<compile_context>
chip_gen: v6e
topology: v6e:2x2x1
jax: 0.10.0
libtpu: 0.0.40
codegen_flags: <defaults>
</compile_context>

<pallas_src>
from functools import partial

import jax
import jax.numpy as jnp
from jax.experimental import pallas as pl
from jax.experimental.pallas import tpu as pltpu

# ---------------- small, deterministic configuration ----------------
N_USERS = 48
N_ITEMS = 80
N_NODES = N_USERS + N_ITEMS          # 128
EMB = 128                            # args_config.dim
HOPS = 2                             # args_config.context_hops
L = HOPS + 1
BATCH = 8
N_NEGS = 4                           # args_config.n_negs
K = 2                                # args_config.K
WARMUP = 100
BETA = 0.05
EPS = 0.01                           # args_config.eps
GAMMA = 0.5
DECAY = 1e-4                         # args_config.l2
CHOOSE = 1
NS = "novel"
POOL = "mean"
CUR_EPOCH = 10


# =====================================================================
# Kernel 1: fused GCN propagation.
#   One call: keeps `agg` on-chip across hops, writes stacked (L, N, D).
# =====================================================================
def _gcn_kernel(adj_ref, x_ref, out_ref):
    adj = adj_ref[...]                       # (N, N) — one full MXU block
    agg = x_ref[...]                         # (N, D)
    out_ref[0] = agg                         # hop 0 = raw embeddings
    n_hops = out_ref.shape[0] - 1
    for h in range(n_hops):                  # static unroll, agg never leaves chip
        agg = jnp.dot(adj, agg, preferred_element_type=jnp.float32)
        out_ref[h + 1] = agg


def gcn_propagate(adj, user_embed, item_embed):
    all_embed = jnp.concatenate([user_embed, item_embed], axis=0)     # (N, D)
    N, D = all_embed.shape
    stacked = pl.pallas_call(
        _gcn_kernel,
        out_shape=jax.ShapeDtypeStruct((L, N, D), jnp.float32),
        grid=(1,),
        in_specs=[
            pl.BlockSpec((N, N), lambda i: (0, 0)),
            pl.BlockSpec((N, D), lambda i: (0, 0)),
        ],
        out_specs=pl.BlockSpec((L, N, D), lambda i: (0, 0, 0)),
        compiler_params=pltpu.CompilerParams(dimension_semantics=("arbitrary",)),
    )(adj, all_embed)
    embs = jnp.transpose(stacked, (1, 0, 2))                          # (N, L, D)
    return embs[:N_USERS], embs[N_USERS:]


# =====================================================================
# Kernel 2: fully fused negative sampling (all K chunks, both modes).
#   gate  = sigmoid(n_e @ W^T + b)            -- one 192-row MXU matmul
#   low_m = c1[m] * n_e - c2[m] * (n_e*gate)
#   score = sum_d( s_mean[m,k] * low_m )      -- s_mean = (s + s1 + s2)/3
#   idx   = argmax (m=0 / phase) or argmin (m=1 / n) over the NN candidates,
#           first-occurrence tie-break, per (batch, hop) — done in-kernel via
#           max/min + iota one-hot, then the SELECTED embeddings are written
#           directly as a lane-dense (2K, B, L, D) slab.
#   c1/c2 arrive via SMEM -> compile once for all epochs.
# =====================================================================
def _neg_select_kernel(c_ref, n_ref, s_ref, wt_ref, b_ref, out_ref):
    B, KN, LL, D = n_ref.shape               # (B, K*NN, L, D)
    NN = N_NEGS
    Kk = KN // NN

    n_all = n_ref[...]
    flat = n_all.reshape(B * KN * LL, D)     # 192 rows -> single gate matmul
    gate = jax.nn.sigmoid(
        jnp.dot(flat, wt_ref[...], preferred_element_type=jnp.float32) + b_ref[...])
    ng = (flat * gate).reshape(B, KN, LL, D)

    # candidate-index iota, laid out like the (B, NN, L, 1) score tensor
    iota_n = jax.lax.broadcasted_iota(jnp.int32, (B, NN, LL, 1), 1)

    for m in range(2):                       # m=0: phase ("max"), m=1: n ("min")
        c1 = c_ref[2 * m]
        c2 = c_ref[2 * m + 1]
        for k in range(Kk):
            sl = slice(k * NN, (k + 1) * NN)
            n_chunk = n_all[:, sl]                                # (B, NN, L, D)
            low = c1 * n_chunk - c2 * ng[:, sl]                   # (B, NN, L, D)
            s = s_ref[m * Kk + k]                                 # (B, L, D)
            scores = jnp.sum(s[:, None, :, :] * low,
                             axis=-1, keepdims=True)              # (B, NN, L, 1)
            if m == 0:
                best = jnp.max(scores, axis=1, keepdims=True)
                hit = scores >= best
            else:
                best = jnp.min(scores, axis=1, keepdims=True)
                hit = scores <= best
            # first-occurrence index (matches torch.max/min tie-break)
            first = jnp.min(jnp.where(hit, iota_n, NN),
                            axis=1, keepdims=True)                # (B, 1, L, 1)
            onehot = (iota_n == first).astype(jnp.float32)        # (B, NN, L, 1)
            out_ref[m * Kk + k] = jnp.sum(onehot * n_chunk, axis=1)   # (B, L, D)


def neg_sampling_select(c, n_e, s_mean, w_t, b_vec):
    B, KN, LL, D = n_e.shape
    return pl.pallas_call(
        _neg_select_kernel,
        out_shape=jax.ShapeDtypeStruct((2 * K, B, LL, D), jnp.float32),
        grid=(1,),
        in_specs=[
            pl.BlockSpec(memory_space=pltpu.MemorySpace.SMEM),          # (4,) scalars
            pl.BlockSpec((B, KN, LL, D), lambda i: (0, 0, 0, 0)),
            pl.BlockSpec((2 * K, B, LL, D), lambda i: (0, 0, 0, 0)),
            pl.BlockSpec((D, D), lambda i: (0, 0)),
            pl.BlockSpec((1, D), lambda i: (0, 0)),
        ],
        out_specs=pl.BlockSpec((2 * K, B, LL, D), lambda i: (0, 0, 0, 0)),
        compiler_params=pltpu.CompilerParams(dimension_semantics=("arbitrary",)),
    )(c, n_e, s_mean, w_t, b_vec)


# =====================================================================
# Kernel 3: BPR pooling + score reductions.
#   Emits ONE lane-dense (B, 128) slab:
#     col 0        : pos_score
#     cols 1..K    : neg_scores
#     cols 1+K..   : r_scores   (gated "relevant" branch)
#     cols 1+2K..  : ir_scores  (= neg - r, exact by linearity)
#   hard-negative scores are recovered algebraically outside the kernel.
# =====================================================================
def _bpr_kernel(u_ref, pos_ref, pneg_ref, wt_ref, b_ref, out_ref):
    B, Kk, LL, D = pneg_ref.shape
    u_e = jnp.mean(u_ref[...], axis=1)                    # (B, D)  mean pool over hops
    pos_e = jnp.mean(pos_ref[...], axis=1)                # (B, D)
    pneg = pneg_ref[...]                                  # (B, K, L, D)
    neg_e = jnp.mean(pneg, axis=2)                        # (B, K, D)

    flat = pneg.reshape(B * Kk * LL, D)                   # 48-row gate matmul
    gate = jax.nn.sigmoid(
        jnp.dot(flat, wt_ref[...], preferred_element_type=jnp.float32) + b_ref[...])
    r_e = jnp.mean((flat * gate).reshape(B, Kk, LL, D), axis=2)   # (B, K, D)

    pos_s = jnp.sum(u_e * pos_e, axis=1, keepdims=True)           # (B, 1)
    neg_s = jnp.sum(u_e[:, None, :] * neg_e, axis=-1)             # (B, K)
    r_s = jnp.sum(u_e[:, None, :] * r_e, axis=-1)                 # (B, K)
    ir_s = neg_s - r_s                                            # pooling & dot are linear

    out_ref[...] = jnp.zeros_like(out_ref)
    out_ref[:, 0:1] = pos_s
    out_ref[:, 1:1 + Kk] = neg_s
    out_ref[:, 1 + Kk:1 + 2 * Kk] = r_s
    out_ref[:, 1 + 2 * Kk:1 + 3 * Kk] = ir_s


def bpr_scores(u_gcn, pos_gcn, p_neg, w_t, b_vec):
    B, LL, D = u_gcn.shape
    Kk = p_neg.shape[1]
    return pl.pallas_call(
        _bpr_kernel,
        out_shape=jax.ShapeDtypeStruct((B, 128), jnp.float32),
        grid=(1,),
        in_specs=[
            pl.BlockSpec((B, LL, D), lambda i: (0, 0, 0)),
            pl.BlockSpec((B, LL, D), lambda i: (0, 0, 0)),
            pl.BlockSpec((B, Kk, LL, D), lambda i: (0, 0, 0, 0)),
            pl.BlockSpec((D, D), lambda i: (0, 0)),
            pl.BlockSpec((1, D), lambda i: (0, 0)),
        ],
        out_specs=pl.BlockSpec((B, 128), lambda i: (0, 0)),
        compiler_params=pltpu.CompilerParams(dimension_semantics=("arbitrary",)),
    )(u_gcn, pos_gcn, p_neg, w_t, b_vec)


# =====================================================================
# Plain-JAX glue reproducing LightGCN1.forward semantics
# =====================================================================
def _noisy_user_mean(s_e, key, eps):
    """(s_e + s_e1 + s_e2)/3 — the averaged (clean, +noise, -noise) user embedding."""
    k1, k2 = jax.random.split(key)
    n1 = jax.random.uniform(k1, s_e.shape, dtype=s_e.dtype)
    n2 = jax.random.uniform(k2, s_e.shape, dtype=s_e.dtype)
    n1 = n1 / jnp.maximum(jnp.linalg.norm(n1, axis=-1, keepdims=True), 1e-12)
    n2 = n2 / jnp.maximum(jnp.linalg.norm(n2, axis=-1, keepdims=True), 1e-12)
    s1 = s_e + jnp.sign(s_e) * n1 * eps
    s2 = s_e - jnp.sign(s_e) * n2 * eps
    return (s_e + s1 + s2) / 3.0


def fused_negative_sampling(user_gcn_emb, item_gcn_emb, user, neg_item,
                            w_t, b_vec, cur_epoch, key):
    """Both 'novel' (argmax) and 'n' (argmin) sampling for all K chunks in one kernel."""
    s_e = user_gcn_emb[user]                                  # (B, L, D)
    n_e = item_gcn_emb[neg_item]                              # (B, K*NN, L, D)

    # Pre-averaged noisy user embeddings, fresh noise per (mode, k) like the
    # original per-call torch.rand_like.  mode 0: phase (eps=0.005), mode 1: n (eps=EPS).
    s_mean = jnp.stack(
        [_noisy_user_mean(s_e, jax.random.fold_in(key, m * K + k), eps)
         for m, eps in enumerate((0.005, EPS)) for k in range(K)],
        axis=0)                                               # (2*K, B, L, D)

    t_phase = min(0.6, cur_epoch / WARMUP)
    t_n = min(1.0, cur_epoch / WARMUP)
    # (c1, c2) per mode, via SMEM so the kernel never recompiles across epochs.
    c = jnp.array([1.0 - t_phase, t_phase, 1.0 - t_n, 1.0], dtype=jnp.float32)

    selected = neg_sampling_select(c, n_e, s_mean, w_t, b_vec)   # (2*K, B, L, D)

    neg_gcn_embs = jnp.transpose(selected[:K], (1, 0, 2, 3))     # (B, K, L, D)
    n_neg_gcn_embs = jnp.transpose(selected[K:], (1, 0, 2, 3))   # (B, K, L, D)
    return neg_gcn_embs, n_neg_gcn_embs


def create_bpr_loss(cur_epoch, user_gcn_emb, pos_gcn_embs, p_neg_gcn_embs,
                    n_neg_gcn_embs, w_t, b_vec):
    batch_size = user_gcn_emb.shape[0]

    slab = bpr_scores(user_gcn_emb, pos_gcn_embs, p_neg_gcn_embs, w_t, b_vec)  # (B, 128)
    pos_scores = slab[:, 0:1]                   # (B, 1)
    neg_scores = slab[:, 1:1 + K]               # (B, K)
    r_scores = slab[:, 1 + K:1 + 2 * K]         # (B, K)
    ir_scores = slab[:, 1 + 2 * K:1 + 3 * K]    # (B, K)

    # hard_gcn_embs is never built: pooling & the u·x dot are linear, so
    # score(hard) = hard_coef * score(pos) + neg_scale * score(p_neg).
    neg_scale = (1.0 - min(0.9, cur_epoch / (WARMUP + 50))) \
        if cur_epoch / WARMUP > BETA else 1.0
    hard_coef = min(0.9, max(0.0, cur_epoch / (WARMUP + 50)))
    hard_neg_scores = hard_coef * pos_scores + neg_scale * neg_scores

    if CHOOSE == 1:
        coef = max(-0.25, 1.5 - 1.0 * cur_epoch / WARMUP)
        mf_loss = coef * jnp.mean(
            jnp.log(1.0 + jnp.sum(jnp.exp(hard_neg_scores - pos_scores), axis=1)))
    elif CHOOSE == 2:
        coef = max(-0.25, 1.5 - 1.0 * cur_epoch / 100)
        mf_loss = coef * jnp.mean(
            jnp.log(1.0 + jnp.sum(jnp.exp(neg_scores - pos_scores), axis=1)))
    else:
        mf_loss = jnp.mean(
            jnp.log(1.0 + jnp.sum(jnp.exp(hard_neg_scores - pos_scores), axis=1)))

    if NS == "novel" and GAMMA > 0.0:
        mf_loss = mf_loss + GAMMA * jnp.mean(
            jnp.log(1.0 + jnp.sum(jnp.exp(r_scores - ir_scores), axis=1)))

    regularize = (
        jnp.sum(user_gcn_emb[:, 0, :] ** 2)
        + jnp.sum(pos_gcn_embs[:, 0, :] ** 2)
        + jnp.sum(p_neg_gcn_embs[:, :, 0, :] ** 2)
        + jnp.sum(n_neg_gcn_embs[:, :, 0, :] ** 2)
    ) / 2.0
    emb_loss = DECAY * regularize / batch_size
    return mf_loss + emb_loss, mf_loss, emb_loss


@partial(jax.jit, static_argnums=(3,))
def lightgcn_forward(params, adj, batch, cur_epoch):
    user = batch["users"]
    pos_item = batch["pos_items"]
    neg_item = batch["neg_items"]

    user_gcn_emb, item_gcn_emb = gcn_propagate(
        adj, params["user_embed"], params["item_embed"])

    w_t = params["neg_gate_w"].T           # (in, out) so kernels do x @ W^T + b
    b_vec = params["neg_gate_b"][None, :]  # (1, D)

    neg_gcn_embs, n_neg_gcn_embs = fused_negative_sampling(
        user_gcn_emb, item_gcn_emb, user, neg_item, w_t, b_vec, cur_epoch,
        jax.random.PRNGKey(1000))

    return create_bpr_loss(cur_epoch, user_gcn_emb[user], item_gcn_emb[pos_item],
                           neg_gcn_embs, n_neg_gcn_embs, w_t, b_vec)


# =====================================================================
if __name__ == "__main__":
    key = jax.random.PRNGKey(0)
    k_u, k_i, k_w, k_b, k_bias, k_adj, k_batch = jax.random.split(key, 7)

    def xavier(k, shape):
        bound = (6.0 / (shape[0] + shape[1])) ** 0.5
        return jax.random.uniform(k, shape, jnp.float32, -bound, bound)

    params = {
        "user_embed": xavier(k_u, (N_USERS, EMB)),
        "item_embed": xavier(k_i, (N_ITEMS, EMB)),
        "neg_gate_w": xavier(k_w, (EMB, EMB)),   # torch Linear weight (out, in)
        "neg_gate_b": jax.random.uniform(
            k_b, (EMB,), jnp.float32, -1.0 / EMB ** 0.5, 1.0 / EMB ** 0.5),
        # remaining module parameters (bias, user/item/pos gates, mlp_q/p) are
        # not used by forward(); bias kept for parity.
        "bias": xavier(k_bias, (1, N_USERS)),
    }

    # dense symmetric-normalized bipartite adjacency (stand-in for sparse_norm_adj)
    r = (jax.random.uniform(k_adj, (N_USERS, N_ITEMS)) < 0.1).astype(jnp.float32)
    adj = jnp.zeros((N_NODES, N_NODES), jnp.float32)
    adj = adj.at[:N_USERS, N_USERS:].set(r)
    adj = adj.at[N_USERS:, :N_USERS].set(r.T)
    deg = jnp.sum(adj, axis=1)
    d_inv_sqrt = jnp.where(deg > 0, 1.0 / jnp.sqrt(jnp.maximum(deg, 1e-12)), 0.0)
    adj = adj * d_inv_sqrt[:, None] * d_inv_sqrt[None, :]

    kb1, kb2, kb3 = jax.random.split(k_batch, 3)
    batch = {
        "users": jax.random.randint(kb1, (BATCH,), 0, N_USERS),
        "pos_items": jax.random.randint(kb2, (BATCH,), 0, N_ITEMS),
        "neg_items": jax.random.randint(kb3, (BATCH, K * N_NEGS), 0, N_ITEMS),
    }

    loss, mf_loss, emb_loss = lightgcn_forward(params, adj, batch, CUR_EPOCH)
    jax.block_until_ready(loss)
    print("KERNEL_OK")
</pallas_src>

<mosaic_0001>
module attributes {stable_mosaic.version = 11 : i64} {
  func.func @_gcn_kernel(%arg0: i32, %arg1: memref<128x128xf32, #tpu.memory_space<vmem>>, %arg2: memref<128x128xf32, #tpu.memory_space<vmem>>, %arg3: memref<3x128x128xf32, #tpu.memory_space<vmem>>) attributes {dimension_semantics = [#tpu.dimension_semantics<arbitrary>], iteration_bounds = array<i64: 1>, scalar_prefetch = 0 : i64, scratch_operands = 0 : i64, tpu.core_type = #tpu.core_type<tc>, window_params = [{pipeline_mode = #tpu.pipeline_mode<synchronous>, transform_indices = @transform_0, window_bounds = array<i64: 128, 128>}, {pipeline_mode = #tpu.pipeline_mode<synchronous>, transform_indices = @transform_1, window_bounds = array<i64: 128, 128>}, {pipeline_mode = #tpu.pipeline_mode<synchronous>, transform_indices = @transform_2, window_bounds = array<i64: 3, 128, 128>}]} {
    %c0 = arith.constant 0 : index
    %c0_0 = arith.constant 0 : index
    %0 = vector.load %arg1[%c0, %c0_0] : memref<128x128xf32, #tpu.memory_space<vmem>>, vector<128x128xf32>
    %c0_1 = arith.constant 0 : index
    %c0_2 = arith.constant 0 : index
    %1 = vector.load %arg2[%c0_1, %c0_2] : memref<128x128xf32, #tpu.memory_space<vmem>>, vector<128x128xf32>
    %c0_3 = arith.constant 0 : index
    %c0_4 = arith.constant 0 : index
    %c0_5 = arith.constant 0 : index
    %2 = vector.load %arg3[%c0_3, %c0_4, %c0_5] : memref<3x128x128xf32, #tpu.memory_space<vmem>>, vector<1x128x128xf32>
    %3 = vector.shape_cast %2 : vector<1x128x128xf32> to vector<128x128xf32>
    %4 = vector.shape_cast %1 : vector<128x128xf32> to vector<1x128x128xf32>
    tpu.vector_store %arg3[%c0_3, %c0_4, %c0_5], %4 {strides = array<i32>} : memref<3x128x128xf32, #tpu.memory_space<vmem>>, vector<1x128x128xf32>,
    %cst = arith.constant dense<0.000000e+00> : vector<128x128xf32>
    %5 = tpu.matmul %0, %1, %cst {dimension_numbers = #tpu.dot_dimension_numbers<[1], [0], [0], [1], [0, 0, 1, 1], [], []>} : vector<128x128xf32>, vector<128x128xf32>, vector<128x128xf32> -> vector<128x128xf32>
    %c1 = arith.constant 1 : index
    %c0_6 = arith.constant 0 : index
    %c0_7 = arith.constant 0 : index
    %6 = vector.load %arg3[%c1, %c0_6, %c0_7] : memref<3x128x128xf32, #tpu.memory_space<vmem>>, vector<1x128x128xf32>
    %7 = vector.shape_cast %6 : vector<1x128x128xf32> to vector<128x128xf32>
    %8 = vector.shape_cast %5 : vector<128x128xf32> to vector<1x128x128xf32>
    tpu.vector_store %arg3[%c1, %c0_6, %c0_7], %8 {strides = array<i32>} : memref<3x128x128xf32, #tpu.memory_space<vmem>>, vector<1x128x128xf32>,
    %cst_8 = arith.constant dense<0.000000e+00> : vector<128x128xf32>
    %9 = tpu.matmul %0, %5, %cst_8 {dimension_numbers = #tpu.dot_dimension_numbers<[1], [0], [0], [1], [0, 0, 1, 1], [], []>} : vector<128x128xf32>, vector<128x128xf32>, vector<128x128xf32> -> vector<128x128xf32>
    %c2 = arith.constant 2 : index
    %c0_9 = arith.constant 0 : index
    %c0_10 = arith.constant 0 : index
    %10 = vector.load %arg3[%c2, %c0_9, %c0_10] : memref<3x128x128xf32, #tpu.memory_space<vmem>>, vector<1x128x128xf32>
    %11 = vector.shape_cast %10 : vector<1x128x128xf32> to vector<128x128xf32>
    %12 = vector.shape_cast %9 : vector<128x128xf32> to vector<1x128x128xf32>
    tpu.vector_store %arg3[%c2, %c0_9, %c0_10], %12 {strides = array<i32>} : memref<3x128x128xf32, #tpu.memory_space<vmem>>, vector<1x128x128xf32>,
    return
  }
  func.func @transform_0(%arg0: i32) -> (i32, i32) {
    %c0_i32 = arith.constant 0 : i32
    %c0_i32_0 = arith.constant 0 : i32
    %c0_i32_1 = arith.constant 0 : i32
    return %c0_i32, %c0_i32_0 : i32, i32
  }
  func.func @transform_1(%arg0: i32) -> (i32, i32) {
    %c0_i32 = arith.constant 0 : i32
    %c0_i32_0 = arith.constant 0 : i32
    %c0_i32_1 = arith.constant 0 : i32
    return %c0_i32, %c0_i32_0 : i32, i32
  }
  func.func @transform_2(%arg0: i32) -> (i32, i32, i32) {
    %c0_i32 = arith.constant 0 : i32
    %c0_i32_0 = arith.constant 0 : i32
    %c0_i32_1 = arith.constant 0 : i32
    %c0_i32_2 = arith.constant 0 : i32
    return %c0_i32, %c0_i32_0, %c0_i32_1 : i32, i32, i32
  }
}

module attributes {stable_mosaic.version = 11 : i64} {
  func.func @_neg_select_kernel(%arg0: i32, %arg1: memref<4xf32, #tpu.memory_space<smem>>, %arg2: memref<8x8x3x128xf32, #tpu.memory_space<vmem>>, %arg3: memref<4x8x3x128xf32, #tpu.memory_space<vmem>>, %arg4: memref<128x128xf32, #tpu.memory_space<vmem>>, %arg5: memref<1x128xf32, #tpu.memory_space<vmem>>, %arg6: memref<4x8x3x128xf32, #tpu.memory_space<vmem>>) attributes {dimension_semantics = [#tpu.dimension_semantics<arbitrary>], iteration_bounds = array<i64: 1>, scalar_prefetch = 0 : i64, scratch_operands = 0 : i64, tpu.core_type = #tpu.core_type<tc>, window_params = [{transform_indices = @transform_0, window_bounds = array<i64: 4>}, {pipeline_mode = #tpu.pipeline_mode<synchronous>, transform_indices = @transform_1, window_bounds = array<i64: 8, 8, 3, 128>}, {pipeline_mode = #tpu.pipeline_mode<synchronous>, transform_indices = @transform_2, window_bounds = array<i64: 4, 8, 3, 128>}, {pipeline_mode = #tpu.pipeline_mode<synchronous>, transform_indices = @transform_3, window_bounds = array<i64: 128, 128>}, {pipeline_mode = #tpu.pipeline_mode<synchronous>, transform_indices = @transform_4, window_bounds = array<i64: 1, 128>}, {pipeline_mode = #tpu.pipeline_mode<synchronous>, transform_indices = @transform_5, window_bounds = array<i64: 4, 8, 3, 128>}]} {
    %c0 = arith.constant 0 : index
    %c0_0 = arith.constant 0 : index
    %c0_1 = arith.constant 0 : index
    %c0_2 = arith.constant 0 : index
    %0 = vector.load %arg2[%c0, %c0_0, %c0_1, %c0_2] : memref<8x8x3x128xf32, #tpu.memory_space<vmem>>, vector<8x8x3x128xf32>
    %1 = vector.shape_cast %0 : vector<8x8x3x128xf32> to vector<192x128xf32>
    %c0_3 = arith.constant 0 : index
    %c0_4 = arith.constant 0 : index
    %2 = vector.load %arg4[%c0_3, %c0_4] : memref<128x128xf32, #tpu.memory_space<vmem>>, vector<128x128xf32>
    %cst = arith.constant dense<0.000000e+00> : vector<192x128xf32>
    %3 = tpu.matmul %1, %2, %cst {dimension_numbers = #tpu.dot_dimension_numbers<[1], [0], [0], [1], [0, 0, 1, 1], [], []>} : vector<192x128xf32>, vector<128x128xf32>, vector<192x128xf32> -> vector<192x128xf32>
    %c0_5 = arith.constant 0 : index
    %c0_6 = arith.constant 0 : index
    %4 = vector.load %arg5[%c0_5, %c0_6] : memref<1x128xf32, #tpu.memory_space<vmem>>, vector<1x128xf32>
    %5 = vector.broadcast %4 : vector<1x128xf32> to vector<192x128xf32>
    %6 = arith.addf %3, %5 : vector<192x128xf32>
    %7 = arith.negf %6 : vector<192x128xf32>
    %8 = math.exp %7 : vector<192x128xf32>
    %cst_7 = arith.constant 1.000000e+00 : f32
    %9 = vector.broadcast %cst_7 : f32 to vector<192x128xf32>
    %10 = arith.addf %9, %8 : vector<192x128xf32>
    %11 = arith.divf %9, %10 : vector<192x128xf32>
    %12 = arith.mulf %1, %11 : vector<192x128xf32>
    %13 = vector.shape_cast %12 : vector<192x128xf32> to vector<8x8x3x128xf32>
    %14 = tpu.iota {dimensions = array<i32: 1>} : vector<8x4x3x1xi32>
    %c0_8 = arith.constant 0 : index
    %15 = memref.load %arg1[%c0_8] : memref<4xf32, #tpu.memory_space<smem>>
    %c1 = arith.constant 1 : index
    %16 = memref.load %arg1[%c1] : memref<4xf32, #tpu.memory_space<smem>>
    %17 = vector.extract_strided_slice %0 {offsets = [0, 0, 0, 0], sizes = [8, 4, 3, 128], strides = [1, 1, 1, 1]} : vector<8x8x3x128xf32> to vector<8x4x3x128xf32>
    %18 = vector.broadcast %15 : f32 to vector<8x4x3x128xf32>
    %19 = arith.mulf %18, %17 : vector<8x4x3x128xf32>
    %20 = vector.extract_strided_slice %13 {offsets = [0, 0, 0, 0], sizes = [8, 4, 3, 128], strides = [1, 1, 1, 1]} : vector<8x8x3x128xf32> to vector<8x4x3x128xf32>
    %21 = vector.broadcast %16 : f32 to vector<8x4x3x128xf32>
    %22 = arith.mulf %21, %20 : vector<8x4x3x128xf32>
    %23 = arith.subf %19, %22 : vector<8x4x3x128xf32>
    %c0_9 = arith.constant 0 : index
    %c0_10 = arith.constant 0 : index
    %c0_11 = arith.constant 0 : index
    %c0_12 = arith.constant 0 : index
    %24 = vector.load %arg3[%c0_9, %c0_10, %c0_11, %c0_12] : memref<4x8x3x128xf32, #tpu.memory_space<vmem>>, vector<1x8x3x128xf32>
    %25 = vector.shape_cast %24 : vector<1x8x3x128xf32> to vector<8x3x128xf32>
    %26 = vector.shape_cast %25 : vector<8x3x128xf32> to vector<8x1x3x128xf32>
    %27 = vector.broadcast %26 : vector<8x1x3x128xf32> to vector<8x4x3x128xf32>
    %28 = arith.mulf %27, %23 : vector<8x4x3x128xf32>
    %cst_13 = arith.constant dense<0.000000e+00> : vector<8x4x3xf32>
    %29 = vector.multi_reduction <add>, %28, %cst_13 [3] : vector<8x4x3x128xf32> to vector<8x4x3xf32>
    %30 = vector.shape_cast %29 : vector<8x4x3xf32> to vector<8x4x3x1xf32>
    %cst_14 = arith.constant dense<0xFF800000> : vector<8x3x1xf32>
    %31 = vector.multi_reduction <maximumf>, %30, %cst_14 [1] : vector<8x4x3x1xf32> to vector<8x3x1xf32>
    %32 = vector.shape_cast %31 : vector<8x3x1xf32> to vector<8x1x3x1xf32>
    %33 = vector.broadcast %32 : vector<8x1x3x1xf32> to vector<8x4x3x1xf32>
    %34 = arith.cmpf oge, %30, %33 : vector<8x4x3x1xf32>
    %c4_i32 = arith.constant 4 : i32
    %35 = vector.broadcast %c4_i32 : i32 to vector<8x4x3x1xi32>
    %36 = arith.select %34, %14, %35 : vector<8x4x3x1xi1>, vector<8x4x3x1xi32>
    %cst_15 = arith.constant dense<2147483647> : vector<8x3x1xi32>
    %37 = vector.multi_reduction <minsi>, %36, %cst_15 [1] : vector<8x4x3x1xi32> to vector<8x3x1xi32>
    %38 = vector.shape_cast %37 : vector<8x3x1xi32> to vector<8x1x3x1xi32>
    %39 = vector.broadcast %38 : vector<8x1x3x1xi32> to vector<8x4x3x1xi32>
    %40 = arith.cmpi eq, %14, %39 : vector<8x4x3x1xi32>
    %41 = arith.extui %40 : vector<8x4x3x1xi1> to vector<8x4x3x1xi32>
    %42 = arith.sitofp %41 : vector<8x4x3x1xi32> to vector<8x4x3x1xf32>
    %43 = vector.broadcast %42 : vector<8x4x3x1xf32> to vector<8x4x3x128xf32>
    %44 = arith.mulf %43, %17 : vector<8x4x3x128xf32>
    %cst_16 = arith.constant dense<0.000000e+00> : vector<8x3x128xf32>
    %45 = vector.multi_reduction <add>, %44, %cst_16 [1] : vector<8x4x3x128xf32> to vector<8x3x128xf32>
    %c0_17 = arith.constant 0 : index
    %c0_18 = arith.constant 0 : index
    %c0_19 = arith.constant 0 : index
    %c0_20 = arith.constant 0 : index
    %46 = vector.load %arg6[%c0_17, %c0_18, %c0_19, %c0_20] : memref<4x8x3x128xf32, #tpu.memory_space<vmem>>, vector<1x8x3x128xf32>
    %47 = vector.shape_cast %46 : vector<1x8x3x128xf32> to vector<8x3x128xf32>
    %48 = vector.shape_cast %45 : vector<8x3x128xf32> to vector<1x8x3x128xf32>
    tpu.vector_store %arg6[%c0_17, %c0_18, %c0_19, %c0_20], %48 {strides = array<i32>} : memref<4x8x3x128xf32, #tpu.memory_space<vmem>>, vector<1x8x3x128xf32>,
    %49 = vector.extract_strided_slice %0 {offsets = [0, 4, 0, 0], sizes = [8, 4, 3, 128], strides = [1, 1, 1, 1]} : vector<8x8x3x128xf32> to vector<8x4x3x128xf32>
    %50 = vector.broadcast %15 : f32 to vector<8x4x3x128xf32>
    %51 = arith.mulf %50, %49 : vector<8x4x3x128xf32>
    %52 = vector.extract_strided_slice %13 {offsets = [0, 4, 0, 0], sizes = [8, 4, 3, 128], strides = [1, 1, 1, 1]} : vector<8x8x3x128xf32> to vector<8x4x3x128xf32>
    %53 = vector.broadcast %16 : f32 to vector<8x4x3x128xf32>
    %54 = arith.mulf %53, %52 : vector<8x4x3x128xf32>
    %55 = arith.subf %51, %54 : vector<8x4x3x128xf32>
    %c1_21 = arith.constant 1 : index
    %c0_22 = arith.constant 0 : index
    %c0_23 = arith.constant 0 : index
    %c0_24 = arith.constant 0 : index
    %56 = vector.load %arg3[%c1_21, %c0_22, %c0_23, %c0_24] : memref<4x8x3x128xf32, #tpu.memory_space<vmem>>, vector<1x8x3x128xf32>
    %57 = vector.shape_cast %56 : vector<1x8x3x128xf32> to vector<8x3x128xf32>
    %58 = vector.shape_cast %57 : vector<8x3x128xf32> to vector<8x1x3x128xf32>
    %59 = vector.broadcast %58 : vector<8x1x3x128xf32> to vector<8x4x3x128xf32>
    %60 = arith.mulf %59, %55 : vector<8x4x3x128xf32>
    %cst_25 = arith.constant dense<0.000000e+00> : vector<8x4x3xf32>
    %61 = vector.multi_reduction <add>, %60, %cst_25 [3] : vector<8x4x3x128xf32> to vector<8x4x3xf32>
    %62 = vector.shape_cast %61 : vector<8x4x3xf32> to vector<8x4x3x1xf32>
    %cst_26 = arith.constant dense<0xFF800000> : vector<8x3x1xf32>
    %63 = vector.multi_reduction <maximumf>, %62, %cst_26 [1] : vector<8x4x3x1xf32> to vector<8x3x1xf32>
    %64 = vector.shape_cast %63 : vector<8x3x1xf32> to vector<8x1x3x1xf32>
    %65 = vector.broadcast %64 : vector<8x1x3x1xf32> to vector<8x4x3x1xf32>
    %66 = arith.cmpf oge, %62, %65 : vector<8x4x3x1xf32>
    %c4_i32_27 = arith.constant 4 : i32
    %67 = vector.broadcast %c4_i32_27 : i32 to vector<8x4x3x1xi32>
    %68 = arith.select %66, %14, %67 : vector<8x4x3x1xi1>, vector<8x4x3x1xi32>
    %cst_28 = arith.constant dense<2147483647> : vector<8x3x1xi32>
    %69 = vector.multi_reduction <minsi>, %68, %cst_28 [1] : vector<8x4x3x1xi32> to vector<8x3x1xi32>
    %70 = vector.shape_cast %69 : vector<8x3x1xi32> to vector<8x1x3x1xi32>
    %71 = vector.broadcast %70 : vector<8x1x3x1xi32> to vector<8x4x3x1xi32>
    %72 = arith.cmpi eq, %14, %71 : vector<8x4x3x1xi32>
    %73 = arith.extui %72 : vector<8x4x3x1xi1> to vector<8x4x3x1xi32>
    %74 = arith.sitofp %73 : vector<8x4x3x1xi32> to vector<8x4x3x1xf32>
    %75 = vector.broadcast %74 : vector<8x4x3x1xf32> to vector<8x4x3x128xf32>
    %76 = arith.mulf %75, %49 : vector<8x4x3x128xf32>
    %cst_29 = arith.constant dense<0.000000e+00> : vector<8x3x128xf32>
    %77 = vector.multi_reduction <add>, %76, %cst_29 [1] : vector<8x4x3x128xf32> to vector<8x3x128xf32>
    %c1_30 = arith.constant 1 : index
    %c0_31 = arith.constant 0 : index
    %c0_32 = arith.constant 0 : index
    %c0_33 = arith.constant 0 : index
    %78 = vector.load %arg6[%c1_30, %c0_31, %c0_32, %c0_33] : memref<4x8x3x128xf32, #tpu.memory_space<vmem>>, vector<1x8x3x128xf32>
    %79 = vector.shape_cast %78 : vector<1x8x3x128xf32> to vector<8x3x128xf32>
    %80 = vector.shape_cast %77 : vector<8x3x128xf32> to vector<1x8x3x128xf32>
    tpu.vector_store %arg6[%c1_30, %c0_31, %c0_32, %c0_33], %80 {strides = array<i32>} : memref<4x8x3x128xf32, #tpu.memory_space<vmem>>, vector<1x8x3x128xf32>,
    %c2 = arith.constant 2 : index
    %81 = memref.load %arg1[%c2] : memref<4xf32, #tpu.memory_space<smem>>
    %c3 = arith.constant 3 : index
    %82 = memref.load %arg1[%c3] : memref<4xf32, #tpu.memory_space<smem>>
    %83 = vector.extract_strided_slice %0 {offsets = [0, 0, 0, 0], sizes = [8, 4, 3, 128], strides = [1, 1, 1, 1]} : vector<8x8x3x128xf32> to vector<8x4x3x128xf32>
    %84 = vector.broadcast %81 : f32 to vector<8x4x3x128xf32>
    %85 = arith.mulf %84, %83 : vector<8x4x3x128xf32>
    %86 = vector.extract_strided_slice %13 {offsets = [0, 0, 0, 0], sizes = [8, 4, 3, 128], strides = [1, 1, 1, 1]} : vector<8x8x3x128xf32> to vector<8x4x3x128xf32>
    %87 = vector.broadcast %82 : f32 to vector<8x4x3x128xf32>
    %88 = arith.mulf %87, %86 : vector<8x4x3x128xf32>
    %89 = arith.subf %85, %88 : vector<8x4x3x128xf32>
    %c2_34 = arith.constant 2 : index
    %c0_35 = arith.constant 0 : index
    %c0_36 = arith.constant 0 : index
    %c0_37 = arith.constant 0 : index
    %90 = vector.load %arg3[%c2_34, %c0_35, %c0_36, %c0_37] : memref<4x8x3x128xf32, #tpu.memory_space<vmem>>, vector<1x8x3x128xf32>
    %91 = vector.shape_cast %90 : vector<1x8x3x128xf32> to vector<8x3x128xf32>
    %92 = vector.shape_cast %91 : vector<8x3x128xf32> to vector<8x1x3x128xf32>
    %93 = vector.broadcast %92 : vector<8x1x3x128xf32> to vector<8x4x3x128xf32>
    %94 = arith.mulf %93, %89 : vector<8x4x3x128xf32>
    %cst_38 = arith.constant dense<0.000000e+00> : vector<8x4x3xf32>
    %95 = vector.multi_reduction <add>, %94, %cst_38 [3] : vector<8x4x3x128xf32> to vector<8x4x3xf32>
    %96 = vector.shape_cast %95 : vector<8x4x3xf32> to vector<8x4x3x1xf32>
    %cst_39 = arith.constant dense<0x7F800000> : vector<8x3x1xf32>
    %97 = vector.multi_reduction <minimumf>, %96, %cst_39 [1] : vector<8x4x3x1xf32> to vector<8x3x1xf32>
    %98 = vector.shape_cast %97 : vector<8x3x1xf32> to vector<8x1x3x1xf32>
    %99 = vector.broadcast %98 : vector<8x1x3x1xf32> to vector<8x4x3x1xf32>
    %100 = arith.cmpf ole, %96, %99 : vector<8x4x3x1xf32>
    %c4_i32_40 = arith.constant 4 : i32
    %101 = vector.broadcast %c4_i32_40 : i32 to vector<8x4x3x1xi32>
    %102 = arith.select %100, %14, %101 : vector<8x4x3x1xi1>, vector<8x4x3x1xi32>
    %cst_41 = arith.constant dense<2147483647> : vector<8x3x1xi32>
    %103 = vector.multi_reduction <minsi>, %102, %cst_41 [1] : vector<8x4x3x1xi32> to vector<8x3x1xi32>
    %104 = vector.shape_cast %103 : vector<8x3x1xi32> to vector<8x1x3x1xi32>
    %105 = vector.broadcast %104 : vector<8x1x3x1xi32> to vector<8x4x3x1xi32>
    %106 = arith.cmpi eq, %14, %105 : vector<8x4x3x1xi32>
    %107 = arith.extui %106 : vector<8x4x3x1xi1> to vector<8x4x3x1xi32>
    %108 = arith.sitofp %107 : vector<8x4x3x1xi32> to vector<8x4x3x1xf32>
    %109 = vector.broadcast %108 : vector<8x4x3x1xf32> to vector<8x4x3x128xf32>
    %110 = arith.mulf %109, %83 : vector<8x4x3x128xf32>
    %cst_42 = arith.constant dense<0.000000e+00> : vector<8x3x128xf32>
    %111 = vector.multi_reduction <add>, %110, %cst_42 [1] : vector<8x4x3x128xf32> to vector<8x3x128xf32>
    %c2_43 = arith.constant 2 : index
    %c0_44 = arith.constant 0 : index
    %c0_45 = arith.constant 0 : index
    %c0_46 = arith.constant 0 : index
    %112 = vector.load %arg6[%c2_43, %c0_44, %c0_45, %c0_46] : memref<4x8x3x128xf32, #tpu.memory_space<vmem>>, vector<1x8x3x128xf32>
    %113 = vector.shape_cast %112 : vector<1x8x3x128xf32> to vector<8x3x128xf32>
    %114 = vector.shape_cast %111 : vector<8x3x128xf32> to vector<1x8x3x128xf32>
    tpu.vector_store %arg6[%c2_43, %c0_44, %c0_45, %c0_46], %114 {strides = array<i32>} : memref<4x8x3x128xf32, #tpu.memory_space<vmem>>, vector<1x8x3x128xf32>,
    %115 = vector.extract_strided_slice %0 {offsets = [0, 4, 0, 0], sizes = [8, 4, 3, 128], strides = [1, 1, 1, 1]} : vector<8x8x3x128xf32> to vector<8x4x3x128xf32>
    %116 = vector.broadcast %81 : f32 to vector<8x4x3x128xf32>
    %117 = arith.mulf %116, %115 : vector<8x4x3x128xf32>
    %118 = vector.extract_strided_slice %13 {offsets = [0, 4, 0, 0], sizes = [8, 4, 3, 128], strides = [1, 1, 1, 1]} : vector<8x8x3x128xf32> to vector<8x4x3x128xf32>
    %119 = vector.broadcast %82 : f32 to vector<8x4x3x128xf32>
    %120 = arith.mulf %119, %118 : vector<8x4x3x128xf32>
    %121 = arith.subf %117, %120 : vector<8x4x3x128xf32>
    %c3_47 = arith.constant 3 : index
    %c0_48 = arith.constant 0 : index
    %c0_49 = arith.constant 0 : index
    %c0_50 = arith.constant 0 : index
    %122 = vector.load %arg3[%c3_47, %c0_48, %c0_49, %c0_50] : memref<4x8x3x128xf32, #tpu.memory_space<vmem>>, vector<1x8x3x128xf32>
    %123 = vector.shape_cast %122 : vector<1x8x3x128xf32> to vector<8x3x128xf32>
    %124 = vector.shape_cast %123 : vector<8x3x128xf32> to vector<8x1x3x128xf32>
    %125 = vector.broadcast %124 : vector<8x1x3x128xf32> to vector<8x4x3x128xf32>
    %126 = arith.mulf %125, %121 : vector<8x4x3x128xf32>
    %cst_51 = arith.constant dense<0.000000e+00> : vector<8x4x3xf32>
    %127 = vector.multi_reduction <add>, %126, %cst_51 [3] : vector<8x4x3x128xf32> to vector<8x4x3xf32>
    %128 = vector.shape_cast %127 : vector<8x4x3xf32> to vector<8x4x3x1xf32>
    %cst_52 = arith.constant dense<0x7F800000> : vector<8x3x1xf32>
    %129 = vector.multi_reduction <minimumf>, %128, %cst_52 [1] : vector<8x4x3x1xf32> to vector<8x3x1xf32>
    %130 = vector.shape_cast %129 : vector<8x3x1xf32> to vector<8x1x3x1xf32>
    %131 = vector.broadcast %130 : vector<8x1x3x1xf32> to vector<8x4x3x1xf32>
    %132 = arith.cmpf ole, %128, %131 : vector<8x4x3x1xf32>
    %c4_i32_53 = arith.constant 4 : i32
    %133 = vector.broadcast %c4_i32_53 : i32 to vector<8x4x3x1xi32>
    %134 = arith.select %132, %14, %133 : vector<8x4x3x1xi1>, vector<8x4x3x1xi32>
    %cst_54 = arith.constant dense<2147483647> : vector<8x3x1xi32>
    %135 = vector.multi_reduction <minsi>, %134, %cst_54 [1] : vector<8x4x3x1xi32> to vector<8x3x1xi32>
    %136 = vector.shape_cast %135 : vector<8x3x1xi32> to vector<8x1x3x1xi32>
    %137 = vector.broadcast %136 : vector<8x1x3x1xi32> to vector<8x4x3x1xi32>
    %138 = arith.cmpi eq, %14, %137 : vector<8x4x3x1xi32>
    %139 = arith.extui %138 : vector<8x4x3x1xi1> to vector<8x4x3x1xi32>
    %140 = arith.sitofp %139 : vector<8x4x3x1xi32> to vector<8x4x3x1xf32>
    %141 = vector.broadcast %140 : vector<8x4x3x1xf32> to vector<8x4x3x128xf32>
    %142 = arith.mulf %141, %115 : vector<8x4x3x128xf32>
    %cst_55 = arith.constant dense<0.000000e+00> : vector<8x3x128xf32>
    %143 = vector.multi_reduction <add>, %142, %cst_55 [1] : vector<8x4x3x128xf32> to vector<8x3x128xf32>
    %c3_56 = arith.constant 3 : index
    %c0_57 = arith.constant 0 : index
    %c0_58 = arith.constant 0 : index
    %c0_59 = arith.constant 0 : index
    %144 = vector.load %arg6[%c3_56, %c0_57, %c0_58, %c0_59] : memref<4x8x3x128xf32, #tpu.memory_space<vmem>>, vector<1x8x3x128xf32>
    %145 = vector.shape_cast %144 : vector<1x8x3x128xf32> to vector<8x3x128xf32>
    %146 = vector.shape_cast %143 : vector<8x3x128xf32> to vector<1x8x3x128xf32>
    tpu.vector_store %arg6[%c3_56, %c0_57, %c0_58, %c0_59], %146 {strides = array<i32>} : memref<4x8x3x128xf32, #tpu.memory_space<vmem>>, vector<1x8x3x128xf32>,
    return
  }
  func.func @transform_0(%arg0: i32) -> i32 {
    %c0_i32 = arith.constant 0 : i32
    %c0_i32_0 = arith.constant 0 : i32
    return %c0_i32 : i32
  }
  func.func @transform_1(%arg0: i32) -> (i32, i32, i32, i32) {
    %c0_i32 = arith.constant 0 : i32
    %c0_i32_0 = arith.constant 0 : i32
    %c0_i32_1 = arith.constant 0 : i32
    %c0_i32_2 = arith.constant 0 : i32
    %c0_i32_3 = arith.constant 0 : i32
    return %c0_i32, %c0_i32_0, %c0_i32_1, %c0_i32_2 : i32, i32, i32, i32
  }
  func.func @transform_2(%arg0: i32) -> (i32, i32, i32, i32) {
    %c0_i32 = arith.constant 0 : i32
    %c0_i32_0 = arith.constant 0 : i32
    %c0_i32_1 = arith.constant 0 : i32
    %c0_i32_2 = arith.constant 0 : i32
    %c0_i32_3 = arith.constant 0 : i32
    return %c0_i32, %c0_i32_0, %c0_i32_1, %c0_i32_2 : i32, i32, i32, i32
  }
  func.func @transform_3(%arg0: i32) -> (i32, i32) {
    %c0_i32 = arith.constant 0 : i32
    %c0_i32_0 = arith.constant 0 : i32
    %c0_i32_1 = arith.constant 0 : i32
    return %c0_i32, %c0_i32_0 : i32, i32
  }
  func.func @transform_4(%arg0: i32) -> (i32, i32) {
    %c0_i32 = arith.constant 0 : i32
    %c0_i32_0 = arith.constant 0 : i32
    %c0_i32_1 = arith.constant 0 : i32
    return %c0_i32, %c0_i32_0 : i32, i32
  }
  func.func @transform_5(%arg0: i32) -> (i32, i32, i32, i32) {
    %c0_i32 = arith.constant 0 : i32
    %c0_i32_0 = arith.constant 0 : i32
    %c0_i32_1 = arith.constant 0 : i32
    %c0_i32_2 = arith.constant 0 : i32
    %c0_i32_3 = arith.constant 0 : i32
    return %c0_i32, %c0_i32_0, %c0_i32_1, %c0_i32_2 : i32, i32, i32, i32
  }
}

module attributes {stable_mosaic.version = 11 : i64} {
  func.func @_bpr_kernel(%arg0: i32, %arg1: memref<8x3x128xf32, #tpu.memory_space<vmem>>, %arg2: memref<8x3x128xf32, #tpu.memory_space<vmem>>, %arg3: memref<8x2x3x128xf32, #tpu.memory_space<vmem>>, %arg4: memref<128x128xf32, #tpu.memory_space<vmem>>, %arg5: memref<1x128xf32, #tpu.memory_space<vmem>>, %arg6: memref<8x128xf32, #tpu.memory_space<vmem>>) attributes {dimension_semantics = [#tpu.dimension_semantics<arbitrary>], iteration_bounds = array<i64: 1>, scalar_prefetch = 0 : i64, scratch_operands = 0 : i64, tpu.core_type = #tpu.core_type<tc>, window_params = [{pipeline_mode = #tpu.pipeline_mode<synchronous>, transform_indices = @transform_0, window_bounds = array<i64: 8, 3, 128>}, {pipeline_mode = #tpu.pipeline_mode<synchronous>, transform_indices = @transform_1, window_bounds = array<i64: 8, 3, 128>}, {pipeline_mode = #tpu.pipeline_mode<synchronous>, transform_indices = @transform_2, window_bounds = array<i64: 8, 2, 3, 128>}, {pipeline_mode = #tpu.pipeline_mode<synchronous>, transform_indices = @transform_3, window_bounds = array<i64: 128, 128>}, {pipeline_mode = #tpu.pipeline_mode<synchronous>, transform_indices = @transform_4, window_bounds = array<i64: 1, 128>}, {pipeline_mode = #tpu.pipeline_mode<synchronous>, transform_indices = @transform_5, window_bounds = array<i64: 8, 128>}]} {
    %c0 = arith.constant 0 : index
    %c0_0 = arith.constant 0 : index
    %c0_1 = arith.constant 0 : index
    %0 = vector.load %arg1[%c0, %c0_0, %c0_1] : memref<8x3x128xf32, #tpu.memory_space<vmem>>, vector<8x3x128xf32>
    %cst = arith.constant dense<0.000000e+00> : vector<8x128xf32>
    %1 = vector.multi_reduction <add>, %0, %cst [1] : vector<8x3x128xf32> to vector<8x128xf32>
    %cst_2 = arith.constant 3.000000e+00 : f32
    %2 = vector.broadcast %cst_2 : f32 to vector<8x128xf32>
    %3 = arith.divf %1, %2 : vector<8x128xf32>
    %c0_3 = arith.constant 0 : index
    %c0_4 = arith.constant 0 : index
    %c0_5 = arith.constant 0 : index
    %4 = vector.load %arg2[%c0_3, %c0_4, %c0_5] : memref<8x3x128xf32, #tpu.memory_space<vmem>>, vector<8x3x128xf32>
    %cst_6 = arith.constant dense<0.000000e+00> : vector<8x128xf32>
    %5 = vector.multi_reduction <add>, %4, %cst_6 [1] : vector<8x3x128xf32> to vector<8x128xf32>
    %cst_7 = arith.constant 3.000000e+00 : f32
    %6 = vector.broadcast %cst_7 : f32 to vector<8x128xf32>
    %7 = arith.divf %5, %6 : vector<8x128xf32>
    %c0_8 = arith.constant 0 : index
    %c0_9 = arith.constant 0 : index
    %c0_10 = arith.constant 0 : index
    %c0_11 = arith.constant 0 : index
    %8 = vector.load %arg3[%c0_8, %c0_9, %c0_10, %c0_11] : memref<8x2x3x128xf32, #tpu.memory_space<vmem>>, vector<8x2x3x128xf32>
    %cst_12 = arith.constant dense<0.000000e+00> : vector<8x2x128xf32>
    %9 = vector.multi_reduction <add>, %8, %cst_12 [2] : vector<8x2x3x128xf32> to vector<8x2x128xf32>
    %cst_13 = arith.constant 3.000000e+00 : f32
    %10 = vector.broadcast %cst_13 : f32 to vector<8x2x128xf32>
    %11 = arith.divf %9, %10 : vector<8x2x128xf32>
    %12 = vector.shape_cast %8 : vector<8x2x3x128xf32> to vector<48x128xf32>
    %c0_14 = arith.constant 0 : index
    %c0_15 = arith.constant 0 : index
    %13 = vector.load %arg4[%c0_14, %c0_15] : memref<128x128xf32, #tpu.memory_space<vmem>>, vector<128x128xf32>
    %cst_16 = arith.constant dense<0.000000e+00> : vector<48x128xf32>
    %14 = tpu.matmul %12, %13, %cst_16 {dimension_numbers = #tpu.dot_dimension_numbers<[1], [0], [0], [1], [0, 0, 1, 1], [], []>} : vector<48x128xf32>, vector<128x128xf32>, vector<48x128xf32> -> vector<48x128xf32>
    %c0_17 = arith.constant 0 : index
    %c0_18 = arith.constant 0 : index
    %15 = vector.load %arg5[%c0_17, %c0_18] : memref<1x128xf32, #tpu.memory_space<vmem>>, vector<1x128xf32>
    %16 = vector.broadcast %15 : vector<1x128xf32> to vector<48x128xf32>
    %17 = arith.addf %14, %16 : vector<48x128xf32>
    %18 = arith.negf %17 : vector<48x128xf32>
    %19 = math.exp %18 : vector<48x128xf32>
    %cst_19 = arith.constant 1.000000e+00 : f32
    %20 = vector.broadcast %cst_19 : f32 to vector<48x128xf32>
    %21 = arith.addf %20, %19 : vector<48x128xf32>
    %22 = arith.divf %20, %21 : vector<48x128xf32>
    %23 = arith.mulf %12, %22 : vector<48x128xf32>
    %24 = vector.shape_cast %23 : vector<48x128xf32> to vector<8x2x3x128xf32>
    %cst_20 = arith.constant dense<0.000000e+00> : vector<8x2x128xf32>
    %25 = vector.multi_reduction <add>, %24, %cst_20 [2] : vector<8x2x3x128xf32> to vector<8x2x128xf32>
    %cst_21 = arith.constant 3.000000e+00 : f32
    %26 = vector.broadcast %cst_21 : f32 to vector<8x2x128xf32>
    %27 = arith.divf %25, %26 : vector<8x2x128xf32>
    %28 = arith.mulf %3, %7 : vector<8x128xf32>
    %cst_22 = arith.constant dense<0.000000e+00> : vector<8xf32>
    %29 = vector.multi_reduction <add>, %28, %cst_22 [1] : vector<8x128xf32> to vector<8xf32>
    %30 = vector.shape_cast %29 : vector<8xf32> to vector<8x1xf32>
    %31 = vector.shape_cast %3 : vector<8x128xf32> to vector<8x1x128xf32>
    %32 = vector.broadcast %31 : vector<8x1x128xf32> to vector<8x2x128xf32>
    %33 = arith.mulf %32, %11 : vector<8x2x128xf32>
    %cst_23 = arith.constant dense<0.000000e+00> : vector<8x2xf32>
    %34 = vector.multi_reduction <add>, %33, %cst_23 [2] : vector<8x2x128xf32> to vector<8x2xf32>
    %35 = vector.shape_cast %3 : vector<8x128xf32> to vector<8x1x128xf32>
    %36 = vector.broadcast %35 : vector<8x1x128xf32> to vector<8x2x128xf32>
    %37 = arith.mulf %36, %27 : vector<8x2x128xf32>
    %cst_24 = arith.constant dense<0.000000e+00> : vector<8x2xf32>
    %38 = vector.multi_reduction <add>, %37, %cst_24 [2] : vector<8x2x128xf32> to vector<8x2xf32>
    %39 = arith.subf %34, %38 : vector<8x2xf32>
    %cst_25 = arith.constant 0.000000e+00 : f32
    %40 = vector.broadcast %cst_25 : f32 to vector<8x128xf32>
    %c0_26 = arith.constant 0 : index
    %c0_27 = arith.constant 0 : index
    %41 = vector.load %arg6[%c0_26, %c0_27] : memref<8x128xf32, #tpu.memory_space<vmem>>, vector<8x128xf32>
    tpu.vector_store %arg6[%c0_26, %c0_27], %40 {strides = array<i32>} : memref<8x128xf32, #tpu.memory_space<vmem>>, vector<8x128xf32>,
    %c0_28 = arith.constant 0 : index
    %c0_29 = arith.constant 0 : index
    %42 = vector.load %arg6[%c0_28, %c0_29] : memref<8x128xf32, #tpu.memory_space<vmem>>, vector<8x1xf32>
    tpu.vector_store %arg6[%c0_28, %c0_29], %30 {strides = array<i32>} : memref<8x128xf32, #tpu.memory_space<vmem>>, vector<8x1xf32>,
    %c0_30 = arith.constant 0 : index
    %c1 = arith.constant 1 : index
    %43 = vector.load %arg6[%c0_30, %c1] : memref<8x128xf32, #tpu.memory_space<vmem>>, vector<8x2xf32>
    tpu.vector_store %arg6[%c0_30, %c1], %34 {strides = array<i32>} : memref<8x128xf32, #tpu.memory_space<vmem>>, vector<8x2xf32>,
    %c0_31 = arith.constant 0 : index
    %c3 = arith.constant 3 : index
    %44 = vector.load %arg6[%c0_31, %c3] : memref<8x128xf32, #tpu.memory_space<vmem>>, vector<8x2xf32>
    tpu.vector_store %arg6[%c0_31, %c3], %38 {strides = array<i32>} : memref<8x128xf32, #tpu.memory_space<vmem>>, vector<8x2xf32>,
    %c0_32 = arith.constant 0 : index
    %c5 = arith.constant 5 : index
    %45 = vector.load %arg6[%c0_32, %c5] : memref<8x128xf32, #tpu.memory_space<vmem>>, vector<8x2xf32>
    tpu.vector_store %arg6[%c0_32, %c5], %39 {strides = array<i32>} : memref<8x128xf32, #tpu.memory_space<vmem>>, vector<8x2xf32>,
    return
  }
  func.func @transform_0(%arg0: i32) -> (i32, i32, i32) {
    %c0_i32 = arith.constant 0 : i32
    %c0_i32_0 = arith.constant 0 : i32
    %c0_i32_1 = arith.constant 0 : i32
    %c0_i32_2 = arith.constant 0 : i32
    return %c0_i32, %c0_i32_0, %c0_i32_1 : i32, i32, i32
  }
  func.func @transform_1(%arg0: i32) -> (i32, i32, i32) {
    %c0_i32 = arith.constant 0 : i32
    %c0_i32_0 = arith.constant 0 : i32
    %c0_i32_1 = arith.constant 0 : i32
    %c0_i32_2 = arith.constant 0 : i32
    return %c0_i32, %c0_i32_0, %c0_i32_1 : i32, i32, i32
  }
  func.func @transform_2(%arg0: i32) -> (i32, i32, i32, i32) {
    %c0_i32 = arith.constant 0 : i32
    %c0_i32_0 = arith.constant 0 : i32
    %c0_i32_1 = arith.constant 0 : i32
    %c0_i32_2 = arith.constant 0 : i32
    %c0_i32_3 = arith.constant 0 : i32
    return %c0_i32, %c0_i32_0, %c0_i32_1, %c0_i32_2 : i32, i32, i32, i32
  }
  func.func @transform_3(%arg0: i32) -> (i32, i32) {
    %c0_i32 = arith.constant 0 : i32
    %c0_i32_0 = arith.constant 0 : i32
    %c0_i32_1 = arith.constant 0 : i32
    return %c0_i32, %c0_i32_0 : i32, i32
  }
  func.func @transform_4(%arg0: i32) -> (i32, i32) {
    %c0_i32 = arith.constant 0 : i32
    %c0_i32_0 = arith.constant 0 : i32
    %c0_i32_1 = arith.constant 0 : i32
    return %c0_i32, %c0_i32_0 : i32, i32
  }
  func.func @transform_5(%arg0: i32) -> (i32, i32) {
    %c0_i32 = arith.constant 0 : i32
    %c0_i32_0 = arith.constant 0 : i32
    %c0_i32_1 = arith.constant 0 : i32
    return %c0_i32, %c0_i32_0 : i32, i32
  }
}

</mosaic_0001>

<bundles_post_ra>
// kernel: lightgcn_forward.3
= control target key start
LH: loop header
LB: loop body
LE: loop exit
PB: predicated region body
PF: predicated region fallthrough
CT: control target
= control target key end

     0   :  { %s910_s1 = inlined_call_operand.vmem [shape: f32[128,128], index: 1, kind: input, shape index: {}]   ;;  %s911_s2 = inlined_call_operand.vmem [shape: f32[3,128,128], index: 2, kind: output, shape index: {}]   ;;  %s912_s0 = inlined_call_operand.vmem [shape: f32[128,128], index: 0, kind: input, shape index: {}]  }
   0x1   :  { %v42_v0 = vld [vmem:[%s910_s1 + $0x78] sm:$0xff]  ;;  %v41_v1 = vld [vmem:[%s910_s1 + $0x70] sm:$0xff]  ;;  %v40_v2 = vld [vmem:[%s910_s1 + $0x68] sm:$0xff] }
   0x2   :  { %58 = vst [vmem:[%s911_s2 + $0x78] sm:$0xff] %v42_v0  ;;  %483 = vmatprep.subr.mxu0 %v42_v0  ;;  %57 = vst [vmem:[%s911_s2 + $0x70] sm:$0xff] %v41_v1  ;;  %v39_v3 = vld [vmem:[%s910_s1 + $0x60] sm:$0xff]  ;;  %v38_v4 = vld [vmem:[%s910_s1 + $0x58] sm:$0xff] }
   0x3   :  { %56 = vst [vmem:[%s911_s2 + $0x68] sm:$0xff] %v40_v2  ;;  %v37_v5 = vld [vmem:[%s910_s1 + $0x50] sm:$0xff]  ;;  %484 = vmatpush3.msra.mxu0 %v42_v0  ;;  %55 = vst [vmem:[%s911_s2 + $0x60] sm:$0xff] %v39_v3  ;;  %v36_v6 = vld [vmem:[%s910_s1 + $0x48] sm:$0xff] }
   0x4   :  { %54 = vst [vmem:[%s911_s2 + $0x58] sm:$0xff] %v38_v4  ;;  %53 = vst [vmem:[%s911_s2 + $0x50] sm:$0xff] %v37_v5  ;;  %v35_v7 = vld [vmem:[%s910_s1 + $0x40] sm:$0xff]  ;;  %v34_v8 = vld [vmem:[%s910_s1 + $0x38] sm:$0xff]  ;;  %485 = vmatprep.subr.mxu0 %v41_v1 }
   0x5   :  { %52 = vst [vmem:[%s911_s2 + $0x48] sm:$0xff] %v36_v6  ;;  %51 = vst [vmem:[%s911_s2 + $0x40] sm:$0xff] %v35_v7  ;;  %v33_v9 = vld [vmem:[%s910_s1 + $0x30] sm:$0xff]  ;;  %v32_v10 = vld [vmem:[%s910_s1 + $0x28] sm:$0xff]  ;;  %486 = vmatpush3.msra.mxu0 %v41_v1 }
   0x6   :  { %50 = vst [vmem:[%s911_s2 + $0x38] sm:$0xff] %v34_v8  ;;  %v31_v11 = vld [vmem:[%s910_s1 + $0x20] sm:$0xff]  ;;  %49 = vst [vmem:[%s911_s2 + $0x30] sm:$0xff] %v33_v9  ;;  %v30_v12 = vld [vmem:[%s910_s1 + $0x18] sm:$0xff]  ;;  %487 = vmatprep.subr.mxu0 %v40_v2 }
   0x7   :  { %48 = vst [vmem:[%s911_s2 + $0x28] sm:$0xff] %v32_v10  ;;  %47 = vst [vmem:[%s911_s2 + $0x20] sm:$0xff] %v31_v11  ;;  %v29_v13 = vld [vmem:[%s910_s1 + $0x10] sm:$0xff]  ;;  %v28_v14 = vld [vmem:[%s910_s1 + $0x8] sm:$0xff]  ;;  %488 = vmatpush3.msra.mxu0 %v40_v2 }
   0x8   :  { %46 = vst [vmem:[%s911_s2 + $0x18] sm:$0xff] %v30_v12  ;;  %45 = vst [vmem:[%s911_s2 + $0x10] sm:$0xff] %v29_v13  ;;  %v27_v15 = vld [vmem:[%s910_s1] sm:$0xff]  ;;  %489 = vmatprep.subr.mxu0 %v39_v3  ;;  %v712_v17 = vld [vmem:[%s912_s0 + $0x8] sm:$0xff] }
   0x9   :  { %44 = vst [vmem:[%s911_s2 + $0x8] sm:$0xff] %v28_v14  ;;  %v11_v16 = vld [vmem:[%s912_s0] sm:$0xff]  ;;  %43 = vst [vmem:[%s911_s2] sm:$0xff] %v27_v15  ;;  %490 = vmatpush3.msra.mxu0 %v39_v3  ;;  %v717_v18 = vld [vmem:[%s912_s0 + $0x10] sm:$0xff] }
   0xa   :  { %515 = vmatprep.mubr.f32.mxu0 %v11_v16  ;;  %571 = vmatprep.mubr.f32.mxu1 %v11_v16  ;;  %v724_v19 = vld [vmem:[%s912_s0 + $0x18] sm:$0xff]  ;;  %v729_v20 = vld [vmem:[%s912_s0 + $0x20] sm:$0xff]  ;;  %v736_v21 = vld [vmem:[%s912_s0 + $0x28] sm:$0xff] }
   0xb   :  { %491 = vmatprep.subr.mxu0 %v38_v4  ;;  %v741_v22 = vld [vmem:[%s912_s0 + $0x30] sm:$0xff]  ;;  %v748_v23 = vld [vmem:[%s912_s0 + $0x38] sm:$0xff]  ;;  %v753_v24 = vld [vmem:[%s912_s0 + $0x40] sm:$0xff] }
   0xc   :  { %492 = vmatpush3.msra.mxu0 %v38_v4  ;;  %v760_v25 = vld [vmem:[%s912_s0 + $0x48] sm:$0xff]  ;;  %v765_v26 = vld [vmem:[%s912_s0 + $0x50] sm:$0xff]  ;;  %v772_v27 = vld [vmem:[%s912_s0 + $0x58] sm:$0xff] }
   0xd   :  { %493 = vmatprep.subr.mxu0 %v37_v5  ;;  %v777_v28 = vld [vmem:[%s912_s0 + $0x60] sm:$0xff]  ;;  %v784_v29 = vld [vmem:[%s912_s0 + $0x68] sm:$0xff]  ;;  %v789_v30 = vld [vmem:[%s912_s0 + $0x70] sm:$0xff] }
   0xe   :  { %494 = vmatpush3.msra.mxu0 %v37_v5  ;;  %v796_v31 = vld [vmem:[%s912_s0 + $0x78] sm:$0xff] }
   0xf   :  { %495 = vmatprep.subr.mxu0 %v36_v6 }
  0x10   :  { %496 = vmatpush3.msra.mxu0 %v36_v6 }
  0x11   :  { %497 = vmatprep.subr.mxu0 %v35_v7 }
  0x12   :  { %498 = vmatpush3.msra.mxu0 %v35_v7 }
  0x13   :  { %499 = vmatprep.subr.mxu0 %v34_v8 }
  0x14   :  { %500 = vmatpush3.msra.mxu0 %v34_v8 }
  0x15   :  { %501 = vmatprep.subr.mxu0 %v33_v9 }
  0x16   :  { %502 = vmatpush3.msra.mxu0 %v33_v9 }
  0x17   :  { %503 = vmatprep.subr.mxu0 %v32_v10 }
  0x18   :  { %504 = vmatpush3.msra.mxu0 %v32_v10 }
  0x19   :  { %505 = vmatprep.subr.mxu0 %v31_v11 }
  0x1a   :  { %506 = vmatpush3.msra.mxu0 %v31_v11 }
  0x1b   :  { %507 = vmatprep.subr.mxu0 %v30_v12 }
  0x1c   :  { %508 = vmatpush3.msra.mxu0 %v30_v12 }
  0x1d   :  { %509 = vmatprep.subr.mxu0 %v29_v13 }
  0x1e   :  { %510 = vmatpush3.msra.mxu0 %v29_v13 }
  0x1f   :  { %511 = vmatprep.subr.mxu0 %v28_v14 }
  0x20   :  { %512 = vmatpush3.msra.mxu0 %v28_v14 }
  0x21   :  { %513 = vmatprep.subr.mxu0 %v27_v15 }
  0x22   :  { %514 = vmatpush3.msra.mxu0 %v27_v15 }
  0x23   :  { %516 = vmatmul.mubr.f32.vlgmr.msra.gmra.mxu0 %v712_v17 }
  0x24   :  { %518 = vmatprep.mubr.f32.mxu0 %v717_v18 }
  0x27   :  { %519 = vmatmul.mubr.f32.gmra.mxu0 %v724_v19 }
  0x28   :  { %521 = vmatprep.mubr.f32.mxu0 %v729_v20 }
  0x2b   :  { %522 = vmatmul.mubr.f32.gmra.mxu0 %v736_v21 }
  0x2c   :  { %524 = vmatprep.mubr.f32.mxu0 %v741_v22 }
  0x2f   :  { %525 = vmatmul.mubr.f32.gmra.mxu0 %v748_v23 }
  0x30   :  { %527 = vmatprep.mubr.f32.mxu0 %v753_v24 }
  0x33   :  { %528 = vmatmul.mubr.f32.gmra.mxu0 %v760_v25 }
  0x34   :  { %530 = vmatprep.mubr.f32.mxu0 %v765_v26 }
  0x37   :  { %531 = vmatmul.mubr.f32.gmra.mxu0 %v772_v27 }
  0x38   :  { %533 = vmatprep.mubr.f32.mxu0 %v777_v28 }
  0x3b   :  { %534 = vmatmul.mubr.f32.gmra.mxu0 %v784_v29 }
  0x3c   :  { %536 = vmatprep.mubr.f32.mxu0 %v789_v30 }
  0x3f   :  { %537 = vmatmul.mubr.f32.gmra.mxu0 %v796_v31 }
  0xe3   :  { %v517_v32 = vpop.f32.mrf.mxu0 }
  0xe4   :  { %388 = vst [vmem:[%s911_s2 + $0x88] sm:$0xff] %v517_v32 }
  0xe5   :  { %v125_v33 = vpop.f32.mrf.mxu0 }
  0xe6   :  { %387 = vst [vmem:[%s911_s2 + $0x80] sm:$0xff] %v125_v33 }
  0xe7   :  { %v520_v34 = vpop.f32.mrf.mxu0 }
  0xe8   :  { %390 = vst [vmem:[%s911_s2 + $0x98] sm:$0xff] %v520_v34 }
  0xe9   :  { %v135_v35 = vpop.f32.mrf.mxu0 }
  0xea   :  { %389 = vst [vmem:[%s911_s2 + $0x90] sm:$0xff] %v135_v35 }
  0xeb   :  { %v523_v36 = vpop.f32.mrf.mxu0 }
  0xec   :  { %392 = vst [vmem:[%s911_s2 + $0xa8] sm:$0xff] %v523_v36 }
  0xed   :  { %v145_v37 = vpop.f32.mrf.mxu0 }
  0xee   :  { %391 = vst [vmem:[%s911_s2 + $0xa0] sm:$0xff] %v145_v37 }
  0xef   :  { %v526_v38 = vpop.f32.mrf.mxu0 }
  0xf0   :  { %394 = vst [vmem:[%s911_s2 + $0xb8] sm:$0xff] %v526_v38 }
  0xf1   :  { %v155_v39 = vpop.f32.mrf.mxu0 }
  0xf2   :  { %393 = vst [vmem:[%s911_s2 + $0xb0] sm:$0xff] %v155_v39 }
  0xf3   :  { %v529_v40 = vpop.f32.mrf.mxu0 }
  0xf4   :  { %396 = vst [vmem:[%s911_s2 + $0xc8] sm:$0xff] %v529_v40 }
  0xf5   :  { %v165_v41 = vpop.f32.mrf.mxu0 }
  0xf6   :  { %395 = vst [vmem:[%s911_s2 + $0xc0] sm:$0xff] %v165_v41 }
  0xf7   :  { %v532_v42 = vpop.f32.mrf.mxu0 }
  0xf8   :  { %398 = vst [vmem:[%s911_s2 + $0xd8] sm:$0xff] %v532_v42 }
  0xf9   :  { %v175_v43 = vpop.f32.mrf.mxu0 }
  0xfa   :  { %397 = vst [vmem:[%s911_s2 + $0xd0] sm:$0xff] %v175_v43 }
  0xfb   :  { %v535_v44 = vpop.f32.mrf.mxu0 }
  0xfc   :  { %400 = vst [vmem:[%s911_s2 + $0xe8] sm:$0xff] %v535_v44 }
  0xfd   :  { %v185_v45 = vpop.f32.mrf.mxu0 }
  0xfe   :  { %399 = vst [vmem:[%s911_s2 + $0xe0] sm:$0xff] %v185_v45 }
  0xff   :  { %v538_v46 = vpop.f32.mrf.mxu0 }
 0x100   :  { %402 = vst [vmem:[%s911_s2 + $0xf8] sm:$0xff] %v538_v46  ;;  %539 = vmatprep.subr.mxu1 %v538_v46 }
 0x101   :  { %v195_v47 = vpop.f32.mrf.mxu0  ;;  %540 = vmatpush3.msra.mxu1 %v538_v46 }
 0x102   :  { %401 = vst [vmem:[%s911_s2 + $0xf0] sm:$0xff] %v195_v47  ;;  %541 = vmatprep.subr.mxu1 %v195_v47 }
 0x103   :  { %542 = vmatpush3.msra.mxu1 %v195_v47 }
 0x104   :  { %543 = vmatprep.subr.mxu1 %v535_v44 }
 0x105   :  { %544 = vmatpush3.msra.mxu1 %v535_v44 }
 0x106   :  { %545 = vmatprep.subr.mxu1 %v185_v45 }
 0x107   :  { %546 = vmatpush3.msra.mxu1 %v185_v45 }
 0x108   :  { %547 = vmatprep.subr.mxu1 %v532_v42 }
 0x109   :  { %548 = vmatpush3.msra.mxu1 %v532_v42 }
 0x10a   :  { %549 = vmatprep.subr.mxu1 %v175_v43 }
 0x10b   :  { %550 = vmatpush3.msra.mxu1 %v175_v43 }
 0x10c   :  { %551 = vmatprep.subr.mxu1 %v529_v40 }
 0x10d   :  { %552 = vmatpush3.msra.mxu1 %v529_v40 }
 0x10e   :  { %553 = vmatprep.subr.mxu1 %v165_v41 }
 0x10f   :  { %554 = vmatpush3.msra.mxu1 %v165_v41 }
 0x110   :  { %555 = vmatprep.subr.mxu1 %v526_v38 }
 0x111   :  { %556 = vmatpush3.msra.mxu1 %v526_v38 }
 0x112   :  { %557 = vmatprep.subr.mxu1 %v155_v39 }
 0x113   :  { %558 = vmatpush3.msra.mxu1 %v155_v39 }
 0x114   :  { %559 = vmatprep.subr.mxu1 %v523_v36 }
 0x115   :  { %560 = vmatpush3.msra.mxu1 %v523_v36 }
 0x116   :  { %561 = vmatprep.subr.mxu1 %v145_v37 }
 0x117   :  { %562 = vmatpush3.msra.mxu1 %v145_v37 }
 0x118   :  { %563 = vmatprep.subr.mxu1 %v520_v34 }
 0x119   :  { %564 = vmatpush3.msra.mxu1 %v520_v34 }
 0x11a   :  { %565 = vmatprep.subr.mxu1 %v135_v35 }
 0x11b   :  { %566 = vmatpush3.msra.mxu1 %v135_v35 }
 0x11c   :  { %567 = vmatprep.subr.mxu1 %v517_v32 }
 0x11d   :  { %568 = vmatpush3.msra.mxu1 %v517_v32 }
 0x11e   :  { %569 = vmatprep.subr.mxu1 %v125_v33 }
 0x11f   :  { %570 = vmatpush3.msra.mxu1 %v125_v33 }
 0x120   :  { %572 = vmatmul.mubr.f32.vlgmr.msra.gmra.mxu1 %v712_v17 }
 0x121   :  { %574 = vmatprep.mubr.f32.mxu1 %v717_v18 }
 0x124   :  { %575 = vmatmul.mubr.f32.gmra.mxu1 %v724_v19 }
 0x125   :  { %577 = vmatprep.mubr.f32.mxu1 %v729_v20 }
 0x128   :  { %578 = vmatmul.mubr.f32.gmra.mxu1 %v736_v21 }
 0x129   :  { %580 = vmatprep.mubr.f32.mxu1 %v741_v22 }
 0x12c   :  { %581 = vmatmul.mubr.f32.gmra.mxu1 %v748_v23 }
 0x12d   :  { %583 = vmatprep.mubr.f32.mxu1 %v753_v24 }
 0x130   :  { %584 = vmatmul.mubr.f32.gmra.mxu1 %v760_v25 }
 0x131   :  { %586 = vmatprep.mubr.f32.mxu1 %v765_v26 }
 0x134   :  { %587 = vmatmul.mubr.f32.gmra.mxu1 %v772_v27 }
 0x135   :  { %589 = vmatprep.mubr.f32.mxu1 %v777_v28 }
 0x138   :  { %590 = vmatmul.mubr.f32.gmra.mxu1 %v784_v29 }
 0x139   :  { %592 = vmatprep.mubr.f32.mxu1 %v789_v30 }
 0x13c   :  { %593 = vmatmul.mubr.f32.gmra.mxu1 %v796_v31 }
 0x1e0   :  { %v573_v48 = vpop.f32.mrf.mxu1 }
 0x1e1   :  { %404 = vst [vmem:[%s911_s2 + $0x108] sm:$0xff] %v573_v48 }
 0x1e2   :  { %v287_v49 = vpop.f32.mrf.mxu1 }
 0x1e3   :  { %403 = vst [vmem:[%s911_s2 + $0x100] sm:$0xff] %v287_v49 }
 0x1e4   :  { %v576_v50 = vpop.f32.mrf.mxu1 }
 0x1e5   :  { %406 = vst [vmem:[%s911_s2 + $0x118] sm:$0xff] %v576_v50 }
 0x1e6   :  { %v297_v51 = vpop.f32.mrf.mxu1 }
 0x1e7   :  { %405 = vst [vmem:[%s911_s2 + $0x110] sm:$0xff] %v297_v51 }
 0x1e8   :  { %v579_v52 = vpop.f32.mrf.mxu1 }
 0x1e9   :  { %408 = vst [vmem:[%s911_s2 + $0x128] sm:$0xff] %v579_v52 }
 0x1ea   :  { %v307_v53 = vpop.f32.mrf.mxu1 }
 0x1eb   :  { %407 = vst [vmem:[%s911_s2 + $0x120] sm:$0xff] %v307_v53 }
 0x1ec   :  { %v582_v54 = vpop.f32.mrf.mxu1 }
 0x1ed   :  { %410 = vst [vmem:[%s911_s2 + $0x138] sm:$0xff] %v582_v54 }
 0x1ee   :  { %v317_v55 = vpop.f32.mrf.mxu1 }
 0x1ef   :  { %409 = vst [vmem:[%s911_s2 + $0x130] sm:$0xff] %v317_v55 }
 0x1f0   :  { %v585_v56 = vpop.f32.mrf.mxu1 }
 0x1f1   :  { %412 = vst [vmem:[%s911_s2 + $0x148] sm:$0xff] %v585_v56 }
 0x1f2   :  { %v327_v57 = vpop.f32.mrf.mxu1 }
 0x1f3   :  { %411 = vst [vmem:[%s911_s2 + $0x140] sm:$0xff] %v327_v57 }
 0x1f4   :  { %v588_v58 = vpop.f32.mrf.mxu1 }
 0x1f5   :  { %414 = vst [vmem:[%s911_s2 + $0x158] sm:$0xff] %v588_v58 }
 0x1f6   :  { %v337_v59 = vpop.f32.mrf.mxu1 }
 0x1f7   :  { %413 = vst [vmem:[%s911_s2 + $0x150] sm:$0xff] %v337_v59 }
 0x1f8   :  { %v591_v60 = vpop.f32.mrf.mxu1 }
 0x1f9   :  { %416 = vst [vmem:[%s911_s2 + $0x168] sm:$0xff] %v591_v60 }
 0x1fa   :  { %v347_v61 = vpop.f32.mrf.mxu1 }
 0x1fb   :  { %415 = vst [vmem:[%s911_s2 + $0x160] sm:$0xff] %v347_v61 }
 0x1fc   :  { %v594_v62 = vpop.f32.mrf.mxu1 }
 0x1fd   :  { %418 = vst [vmem:[%s911_s2 + $0x178] sm:$0xff] %v594_v62 }
 0x1fe   :  { %v357_v63 = vpop.f32.mrf.mxu1 }
 0x1ff   :  { %417 = vst [vmem:[%s911_s2 + $0x170] sm:$0xff] %v357_v63 }

// kernel: lightgcn_forward.5
= control target key start
LH: loop header
LB: loop body
LE: loop exit
PB: predicated region body
PF: predicated region fallthrough
CT: control target
= control target key end

     0   :  { %v3629_v0 = vlaneseq  ;;  %v2612_v3 = vmov 1966171168   ;;  %vm28_vm0 = vcmask 1042432   ;;  %vm2168_vm1 = vcmask 1041409   ;;  %s3623_s3 = inlined_call_operand.vmem [shape: f32[128,128], index: 3, kind: input, shape index: {}]   ;;  %s3624_s2 = inlined_call_operand.vmem [shape: f32[8,2,3,128], index: 2, kind: input, shape index: {}]   ;;  %s3625_s0 = inlined_call_operand.vmem [shape: f32[8,3,128], index: 0, kind: input, shape index: {}]   ;;  %s3626_s1 = inlined_call_operand.vmem [shape: f32[8,3,128], index: 1, kind: input, shape index: {}]   ;;  %s3627_s4 = inlined_call_operand.vmem [shape: f32[1,128], index: 4, kind: input, shape index: {}]   ;;  %s3628_s5 = inlined_call_operand.vmem [shape: f32[8,128], index: 5, kind: output, shape index: {}]  }
   0x1   :  { %v757_v1 = vld [vmem:[%s3623_s3 + $0x78] sm:$0xff]  ;;  %v756_v2 = vld [vmem:[%s3623_s3 + $0x70] sm:$0xff]  ;;  %v327_v4 = vunpack.c.l.s4 %v2612_v3  ;;  %v755_v6 = vld [vmem:[%s3623_s3 + $0x68] sm:$0xff]  ;;  %vm2225_vm2 = vcmask 1041408   ;;  %vm2170_vm3 = vcmask 1042434   ;;  %vm2172_vm4 = vcmask 1043459  }
   0x2   :  { %2513 = vmatprep.subr.mxu0 %v757_v1  ;;  %2554 = vmatprep.subr.mxu1 %v757_v1  ;;  %v2651_v5 = vshrl.u32 %v3629_v0, 7  ;;  %v754_v8 = vld [vmem:[%s3623_s3 + $0x60] sm:$0xff]  ;;  %v753_v10 = vld [vmem:[%s3623_s3 + $0x58] sm:$0xff]  ;;  %v2678_v13 = vld [vmem:[%s3624_s2 + $0x8] sm:$0x7]  ;;  %vm2174_vm5 = vcmask 1044484  }
   0x3   :  { %2514 = vmatpush3.msra.mxu0 %v757_v1  ;;  %2570 = vmatpush3.msra.mxu1 %v757_v1  ;;  %v328_v7 = vunpack.c.0.s8 %v327_v4  ;;  %v2668_v11 = vld [vmem:[%s3624_s2] sm:$0x7]  ;;  %v2673_v12 = vld [vmem:[%s3624_s2 + $0x4] sm:$0x7]  ;;  %v2687_v16 = vld [vmem:[%s3624_s2 + $0x14] sm:$0x7] }
   0x4   :  { %2515 = vmatprep.subr.mxu0 %v756_v2  ;;  %2555 = vmatprep.subr.mxu1 %v756_v2  ;;  %v2692_v17 = vld [vmem:[%s3624_s2 + $0x18] sm:$0x7]  ;;  %v752_v21 = vld [vmem:[%s3623_s3 + $0x50] sm:$0xff]  ;;  %v751_v28 = vld [vmem:[%s3623_s3 + $0x48] sm:$0xff]  ;;  %vm2176_vm6 = vcmask 1045509   ;;  %vm2178_vm7 = vcmask 1046534  }
   0x5   :  { %2516 = vmatpush3.msra.mxu0 %v756_v2  ;;  %2571 = vmatpush3.msra.mxu1 %v756_v2  ;;  %v2660_v9 = vsub.s32 %v328_v7, %v2651_v5  ;;  %v750_v35 = vld [vmem:[%s3623_s3 + $0x40] sm:$0xff]  ;;  %v2749_v41 = vld [vmem:[%s3624_s2 + $0x1c] sm:$0x7]  ;;  %v748_v50 = vld [vmem:[%s3623_s3 + $0x30] sm:$0xff]  ;;  %vm2180_vm8 = vcmask 1047559   ;;  %vm2323_vm9 = vcmask 7168  }
   0x6   :  { %2517 = vmatprep.subr.mxu0 %v755_v6  ;;  %2556 = vmatprep.subr.mxu1 %v755_v6  ;;  %v749_v43 = vld [vmem:[%s3623_s3 + $0x38] sm:$0xff]  ;;  %v747_v57 = vld [vmem:[%s3623_s3 + $0x28] sm:$0xff]  ;;  %v2804_v2 = vld [vmem:[%s3624_s2 + $0x10] sm:$0x7]  ;;  %vm2376_vm10 = vcmask 23560   ;;  %vm2427_vm11 = vcmask 39960  }
   0x7   :  { %2518 = vmatpush3.msra.mxu0 %v755_v6  ;;  %2572 = vmatpush3.msra.mxu1 %v755_v6  ;;  %v332_v14 = vrot.slane %v2668_v11, %v2660_v9  ;;  %v355_v15 = vrot.slane %v2673_v12, %v2660_v9  ;;  %v378_v18 = vrot.slane %v2678_v13, %v2660_v9  ;;  %v2799_v1 = vld [vmem:[%s3624_s2 + $0xc] sm:$0x7]  ;;  %v746_v3 = vld [vmem:[%s3623_s3 + $0x20] sm:$0xff]  ;;  %v2987_v0 = vld [vmem:[%s3624_s2 + $0x38] sm:$0x7]  ;;  %vm2478_vm12 = vcmask 56360  }
   0x8   :  { %2519 = vmatprep.subr.mxu0 %v754_v8  ;;  %2557 = vmatprep.subr.mxu1 %v754_v8  ;;  %v447_v19 = vrot.slane %v2687_v16, %v2660_v9  ;;  %v470_v20 = vrot.slane %v2692_v17, %v2660_v9  ;;  %v493_v53 = vrot.slane %v2749_v41, %v2660_v9 }
   0x9   :  { %2520 = vmatpush3.msra.mxu0 %v754_v8  ;;  %2573 = vmatpush3.msra.mxu1 %v754_v8  ;;  %v333_v22 = vcombine.high %v332_v14, %v332_v14  ;;  %v2704_v23 = vrot.slane %v332_v14, %v2660_v9  ;;  %v356_v24 = vcombine.high %v355_v15, %v355_v15  ;;  %v2820_v8 = vld [vmem:[%s3624_s2 + $0x20] sm:$0x7] }
   0xa   :  { %2521 = vmatprep.subr.mxu0 %v753_v10  ;;  %2558 = vmatprep.subr.mxu1 %v753_v10  ;;  %v2707_v25 = vrot.slane %v355_v15, %v2660_v9  ;;  %v379_v26 = vcombine.high %v378_v18, %v378_v18  ;;  %v2710_v27 = vrot.slane %v378_v18, %v2660_v9  ;;  %v745_v18 = vld [vmem:[%s3623_s3 + $0x18] sm:$0xff] }
   0xb   :  { %2522 = vmatpush3.msra.mxu0 %v753_v10  ;;  %2574 = vmatpush3.msra.mxu1 %v753_v10  ;;  %v2716_v29 = vrot.slane %v333_v22, %v2660_v9  ;;  %v2720_v30 = vcombine.high %v2704_v23, %v2704_v23  ;;  %v2723_v31 = vrot.slane %v356_v24, %v2660_v9 }
   0xc   :  { %3660 = vst [vmem:[#allocation2_spill] sm:$0xff] %v2710_v27  ;;  %2523 = vmatprep.subr.mxu0 %v752_v21  ;;  %2559 = vmatprep.subr.mxu1 %v752_v21  ;;  %v2727_v32 = vcombine.high %v2707_v25, %v2707_v25  ;;  %v2730_v33 = vrot.slane %v379_v26, %v2660_v9 }
   0xd   :  { %v448_v34 = vcombine.high %v447_v19, %v447_v19  ;;  %2524 = vmatpush3.msra.mxu0 %v752_v21  ;;  %2575 = vmatpush3.msra.mxu1 %v752_v21  ;;  %v765_v36 = vcombine.low %v2704_v23, %v2716_v29  ;;  %v766_v37 = vcombine.low %v2720_v30, %v2707_v25 }
   0xe   :  { %3661 = vst [vmem:[#allocation3_spill] sm:$0xff] %v2730_v33  ;;  %v2740_v38 = vrot.slane %v447_v19, %v2660_v9  ;;  %2525 = vmatprep.subr.mxu0 %v751_v28  ;;  %2560 = vmatprep.subr.mxu1 %v751_v28  ;;  %v767_v39 = vcombine.low %v2723_v31, %v2727_v32 }
   0xf   :  { %v768_v40 = vcombine.low %v2710_v27, %v2730_v33  ;;  %v2752_v42 = vrot.slane %v448_v34, %v2660_v9  ;;  %2526 = vmatpush3.msra.mxu0 %v751_v28  ;;  %2576 = vmatpush3.msra.mxu1 %v751_v28  ;;  %v775_v44 = vrot.slane %v765_v36, %v2660_v9  ;;  %v744_v28 = vld [vmem:[%s3623_s3 + $0x10] sm:$0xff] }
  0x10   :  { %v782_v45 = vrot.slane %v766_v37, %v2660_v9  ;;  %v2761_v46 = vcombine.high %v2740_v38, %v2740_v38  ;;  %2527 = vmatprep.subr.mxu0 %v750_v35  ;;  %2561 = vmatprep.subr.mxu1 %v750_v35  ;;  %v789_v47 = vrot.slane %v767_v39, %v2660_v9 }
  0x11   :  { %v796_v48 = vrot.slane %v768_v40, %v2660_v9  ;;  %v471_v49 = vcombine.high %v470_v20, %v470_v20  ;;  %2528 = vmatpush3.msra.mxu0 %v750_v35  ;;  %2577 = vmatpush3.msra.mxu1 %v750_v35  ;;  %v2769_v52 = vrot.slane %v470_v20, %v2660_v9 }
  0x12   :  { %v797_v51 = vcombine.low %v775_v44, %v782_v45  ;;  %2529 = vmatprep.subr.mxu0 %v749_v43  ;;  %2562 = vmatprep.subr.mxu1 %v749_v43  ;;  %v863_v56 = vcombine.low %v2752_v42, %v2761_v46  ;;  %v494_v60 = vcombine.high %v493_v53, %v493_v53 }
  0x13   :  { %3662 = vst [vmem:[#allocation4_spill] sm:$0xff] %v2769_v52  ;;  %v798_v54 = vcombine.low %v789_v47, %v796_v48  ;;  %v2774_v55 = vrot.slane %v471_v49, %v2660_v9  ;;  %2530 = vmatpush3.msra.mxu0 %v749_v43  ;;  %2578 = vmatpush3.msra.mxu1 %v749_v43  ;;  %v743_v43 = vld [vmem:[%s3623_s3 + $0x8] sm:$0xff] }
  0x14   :  { %v2782_v58 = vrot.slane %v797_v51, %v2660_v9  ;;  %v2786_v59 = vcombine.high %v2769_v52, %v2769_v52  ;;  %2531 = vmatprep.subr.mxu0 %v748_v50  ;;  %2563 = vmatprep.subr.mxu1 %v748_v50  ;;  %v2792_v62 = vrot.slane %v493_v53, %v2660_v9  ;;  %v742_v51 = vld [vmem:[%s3623_s3] sm:$0xff] }
  0x15   :  { %3663 = vst [vmem:[#allocation5_spill] sm:$0xff] %v2774_v55  ;;  %v2789_v61 = vrot.slane %v798_v54, %v2660_v9  ;;  %v864_v63 = vcombine.low %v2769_v52, %v2774_v55  ;;  %2532 = vmatpush3.msra.mxu0 %v748_v50  ;;  %2579 = vmatpush3.msra.mxu1 %v748_v50 }
  0x16   :  { %3664 = vst [vmem:[#allocation6_spill] sm:$0xff] %v2786_v59  ;;  %3665 = vst [vmem:[#allocation7_spill] sm:$0xff] %v2792_v62  ;;  %v2810_v4 = vrot.slane %v494_v60, %v2660_v9  ;;  %v873_v6 = vrot.slane %v863_v56, %v2660_v9  ;;  %v2815_v7 = vcombine.high %v2710_v27, %v2710_v27  ;;  %2533 = vmatprep.subr.mxu0 %v747_v57 }
  0x17   :  { %2564 = vmatprep.subr.mxu1 %v747_v57  ;;  %v813_v10 = vcombine.low %v2782_v58, %v2789_v61  ;;  %v2826_v14 = vcombine.high %v2792_v62, %v2792_v62  ;;  %v865_v15 = vcombine.low %v2786_v59, %v2792_v62  ;;  %2534 = vmatpush3.msra.mxu0 %v747_v57 }
  0x18   :  { %3666 = vst [vmem:[#allocation8_spill] sm:$0xff] %v2810_v4  ;;  %2580 = vmatpush3.msra.mxu1 %v747_v57  ;;  %v880_v19 = vrot.slane %v864_v63, %v2660_v9  ;;  %v401_v20 = vrot.slane %v2799_v1, %v2660_v9  ;;  %v424_v21 = vrot.slane %v2804_v2, %v2660_v9 }
  0x19   :  { %3667 = vst [vmem:[#allocation9_spill] sm:$0xff] %v2826_v14  ;;  %2535 = vmatprep.subr.mxu0 %v746_v3  ;;  %2565 = vmatprep.subr.mxu1 %v746_v3  ;;  %v866_v22 = vcombine.low %v2810_v4, %v2826_v14  ;;  %v887_v24 = vrot.slane %v865_v15, %v2660_v9  ;;  %v2888_v15 = vld [vmem:[%s3624_s2 + $0x24] sm:$0x7] }
  0x1a   :  { %v516_v26 = vrot.slane %v2820_v8, %v2660_v9  ;;  %2536 = vmatpush3.msra.mxu0 %v746_v3  ;;  %2581 = vmatpush3.msra.mxu1 %v746_v3  ;;  %v895_v34 = vcombine.low %v873_v6, %v880_v19  ;;  %v402_v35 = vcombine.high %v401_v20, %v401_v20 }
  0x1b   :  { %v2847_v36 = vrot.slane %v401_v20, %v2660_v9  ;;  %2537 = vmatprep.subr.mxu0 %v745_v18  ;;  %2566 = vmatprep.subr.mxu1 %v745_v18  ;;  %v894_v37 = vrot.slane %v866_v22, %v2660_v9  ;;  %v425_v39 = vcombine.high %v424_v21, %v424_v21 }
  0x1c   :  { %v2851_v40 = vrot.slane %v424_v21, %v2660_v9  ;;  %2538 = vmatpush3.msra.mxu0 %v745_v18  ;;  %2582 = vmatpush3.msra.mxu1 %v745_v18  ;;  %v903_v44 = vrot.slane %v895_v34, %v2660_v9  ;;  %v2858_v45 = vrot.slane %v402_v35, %v2660_v9  ;;  %v2893_v18 = vld [vmem:[%s3624_s2 + $0x28] sm:$0x7] }
  0x1d   :  { %3668 = vst [vmem:[#allocation10_spill] sm:$0xff] %v2847_v36  ;;  %v2862_v47 = vcombine.high %v2847_v36, %v2847_v36  ;;  %2539 = vmatprep.subr.mxu0 %v744_v28  ;;  %2567 = vmatprep.subr.mxu1 %v744_v28  ;;  %v896_v48 = vcombine.low %v887_v24, %v894_v37  ;;  %v2903_v24 = vld [vmem:[%s3624_s2 + $0x2c] sm:$0x7] }
  0x1e   :  { %3669 = vst [vmem:[#allocation11_spill] sm:$0xff] %v2858_v45  ;;  %v2865_v49 = vrot.slane %v425_v39, %v2660_v9  ;;  %v2869_v50 = vcombine.high %v2851_v40, %v2851_v40  ;;  %2540 = vmatpush3.msra.mxu0 %v744_v28  ;;  %2583 = vmatpush3.msra.mxu1 %v744_v28  ;;  %v2908_v28 = vld [vmem:[%s3624_s2 + $0x30] sm:$0x7] }
  0x1f   :  { %3670 = vst [vmem:[#allocation12_spill] sm:$0xff] %v2862_v47  ;;  %v814_v53 = vcombine.low %v2815_v7, %v2847_v36  ;;  %v815_v54 = vcombine.low %v2858_v45, %v2862_v47  ;;  %v517_v56 = vcombine.high %v516_v26, %v516_v26  ;;  %2541 = vmatprep.subr.mxu0 %v743_v43 }
  0x20   :  { %2568 = vmatprep.subr.mxu1 %v743_v43  ;;  %v910_v57 = vrot.slane %v896_v48, %v2660_v9  ;;  %v816_v60 = vcombine.low %v2851_v40, %v2865_v49  ;;  %v817_v63 = vcombine.low %v2869_v50, %v2740_v38  ;;  %2542 = vmatpush3.msra.mxu0 %v743_v43 }
  0x21   :  { %2584 = vmatpush3.msra.mxu1 %v743_v43  ;;  %v824_v3 = vrot.slane %v814_v53, %v2660_v9  ;;  %v831_v6 = vrot.slane %v815_v54, %v2660_v9  ;;  %v2896_v19 = vrot.slane %v516_v26, %v2660_v9  ;;  %2543 = vmatprep.subr.mxu0 %v742_v51 }
  0x22   :  { %2569 = vmatprep.subr.mxu1 %v742_v51  ;;  %v911_v20 = vcombine.low %v903_v44, %v910_v57  ;;  %v838_v21 = vrot.slane %v816_v60, %v2660_v9  ;;  %v845_v22 = vrot.slane %v817_v63, %v2660_v9  ;;  %2544 = vmatpush3.msra.mxu0 %v742_v51 }
  0x23   :  { %2585 = vmatpush3.msra.mxu1 %v742_v51  ;;  %v846_v26 = vcombine.low %v824_v3, %v831_v6  ;;  %v2911_v34 = vrot.slane %v517_v56, %v2660_v9  ;;  %v2915_v35 = vcombine.high %v2896_v19, %v2896_v19  ;;  %2545 = vmatprep.mubr.f32.mxu0 %v813_v10 }
  0x24   :  { %2548 = vmatprep.mubr.f32.mxu1 %v911_v20  ;;  %v847_v37 = vcombine.low %v838_v21, %v845_v22  ;;  %v539_v39 = vrot.slane %v2888_v15, %v2660_v9  ;;  %v562_v43 = vrot.slane %v2893_v18, %v2660_v9  ;;  %v585_v51 = vrot.slane %v2903_v24, %v2660_v9  ;;  %v2955_v22 = vld [vmem:[%s3624_s2 + $0x34] sm:$0x7] }
  0x25   :  { %v854_v44 = vrot.slane %v846_v26, %v2660_v9  ;;  %v912_v48 = vcombine.low %v2896_v19, %v2911_v34  ;;  %v608_v58 = vrot.slane %v2908_v28, %v2660_v9 }
  0x26   :  { %v861_v61 = vrot.slane %v847_v37, %v2660_v9  ;;  %v540_v10 = vcombine.high %v539_v39, %v539_v39  ;;  %v2933_v53 = vrot.slane %v539_v39, %v2660_v9  ;;  %v563_v54 = vcombine.high %v562_v43, %v562_v43 }
  0x27   :  { %v2936_v56 = vrot.slane %v562_v43, %v2660_v9  ;;  %v922_v57 = vrot.slane %v912_v48, %v2660_v9  ;;  %v586_v60 = vcombine.high %v585_v51, %v585_v51  ;;  %v2940_v63 = vrot.slane %v585_v51, %v2660_v9 }
  0x28   :  { %v862_v3 = vcombine.low %v854_v44, %v861_v61  ;;  %v2943_v6 = vrot.slane %v540_v10, %v2660_v9  ;;  %v2947_v20 = vcombine.high %v2933_v53, %v2933_v53  ;;  %v2950_v21 = vrot.slane %v563_v54, %v2660_v9 }
  0x29   :  { %3671 = vst [vmem:[#allocation13_spill] sm:$0xff] %v2936_v56  ;;  %3672 = vst [vmem:[#allocation14_spill] sm:$0xff] %v2940_v63  ;;  %v913_v26 = vcombine.low %v2915_v35, %v2933_v53  ;;  %v2961_v37 = vcombine.high %v2936_v56, %v2936_v56  ;;  %v2964_v39 = vrot.slane %v586_v60, %v2660_v9 }
  0x2a   :  { %3673 = vst [vmem:[#allocation15_spill] sm:$0xff] %v2950_v21  ;;  %v2968_v43 = vcombine.high %v2940_v63, %v2940_v63  ;;  %2546 = vmatmul.mubr.f32.vlgmr.msra.gmra.mxu0 %v862_v3  ;;  %v914_v44 = vcombine.low %v2943_v6, %v2947_v20  ;;  %v915_v48 = vcombine.low %v2936_v56, %v2950_v21 }
  0x2b   :  { %3674 = vst [vmem:[#allocation16_spill] sm:$0xff] %v2961_v37  ;;  %3675 = vst [vmem:[#allocation17_spill] sm:$0xff] %v2964_v39  ;;  %v609_v51 = vcombine.high %v608_v58, %v608_v58  ;;  %v2975_v61 = vrot.slane %v608_v58, %v2660_v9  ;;  %v929_v10 = vrot.slane %v913_v26, %v2660_v9 }
  0x2c   :  { %3676 = vst [vmem:[#allocation18_spill] sm:$0xff] %v2968_v43  ;;  %v631_v54 = vrot.slane %v2955_v22, %v2660_v9  ;;  %v961_v60 = vcombine.low %v2961_v37, %v2940_v63  ;;  %v962_v3 = vcombine.low %v2964_v39, %v2968_v43  ;;  %v936_v21 = vrot.slane %v914_v44, %v2660_v9 }
  0x2d   :  { %3677 = vst [vmem:[#allocation19_spill] sm:$0xff] %v2975_v61  ;;  %v943_v58 = vrot.slane %v915_v48, %v2660_v9  ;;  %v2992_v26 = vrot.slane %v609_v51, %v2660_v9  ;;  %v2996_v56 = vcombine.high %v2975_v61, %v2975_v61  ;;  %v944_v63 = vcombine.low %v922_v57, %v929_v10  ;;  %v3008_v48 = vld [vmem:[%s3624_s2 + $0x3c] sm:$0x7] }
  0x2e   :  { %v2999_v37 = vrot.slane %v631_v54, %v2660_v9  ;;  %v971_v43 = vrot.slane %v961_v60, %v2660_v9  ;;  %v978_v39 = vrot.slane %v962_v3, %v2660_v9  ;;  %v632_v51 = vcombine.high %v631_v54, %v631_v54 }
  0x2f   :  { %3678 = vst [vmem:[#allocation20_spill] sm:$0xff] %v2992_v26  ;;  %3679 = vst [vmem:[#allocation21_spill] sm:$0xff] %v2996_v56  ;;  %v945_v47 = vcombine.low %v936_v21, %v943_v58  ;;  %v963_v44 = vcombine.low %v2975_v61, %v2992_v26  ;;  %v654_v57 = vrot.slane %v2987_v0, %v2660_v9 }
  0x30   :  { %3680 = vst [vmem:[#allocation22_spill] sm:$0xff] %v2999_v37  ;;  %v952_v10 = vrot.slane %v944_v63, %v2660_v9  ;;  %v964_v60 = vcombine.low %v2996_v56, %v2999_v37  ;;  %v993_v45 = vcombine.low %v971_v43, %v978_v39  ;;  %v3017_v21 = vcombine.high %v2999_v37, %v2999_v37 }
  0x31   :  { %v959_v3 = vrot.slane %v945_v47, %v2660_v9  ;;  %v985_v58 = vrot.slane %v963_v44, %v2660_v9  ;;  %v3022_v26 = vrot.slane %v632_v51, %v2660_v9  ;;  %v655_v54 = vcombine.high %v654_v57, %v654_v57 }
  0x32   :  { %3681 = vst [vmem:[#allocation23_spill] sm:$0xff] %v3017_v21  ;;  %v992_v61 = vrot.slane %v964_v60, %v2660_v9  ;;  %v3026_v63 = vrot.slane %v654_v57, %v2660_v9  ;;  %v677_v39 = vrot.slane %v3008_v48, %v2660_v9  ;;  %v1001_v37 = vrot.slane %v993_v45, %v2660_v9 }
  0x33   :  { %3682 = vst [vmem:[#allocation24_spill] sm:$0xff] %v3022_v26  ;;  %v960_v43 = vcombine.low %v952_v10, %v959_v3  ;;  %v3032_v56 = vrot.slane %v655_v54, %v2660_v9  ;;  %v1010_v47 = vcombine.low %v3022_v26, %v3017_v21 }
  0x34   :  { %3683 = vst [vmem:[#allocation25_spill] sm:$0xff] %v3026_v63  ;;  %v994_v44 = vcombine.low %v985_v58, %v992_v61  ;;  %v3038_v51 = vcombine.high %v3026_v63, %v3026_v63  ;;  %v678_v60 = vcombine.high %v677_v39, %v677_v39  ;;  %v3041_v57 = vrot.slane %v677_v39, %v2660_v9 }
  0x35   :  { %3684 = vst [vmem:[#allocation26_spill] sm:$0xff] %v3032_v56  ;;  %2549 = vmatmul.mubr.f32.vlgmr.msra.gmra.mxu1 %v960_v43  ;;  %v1011_v10 = vcombine.low %v3026_v63, %v3032_v56  ;;  %v1020_v45 = vrot.slane %v1010_v47, %v2660_v9 }
  0x36   :  { %3685 = vst [vmem:[#allocation27_spill] sm:$0xff] %v3038_v51  ;;  %3686 = vst [vmem:[#allocation28_spill] sm:$0xff] %v3041_v57  ;;  %v1008_v3 = vrot.slane %v994_v44, %v2660_v9  ;;  %v3048_v54 = vrot.slane %v678_v60, %v2660_v9  ;;  %v3052_v61 = vcombine.high %v3041_v57, %v3041_v57 }
  0x37   :  { %v1012_v58 = vcombine.low %v3038_v51, %v3041_v57  ;;  %v1027_v39 = vrot.slane %v1011_v10, %v2660_v9  ;;  %v182_v10 = vsel %vm28_vm0, %v2668_v11, 0.0  ;;  %v203_v11 = vsel %vm28_vm0, %v2799_v1, 0.0 }
  0x38   :  { %3687 = vst [vmem:[#allocation29_spill] sm:$0xff] %v3048_v54  ;;  %3688 = vst [vmem:[#allocation30_spill] sm:$0xff] %v3052_v61  ;;  %v1009_v43 = vcombine.low %v1001_v37, %v1008_v3  ;;  %v1013_v56 = vcombine.low %v3048_v54, %v3052_v61  ;;  %v20_v37 = vld [vmem:[%s3625_s0] sm:$0x7]  ;;  %v183_v3 = vrot.slane %v182_v10, 4  ;;  %v210_v1 = vsel %vm28_vm0, %v2804_v2, 0.0 }
  0x39   :  { %v1034_v47 = vrot.slane %v1012_v58, %v2660_v9  ;;  %v1042_v63 = vcombine.low %v1020_v45, %v1027_v39  ;;  %v189_v45 = vsel %vm28_vm0, %v2673_v12, 0.0 }
  0x3a   :  { %2551 = vmatprep.mubr.f32.mxu1 %v1009_v43  ;;  %v1041_v44 = vrot.slane %v1013_v56, %v2660_v9  ;;  %v29_v56 = vsel %vm28_vm0, %v20_v37, 0.0  ;;  %v190_v58 = vrot.slane %v189_v45, 4  ;;  %v184_v39 = vadd.f32 %v183_v3, %v182_v10 }
  0x3b   :  { %v1050_v21 = vrot.slane %v1042_v63, %v2660_v9  ;;  %v30_v63 = vrot.slane %v29_v56, 4  ;;  %v204_v10 = vrot.slane %v203_v11, 4 }
  0x3c   :  { %v1043_v60 = vcombine.low %v1034_v47, %v1041_v44  ;;  %v191_v43 = vadd.f32 %v190_v58, %v189_v45  ;;  %v185_v47 = vrot.slane %v184_v39, 2 }
  0x3d   :  { %v205_v54 = vadd.f32 %v204_v10, %v203_v11  ;;  %v211_v11 = vrot.slane %v210_v1, 4 }
  0x3e   :  { %v1057_v26 = vrot.slane %v1043_v60, %v2660_v9  ;;  %v192_v12 = vrot.slane %v191_v43, 2  ;;  %v186_v45 = vadd.f32 %v185_v47, %v184_v39 }
  0x3f   :  { %v206_v39 = vrot.slane %v205_v54, 2  ;;  %v212_v4 = vadd.f32 %v211_v11, %v210_v1 }
  0x40   :  { %v1058_v33 = vcombine.low %v1050_v21, %v1057_v26  ;;  %v31_v26 = vadd.f32 %v30_v63, %v29_v56  ;;  %v196_v21 = vsel %vm28_vm0, %v2678_v13, 0.0  ;;  %v193_v56 = vadd.f32 %v192_v12, %v191_v43  ;;  %v22_v13 = vld [vmem:[%s3625_s0 + $0x8] sm:$0x7] }
  0x41   :  { %v197_v60 = vrot.slane %v196_v21, 4  ;;  %v187_v57 = vrot.slane %v186_v45, 1  ;;  %v43_v36 = vsel %vm28_vm0, %v22_v13, 0.0 }
  0x42   :  { %2552 = vmatmul.mubr.f32.gmra.mxu1 %v1058_v33  ;;  %v21_v33 = vld [vmem:[%s3625_s0 + $0x4] sm:$0x7]  ;;  %v32_v37 = vrot.slane %v31_v26, 2  ;;  %v194_v51 = vrot.slane %v193_v56, 1  ;;  %v44_v43 = vrot.slane %v43_v36, 4 }
  0x43   :  { %v36_v44 = vsel %vm28_vm0, %v21_v33, 0.0  ;;  %v198_v3 = vadd.f32 %v197_v60, %v196_v21  ;;  %v188_v21 = vadd.f32 %v187_v57, %v186_v45 }
  0x44   :  { %v37_v61 = vrot.slane %v36_v44, 4  ;;  %v33_v58 = vadd.f32 %v32_v37, %v31_v26  ;;  %v195_v26 = vadd.f32 %v194_v51, %v193_v56  ;;  %v45_v60 = vadd.f32 %v44_v43, %v43_v36 }
  0x45   :  { %v199_v33 = vrot.slane %v198_v3, 2  ;;  %v294_v37 = vmul.f32 0.33333334, %v188_v21  ;;  %v213_v51 = vrot.slane %v212_v4, 2  ;;  %v217_v36 = vsel %vm28_vm0, %v2687_v16, 0.0 }
  0x46   :  { %v38_v63 = vadd.f32 %v37_v61, %v36_v44  ;;  %v34_v27 = vrot.slane %v33_v58, 1  ;;  %v207_v44 = vadd.f32 %v206_v39, %v205_v54  ;;  %v295_v10 = vmul.f32 0.33333334, %v195_v26  ;;  %v95_v16 = vld [vmem:[%s3626_s1 + $0x4] sm:$0x7] }
  0x47   :  { %v200_v61 = vadd.f32 %v199_v33, %v198_v3  ;;  %v46_v57 = vrot.slane %v45_v60, 2  ;;  %v214_v3 = vadd.f32 %v213_v51, %v212_v4  ;;  %v218_v39 = vrot.slane %v217_v36, 4  ;;  %v96_v26 = vld [vmem:[%s3626_s1 + $0x8] sm:$0x7] }
  0x48   :  { %v39_v14 = vrot.slane %v38_v63, 2  ;;  %v35_v47 = vadd.f32 %v34_v27, %v33_v58  ;;  %v208_v59 = vrot.slane %v207_v44, 1  ;;  %v2201_v55 = vsel %vm2168_vm1, %v295_v10, %v294_v37  ;;  %v23_v58 = vld [vmem:[%s3625_s0 + $0xc] sm:$0x7] }
  0x49   :  { %v201_v2 = vrot.slane %v200_v61, 1  ;;  %v47_v56 = vadd.f32 %v46_v57, %v45_v60  ;;  %v109_v43 = vsel %vm28_vm0, %v95_v16, 0.0  ;;  %v116_v60 = vsel %vm28_vm0, %v96_v26, 0.0 }
  0x4a   :  { %v40_v12 = vadd.f32 %v39_v14, %v38_v63  ;;  %v3085_v62 = vmul.f32 0.33333334, %v35_v47  ;;  %v209_v14 = vadd.f32 %v208_v59, %v207_v44  ;;  %v215_v59 = vrot.slane %v214_v3, 1 }
  0x4b   :  { %v202_v52 = vadd.f32 %v201_v2, %v200_v61  ;;  %v219_v61 = vadd.f32 %v218_v39, %v217_v36  ;;  %v110_v47 = vrot.slane %v109_v43, 4  ;;  %v50_v2 = vsel %vm28_vm0, %v23_v58, 0.0 }
  0x4c   :  { %v41_v13 = vrot.slane %v40_v12, 1  ;;  %v2217_v45 = vmul.f32 %v2201_v55, %v3085_v62  ;;  %v297_v33 = vmul.f32 0.33333334, %v209_v14  ;;  %v94_v55 = vld [vmem:[%s3626_s1] sm:$0x7]  ;;  %v216_v37 = vadd.f32 %v215_v59, %v214_v3 }
  0x4d   :  { %v296_v54 = vmul.f32 0.33333334, %v202_v52  ;;  %v48_v52 = vrot.slane %v47_v56, 1  ;;  %v102_v4 = vsel %vm28_vm0, %v94_v55, 0.0  ;;  %v220_v10 = vrot.slane %v219_v61, 2 }
  0x4e   :  { %v42_v27 = vadd.f32 %v41_v13, %v40_v12  ;;  %v2226_v63 = vsel %vm2225_vm2, %v2217_v45, 0.0  ;;  %v103_v11 = vrot.slane %v102_v4, 4  ;;  %v97_v13 = vld [vmem:[%s3626_s1 + $0xc] sm:$0x7]  ;;  %v111_v51 = vadd.f32 %v110_v47, %v109_v43 }
  0x4f   :  { %2227 = vadd.xlane.f32.xlu0 %v2226_v63  ;;  %v2202_v21 = vsel %vm2168_vm1, %v297_v33, %v296_v54  ;;  %v49_v44 = vadd.f32 %v48_v52, %v47_v56  ;;  %v117_v14 = vrot.slane %v116_v60, 4  ;;  %v221_v36 = vadd.f32 %v220_v10, %v219_v61 }
  0x50   :  { %v3095_v1 = vmul.f32 0.33333334, %v42_v27  ;;  %v104_v57 = vadd.f32 %v103_v11, %v102_v4  ;;  %v298_v54 = vmul.f32 0.33333334, %v216_v37  ;;  %v51_v56 = vrot.slane %v50_v2, 4 }
  0x51   :  { %v3116_v27 = vmul.f32 0.33333334, %v49_v44  ;;  %v112_v3 = vrot.slane %v111_v51, 2  ;;  %v123_v33 = vsel %vm28_vm0, %v97_v13, 0.0  ;;  %v224_v58 = vsel %vm28_vm0, %v2692_v17, 0.0 }
  0x52   :  { %3689 = vst [vmem:[#allocation31_spill] sm:$0xff] %v3095_v1  ;;  %v2218_v12 = vmul.f32 %v2202_v21, %v3095_v1  ;;  %v105_v63 = vrot.slane %v104_v57, 2  ;;  %v118_v39 = vadd.f32 %v117_v14, %v116_v60  ;;  %v222_v55 = vrot.slane %v221_v36, 1 }
  0x53   :  { %v52_v16 = vadd.f32 %v51_v56, %v50_v2  ;;  %v124_v52 = vrot.slane %v123_v33, 4  ;;  %v113_v4 = vadd.f32 %v112_v3, %v111_v51  ;;  %v225_v43 = vrot.slane %v224_v58, 4 }
  0x54   :  { %v2229_v45 = vsel %vm2225_vm2, %v2218_v12, 0.0  ;;  %v106_v59 = vadd.f32 %v105_v63, %v104_v57  ;;  %v231_v21 = vsel %vm28_vm0, %v2749_v41, 0.0  ;;  %v119_v26 = vrot.slane %v118_v39, 2 }
  0x55   :  { %2230 = vadd.xlane.f32.xlu0 %v2229_v45  ;;  %v223_v61 = vadd.f32 %v222_v55, %v221_v36  ;;  %v53_v11 = vrot.slane %v52_v16, 2  ;;  %v125_v47 = vadd.f32 %v124_v52, %v123_v33  ;;  %v114_v44 = vrot.slane %v113_v4, 1 }
  0x56   :  { %v107_v12 = vrot.slane %v106_v59, 1  ;;  %v226_v37 = vadd.f32 %v225_v43, %v224_v58  ;;  %v232_v10 = vrot.slane %v231_v21, 4  ;;  %v120_v13 = vadd.f32 %v119_v26, %v118_v39 }
  0x57   :  { %v299_v17 = vmul.f32 0.33333334, %v223_v61  ;;  %v54_v60 = vadd.f32 %v53_v11, %v52_v16  ;;  %v126_v45 = vrot.slane %v125_v47, 2  ;;  %v115_v14 = vadd.f32 %v114_v44, %v113_v4  ;;  %v24_v16 = vld [vmem:[%s3625_s0 + $0x10] sm:$0x7] }
  0x58   :  { %v108_v2 = vadd.f32 %v107_v12, %v106_v59  ;;  %v227_v57 = vrot.slane %v226_v37, 2  ;;  %v233_v51 = vadd.f32 %v232_v10, %v231_v21  ;;  %v121_v56 = vrot.slane %v120_v13, 1  ;;  %v98_v59 = vld [vmem:[%s3626_s1 + $0x10] sm:$0x7] }
  0x59   :  { %v2203_v63 = vsel %vm2168_vm1, %v299_v17, %v298_v54  ;;  %v55_v41 = vrot.slane %v54_v60, 1  ;;  %v127_v3 = vadd.f32 %v126_v45, %v125_v47  ;;  %v159_v55 = vmul.f32 0.33333334, %v115_v14 }
  0x5a   :  { %v158_v36 = vmul.f32 0.33333334, %v108_v2  ;;  %v2219_v33 = vmul.f32 %v2203_v63, %v3116_v27  ;;  %v228_v52 = vadd.f32 %v227_v57, %v226_v37  ;;  %v122_v58 = vadd.f32 %v121_v56, %v120_v13  ;;  %v25_v57 = vld [vmem:[%s3625_s0 + $0x14] sm:$0x7] }
  0x5b   :  { %v56_v43 = vadd.f32 %v55_v41, %v54_v60  ;;  %v128_v39 = vrot.slane %v127_v3, 1  ;;  %v234_v26 = vrot.slane %v233_v51, 2  ;;  %v3135_v4 = vmul.f32 %v159_v55, %v3095_v1 }
  0x5c   :  { %v3132_v54 = vmul.f32 %v158_v36, %v3085_v62  ;;  %v2232_v21 = vsel %vm2225_vm2, %v2219_v33, 0.0  ;;  %v229_v61 = vrot.slane %v228_v52, 1  ;;  %v160_v11 = vmul.f32 0.33333334, %v122_v58 }
  0x5d   :  { %2233 = vadd.xlane.f32.xlu0 %v2232_v21  ;;  %v3138_v47 = vmul.f32 0.33333334, %v56_v43  ;;  %v129_v12 = vadd.f32 %v128_v39, %v127_v3  ;;  %v235_v44 = vadd.f32 %v234_v26, %v233_v51  ;;  %v57_v10 = vsel %vm28_vm0, %v24_v16, 0.0 }
  0x5e   :  { %v230_v37 = vadd.f32 %v229_v61, %v228_v52  ;;  %v130_v13 = vsel %vm28_vm0, %v98_v59, 0.0  ;;  %v238_v17 = vsel %vm28_vm0, %v2820_v8, 0.0  ;;  %v3145_v60 = vmul.f32 %v160_v11, %v3116_v27 }
  0x5f   :  { %v161_v45 = vmul.f32 0.33333334, %v129_v12  ;;  %v236_v2 = vrot.slane %v235_v44, 1  ;;  %v58_v14 = vrot.slane %v57_v10, 4  ;;  %v131_v51 = vrot.slane %v130_v13, 4 }
  0x60   :  { %v300_v56 = vmul.f32 0.33333334, %v230_v37  ;;  %v239_v63 = vrot.slane %v238_v17, 4  ;;  %v245_v41 = vsel %vm28_vm0, %v2888_v15, 0.0  ;;  %v64_v58 = vsel %vm28_vm0, %v25_v57, 0.0 }
  0x61   :  { %v237_v3 = vadd.f32 %v236_v2, %v235_v44  ;;  %v3153_v36 = vmul.f32 %v161_v45, %v3138_v47  ;;  %v59_v8 = vadd.f32 %v58_v14, %v57_v10  ;;  %v246_v55 = vrot.slane %v245_v41, 4 }
  0x62   :  { %v132_v33 = vadd.f32 %v131_v51, %v130_v13  ;;  %v240_v52 = vadd.f32 %v239_v63, %v238_v17  ;;  %v252_v43 = vsel %vm28_vm0, %v2893_v18, 0.0  ;;  %v65_v59 = vrot.slane %v64_v58, 4  ;;  %v26_v63 = vld [vmem:[%s3625_s0 + $0x18] sm:$0x7] }
  0x63   :  { %v301_v39 = vmul.f32 0.33333334, %v237_v3  ;;  %v60_v26 = vrot.slane %v59_v8, 2  ;;  %v247_v16 = vadd.f32 %v246_v55, %v245_v41  ;;  %v253_v15 = vrot.slane %v252_v43, 4 }
  0x64   :  { %v133_v21 = vrot.slane %v132_v33, 2  ;;  %v241_v61 = vrot.slane %v240_v52, 2  ;;  %v259_v11 = vsel %vm28_vm0, %v2903_v24, 0.0  ;;  %v66_v10 = vadd.f32 %v65_v59, %v64_v58 }
  0x65   :  { %v2204_v12 = vsel %vm2168_vm1, %v301_v39, %v300_v56  ;;  %v61_v44 = vadd.f32 %v60_v26, %v59_v8  ;;  %v248_v37 = vrot.slane %v247_v16, 2  ;;  %v254_v18 = vadd.f32 %v253_v15, %v252_v43 }
  0x66   :  { %v2220_v13 = vmul.f32 %v2204_v12, %v3138_v47  ;;  %v134_v17 = vadd.f32 %v133_v21, %v132_v33  ;;  %v242_v45 = vadd.f32 %v241_v61, %v240_v52  ;;  %v67_v57 = vrot.slane %v66_v10, 2 }
  0x67   :  { %v62_v2 = vrot.slane %v61_v44, 1  ;;  %v249_v14 = vadd.f32 %v248_v37, %v247_v16  ;;  %v260_v51 = vrot.slane %v259_v11, 4  ;;  %v255_v3 = vrot.slane %v254_v18, 2 }
  0x68   :  { %v2235_v24 = vsel %vm2225_vm2, %v2220_v13, 0.0  ;;  %v135_v41 = vrot.slane %v134_v17, 1  ;;  %v243_v56 = vrot.slane %v242_v45, 1  ;;  %v68_v58 = vadd.f32 %v67_v57, %v66_v10 }
  0x69   :  { %2236 = vadd.xlane.f32.xlu0 %v2235_v24  ;;  %v63_v8 = vadd.f32 %v62_v2, %v61_v44  ;;  %v250_v55 = vrot.slane %v249_v14, 1  ;;  %v261_v33 = vadd.f32 %v260_v51, %v259_v11  ;;  %v256_v39 = vadd.f32 %v255_v3, %v254_v18  ;;  %v27_v2 = vld [vmem:[%s3625_s0 + $0x1c] sm:$0x7] }
  0x6a   :  { %v136_v52 = vadd.f32 %v135_v41, %v134_v17  ;;  %v244_v43 = vadd.f32 %v243_v56, %v242_v45  ;;  %v71_v26 = vsel %vm28_vm0, %v26_v63, 0.0  ;;  %v69_v21 = vrot.slane %v68_v58, 1 }
  0x6b   :  { %v3167_v16 = vmul.f32 0.33333334, %v63_v8  ;;  %v251_v59 = vadd.f32 %v250_v55, %v249_v14  ;;  %v262_v61 = vrot.slane %v261_v33, 2  ;;  %v257_v37 = vrot.slane %v256_v39, 1 }
  0x6c   :  { %v162_v15 = vmul.f32 0.33333334, %v136_v52  ;;  %v302_v12 = vmul.f32 0.33333334, %v244_v43  ;;  %v72_v13 = vrot.slane %v71_v26, 4  ;;  %v70_v24 = vadd.f32 %v69_v21, %v68_v58 }
  0x6d   :  { %v303_v1 = vmul.f32 0.33333334, %v251_v59  ;;  %v263_v44 = vadd.f32 %v262_v61, %v261_v33  ;;  %v266_v11 = vsel %vm28_vm0, %v2908_v28, 0.0  ;;  %v258_v17 = vadd.f32 %v257_v37, %v256_v39 }
  0x6e   :  { %v3172_v10 = vmul.f32 %v162_v15, %v3167_v16  ;;  %v73_v45 = vadd.f32 %v72_v13, %v71_v26  ;;  %v267_v18 = vrot.slane %v266_v11, 4  ;;  %v3178_v57 = vmul.f32 0.33333334, %v70_v24 }
  0x6f   :  { %v2205_v14 = vsel %vm2168_vm1, %v303_v1, %v302_v12  ;;  %v264_v51 = vrot.slane %v263_v44, 1  ;;  %v273_v63 = vsel %vm28_vm0, %v2955_v22, 0.0  ;;  %v304_v41 = vmul.f32 0.33333334, %v258_v17  ;;  %v99_v22 = vld [vmem:[%s3626_s1 + $0x14] sm:$0x7] }
  0x70   :  { %v2221_v28 = vmul.f32 %v2205_v14, %v3167_v16  ;;  %v74_v56 = vrot.slane %v73_v45, 2  ;;  %v268_v3 = vadd.f32 %v267_v18, %v266_v11  ;;  %v274_v55 = vrot.slane %v273_v63, 4 }
  0x71   :  { %v265_v8 = vadd.f32 %v264_v51, %v263_v44  ;;  %v78_v58 = vsel %vm28_vm0, %v27_v2, 0.0  ;;  %v280_v33 = vsel %vm28_vm0, %v2987_v0, 0.0  ;;  %v287_v61 = vsel %vm28_vm0, %v3008_v48, 0.0  ;;  %v100_v48 = vld [vmem:[%s3626_s1 + $0x18] sm:$0x7] }
  0x72   :  { %v2238_v1 = vsel %vm2225_vm2, %v2221_v28, 0.0  ;;  %v75_v52 = vadd.f32 %v74_v56, %v73_v45  ;;  %v269_v43 = vrot.slane %v268_v3, 2  ;;  %v79_v39 = vrot.slane %v78_v58, 4  ;;  %v101_v28 = vld [vmem:[%s3626_s1 + $0x1c] sm:$0x7] }
  0x73   :  { %2239 = vadd.xlane.f32.xlu0 %v2238_v1  ;;  %v305_v26 = vmul.f32 0.33333334, %v265_v8  ;;  %v275_v59 = vadd.f32 %v274_v55, %v273_v63  ;;  %v281_v21 = vrot.slane %v280_v33, 4  ;;  %v288_v0 = vrot.slane %v287_v61, 4 }
  0x74   :  { %v76_v15 = vrot.slane %v75_v52, 1  ;;  %v270_v12 = vadd.f32 %v269_v43, %v268_v3  ;;  %v80_v37 = vadd.f32 %v79_v39, %v78_v58  ;;  %v137_v11 = vsel %vm28_vm0, %v99_v22, 0.0 }
  0x75   :  { %v2206_v13 = vsel %vm2168_vm1, %v305_v26, %v304_v41  ;;  %v276_v24 = vrot.slane %v275_v59, 2  ;;  %v282_v44 = vadd.f32 %v281_v21, %v280_v33  ;;  %v289_v63 = vadd.f32 %v288_v0, %v287_v61 }
  0x76   :  { %v2222_v17 = vmul.f32 %v2206_v13, %v3178_v57  ;;  %v77_v45 = vadd.f32 %v76_v15, %v75_v52  ;;  %v271_v18 = vrot.slane %v270_v12, 1  ;;  %v81_v2 = vrot.slane %v80_v37, 2 }
  0x77   :  { %v277_v14 = vadd.f32 %v276_v24, %v275_v59  ;;  %v283_v51 = vrot.slane %v282_v44, 2  ;;  %v138_v41 = vrot.slane %v137_v11, 4  ;;  %v290_v1 = vrot.slane %v289_v63, 2 }
  0x78   :  { %v2241_v56 = vsel %vm2225_vm2, %v2222_v17, 0.0  ;;  %v3202_v3 = vmul.f32 0.33333334, %v77_v45  ;;  %v272_v8 = vadd.f32 %v271_v18, %v270_v12  ;;  %v82_v55 = vadd.f32 %v81_v2, %v80_v37 }
  0x79   :  { %2242 = vadd.xlane.f32.xlu0 %v2241_v56  ;;  %v278_v58 = vrot.slane %v277_v14, 1  ;;  %v284_v33 = vadd.f32 %v283_v51, %v282_v44  ;;  %v139_v52 = vadd.f32 %v138_v41, %v137_v11  ;;  %v144_v22 = vsel %vm28_vm0, %v100_v48, 0.0 }
  0x7a   :  { %v306_v43 = vmul.f32 0.33333334, %v272_v8  ;;  %v83_v39 = vrot.slane %v82_v55, 1  ;;  %v151_v26 = vsel %vm28_vm0, %v101_v28, 0.0  ;;  %v291_v61 = vadd.f32 %v290_v1, %v289_v63 }
  0x7b   :  { %v279_v59 = vadd.f32 %v278_v58, %v277_v14  ;;  %v285_v21 = vrot.slane %v284_v33, 1  ;;  %v140_v15 = vrot.slane %v139_v52, 2  ;;  %v145_v13 = vrot.slane %v144_v22, 4 }
  0x7c   :  { %v84_v0 = vadd.f32 %v83_v39, %v82_v55  ;;  %v152_v24 = vrot.slane %v151_v26, 4  ;;  %v2169_v12 = vsel %vm2168_vm1, %v3135_v4, %v3132_v54  ;;  %v292_v11 = vrot.slane %v291_v61, 1 }
  0x7d   :  { %v307_v37 = vmul.f32 0.33333334, %v279_v59  ;;  %v286_v44 = vadd.f32 %v285_v21, %v284_v33  ;;  %v141_v17 = vadd.f32 %v140_v15, %v139_v52  ;;  %v146_v18 = vadd.f32 %v145_v13, %v144_v22 }
  0x7e   :  { %v3209_v45 = vmul.f32 0.33333334, %v84_v0  ;;  %v153_v2 = vadd.f32 %v152_v24, %v151_v26  ;;  %v293_v51 = vadd.f32 %v292_v11, %v291_v61  ;;  %v2171_v54 = vsel %vm2170_vm3, %v3145_v60, %v2169_v12 }
  0x7f   :  { %v2207_v14 = vsel %vm2168_vm1, %v307_v37, %v306_v43  ;;  %v308_v63 = vmul.f32 0.33333334, %v286_v44  ;;  %v142_v48 = vrot.slane %v141_v17, 1  ;;  %v147_v41 = vrot.slane %v146_v18, 2 }
  0x80   :  { %v2223_v28 = vmul.f32 %v2207_v14, %v3202_v3  ;;  %v154_v56 = vrot.slane %v153_v2, 2  ;;  %v309_v4 = vmul.f32 0.33333334, %v293_v51  ;;  %v2173_v1 = vsel %vm2172_vm4, %v3153_v36, %v2171_v54  ;;  %v2484_v36 = vld [vmem:[%s3627_s4] ss:$0 sm:$0xff] }
  0x81   :  { %v143_v8 = vadd.f32 %v142_v48, %v141_v17  ;;  %v148_v58 = vadd.f32 %v147_v41, %v146_v18  ;;  %v2175_v59 = vsel %vm2174_vm5, %v3172_v10, %v2173_v1 }
  0x82   :  { %v2244_v55 = vsel %vm2225_vm2, %v2223_v28, 0.0  ;;  %v155_v33 = vadd.f32 %v154_v56, %v153_v2  ;;  %v2208_v52 = vsel %vm2168_vm1, %v309_v4, %v308_v63 }
  0x83   :  { %2245 = vadd.xlane.f32.xlu0 %v2244_v55  ;;  %v163_v43 = vmul.f32 0.33333334, %v143_v8  ;;  %v2224_v39 = vmul.f32 %v2208_v52, %v3209_v45  ;;  %v149_v22 = vrot.slane %v148_v58, 1 }
  0x84   :  { %v156_v26 = vrot.slane %v155_v33, 1 }
  0x85   :  { %v2157_v60 = vmul.f32 %v163_v43, %v3178_v57  ;;  %v2247_v21 = vsel %vm2225_vm2, %v2224_v39, 0.0  ;;  %v150_v61 = vadd.f32 %v149_v22, %v148_v58 }
  0x86   :  { %v157_v15 = vadd.f32 %v156_v26, %v155_v33 }
  0x87   :  { %2248 = vadd.xlane.f32.xlu0 %v2247_v21  ;;  %v164_v0 = vmul.f32 0.33333334, %v150_v61  ;;  %v2177_v24 = vsel %vm2176_vm6, %v2157_v60, %v2175_v59  ;;  %v3690_v21 = vlaneseq }
  0x88   :  { %v165_v13 = vmul.f32 0.33333334, %v157_v15 }
  0x89   :  { %v2158_v37 = vmul.f32 %v164_v0, %v3202_v3  ;;  %v3233_v61 = vand.u32 127, %v3690_v21 }
  0x8a   :  { %v2159_v10 = vmul.f32 %v165_v13, %v3209_v45 }
  0x8b   :  { %v2179_v17 = vsel %vm2178_vm7, %v2158_v37, %v2177_v24  ;;  %v2335_v13 = vadd.s32 4294967295, %v3233_v61 }
  0x8c   :  { %v2181_v14 = vsel %vm2180_vm8, %v2159_v10, %v2179_v17 }
  0x8d   :  { %2183 = vadd.xlane.f32.xlu0 %v2181_v14 }
  0xea   :  { %v2547_v12 = vpop.f32.mrf.mxu0 }
  0xeb   :  { %v1137_v44 = vadd.f32 %v2547_v12, %v2484_v36 }
  0xec   :  { %v1131_v11 = vpop.f32.mrf.mxu0 }
  0xed   :  { %v2486_v18 = vmul.f32 -1.442695, %v1137_v44  ;;  %v1132_v2 = vadd.f32 %v2484_v36, %v1131_v11 }
  0xef   :  { %2588 = vpow2.f32 %v2486_v18  ;;  %v2485_v51 = vmul.f32 -1.442695, %v1132_v2  ;;  %v3243_v18 = vsub.s32 %v2335_v13, %v2651_v5 }
  0xf1   :  { %2590 = vpow2.f32 %v2485_v51 }
  0xf5   :  { %v2550_v63 = vpop.f32.mrf.mxu1 }
  0xf6   :  { %v1147_v48 = vadd.f32 %v2550_v63, %v2484_v36 }
  0xf7   :  { %v1141_v28 = vpop.f32.mrf.mxu1 }
  0xf8   :  { %v2488_v41 = vmul.f32 -1.442695, %v1147_v48  ;;  %v1142_v56 = vadd.f32 %v2484_v36, %v1141_v28 }
  0xfa   :  { %2592 = vpow2.f32 %v2488_v41  ;;  %v2487_v54 = vmul.f32 -1.442695, %v1142_v56 }
  0xfc   :  { %2594 = vpow2.f32 %v2487_v54  ;;  %v2589_v4 = vpop.eup %2588 }
  0xfd   :  { %v1179_v8 = vadd.f32 1.0, %v2589_v4 }
  0xfe   :  { %v2591_v55 = vpop.eup %2590 }
  0xff   :  { %2596 = vrcp.f32 %v1179_v8  ;;  %v1178_v58 = vadd.f32 1.0, %v2591_v55 }
 0x101   :  { %2598 = vrcp.f32 %v1178_v58 }
 0x102   :  { %v2553_v33 = vpop.f32.mrf.mxu1 }
 0x103   :  { %v1157_v1 = vadd.f32 %v2553_v33, %v2484_v36 }
 0x104   :  { %v1151_v52 = vpop.f32.mrf.mxu1 }
 0x105   :  { %v2490_v43 = vmul.f32 -1.442695, %v1157_v1  ;;  %v1152_v39 = vadd.f32 %v2484_v36, %v1151_v52 }
 0x107   :  { %v2593_v22 = vpop.eup %2592  ;;  %2600 = vpow2.f32 %v2490_v43  ;;  %v2489_v26 = vmul.f32 -1.442695, %v1152_v39 }
 0x108   :  { %v1181_v60 = vadd.f32 1.0, %v2593_v22 }
 0x109   :  { %v2595_v59 = vpop.eup %2594  ;;  %2602 = vpow2.f32 %v2489_v26 }
 0x10a   :  { %2604 = vrcp.f32 %v1181_v60  ;;  %v1180_v15 = vadd.f32 1.0, %v2595_v59 }
 0x10c   :  { %2606 = vrcp.f32 %v1180_v15  ;;  %v2597_v0 = vpop.eup %2596 }
 0x10d   :  { %v1251_v24 = vcombine.high %v2597_v0, %v2597_v0  ;;  %v1258_v12 = vrot.slane %v2597_v0, %v2660_v9 }
 0x10e   :  { %v2599_v37 = vpop.eup %2598 }
 0x10f   :  { %v1265_v36 = vrot.slane %v1251_v24, %v2660_v9  ;;  %v1266_v10 = vcombine.high %v1258_v12, %v1258_v12  ;;  %v3239_v44 = vrot.slane %v1258_v12, %v2660_v9  ;;  %v1202_v11 = vcombine.high %v2599_v37, %v2599_v37 }
 0x110   :  { %v1209_v17 = vrot.slane %v2599_v37, %v2660_v9 }
 0x111   :  { %v1267_v2 = vcombine.high %v1265_v36, %v1265_v36  ;;  %v3246_v14 = vrot.slane %v1265_v36, %v2660_v9  ;;  %v3249_v51 = vrot.slane %v1266_v10, %v2660_v9  ;;  %v1296_v63 = vcombine.high %v3239_v44, %v3239_v44 }
 0x112   :  { %v1216_v48 = vrot.slane %v1202_v11, %v2660_v9  ;;  %v1217_v28 = vcombine.high %v1209_v17, %v1209_v17  ;;  %v1225_v41 = vrot.slane %v1209_v17, %v2660_v9  ;;  %v3257_v56 = vmul.f32 %v3239_v44, %v2815_v7 }
 0x113   :  { %v3260_v4 = vrot.slane %v1267_v2, %v2660_v9  ;;  %v1297_v8 = vcombine.high %v3246_v14, %v3246_v14  ;;  %v3266_v55 = vmul.f32 %v3246_v14, %v2851_v40  ;;  %v1298_v58 = vcombine.high %v3249_v51, %v3249_v51 }
 0x114   :  { %v2601_v54 = vpop.eup %2600  ;;  %v1218_v33 = vcombine.high %v1216_v48, %v1216_v48  ;;  %v3271_v1 = vrot.slane %v1216_v48, %v2660_v9  ;;  %v1239_v7 = vrot.slane %v1217_v28, %v2660_v9  ;;  %v1247_v39 = vcombine.high %v1225_v41, %v1225_v41 }
 0x115   :  { %v1183_v52 = vadd.f32 1.0, %v2601_v54  ;;  %v1544_v22 = vmul.f32 %v1225_v41, %v2704_v23  ;;  %v1299_v26 = vcombine.high %v3260_v4, %v3260_v4  ;;  %v3279_v40 = vmul.f32 %v3260_v4, %v2865_v49 }
 0x116   :  { %v2603_v43 = vpop.eup %2602  ;;  %v3282_v21 = vrot.slane %v1218_v33, %v2660_v9  ;;  %v1249_v15 = vcombine.high %v1239_v7, %v1239_v7  ;;  %v1545_v24 = vmul.f32 %v1239_v7, %v2716_v29  ;;  %v1546_v23 = vmul.f32 %v1247_v39, %v2720_v30 }
 0x117   :  { %v2605_v60 = vpop.eup %2604  ;;  %2608 = vrcp.f32 %v1183_v52  ;;  %v1182_v59 = vadd.f32 1.0, %v2603_v43  ;;  %v1548_v49 = vmul.f32 %v3271_v1, %v2723_v31 }
 0x118   :  { %v1349_v0 = vcombine.high %v2605_v60, %v2605_v60  ;;  %v1356_v13 = vrot.slane %v2605_v60, %v2660_v9  ;;  %v1547_v37 = vmul.f32 %v1249_v15, %v2707_v25  ;;  %v1549_v36 = vmul.f32 %v3282_v21, %v2727_v32 }
 0x119   :  { %v2607_v12 = vpop.eup %2606  ;;  %2610 = vrcp.f32 %v1182_v59  ;;  %v1640_v48 = vcombine.low %v1544_v22, %v1545_v24  ;;  %v1654_v30 = vrot.slane %v1546_v23, %v2660_v9 }
 0x11a   :  { %v1363_v10 = vrot.slane %v1349_v0, %v2660_v9  ;;  %v1364_v11 = vcombine.high %v1356_v13, %v1356_v13  ;;  %v1372_v17 = vrot.slane %v1356_v13, %v2660_v9  ;;  %v1300_v2 = vcombine.high %v2607_v12, %v2607_v12 }
 0x11b   :  { %v1307_v29 = vrot.slane %v2607_v12, %v2660_v9  ;;  %v1663_v28 = vcombine.low %v1547_v37, %v1548_v49  ;;  %v1647_v0 = vrot.slane %v1640_v48, %v2660_v9 }
 0x11c   :  { %v1365_v41 = vcombine.high %v1363_v10, %v1363_v10  ;;  %v3297_v25 = vrot.slane %v1363_v10, %v2660_v9  ;;  %v1386_v31 = vrot.slane %v1364_v11, %v2660_v9  ;;  %v3301_v32 = vrot.slane %v1300_v2, %v2660_v9 }
 0x11d   :  { %v1315_v54 = vcombine.high %v1307_v29, %v1307_v29  ;;  %v3304_v4 = vrot.slane %v1307_v29, %v2660_v9  ;;  %v1394_v33 = vcombine.high %v1372_v17, %v1372_v17  ;;  %v1568_v7 = vmul.f32 %v1372_v17, %v2896_v19 }
 0x11e   :  { %v1316_v52 = vcombine.high %v3301_v32, %v3301_v32  ;;  %v3310_v43 = vrot.slane %v1365_v41, %v2660_v9  ;;  %v1396_v39 = vcombine.high %v1386_v31, %v1386_v31  ;;  %v1569_v22 = vmul.f32 %v1386_v31, %v2911_v34 }
 0x11f   :  { %v1345_v60 = vcombine.high %v3304_v4, %v3304_v4  ;;  %v1570_v59 = vmul.f32 %v1394_v33, %v2915_v35  ;;  %v1572_v15 = vmul.f32 %v3297_v25, %v2943_v6  ;;  %v1655_v12 = vcombine.low %v1647_v0, %v1654_v30 }
 0x120   :  { %v1397_v19 = vcombine.high %v3310_v43, %v3310_v43  ;;  %v1571_v13 = vmul.f32 %v1396_v39, %v2933_v53  ;;  %v1573_v24 = vmul.f32 %v3310_v43, %v2947_v20  ;;  %v1824_v23 = vcombine.low %v1568_v7, %v1569_v22 }
 0x121   :  { %v1838_v34 = vrot.slane %v1570_v59, %v2660_v9  ;;  %v1670_v37 = vrot.slane %v1663_v28, %v2660_v9  ;;  %v1677_v35 = vrot.slane %v1549_v36, %v2660_v9  ;;  %v3330_v11 = vrot.slane %v1315_v54, %v2660_v9 }
 0x122   :  { %v1831_v6 = vrot.slane %v1824_v23, %v2660_v9  ;;  %v1847_v49 = vcombine.low %v1571_v13, %v1572_v15  ;;  %v1861_v10 = vrot.slane %v1573_v24, %v2660_v9  ;;  %v1662_v53 = vrot.slane %v1655_v12, %v2660_v9 }
 0x123   :  { %v1678_v17 = vcombine.low %v1670_v37, %v1677_v35  ;;  %v1558_v20 = vmul.f32 %v1297_v8, %v2869_v50  ;;  %v1559_v2 = vmul.f32 %v1299_v26, %v2740_v38  ;;  %v1560_v30 = vmul.f32 %v3304_v4, %v2752_v42  ;;  %v3696_v4 = vld [vmem:[#allocation9_spill] sm:$0xff] }
 0x124   :  { %v2609_v29 = vpop.eup %2608  ;;  %v1839_v36 = vcombine.low %v1831_v6, %v1838_v34  ;;  %v1854_v48 = vrot.slane %v1847_v49, %v2660_v9  ;;  %v1561_v28 = vmul.f32 %v3330_v11, %v2761_v46  ;;  %v2024_v50 = vsel %vm28_vm0, %v1662_v53, 0.0 }
 0x125   :  { %v1447_v41 = vcombine.high %v2609_v29, %v2609_v29  ;;  %v3344_v31 = vrot.slane %v2609_v29, %v2660_v9  ;;  %v1685_v54 = vrot.slane %v1678_v17, %v2660_v9  ;;  %v2025_v26 = vrot.slane %v2024_v50, 4 }
 0x126   :  { %v2611_v14 = vpop.eup %2610  ;;  %v1846_v38 = vrot.slane %v1839_v36, %v2660_v9  ;;  %v1862_v8 = vcombine.low %v1854_v48, %v1861_v10  ;;  %v1732_v33 = vcombine.low %v3266_v55, %v3279_v40 }
 0x127   :  { %v3352_v42 = vrot.slane %v1447_v41, %v2660_v9  ;;  %v1462_v46 = vcombine.high %v3344_v31, %v3344_v31  ;;  %v3358_v7 = vrot.slane %v3344_v31, %v2660_v9  ;;  %v1398_v39 = vcombine.high %v2611_v14, %v2611_v14 }
 0x128   :  { %v1405_v22 = vrot.slane %v2611_v14, %v2660_v9  ;;  %v1869_v59 = vrot.slane %v1862_v8, %v2660_v9  ;;  %v2080_v15 = vsel %vm28_vm0, %v1846_v38, 0.0  ;;  %v2026_v0 = vadd.f32 %v2025_v26, %v2024_v50 }
 0x129   :  { %v3368_v13 = vrot.slane %v1398_v39, %v2660_v9  ;;  %v2081_v24 = vrot.slane %v2080_v15, 4  ;;  %v2031_v36 = vsel %vm28_vm0, %v1685_v54, 0.0  ;;  %v1739_v14 = vrot.slane %v1732_v33, %v2660_v9 }
 0x12a   :  { %v1413_v23 = vcombine.high %v1405_v22, %v1405_v22  ;;  %v3371_v34 = vrot.slane %v1405_v22, %v2660_v9  ;;  %v2087_v12 = vsel %vm28_vm0, %v1869_v59, 0.0  ;;  %v2027_v37 = vrot.slane %v2026_v0, 2 }
 0x12b   :  { %v1414_v35 = vcombine.high %v3368_v13, %v3368_v13  ;;  %v3378_v6 = vrot.slane %v3368_v13, %v2660_v9  ;;  %v2082_v49 = vadd.f32 %v2081_v24, %v2080_v15  ;;  %v2088_v10 = vrot.slane %v2087_v12, 4 }
 0x12c   :  { %v3381_v53 = vrot.slane %v1413_v23, %v2660_v9  ;;  %v1443_v17 = vcombine.high %v3371_v34, %v3371_v34  ;;  %v2028_v29 = vadd.f32 %v2027_v37, %v2026_v0  ;;  %v2032_v50 = vrot.slane %v2031_v36, 4 }
 0x12d   :  { %v2083_v48 = vrot.slane %v2082_v49, 2  ;;  %v2089_v41 = vadd.f32 %v2088_v10, %v2087_v12  ;;  %v1746_v8 = vrot.slane %v1558_v20, %v2660_v9  ;;  %v1755_v26 = vcombine.low %v1559_v2, %v1560_v30 }
 0x12e   :  { %v2029_v38 = vrot.slane %v2028_v29, 1  ;;  %v1769_v39 = vrot.slane %v1561_v28, %v2660_v9  ;;  %v2033_v15 = vadd.f32 %v2032_v50, %v2031_v36  ;;  %v1330_v24 = vrot.slane %v3301_v32, %v2660_v9 }
 0x12f   :  { %v2084_v22 = vadd.f32 %v2083_v48, %v2082_v49  ;;  %v2090_v59 = vrot.slane %v2089_v41, 2  ;;  %v1747_v23 = vcombine.low %v1739_v14, %v1746_v8  ;;  %v1762_v54 = vrot.slane %v1755_v26, %v2660_v9 }
 0x130   :  { %v2030_v0 = vadd.f32 %v2029_v38, %v2028_v29  ;;  %v1344_v33 = vrot.slane %v1316_v52, %v2660_v9  ;;  %v2034_v2 = vrot.slane %v2033_v15, 2  ;;  %v1346_v30 = vcombine.high %v1330_v24, %v1330_v24  ;;  %v3691_v52 = vld [vmem:[#allocation4_spill] sm:$0xff]  ;;  %v3692_v38 = vld [vmem:[#allocation5_spill] sm:$0xff] }
 0x131   :  { %v2085_v12 = vrot.slane %v2084_v22, 1  ;;  %v2091_v20 = vadd.f32 %v2090_v59, %v2089_v41  ;;  %v1754_v37 = vrot.slane %v1747_v23, %v2660_v9  ;;  %v1770_v49 = vcombine.low %v1762_v54, %v1769_v39  ;;  %v3694_v23 = vld [vmem:[#allocation7_spill] sm:$0xff] }
 0x132   :  { %v2136_v28 = vmul.f32 0.33333334, %v2030_v0  ;;  %v1347_v10 = vcombine.high %v3330_v11, %v3330_v11  ;;  %v2035_v48 = vadd.f32 %v2034_v2, %v2033_v15  ;;  %v1348_v50 = vcombine.high %v1344_v33, %v1344_v33 }
 0x133   :  { %v2086_v29 = vadd.f32 %v2085_v12, %v2084_v22  ;;  %v2092_v36 = vrot.slane %v2091_v20, 1  ;;  %v1777_v14 = vrot.slane %v1770_v49, %v2660_v9  ;;  %v2052_v32 = vsel %vm28_vm0, %v1754_v37, 0.0  ;;  %v3693_v22 = vld [vmem:[#allocation6_spill] sm:$0xff]  ;;  %v3695_v12 = vld [vmem:[#allocation8_spill] sm:$0xff] }
 0x134   :  { %v1562_v41 = vmul.f32 %v1345_v60, %v3691_v52  ;;  %v1563_v8 = vmul.f32 %v1347_v10, %v3692_v38  ;;  %v2036_v59 = vrot.slane %v2035_v48, 1  ;;  %v2053_v0 = vrot.slane %v2052_v32, 4 }
 0x135   :  { %v2093_v26 = vadd.f32 %v2092_v36, %v2091_v20  ;;  %v2144_v39 = vmul.f32 0.33333334, %v2086_v29  ;;  %v2059_v11 = vsel %vm28_vm0, %v1777_v14, 0.0  ;;  %v1564_v15 = vmul.f32 %v1330_v24, %v3693_v22  ;;  %v3697_v22 = vld [vmem:[#allocation2_spill] sm:$0xff] }
 0x136   :  { %v1565_v54 = vmul.f32 %v1344_v33, %v3694_v23  ;;  %v1566_v2 = vmul.f32 %v1346_v30, %v3695_v12  ;;  %v2037_v49 = vadd.f32 %v2036_v59, %v2035_v48  ;;  %v2054_v40 = vadd.f32 %v2053_v0, %v2052_v32  ;;  %v3698_v23 = vld [vmem:[#allocation10_spill] sm:$0xff] }
 0x137   :  { %v2145_v37 = vmul.f32 0.33333334, %v2093_v26  ;;  %v2060_v55 = vrot.slane %v2059_v11, 4  ;;  %v1567_v60 = vmul.f32 %v1348_v50, %v3696_v4  ;;  %v1778_v52 = vcombine.low %v1562_v41, %v1563_v8 }
 0x138   :  { %v1792_v20 = vrot.slane %v1564_v15, %v2660_v9  ;;  %v1801_v10 = vcombine.low %v1565_v54, %v1566_v2  ;;  %v2137_v36 = vmul.f32 0.33333334, %v2037_v49  ;;  %v2055_v14 = vrot.slane %v2054_v40, 2  ;;  %v3699_v2 = vld [vmem:[#allocation3_spill] sm:$0xff] }
 0x139   :  { %v2270_v29 = vsel %vm2168_vm1, %v2145_v37, %v2144_v39  ;;  %v2061_v38 = vadd.f32 %v2060_v55, %v2059_v11  ;;  %v1785_v33 = vrot.slane %v1778_v52, %v2660_v9  ;;  %v1815_v48 = vrot.slane %v1567_v60, %v2660_v9  ;;  %v3700_v49 = vld [vmem:[#allocation11_spill] sm:$0xff]  ;;  %v3701_v52 = vld [vmem:[#allocation12_spill] sm:$0xff] }
 0x13a   :  { %v2286_v24 = vmul.f32 %v2270_v29, %v3167_v16  ;;  %v1808_v30 = vrot.slane %v1801_v10, %v2660_v9  ;;  %v2266_v32 = vsel %vm2168_vm1, %v2137_v36, %v2136_v28  ;;  %v2056_v50 = vadd.f32 %v2055_v14, %v2054_v40 }
 0x13b   :  { %v2062_v41 = vrot.slane %v2061_v38, 2  ;;  %v1248_v8 = vcombine.high %v3271_v1, %v3271_v1  ;;  %v2282_v39 = vmul.f32 %v2266_v32, %v3085_v62  ;;  %v1793_v55 = vcombine.low %v1785_v33, %v1792_v20 }
 0x13c   :  { %v2302_v26 = vsel %vm2225_vm2, %v2286_v24, 0.0  ;;  %v1816_v59 = vcombine.low %v1808_v30, %v1815_v48  ;;  %v2057_v16 = vrot.slane %v2056_v50, 1  ;;  %v1250_v11 = vcombine.high %v3282_v21, %v3282_v21 }
 0x13d   :  { %2303 = vadd.xlane.f32.xlu1 %v2302_v26  ;;  %v2063_v0 = vadd.f32 %v2062_v41, %v2061_v38  ;;  %v1550_v15 = vmul.f32 %v1248_v8, %v3697_v22  ;;  %v2290_v40 = vsel %vm2225_vm2, %v2282_v39, 0.0  ;;  %v1800_v28 = vrot.slane %v1793_v55, %v2660_v9  ;;  %v3703_v8 = vld [vmem:[#allocation15_spill] sm:$0xff] }
 0x13e   :  { %v1823_v1 = vrot.slane %v1816_v59, %v2660_v9  ;;  %v1553_v54 = vmul.f32 %v3249_v51, %v3698_v23  ;;  %v2058_v62 = vadd.f32 %v2057_v16, %v2056_v50  ;;  %v1551_v37 = vmul.f32 %v1250_v11, %v3699_v2  ;;  %v3702_v50 = vld [vmem:[#allocation13_spill] sm:$0xff]  ;;  %v3704_v59 = vld [vmem:[#allocation16_spill] sm:$0xff] }
 0x13f   :  { %v2064_v12 = vrot.slane %v2063_v0, 1  ;;  %v1554_v21 = vmul.f32 %v1296_v63, %v3700_v49  ;;  %v2066_v4 = vsel %vm28_vm0, %v1800_v28, 0.0  ;;  %v1555_v20 = vmul.f32 %v1298_v58, %v3701_v52  ;;  %v3706_v23 = vld [vmem:[#allocation17_spill] sm:$0xff] }
 0x140   :  { %v2073_v60 = vsel %vm28_vm0, %v1823_v1, 0.0  ;;  %v1700_v10 = vrot.slane %v3257_v56, %v2660_v9  ;;  %v2140_v36 = vmul.f32 0.33333334, %v2058_v62  ;;  %v2067_v14 = vrot.slane %v2066_v4, 4 }
 0x141   :  { %2291 = vadd.xlane.f32.xlu1 %v2290_v40  ;;  %v2065_v29 = vadd.f32 %v2064_v12, %v2063_v0  ;;  %v2074_v38 = vrot.slane %v2073_v60, 4  ;;  %v1686_v24 = vcombine.low %v1550_v15, %v1551_v37  ;;  %v1709_v44 = vcombine.low %v1553_v54, %v1554_v21  ;;  %v3705_v15 = vld [vmem:[#allocation14_spill] sm:$0xff] }
 0x142   :  { %v1723_v63 = vrot.slane %v1555_v20, %v2660_v9  ;;  %v1395_v33 = vcombine.high %v3297_v25, %v3297_v25  ;;  %v2068_v48 = vadd.f32 %v2067_v14, %v2066_v4  ;;  %v1445_v51 = vcombine.high %v3381_v53, %v3381_v53  ;;  %v3470_v4 = vpop.xlane.xlu0 %2227 }
 0x143   :  { %v2141_v30 = vmul.f32 0.33333334, %v2065_v29  ;;  %v2075_v32 = vadd.f32 %v2074_v38, %v2073_v60  ;;  %v1693_v56 = vrot.slane %v1686_v24, %v2660_v9  ;;  %v1716_v58 = vrot.slane %v1709_v44, %v2660_v9 }
 0x144   :  { %v1574_v41 = vmul.f32 %v1395_v33, %v3702_v50  ;;  %v1575_v26 = vmul.f32 %v1397_v19, %v3703_v8  ;;  %v2069_v25 = vrot.slane %v2068_v48, 2  ;;  %v1576_v16 = vmul.f32 %v3371_v34, %v3704_v59  ;;  %v3707_v19 = vld [vmem:[#allocation18_spill] sm:$0xff]  ;;  %v3709_v59 = vld [vmem:[#allocation20_spill] sm:$0xff] }
 0x145   :  { %v2268_v39 = vsel %vm2168_vm1, %v2141_v30, %v2140_v36  ;;  %v2076_v55 = vrot.slane %v2075_v32, 2  ;;  %v1701_v11 = vcombine.low %v1693_v56, %v1700_v10  ;;  %v1724_v22 = vcombine.low %v1716_v58, %v1723_v63 }
 0x146   :  { %v2284_v0 = vmul.f32 %v2268_v39, %v3116_v27  ;;  %v1577_v40 = vmul.f32 %v3381_v53, %v3705_v15  ;;  %v2070_v28 = vadd.f32 %v2069_v25, %v2068_v48  ;;  %v1578_v43 = vmul.f32 %v1443_v17, %v3706_v23 }
 0x147   :  { %v2077_v1 = vadd.f32 %v2076_v55, %v2075_v32  ;;  %v1579_v54 = vmul.f32 %v1445_v51, %v3707_v19  ;;  %v1708_v12 = vrot.slane %v1701_v11, %v2660_v9  ;;  %v1731_v27 = vrot.slane %v1724_v22, %v2660_v9  ;;  %v3710_v11 = vld [vmem:[#allocation21_spill] sm:$0xff] }
 0x148   :  { %v2296_v62 = vsel %vm2225_vm2, %v2284_v0, 0.0  ;;  %v1870_v2 = vcombine.low %v1574_v41, %v1575_v26  ;;  %v2071_v37 = vrot.slane %v2070_v28, 1  ;;  %v1884_v53 = vrot.slane %v1576_v16, %v2660_v9  ;;  %v3708_v41 = vld [vmem:[#allocation19_spill] sm:$0xff]  ;;  %v3491_v26 = vpop.xlane.xlu0 %2230 }
 0x149   :  { %2297 = vadd.xlane.f32.xlu1 %v2296_v62  ;;  %v2078_v49 = vrot.slane %v2077_v1, 1  ;;  %v1893_v21 = vcombine.low %v1577_v40, %v1578_v43  ;;  %v2038_v34 = vsel %vm28_vm0, %v1708_v12, 0.0  ;;  %v2045_v17 = vsel %vm28_vm0, %v1731_v27, 0.0  ;;  %v3713_v62 = vld [vmem:[#allocation23_spill] sm:$0xff] }
 0x14a   :  { %v1877_v60 = vrot.slane %v1870_v2, %v2660_v9  ;;  %v1907_v52 = vrot.slane %v1579_v54, %v2660_v9  ;;  %v2072_v20 = vadd.f32 %v2071_v37, %v2070_v28  ;;  %v2039_v29 = vrot.slane %v2038_v34, 4 }
 0x14b   :  { %v2079_v10 = vadd.f32 %v2078_v49, %v2077_v1  ;;  %v2046_v36 = vrot.slane %v2045_v17, 4  ;;  %v1900_v38 = vrot.slane %v1893_v21, %v2660_v9  ;;  %v1442_v24 = vrot.slane %v1414_v35, %v2660_v9  ;;  %v3712_v1 = vld [vmem:[#allocation24_spill] sm:$0xff] }
 0x14c   :  { %v1885_v14 = vcombine.low %v1877_v60, %v1884_v53  ;;  %v1444_v44 = vcombine.high %v3378_v6, %v3378_v6  ;;  %v2142_v63 = vmul.f32 0.33333334, %v2072_v20  ;;  %v2040_v30 = vadd.f32 %v2039_v29, %v2038_v34 }
 0x14d   :  { %v2143_v33 = vmul.f32 0.33333334, %v2079_v10  ;;  %v2047_v48 = vadd.f32 %v2046_v36, %v2045_v17  ;;  %v1908_v51 = vcombine.low %v1900_v38, %v1907_v52  ;;  %v1446_v56 = vcombine.high %v1442_v24, %v1442_v24  ;;  %v3505_v17 = vpop.xlane.xlu0 %2233 }
 0x14e   :  { %v1892_v32 = vrot.slane %v1885_v14, %v2660_v9  ;;  %v1484_v58 = vrot.slane %v1462_v46, %v2660_v9  ;;  %v2041_v13 = vrot.slane %v2040_v30, 2  ;;  %v1580_v8 = vmul.f32 %v3378_v6, %v3708_v41  ;;  %v3711_v6 = vld [vmem:[#allocation22_spill] sm:$0xff] }
 0x14f   :  { %v2269_v50 = vsel %vm2168_vm1, %v2143_v33, %v2142_v63  ;;  %v2048_v35 = vrot.slane %v2047_v48, 2  ;;  %v1915_v25 = vrot.slane %v1908_v51, %v2660_v9  ;;  %v1581_v16 = vmul.f32 %v1442_v24, %v3709_v59 }
 0x150   :  { %v2285_v39 = vmul.f32 %v2269_v50, %v3138_v47  ;;  %v2094_v55 = vsel %vm28_vm0, %v1892_v32, 0.0  ;;  %v2042_v0 = vadd.f32 %v2041_v13, %v2040_v30  ;;  %v1582_v22 = vmul.f32 %v1444_v44, %v3710_v11  ;;  %v3715_v50 = vld [vmem:[#allocation31_spill] sm:$0xff] }
 0x151   :  { %v2049_v31 = vadd.f32 %v2048_v35, %v2047_v48  ;;  %v2095_v46 = vrot.slane %v2094_v55, 4  ;;  %v2101_v40 = vsel %vm28_vm0, %v1915_v25, 0.0  ;;  %v1583_v28 = vmul.f32 %v1446_v56, %v3711_v6 }
 0x152   :  { %v2299_v15 = vsel %vm2225_vm2, %v2285_v39, 0.0  ;;  %v1584_v47 = vmul.f32 %v3358_v7, %v3712_v1  ;;  %v2043_v23 = vrot.slane %v2042_v0, 1  ;;  %v2102_v54 = vrot.slane %v2101_v40, 4 }
 0x153   :  { %2300 = vadd.xlane.f32.xlu1 %v2299_v15  ;;  %v2050_v43 = vrot.slane %v2049_v31, 1  ;;  %v2096_v19 = vadd.f32 %v2095_v46, %v2094_v55  ;;  %v1585_v12 = vmul.f32 %v1484_v58, %v3713_v62  ;;  %v1916_v27 = vcombine.low %v1580_v8, %v1581_v16  ;;  %v3716_v55 = vld [vmem:[#allocation25_spill] sm:$0xff]  ;;  %v3718_v16 = vld [vmem:[#allocation26_spill] sm:$0xff] }
 0x154   :  { %v1930_v2 = vrot.slane %v1582_v22, %v2660_v9  ;;  %v1939_v37 = vcombine.low %v1583_v28, %v1584_v47  ;;  %v2044_v49 = vadd.f32 %v2043_v23, %v2042_v0  ;;  %v2103_v34 = vadd.f32 %v2102_v54, %v2101_v40  ;;  %v3719_v22 = vld [vmem:[#allocation27_spill] sm:$0xff]  ;;  %v3720_v47 = vld [vmem:[#allocation28_spill] sm:$0xff]  ;;  %v3721_v23 = vld [vmem:[#allocation29_spill] sm:$0xff] }
 0x155   :  { %v2051_v53 = vadd.f32 %v2050_v43, %v2049_v31  ;;  %v2097_v21 = vrot.slane %v2096_v19, 2  ;;  %v1923_v60 = vrot.slane %v1916_v27, %v2660_v9  ;;  %v1953_v20 = vrot.slane %v1585_v12, %v2660_v9  ;;  %v3525_v31 = vpop.xlane.xlu0 %2236 }
 0x156   :  { %v1946_v52 = vrot.slane %v1939_v37, %v2660_v9  ;;  %v1477_v10 = vrot.slane %v3352_v42, %v2660_v9  ;;  %v2138_v29 = vmul.f32 0.33333334, %v2044_v49  ;;  %v2104_v38 = vrot.slane %v2103_v34, 2 }
 0x157   :  { %v2139_v36 = vmul.f32 0.33333334, %v2051_v53  ;;  %v2098_v14 = vadd.f32 %v2097_v21, %v2096_v19  ;;  %v1931_v24 = vcombine.low %v1923_v60, %v1930_v2  ;;  %v3714_v63 = vcombine.high %v3352_v42, %v3352_v42  ;;  %v3722_v19 = vld [vmem:[#allocation30_spill] sm:$0xff] }
 0x158   :  { %v1954_v44 = vcombine.low %v1946_v52, %v1953_v20  ;;  %v1493_v30 = vcombine.high %v1477_v10, %v1477_v10  ;;  %v2105_v51 = vadd.f32 %v2104_v38, %v2103_v34  ;;  %v1494_v56 = vcombine.high %v1484_v58, %v1484_v58 }
 0x159   :  { %v1491_v33 = vrot.slane %v3714_v63, %v2660_v9  ;;  %v2267_v48 = vsel %vm2168_vm1, %v2139_v36, %v2138_v29  ;;  %v2099_v32 = vrot.slane %v2098_v14, 1  ;;  %v1938_v35 = vrot.slane %v1931_v24, %v2660_v9  ;;  %v3542_v29 = vpop.xlane.xlu0 %2239 }
 0x15a   :  { %v2283_v13 = vmul.f32 %v2267_v48, %v3715_v50  ;;  %v1961_v41 = vrot.slane %v1954_v44, %v2660_v9  ;;  %v2106_v25 = vrot.slane %v2105_v51, 1  ;;  %v3717_v42 = vcombine.high %v3358_v7, %v3358_v7 }
 0x15b   :  { %v1495_v8 = vcombine.high %v1491_v33, %v1491_v33  ;;  %v2100_v39 = vadd.f32 %v2099_v32, %v2098_v14  ;;  %v1587_v0 = vmul.f32 %v1494_v56, %v3718_v16  ;;  %v2108_v46 = vsel %vm28_vm0, %v1938_v35, 0.0 }
 0x15c   :  { %v1586_v59 = vmul.f32 %v3717_v42, %v3716_v55  ;;  %v2293_v58 = vsel %vm2225_vm2, %v2283_v13, 0.0  ;;  %v2115_v11 = vsel %vm28_vm0, %v1961_v41, 0.0  ;;  %v1588_v15 = vmul.f32 %v1477_v10, %v3719_v22 }
 0x15d   :  { %2294 = vadd.xlane.f32.xlu1 %v2293_v58  ;;  %v2107_v40 = vadd.f32 %v2106_v25, %v2105_v51  ;;  %v2146_v6 = vmul.f32 0.33333334, %v2100_v39  ;;  %v2109_v28 = vrot.slane %v2108_v46, 4  ;;  %v2116_v1 = vrot.slane %v2115_v11, 4  ;;  %v3555_v39 = vpop.xlane.xlu0 %2242 }
 0x15e   :  { %v1589_v7 = vmul.f32 %v1491_v33, %v3720_v47  ;;  %v1590_v43 = vmul.f32 %v1493_v30, %v3721_v23  ;;  %v1591_v54 = vmul.f32 %v1495_v8, %v3722_v19  ;;  %v1962_v62 = vcombine.low %v1586_v59, %v1587_v0 }
 0x15f   :  { %v2147_v12 = vmul.f32 0.33333334, %v2107_v40  ;;  %v2110_v27 = vadd.f32 %v2109_v28, %v2108_v46  ;;  %v2117_v2 = vadd.f32 %v2116_v1, %v2115_v11  ;;  %v1976_v37 = vrot.slane %v1588_v15, %v2660_v9 }
 0x160   :  { %v1969_v49 = vrot.slane %v1962_v62, %v2660_v9  ;;  %v1985_v53 = vcombine.low %v1589_v7, %v1590_v43  ;;  %v1999_v21 = vrot.slane %v1591_v54, %v2660_v9  ;;  %v2339_v34 = vrot.slane %v3470_v4, %v3243_v18 }
 0x161   :  { %v2271_v60 = vsel %vm2168_vm1, %v2147_v12, %v2146_v6  ;;  %v2111_v52 = vrot.slane %v2110_v27, 2  ;;  %v2118_v20 = vrot.slane %v2117_v2, 2  ;;  %v2343_v10 = vrot.slane %v3491_v26, %v3243_v18  ;;  %v3569_v47 = vpop.xlane.xlu0 %2245 }
 0x162   :  { %v2287_v36 = vmul.f32 %v2271_v60, %v3178_v57  ;;  %v1977_v14 = vcombine.low %v1969_v49, %v1976_v37  ;;  %v1992_v38 = vrot.slane %v1985_v53, %v2660_v9  ;;  %v2347_v48 = vrot.slane %v3505_v17, %v3243_v18 }
 0x163   :  { %v2112_v24 = vadd.f32 %v2111_v52, %v2110_v27  ;;  %v2119_v44 = vadd.f32 %v2118_v20, %v2117_v2  ;;  %v2368_v56 = vsel %vm2168_vm1, %v2343_v10, %v2339_v34  ;;  %v2351_v8 = vrot.slane %v3525_v31, %v3243_v18 }
 0x164   :  { %v2305_v63 = vsel %vm2225_vm2, %v2287_v36, 0.0  ;;  %v1984_v33 = vrot.slane %v1977_v14, %v2660_v9  ;;  %v2000_v30 = vcombine.low %v1992_v38, %v1999_v21  ;;  %v2613_v25 = vmov 0.0  }
 0x165   :  { %2306 = vadd.xlane.f32.xlu1 %v2305_v63  ;;  %v2113_v32 = vrot.slane %v2112_v24, 1  ;;  %v2120_v51 = vrot.slane %v2119_v44, 1  ;;  %2322 = vst [vmem:[%s3628_s5] sm:$0xff] %v2613_v25  ;;  %v2369_v42 = vsel %vm2170_vm3, %v2347_v48, %v2368_v56  ;;  %v2355_v58 = vrot.slane %v3542_v29, %v3243_v18  ;;  %v3576_v27 = vpop.xlane.xlu0 %2248 }
 0x166   :  { %v2007_v57 = vrot.slane %v2000_v30, %v2660_v9  ;;  %v2122_v50 = vsel %vm28_vm0, %v1984_v33, 0.0  ;;  %v2370_v15 = vsel %vm2172_vm4, %v2351_v8, %v2369_v42  ;;  %v2359_v1 = vrot.slane %v3555_v39, %v3243_v18 }
 0x167   :  { %v2114_v13 = vadd.f32 %v2113_v32, %v2112_v24  ;;  %v2121_v35 = vadd.f32 %v2120_v51, %v2119_v44  ;;  %v2123_v41 = vrot.slane %v2122_v50, 4  ;;  %v2371_v23 = vsel %vm2174_vm5, %v2355_v58, %v2370_v15 }
 0x168   :  { %v2129_v55 = vsel %vm28_vm0, %v2007_v57, 0.0  ;;  %v2363_v54 = vrot.slane %v3569_v47, %v3243_v18  ;;  %v2367_v49 = vrot.slane %v3576_v27, %v3243_v18  ;;  %v2386_v24 = vadd.s32 4294967293, %v3233_v61 }
 0x169   :  { %v2148_v9 = vmul.f32 0.33333334, %v2114_v13  ;;  %v2149_v59 = vmul.f32 0.33333334, %v2121_v35  ;;  %v2124_v16 = vadd.f32 %v2123_v41, %v2122_v50  ;;  %v2130_v0 = vrot.slane %v2129_v55, 4  ;;  %v2184_v20 = vpop.xlane.xlu0 %2183 }
 0x16a   :  { %2324 = vst.msk [vmem:[%s3628_s5] sm:$0xff] %vm2323_vm9, %v2184_v20  ;;  %v2389_v63 = vsub.s32 %v2386_v24, %v2651_v5 }
 0x16b   :  { %v2272_v46 = vsel %vm2168_vm1, %v2149_v59, %v2148_v9  ;;  %v2125_v11 = vrot.slane %v2124_v16, 2  ;;  %v2131_v22 = vadd.f32 %v2130_v0, %v2129_v55 }
 0x16c   :  { %v2288_v40 = vmul.f32 %v2272_v46, %v3202_v3  ;;  %v2372_v3 = vsel %vm2176_vm6, %v2359_v1, %v2371_v23 }
 0x16d   :  { %v2126_v6 = vadd.f32 %v2125_v11, %v2124_v16  ;;  %v2132_v28 = vrot.slane %v2131_v22, 2  ;;  %v2373_v53 = vsel %vm2178_vm7, %v2363_v54, %v2372_v3 }
 0x16e   :  { %v2308_v7 = vsel %vm2225_vm2, %v2288_v40, 0.0  ;;  %v2374_v60 = vsel %vm2180_vm8, %v2367_v49, %v2373_v53 }
 0x16f   :  { %2309 = vadd.xlane.f32.xlu1 %v2308_v7  ;;  %v2127_v43 = vrot.slane %v2126_v6, 1  ;;  %v2133_v19 = vadd.f32 %v2132_v28, %v2131_v22  ;;  %2377 = vst.msk [vmem:[%s3628_s5] sm:$0xff] %vm2376_vm10, %v2374_v60 }
 0x171   :  { %v2128_v62 = vadd.f32 %v2127_v43, %v2126_v6  ;;  %v2134_v12 = vrot.slane %v2133_v19, 1 }
 0x173   :  { %v2135_v2 = vadd.f32 %v2134_v12, %v2133_v19  ;;  %v2150_v37 = vmul.f32 0.33333334, %v2128_v62 }
 0x175   :  { %v2151_v21 = vmul.f32 0.33333334, %v2135_v2 }
 0x177   :  { %v2273_v34 = vsel %vm2168_vm1, %v2151_v21, %v2150_v37 }
 0x178   :  { %v2289_v52 = vmul.f32 %v2273_v34, %v3209_v45  ;;  %v2437_v45 = vadd.s32 4294967291, %v3233_v61 }
 0x17a   :  { %v2311_v10 = vsel %vm2225_vm2, %v2289_v52, 0.0  ;;  %v2440_v30 = vsub.s32 %v2437_v45, %v2651_v5 }
 0x17b   :  { %2312 = vadd.xlane.f32.xlu1 %v2311_v10 }
 0x1c6   :  { %v2304_v18 = vpop.xlane.xlu1 %2303 }
 0x1c7   :  { %v2406_v16 = vrot.slane %v2304_v18, %v2389_v63 }
 0x1ca   :  { %v2292_v36 = vpop.xlane.xlu1 %2291 }
 0x1cb   :  { %v2314_v48 = vsub.f32 %v3470_v4, %v2292_v36  ;;  %v2390_v51 = vrot.slane %v2292_v36, %v2389_v63  ;;  %v2318_v4 = vsub.f32 %v3542_v29, %v2304_v18 }
 0x1cd   :  { %v2441_v13 = vrot.slane %v2314_v48, %v2440_v30  ;;  %v2457_v46 = vrot.slane %v2318_v4, %v2440_v30 }
 0x1d2   :  { %v2298_v14 = vpop.xlane.xlu1 %2297 }
 0x1d3   :  { %v2316_v50 = vsub.f32 %v3505_v17, %v2298_v14  ;;  %v2398_v41 = vrot.slane %v2298_v14, %v2389_v63 }
 0x1d5   :  { %v2449_v25 = vrot.slane %v2316_v50, %v2440_v30 }
 0x1dc   :  { %v2301_v38 = vpop.xlane.xlu1 %2300 }
 0x1dd   :  { %v2317_v61 = vsub.f32 %v3525_v31, %v2301_v38  ;;  %v2402_v5 = vrot.slane %v2301_v38, %v2389_v63 }
 0x1df   :  { %v2453_v9 = vrot.slane %v2317_v61, %v2440_v30 }
 0x1e6   :  { %v2295_v44 = vpop.xlane.xlu1 %2294 }
 0x1e7   :  { %v2315_v33 = vsub.f32 %v3491_v26, %v2295_v44  ;;  %v2394_v32 = vrot.slane %v2295_v44, %v2389_v63 }
 0x1e9   :  { %v2445_v56 = vrot.slane %v2315_v33, %v2440_v30  ;;  %v2419_v35 = vsel %vm2168_vm1, %v2394_v32, %v2390_v51 }
 0x1ea   :  { %v2420_v26 = vsel %vm2170_vm3, %v2398_v41, %v2419_v35 }
 0x1eb   :  { %v2470_v8 = vsel %vm2168_vm1, %v2445_v56, %v2441_v13  ;;  %v2421_v17 = vsel %vm2172_vm4, %v2402_v5, %v2420_v26 }
 0x1ec   :  { %v2471_v42 = vsel %vm2170_vm3, %v2449_v25, %v2470_v8  ;;  %v2422_v11 = vsel %vm2174_vm5, %v2406_v16, %v2421_v17 }
 0x1ed   :  { %v2472_v58 = vsel %vm2172_vm4, %v2453_v9, %v2471_v42 }
 0x1ee   :  { %v2307_v57 = vpop.xlane.xlu1 %2306  ;;  %v2473_v29 = vsel %vm2174_vm5, %v2457_v46, %v2472_v58 }
 0x1ef   :  { %v2319_v59 = vsub.f32 %v3555_v39, %v2307_v57  ;;  %v2410_v31 = vrot.slane %v2307_v57, %v2389_v63 }
 0x1f1   :  { %v2461_v15 = vrot.slane %v2319_v59, %v2440_v30  ;;  %v2423_v28 = vsel %vm2176_vm6, %v2410_v31, %v2422_v11 }
 0x1f3   :  { %v2474_v7 = vsel %vm2176_vm6, %v2461_v15, %v2473_v29 }
 0x1f8   :  { %v2310_v55 = vpop.xlane.xlu1 %2309 }
 0x1f9   :  { %v2320_v0 = vsub.f32 %v3569_v47, %v2310_v55  ;;  %v2414_v22 = vrot.slane %v2310_v55, %v2389_v63 }
 0x1fb   :  { %v2465_v40 = vrot.slane %v2320_v0, %v2440_v30  ;;  %v2424_v47 = vsel %vm2178_vm7, %v2414_v22, %v2423_v28 }
 0x1fd   :  { %v2475_v19 = vsel %vm2178_vm7, %v2465_v40, %v2474_v7 }
 0x204   :  { %v2313_v6 = vpop.xlane.xlu1 %2312 }
 0x205   :  { %v2321_v39 = vsub.f32 %v3576_v27, %v2313_v6  ;;  %v2418_v1 = vrot.slane %v2313_v6, %v2389_v63 }
 0x207   :  { %v2425_v23 = vsel %vm2180_vm8, %v2418_v1, %v2424_v47  ;;  %v2469_v43 = vrot.slane %v2321_v39, %v2440_v30 }
 0x208   :  { %2428 = vst.msk [vmem:[%s3628_s5] sm:$0xff] %vm2427_vm11, %v2425_v23 }
 0x209   :  { %v2476_v54 = vsel %vm2180_vm8, %v2469_v43, %v2475_v19 }
 0x20a   :  { %2479 = vst.msk [vmem:[%s3628_s5] sm:$0xff] %vm2478_vm12, %v2476_v54 }

// kernel: lightgcn_forward.4
= control target key start
LH: loop header
LB: loop body
LE: loop exit
PB: predicated region body
PF: predicated region fallthrough
CT: control target
= control target key end

     0   :  { %10 = vsyncpa [#allocation3], 0  ;;  %s18713_s0 = inlined_call_operand.vmem [shape: f32[4], index: 0, kind: input, shape index: {}]   ;;  %s18714_s1 = inlined_call_operand.vmem [shape: f32[8,8,3,128], index: 1, kind: input, shape index: {}]   ;;  %s18715_s2 = inlined_call_operand.vmem [shape: f32[4,8,3,128], index: 2, kind: input, shape index: {}]   ;;  %s18716_s3 = inlined_call_operand.vmem [shape: f32[128,128], index: 3, kind: input, shape index: {}]   ;;  %s18717_s4 = inlined_call_operand.vmem [shape: f32[1,128], index: 4, kind: input, shape index: {}]   ;;  %s18718_s5 = inlined_call_operand.vmem [shape: f32[4,8,3,128], index: 5, kind: output, shape index: {}]  }
   0x1   :  { %s17_s20 = sshll.u32 %s18713_s0, 4  ;;  %s18_s20 = int_to_ptr.vmem [resolvable:$true] %s17_s20 }
   0x2   :  { %s11850_s21 = scalar_lea.vmem %s18_s20, 16  ;;  %p11855_p1 = scmp.lt.s32.totalorder %s18_s20, %s18_s20 }
   0x3   :  { %p11851_p0 = scmp.ne.s32.totalorder %s18_s20, %s11850_s21  ;;  %p11856_p2 = scmp.lt.s32.totalorder %s11850_s21, %s11850_s21 }
   0x5   :  { %p11857_p3 = por %p11856_p2, %p11855_p1 }
   0x7   :  { %p11858_p4 = pnand %p11857_p3, %p11851_p0 }
   0x9   :  { %11861 = shalt.err (!%p11858_p4)
}
   0xa   :  { %s11864_s22 = smov [#allocation2]  }
   0xb   :  { %20 = dma.vmem_to_smem %s18_s20, 16, %s11864_s22, [#allocation3]  }
   0xc   :  { %11862 = dma.done.wait [#allocation3], 16  }
   0xd   :  { %11863 = vsyncadd [#allocation3], 4294967280 }
   0xe   :  { %32 = sfence }
   0xf   :  { %v1840_v0 = vld [vmem:[%s18716_s3 + $0x78] sm:$0xff]  ;;  %v1839_v1 = vld [vmem:[%s18716_s3 + $0x70] sm:$0xff]  ;;  %v164_v2 = vlaneseq  ;;  %v11865_v3 = vmov 1966171168   ;;  %v1838_v5 = vld [vmem:[%s18716_s3 + $0x68] sm:$0xff]  ;;  %s11295_s24 = sld [smem:[#allocation2 + $0x2]] }
  0x10   :  { %11433 = vmatprep.subr.mxu0 %v1840_v0  ;;  %11501 = vmatprep.subr.mxu1 %v1840_v0  ;;  %v162_v4 = vunpack.c.l.s4 %v11865_v3  ;;  %v1837_v8 = vld [vmem:[%s18716_s3 + $0x60] sm:$0xff]  ;;  %v1836_v9 = vld [vmem:[%s18716_s3 + $0x58] sm:$0xff]  ;;  %v11788_v13 = vld.sshfl [vmem:[%s18714_s1 + $0x8] sm:$0x13 pattern:$0x75316420] }
  0x11   :  { %11434 = vmatpush3.msra.mxu0 %v1840_v0  ;;  %11517 = vmatpush3.msra.mxu1 %v1840_v0  ;;  %v165_v6 = vshrl.u32 %v164_v2, 7  ;;  %v11786_v10 = vld.sshfl [vmem:[%s18714_s1] sm:$0x13 pattern:$0x75316420]  ;;  %v1835_v17 = vld [vmem:[%s18716_s3 + $0x50] sm:$0xff]  ;;  %v214_v23 = vcombine.high %v11788_v13, %v11788_v13 }
  0x12   :  { %11435 = vmatprep.subr.mxu0 %v1839_v1  ;;  %11502 = vmatprep.subr.mxu1 %v1839_v1  ;;  %v163_v7 = vunpack.c.0.s8 %v162_v4  ;;  %v11787_v11 = vld.sshfl [vmem:[%s18714_s1 + $0x4] sm:$0x13 pattern:$0x75316420]  ;;  %v168_v18 = vcombine.high %v11786_v10, %v11786_v10  ;;  %v1834_v21 = vld [vmem:[%s18716_s3 + $0x48] sm:$0xff]  ;;  %v1832_v35 = vld [vmem:[%s18716_s3 + $0x38] sm:$0xff] }
  0x13   :  { %11436 = vmatpush3.msra.mxu0 %v1839_v1  ;;  %11518 = vmatpush3.msra.mxu1 %v1839_v1  ;;  %v11789_v14 = vld.sshfl [vmem:[%s18714_s1 + $0x80] sm:$0x13 pattern:$0x75316420]  ;;  %v191_v20 = vcombine.high %v11787_v11, %v11787_v11  ;;  %v1831_v42 = vld [vmem:[%s18716_s3 + $0x30] sm:$0xff]  ;;  %v1830_v49 = vld [vmem:[%s18716_s3 + $0x28] sm:$0xff] }
  0x14   :  { %11437 = vmatprep.subr.mxu0 %v1838_v5  ;;  %11503 = vmatprep.subr.mxu1 %v1838_v5  ;;  %v11922_v12 = vsub.s32 %v163_v7, %v165_v6  ;;  %v11790_v15 = vld.sshfl [vmem:[%s18714_s1 + $0x84] sm:$0x13 pattern:$0x75316420]  ;;  %v904_v31 = vcombine.high %v11789_v14, %v11789_v14  ;;  %v1828_v2 = vld [vmem:[%s18716_s3 + $0x18] sm:$0xff]  ;;  %s4961_s25 = sld [smem:[#allocation2]] }
  0x15   :  { %11438 = vmatpush3.msra.mxu0 %v1838_v5  ;;  %11519 = vmatpush3.msra.mxu1 %v1838_v5  ;;  %v11936_v16 = vld.sshfl [vmem:[%s18714_s1 + $0x88] sm:$0x13 pattern:$0x75316420]  ;;  %v1833_v28 = vld [vmem:[%s18716_s3 + $0x40] sm:$0xff]  ;;  %v927_v45 = vcombine.high %v11790_v15, %v11790_v15  ;;  %s11296_s26 = sld [smem:[#allocation2 + $0x3]] }
  0x16   :  { %11439 = vmatprep.subr.mxu0 %v1837_v8  ;;  %11504 = vmatprep.subr.mxu1 %v1837_v8  ;;  %v11942_v19 = vrot.slane %v11786_v10, %v11922_v12  ;;  %v11948_v22 = vrot.slane %v11787_v11, %v11922_v12  ;;  %v11951_v24 = vrot.slane %v11788_v13, %v11922_v12  ;;  %v1829_v56 = vld [vmem:[%s18716_s3 + $0x20] sm:$0xff]  ;;  %v11792_v60 = vld.sshfl [vmem:[%s18714_s1 + $0xc] sm:$0x13 pattern:$0x75316420]  ;;  %s11214_s0 = sld [smem:[#allocation2 + $0x1]] }
  0x17   :  { %11440 = vmatpush3.msra.mxu0 %v1837_v8  ;;  %11520 = vmatpush3.msra.mxu1 %v1837_v8  ;;  %v11954_v25 = vrot.slane %v168_v18, %v11922_v12  ;;  %v11961_v27 = vrot.slane %v191_v20, %v11922_v12  ;;  %v11971_v30 = vrot.slane %v214_v23, %v11922_v12  ;;  %v11793_v63 = vld.sshfl [vmem:[%s18714_s1 + $0x10] sm:$0x13 pattern:$0x75316420]  ;;  %v1825_v23 = vld [vmem:[%s18716_s3] sm:$0xff]  ;;  %vm6029_vm0 = vcmask 1042432  }
  0x18   :  { %11441 = vmatprep.subr.mxu0 %v1836_v9  ;;  %11505 = vmatprep.subr.mxu1 %v1836_v9  ;;  %19018 = vst [vmem:[#allocation5_spill] sm:$0xff] %v11948_v22  ;;  %19019 = vst [vmem:[#allocation6_spill] sm:$0xff] %v11951_v24  ;;  %v11958_v26 = vcombine.high %v11942_v19, %v11942_v19  ;;  %v11968_v29 = vcombine.high %v11948_v22, %v11948_v22  ;;  %v12049_v0 = vld.sshfl [vmem:[%s18714_s1 + $0x14] sm:$0x13 pattern:$0x75316420] }
  0x19   :  { %11442 = vmatpush3.msra.mxu0 %v1836_v9  ;;  %11521 = vmatpush3.msra.mxu1 %v1836_v9  ;;  %19020 = vst [vmem:[#allocation7_spill] sm:$0xff] %v11961_v27  ;;  %19022 = vst [vmem:[#allocation9_spill] sm:$0xff] %v11971_v30  ;;  %v1848_v32 = vcombine.low %v11942_v19, %v11954_v25  ;;  %v11978_v34 = vrot.slane %v11789_v14, %v11922_v12  ;;  %v1827_v8 = vld [vmem:[%s18716_s3 + $0x10] sm:$0xff]  ;;  %v1826_v14 = vld [vmem:[%s18716_s3 + $0x8] sm:$0xff] }
  0x1a   :  { %11443 = vmatprep.subr.mxu0 %v1835_v17  ;;  %11506 = vmatprep.subr.mxu1 %v1835_v17  ;;  %19021 = vst [vmem:[#allocation8_spill] sm:$0xff] %v11968_v29  ;;  %v1849_v33 = vcombine.low %v11958_v26, %v11948_v22  ;;  %v1850_v36 = vcombine.low %v11961_v27, %v11968_v29 }
  0x1b   :  { %11444 = vmatpush3.msra.mxu0 %v1835_v17  ;;  %11522 = vmatpush3.msra.mxu1 %v1835_v17  ;;  %v1851_v37 = vcombine.low %v11951_v24, %v11971_v30  ;;  %v11988_v38 = vrot.slane %v904_v31, %v11922_v12  ;;  %v1858_v39 = vrot.slane %v1848_v32, %v11922_v12 }
  0x1c   :  { %11445 = vmatprep.subr.mxu0 %v1834_v21  ;;  %11507 = vmatprep.subr.mxu1 %v1834_v21  ;;  %v1865_v40 = vrot.slane %v1849_v33, %v11922_v12  ;;  %v11994_v41 = vcombine.high %v11978_v34, %v11978_v34  ;;  %v1872_v43 = vrot.slane %v1850_v36, %v11922_v12  ;;  %v11795_v33 = vld.sshfl [vmem:[%s18714_s1 + $0x8c] sm:$0x13 pattern:$0x75316420] }
  0x1d   :  { %11446 = vmatpush3.msra.mxu0 %v1834_v21  ;;  %11523 = vmatpush3.msra.mxu1 %v1834_v21  ;;  %v1879_v44 = vrot.slane %v1851_v37, %v11922_v12  ;;  %v12002_v47 = vrot.slane %v11790_v15, %v11922_v12  ;;  %v950_v48 = vcombine.high %v11936_v16, %v11936_v16 }
  0x1e   :  { %11447 = vmatprep.subr.mxu0 %v1833_v28  ;;  %11508 = vmatprep.subr.mxu1 %v1833_v28  ;;  %v1880_v46 = vcombine.low %v1858_v39, %v1865_v40  ;;  %v12010_v51 = vrot.slane %v927_v45, %v11922_v12  ;;  %v12014_v52 = vrot.slane %v11936_v16, %v11922_v12  ;;  %v11796_v39 = vld.sshfl [vmem:[%s18714_s1 + $0x90] sm:$0x13 pattern:$0x75316420] }
  0x1f   :  { %11448 = vmatpush3.msra.mxu0 %v1833_v28  ;;  %11524 = vmatpush3.msra.mxu1 %v1833_v28  ;;  %v1881_v50 = vcombine.low %v1872_v43, %v1879_v44  ;;  %v12021_v54 = vcombine.high %v12002_v47, %v12002_v47  ;;  %v12024_v55 = vrot.slane %v950_v48, %v11922_v12 }
  0x20   :  { %11449 = vmatprep.subr.mxu0 %v1832_v35  ;;  %11509 = vmatprep.subr.mxu1 %v1832_v35  ;;  %19023 = vst [vmem:[#allocation10_spill] sm:$0xff] %v12014_v52  ;;  %v12017_v53 = vrot.slane %v1880_v46, %v11922_v12  ;;  %v2436_v58 = vcombine.low %v11978_v34, %v11988_v38  ;;  %v11797_v46 = vld.sshfl [vmem:[%s18714_s1 + $0x94] sm:$0x13 pattern:$0x75316420] }
  0x21   :  { %11450 = vmatpush3.msra.mxu0 %v1832_v35  ;;  %11525 = vmatpush3.msra.mxu1 %v1832_v35  ;;  %19024 = vst [vmem:[#allocation11_spill] sm:$0xff] %v12024_v55  ;;  %v12030_v57 = vrot.slane %v1881_v50, %v11922_v12  ;;  %v2437_v59 = vcombine.low %v11994_v41, %v12002_v47 }
  0x22   :  { %11451 = vmatprep.subr.mxu0 %v1831_v42  ;;  %11510 = vmatprep.subr.mxu1 %v1831_v42  ;;  %v2438_v61 = vcombine.low %v12010_v51, %v12021_v54  ;;  %v2439_v62 = vcombine.low %v12014_v52, %v12024_v55  ;;  %v12053_v1 = vcombine.high %v11951_v24, %v11951_v24 }
  0x23   :  { %11452 = vmatpush3.msra.mxu0 %v1831_v42  ;;  %11526 = vmatpush3.msra.mxu1 %v1831_v42  ;;  %v1896_v3 = vcombine.low %v12017_v53, %v12030_v57  ;;  %v2446_v4 = vrot.slane %v2436_v58, %v11922_v12  ;;  %v2453_v5 = vrot.slane %v2437_v59, %v11922_v12 }
  0x24   :  { %11453 = vmatprep.subr.mxu0 %v1830_v49  ;;  %11511 = vmatprep.subr.mxu1 %v1830_v49  ;;  %19025 = vst [vmem:[#allocation12_spill] sm:$0xff] %v12053_v1  ;;  %v2460_v6 = vrot.slane %v2438_v61, %v11922_v12  ;;  %v2467_v7 = vrot.slane %v2439_v62, %v11922_v12 }
  0x25   :  { %11454 = vmatpush3.msra.mxu0 %v1830_v49  ;;  %11527 = vmatpush3.msra.mxu1 %v1830_v49  ;;  %v2468_v9 = vcombine.low %v2446_v4, %v2453_v5  ;;  %v237_v11 = vcombine.high %v11792_v60, %v11792_v60  ;;  %v12068_v13 = vrot.slane %v11792_v60, %v11922_v12 }
  0x26   :  { %11455 = vmatprep.subr.mxu0 %v1829_v56  ;;  %11512 = vmatprep.subr.mxu1 %v1829_v56  ;;  %v2469_v10 = vcombine.low %v2460_v6, %v2467_v7  ;;  %v260_v16 = vcombine.high %v11793_v63, %v11793_v63  ;;  %v12075_v17 = vrot.slane %v11793_v63, %v11922_v12  ;;  %v11799_v7 = vld.sshfl [vmem:[%s18714_s1 + $0x1c] sm:$0x13 pattern:$0x75316420] }
  0x27   :  { %11456 = vmatpush3.msra.mxu0 %v1829_v56  ;;  %11528 = vmatpush3.msra.mxu1 %v1829_v56  ;;  %v2476_v15 = vrot.slane %v2468_v9, %v11922_v12  ;;  %v12079_v20 = vrot.slane %v237_v11, %v11922_v12  ;;  %v12083_v21 = vcombine.high %v12068_v13, %v12068_v13 }
  0x28   :  { %11457 = vmatprep.subr.mxu0 %v1828_v2  ;;  %11513 = vmatprep.subr.mxu1 %v1828_v2  ;;  %v2483_v18 = vrot.slane %v2469_v10, %v11922_v12  ;;  %v12089_v28 = vrot.slane %v260_v16, %v11922_v12  ;;  %v12093_v31 = vcombine.high %v12075_v17, %v12075_v17 }
  0x29   :  { %11458 = vmatpush3.msra.mxu0 %v1828_v2  ;;  %11529 = vmatpush3.msra.mxu1 %v1828_v2  ;;  %v12097_v32 = vrot.slane %v12049_v0, %v11922_v12  ;;  %v1897_v36 = vcombine.low %v12053_v1, %v12068_v13  ;;  %v1898_v37 = vcombine.low %v12079_v20, %v12083_v21  ;;  %v11798_v2 = vld.sshfl [vmem:[%s18714_s1 + $0x18] sm:$0x13 pattern:$0x75316420]  ;;  %v11642_v1 = vld [vmem:[%s18714_s1 + $0x4] sm:$0x7] }
  0x2a   :  { %11459 = vmatprep.subr.mxu0 %v1827_v8  ;;  %11514 = vmatprep.subr.mxu1 %v1827_v8  ;;  %v2484_v35 = vcombine.low %v2476_v15, %v2483_v18  ;;  %v1899_v40 = vcombine.low %v12075_v17, %v12089_v28  ;;  %v12115_v43 = vcombine.high %v12014_v52, %v12014_v52 }
  0x2b   :  { %11460 = vmatpush3.msra.mxu0 %v1827_v8  ;;  %11530 = vmatpush3.msra.mxu1 %v1827_v8  ;;  %v1900_v42 = vcombine.low %v12093_v31, %v12097_v32  ;;  %v1907_v44 = vrot.slane %v1897_v36, %v11922_v12  ;;  %v1914_v45 = vrot.slane %v1898_v37, %v11922_v12 }
  0x2c   :  { %11461 = vmatprep.subr.mxu0 %v1826_v14  ;;  %11515 = vmatprep.subr.mxu1 %v1826_v14  ;;  %19026 = vst [vmem:[#allocation13_spill] sm:$0xff] %v12115_v43  ;;  %v1921_v48 = vrot.slane %v1899_v40, %v11922_v12  ;;  %v973_v53 = vcombine.high %v11795_v33, %v11795_v33 }
  0x2d   :  { %11462 = vmatpush3.msra.mxu0 %v1826_v14  ;;  %11531 = vmatpush3.msra.mxu1 %v1826_v14  ;;  %v1928_v49 = vrot.slane %v1900_v42, %v11922_v12  ;;  %v1929_v50 = vcombine.low %v1907_v44, %v1914_v45  ;;  %v12125_v56 = vrot.slane %v11795_v33, %v11922_v12 }
  0x2e   :  { %11463 = vmatprep.subr.mxu0 %v1825_v23  ;;  %11516 = vmatprep.subr.mxu1 %v1825_v23  ;;  %v996_v58 = vcombine.high %v11796_v39, %v11796_v39  ;;  %v12128_v59 = vrot.slane %v11796_v39, %v11922_v12  ;;  %v12132_v61 = vrot.slane %v973_v53, %v11922_v12 }
  0x2f   :  { %11464 = vmatpush3.msra.mxu0 %v1825_v23  ;;  %11532 = vmatpush3.msra.mxu1 %v1825_v23  ;;  %v1930_v57 = vcombine.low %v1921_v48, %v1928_v49  ;;  %v1937_v60 = vrot.slane %v1929_v50, %v11922_v12  ;;  %v12136_v62 = vcombine.high %v12125_v56, %v12125_v56  ;;  %v11800_v49 = vld.sshfl [vmem:[%s18714_s1 + $0x98] sm:$0x13 pattern:$0x75316420] }
  0x30   :  { %11465 = vmatprep.mubr.f32.mxu0 %v1896_v3  ;;  %11483 = vmatprep.mubr.f32.mxu1 %v2484_v35  ;;  %v2485_v63 = vcombine.low %v12115_v43, %v12125_v56  ;;  %v12145_v4 = vrot.slane %v996_v58, %v11922_v12  ;;  %v12149_v5 = vcombine.high %v12128_v59, %v12128_v59  ;;  %v11801_v50 = vld.sshfl [vmem:[%s18714_s1 + $0x9c] sm:$0x13 pattern:$0x75316420] }
  0x31   :  { %v1944_v3 = vrot.slane %v1930_v57, %v11922_v12  ;;  %v12152_v6 = vrot.slane %v11797_v46, %v11922_v12  ;;  %v2486_v8 = vcombine.low %v12132_v61, %v12136_v62  ;;  %v283_v10 = vcombine.high %v12049_v0, %v12049_v0  ;;  %v11802_v57 = vld.sshfl [vmem:[%s18714_s1 + $0x20] sm:$0x13 pattern:$0x75316420] }
  0x32   :  { %v2495_v9 = vrot.slane %v2485_v63, %v11922_v12  ;;  %v12164_v11 = vcombine.high %v12097_v32, %v12097_v32  ;;  %v2487_v15 = vcombine.low %v12128_v59, %v12145_v4  ;;  %v1019_v33 = vcombine.high %v11797_v46, %v11797_v46 }
  0x33   :  { %v1945_v14 = vcombine.low %v1937_v60, %v1944_v3  ;;  %v2488_v16 = vcombine.low %v12149_v5, %v12152_v6  ;;  %v2502_v18 = vrot.slane %v2486_v8, %v11922_v12  ;;  %v12172_v23 = vrot.slane %v283_v10, %v11922_v12 }
  0x34   :  { %v2509_v0 = vrot.slane %v2487_v15, %v11922_v12  ;;  %v306_v36 = vcombine.high %v11798_v2, %v11798_v2  ;;  %v12177_v37 = vrot.slane %v11798_v2, %v11922_v12  ;;  %v329_v40 = vcombine.high %v11799_v7, %v11799_v7 }
  0x35   :  { %11466 = vmatmul.mubr.f32.vlgmr.msra.gmra.mxu0 %v1945_v14  ;;  %v2516_v35 = vrot.slane %v2488_v16, %v11922_v12  ;;  %v2517_v39 = vcombine.low %v2495_v9, %v2502_v18  ;;  %v12180_v42 = vrot.slane %v11799_v7, %v11922_v12  ;;  %v1946_v44 = vcombine.low %v12172_v23, %v12164_v11 }
  0x36   :  { %19027 = vst [vmem:[#allocation14_spill] sm:$0xff] %v12177_v37  ;;  %v12185_v46 = vrot.slane %v306_v36, %v11922_v12  ;;  %v12189_v48 = vcombine.high %v12177_v37, %v12177_v37  ;;  %v12198_v53 = vrot.slane %v1019_v33, %v11922_v12  ;;  %v12205_v60 = vrot.slane %v329_v40, %v11922_v12 }
  0x37   :  { %19028 = vst [vmem:[#allocation15_spill] sm:$0xff] %v12180_v42  ;;  %v2518_v45 = vcombine.low %v2509_v0, %v2516_v35  ;;  %v2525_v58 = vrot.slane %v2517_v39, %v11922_v12  ;;  %v12209_v63 = vcombine.high %v12180_v42, %v12180_v42  ;;  %v1956_v2 = vrot.slane %v1946_v44, %v11922_v12 }
  0x38   :  { %19029 = vst [vmem:[#allocation16_spill] sm:$0xff] %v12185_v46  ;;  %19030 = vst [vmem:[#allocation17_spill] sm:$0xff] %v12189_v48  ;;  %v1947_v7 = vcombine.low %v12177_v37, %v12185_v46  ;;  %v1948_v8 = vcombine.low %v12189_v48, %v12180_v42  ;;  %v12219_v9 = vcombine.high %v12152_v6, %v12152_v6 }
  0x39   :  { %19031 = vst [vmem:[#allocation18_spill] sm:$0xff] %v12205_v60  ;;  %19032 = vst [vmem:[#allocation19_spill] sm:$0xff] %v12209_v63  ;;  %v2532_v3 = vrot.slane %v2518_v45, %v11922_v12  ;;  %v1949_v10 = vcombine.low %v12205_v60, %v12209_v63  ;;  %v1042_v0 = vcombine.high %v11800_v49, %v11800_v49  ;;  %v11803_v45 = vld.sshfl [vmem:[%s18714_s1 + $0x24] sm:$0x13 pattern:$0x75316420] }
  0x3a   :  { %v1963_v15 = vrot.slane %v1947_v7, %v11922_v12  ;;  %v1970_v16 = vrot.slane %v1948_v8, %v11922_v12  ;;  %v2534_v18 = vcombine.low %v12198_v53, %v12219_v9  ;;  %v12229_v35 = vrot.slane %v11800_v49, %v11922_v12 }
  0x3b   :  { %v2533_v14 = vcombine.low %v2525_v58, %v2532_v3  ;;  %v1977_v33 = vrot.slane %v1949_v10, %v11922_v12  ;;  %v1065_v36 = vcombine.high %v11801_v50, %v11801_v50  ;;  %v12232_v40 = vrot.slane %v11801_v50, %v11922_v12  ;;  %v11804_v50 = vld.sshfl [vmem:[%s18714_s1 + $0x28] sm:$0x13 pattern:$0x75316420] }
  0x3c   :  { %19033 = vst [vmem:[#allocation20_spill] sm:$0xff] %v12229_v35  ;;  %v1978_v39 = vcombine.low %v1956_v2, %v1963_v15  ;;  %v2544_v44 = vrot.slane %v2534_v18, %v11922_v12  ;;  %v352_v58 = vcombine.high %v11802_v57, %v11802_v57  ;;  %v12239_v7 = vrot.slane %v1042_v0, %v11922_v12 }
  0x3d   :  { %11484 = vmatmul.mubr.f32.vlgmr.msra.gmra.mxu1 %v2533_v14  ;;  %19034 = vst [vmem:[#allocation21_spill] sm:$0xff] %v12232_v40  ;;  %v1979_v3 = vcombine.low %v1970_v16, %v1977_v33  ;;  %v12243_v49 = vcombine.high %v12229_v35, %v12229_v35  ;;  %v12246_v2 = vrot.slane %v1065_v36, %v11922_v12 }
  0x3e   :  { %19035 = vst [vmem:[#allocation22_spill] sm:$0xff] %v12239_v7  ;;  %v1986_v8 = vrot.slane %v1978_v39, %v11922_v12  ;;  %v12254_v10 = vcombine.high %v12232_v40, %v12232_v40  ;;  %v12257_v14 = vrot.slane %v11802_v57, %v11922_v12  ;;  %v12260_v15 = vrot.slane %v352_v58, %v11922_v12  ;;  %v11805_v39 = vld.sshfl [vmem:[%s18714_s1 + $0xa0] sm:$0x13 pattern:$0x75316420] }
  0x3f   :  { %19036 = vst [vmem:[#allocation23_spill] sm:$0xff] %v12243_v49  ;;  %19037 = vst [vmem:[#allocation24_spill] sm:$0xff] %v12246_v2  ;;  %v1993_v16 = vrot.slane %v1979_v3, %v11922_v12  ;;  %v2535_v18 = vcombine.low %v12229_v35, %v12239_v7  ;;  %v2536_v33 = vcombine.low %v12243_v49, %v12232_v40 }
  0x40   :  { %19038 = vst [vmem:[#allocation25_spill] sm:$0xff] %v12254_v10  ;;  %19039 = vst [vmem:[#allocation26_spill] sm:$0xff] %v12257_v14  ;;  %v2537_v0 = vcombine.low %v12246_v2, %v12254_v10  ;;  %v12271_v36 = vcombine.high %v12257_v14, %v12257_v14  ;;  %v1995_v57 = vcombine.low %v12257_v14, %v12260_v15  ;;  %v11806_v10 = vld.sshfl [vmem:[%s18714_s1 + $0xa4] sm:$0x13 pattern:$0x75316420] }
  0x41   :  { %19040 = vst [vmem:[#allocation27_spill] sm:$0xff] %v12260_v15  ;;  %v1994_v58 = vcombine.low %v1986_v8, %v1993_v16  ;;  %v2551_v3 = vrot.slane %v2535_v18, %v11922_v12  ;;  %v2558_v7 = vrot.slane %v2536_v33, %v11922_v12  ;;  %v375_v35 = vcombine.high %v11803_v45, %v11803_v45 }
  0x42   :  { %19041 = vst [vmem:[#allocation28_spill] sm:$0xff] %v12271_v36  ;;  %v2565_v49 = vrot.slane %v2537_v0, %v11922_v12  ;;  %v12282_v46 = vrot.slane %v11803_v45, %v11922_v12  ;;  %v398_v37 = vcombine.high %v11804_v50, %v11804_v50  ;;  %v12285_v48 = vrot.slane %v11804_v50, %v11922_v12 }
  0x43   :  { %11468 = vmatprep.mubr.f32.mxu0 %v1994_v58  ;;  %v2566_v8 = vcombine.low %v2544_v44, %v2551_v3  ;;  %v12291_v16 = vrot.slane %v375_v35, %v11922_v12  ;;  %v2005_v18 = vrot.slane %v1995_v57, %v11922_v12  ;;  %v1088_v58 = vcombine.high %v11805_v39, %v11805_v39  ;;  %v11807_v57 = vld.sshfl [vmem:[%s18714_s1 + $0xa8] sm:$0x13 pattern:$0x75316420] }
  0x44   :  { %19042 = vst [vmem:[#allocation29_spill] sm:$0xff] %v12282_v46  ;;  %19043 = vst [vmem:[#allocation30_spill] sm:$0xff] %v12285_v48  ;;  %v2567_v33 = vcombine.low %v2558_v7, %v2565_v49  ;;  %v12296_v45 = vcombine.high %v12282_v46, %v12282_v46  ;;  %v12299_v0 = vrot.slane %v398_v37, %v11922_v12 }
  0x45   :  { %19044 = vst [vmem:[#allocation31_spill] sm:$0xff] %v12291_v16  ;;  %v1996_v50 = vcombine.low %v12271_v36, %v12282_v46  ;;  %v2574_v2 = vrot.slane %v2566_v8, %v11922_v12  ;;  %v12305_v44 = vrot.slane %v11805_v39, %v11922_v12  ;;  %v12317_v3 = vrot.slane %v1088_v58, %v11922_v12 }
  0x46   :  { %19045 = vst [vmem:[#allocation32_spill] sm:$0xff] %v12296_v45  ;;  %19046 = vst [vmem:[#allocation33_spill] sm:$0xff] %v12299_v0  ;;  %v2581_v35 = vrot.slane %v2567_v33, %v11922_v12  ;;  %v1997_v7 = vcombine.low %v12291_v16, %v12296_v45  ;;  %v1998_v49 = vcombine.low %v12285_v48, %v12299_v0 }
  0x47   :  { %19047 = vst [vmem:[#allocation34_spill] sm:$0xff] %v12305_v44  ;;  %v2012_v37 = vrot.slane %v1996_v50, %v11922_v12  ;;  %19048 = vst [vmem:[#allocation35_spill] sm:$0xff] %v12317_v3  ;;  %v12321_v39 = vcombine.high %v12305_v44, %v12305_v44  ;;  %v1111_v8 = vcombine.high %v11806_v10, %v11806_v10 }
  0x48   :  { %v12324_v33 = vrot.slane %v11806_v10, %v11922_v12  ;;  %v2582_v40 = vcombine.low %v2574_v2, %v2581_v35  ;;  %v2019_v0 = vrot.slane %v1997_v7, %v11922_v12  ;;  %v2026_v50 = vrot.slane %v1998_v49, %v11922_v12  ;;  %v11808_v10 = vld.sshfl [vmem:[%s18714_s1 + $0x2c] sm:$0x13 pattern:$0x75316420] }
  0x49   :  { %19049 = vst [vmem:[#allocation36_spill] sm:$0xff] %v12321_v39  ;;  %v2027_v63 = vcombine.low %v2005_v18, %v2012_v37  ;;  %v12329_v60 = vrot.slane %v1111_v8, %v11922_v12  ;;  %v2583_v42 = vcombine.low %v12305_v44, %v12317_v3  ;;  %v11809_v2 = vld.sshfl [vmem:[%s18714_s1 + $0x30] sm:$0x13 pattern:$0x75316420]  ;;  %v12351_v37 = vcombine.high %v12285_v48, %v12285_v48 }
  0x4a   :  { %19050 = vst [vmem:[#allocation37_spill] sm:$0xff] %v12324_v33  ;;  %v12333_v58 = vcombine.high %v12324_v33, %v12324_v33  ;;  %11486 = vmatprep.mubr.f32.mxu1 %v2582_v40  ;;  %v2028_v18 = vcombine.low %v2019_v0, %v2026_v50  ;;  %v2584_v7 = vcombine.low %v12321_v39, %v12324_v33  ;;  %v11810_v49 = vld.sshfl [vmem:[%s18714_s1 + $0x34] sm:$0x13 pattern:$0x75316420] }
  0x4b   :  { %19051 = vst [vmem:[#allocation38_spill] sm:$0xff] %v12329_v60  ;;  %v2035_v35 = vrot.slane %v2027_v63, %v11922_v12  ;;  %19053 = vst [vmem:[#allocation40_spill] sm:$0xff] %v12351_v37  ;;  %v11811_v8 = vld.sshfl [vmem:[%s18714_s1 + $0x38] sm:$0x13 pattern:$0x75316420]  ;;  %v1134_v43 = vcombine.high %v11807_v57, %v11807_v57  ;;  %v12357_v40 = vrot.slane %v11807_v57, %v11922_v12 }
  0x4c   :  { %19052 = vst [vmem:[#allocation39_spill] sm:$0xff] %v12333_v58  ;;  %v2585_v63 = vcombine.low %v12329_v60, %v12333_v58  ;;  %v2593_v0 = vrot.slane %v2583_v42, %v11922_v12  ;;  %v2042_v50 = vrot.slane %v2028_v18, %v11922_v12  ;;  %v2600_v55 = vrot.slane %v2584_v7, %v11922_v12 }
  0x4d   :  { %19054 = vst [vmem:[#allocation41_spill] sm:$0xff] %v12357_v40  ;;  %v12365_v48 = vrot.slane %v1134_v43, %v11922_v12  ;;  %v421_v16 = vcombine.high %v11808_v10, %v11808_v10  ;;  %v12369_v57 = vrot.slane %v11808_v10, %v11922_v12  ;;  %v444_v60 = vcombine.high %v11809_v2, %v11809_v2 }
  0x4e   :  { %v2607_v52 = vrot.slane %v2585_v63, %v11922_v12  ;;  %v2043_v33 = vcombine.low %v2035_v35, %v2042_v50  ;;  %v2615_v45 = vcombine.low %v2593_v0, %v2600_v55  ;;  %v12374_v42 = vrot.slane %v11809_v2, %v11922_v12 }
  0x4f   :  { %19055 = vst [vmem:[#allocation42_spill] sm:$0xff] %v12365_v48  ;;  %19056 = vst [vmem:[#allocation43_spill] sm:$0xff] %v12369_v57  ;;  %v2586_v58 = vcombine.low %v12357_v40, %v12365_v48  ;;  %v12377_v18 = vrot.slane %v11810_v49, %v11922_v12  ;;  %v12381_v35 = vrot.slane %v421_v16, %v11922_v12  ;;  %v11812_v16 = vld.sshfl [vmem:[%s18714_s1 + $0x3c] sm:$0x13 pattern:$0x75316420] }
  0x50   :  { %19057 = vst [vmem:[#allocation44_spill] sm:$0xff] %v12374_v42  ;;  %11469 = vmatmul.mubr.f32.gmra.mxu0 %v2043_v33  ;;  %v2623_v43 = vrot.slane %v2615_v45, %v11922_v12  ;;  %v12385_v55 = vcombine.high %v12369_v57, %v12369_v57  ;;  %v2044_v10 = vcombine.low %v12351_v37, %v12369_v57 }
  0x51   :  { %19058 = vst [vmem:[#allocation45_spill] sm:$0xff] %v12377_v18  ;;  %19059 = vst [vmem:[#allocation46_spill] sm:$0xff] %v12381_v35  ;;  %v2614_v7 = vrot.slane %v2586_v58, %v11922_v12  ;;  %v12391_v2 = vrot.slane %v444_v60, %v11922_v12  ;;  %v12395_v33 = vcombine.high %v12374_v42, %v12374_v42 }
  0x52   :  { %19060 = vst [vmem:[#allocation47_spill] sm:$0xff] %v12385_v55  ;;  %v467_v45 = vcombine.high %v11810_v49, %v11810_v49  ;;  %v2045_v63 = vcombine.low %v12381_v35, %v12385_v55  ;;  %v2054_v0 = vrot.slane %v2044_v10, %v11922_v12  ;;  %v12405_v58 = vcombine.high %v12377_v18, %v12377_v18 }
  0x53   :  { %19061 = vst [vmem:[#allocation48_spill] sm:$0xff] %v12391_v2  ;;  %19062 = vst [vmem:[#allocation49_spill] sm:$0xff] %v12395_v33  ;;  %v490_v60 = vcombine.high %v11811_v8, %v11811_v8  ;;  %v2616_v50 = vcombine.low %v2607_v52, %v2614_v7  ;;  %v2046_v57 = vcombine.low %v12374_v42, %v12391_v2 }
  0x54   :  { %19063 = vst [vmem:[#allocation50_spill] sm:$0xff] %v12405_v58  ;;  %v2047_v48 = vcombine.low %v12395_v33, %v12377_v18  ;;  %v12412_v37 = vrot.slane %v467_v45, %v11922_v12  ;;  %v2061_v49 = vrot.slane %v2045_v63, %v11922_v12  ;;  %v12416_v55 = vrot.slane %v11811_v8, %v11922_v12 }
  0x55   :  { %v12419_v10 = vrot.slane %v490_v60, %v11922_v12  ;;  %v2630_v35 = vrot.slane %v2616_v50, %v11922_v12  ;;  %v2068_v52 = vrot.slane %v2046_v57, %v11922_v12  ;;  %v513_v63 = vcombine.high %v11812_v16, %v11812_v16  ;;  %v11813_v60 = vld.sshfl [vmem:[%s18714_s1 + $0xac] sm:$0x13 pattern:$0x75316420] }
  0x56   :  { %19064 = vst [vmem:[#allocation51_spill] sm:$0xff] %v12412_v37  ;;  %19065 = vst [vmem:[#allocation52_spill] sm:$0xff] %v12416_v55  ;;  %v2075_v7 = vrot.slane %v2047_v48, %v11922_v12  ;;  %v2093_v18 = vcombine.low %v12412_v37, %v12405_v58  ;;  %v2076_v33 = vcombine.low %v2054_v0, %v2061_v49  ;;  %v11814_v0 = vld.sshfl [vmem:[%s18714_s1 + $0xb0] sm:$0x13 pattern:$0x75316420] }
  0x57   :  { %19066 = vst [vmem:[#allocation53_spill] sm:$0xff] %v12419_v10  ;;  %v12428_v45 = vcombine.high %v12416_v55, %v12416_v55  ;;  %v12431_v8 = vrot.slane %v11812_v16, %v11922_v12  ;;  %v2631_v50 = vcombine.low %v2623_v43, %v2630_v35  ;;  %v2094_v48 = vcombine.low %v12416_v55, %v12419_v10  ;;  %v11815_v16 = vld.sshfl [vmem:[%s18714_s1 + $0xb4] sm:$0x13 pattern:$0x75316420] }
  0x58   :  { %v2077_v57 = vcombine.low %v2068_v52, %v2075_v7  ;;  %v2103_v58 = vrot.slane %v2093_v18, %v11922_v12  ;;  %v2084_v49 = vrot.slane %v2076_v33, %v11922_v12  ;;  %v12447_v37 = vrot.slane %v513_v63, %v11922_v12 }
  0x59   :  { %19067 = vst [vmem:[#allocation54_spill] sm:$0xff] %v12428_v45  ;;  %19068 = vst [vmem:[#allocation55_spill] sm:$0xff] %v12431_v8  ;;  %v12451_v43 = vcombine.high %v12431_v8, %v12431_v8  ;;  %v2095_v18 = vcombine.low %v12428_v45, %v12431_v8  ;;  %11487 = vmatmul.mubr.f32.gmra.mxu1 %v2631_v50  ;;  %v2110_v52 = vrot.slane %v2094_v48, %v11922_v12 }
  0x5a   :  { %19069 = vst [vmem:[#allocation56_spill] sm:$0xff] %v12447_v37  ;;  %v2091_v35 = vrot.slane %v2077_v57, %v11922_v12  ;;  %v12459_v7 = vcombine.high %v12357_v40, %v12357_v40  ;;  %v1157_v10 = vcombine.high %v11813_v60, %v11813_v60  ;;  %v12465_v55 = vrot.slane %v11813_v60, %v11922_v12 }
  0x5b   :  { %19070 = vst [vmem:[#allocation57_spill] sm:$0xff] %v12451_v43  ;;  %v2096_v33 = vcombine.low %v12447_v37, %v12451_v43  ;;  %v2117_v63 = vrot.slane %v2095_v18, %v11922_v12  ;;  %v2125_v42 = vcombine.low %v2103_v58, %v2110_v52  ;;  %v1180_v57 = vcombine.high %v11814_v0, %v11814_v0  ;;  %v11816_v43 = vld.sshfl [vmem:[%s18714_s1 + $0xb8] sm:$0x13 pattern:$0x75316420] }
  0x5c   :  { %19071 = vst [vmem:[#allocation58_spill] sm:$0xff] %v12459_v7  ;;  %v2092_v2 = vcombine.low %v2084_v49, %v2091_v35  ;;  %19072 = vst [vmem:[#allocation59_spill] sm:$0xff] %v12465_v55  ;;  %v12469_v48 = vrot.slane %v11814_v0, %v11922_v12  ;;  %v12472_v45 = vrot.slane %v11815_v16, %v11922_v12 }
  0x5d   :  { %v2124_v50 = vrot.slane %v2096_v33, %v11922_v12  ;;  %v2133_v58 = vrot.slane %v2125_v42, %v11922_v12  ;;  %v12479_v49 = vrot.slane %v1157_v10, %v11922_v12  ;;  %v12483_v60 = vcombine.high %v12465_v55, %v12465_v55  ;;  %v11817_v42 = vld.sshfl [vmem:[%s18714_s1 + $0xbc] sm:$0x13 pattern:$0x75316420] }
  0x5e   :  { %19073 = vst [vmem:[#allocation60_spill] sm:$0xff] %v12469_v48  ;;  %19074 = vst [vmem:[#allocation61_spill] sm:$0xff] %v12472_v45  ;;  %11471 = vmatprep.mubr.f32.mxu0 %v2092_v2  ;;  %v2632_v0 = vcombine.low %v12459_v7, %v12465_v55  ;;  %v12488_v35 = vrot.slane %v1180_v57, %v11922_v12  ;;  %v12492_v52 = vcombine.high %v12469_v48, %v12469_v48  ;;  %v11818_v55 = vld.sshfl [vmem:[%s18714_s1 + $0x40] sm:$0x13 pattern:$0x75316420] }
  0x5f   :  { %19075 = vst [vmem:[#allocation62_spill] sm:$0xff] %v12479_v49  ;;  %19076 = vst [vmem:[#allocation63_spill] sm:$0xff] %v12483_v60  ;;  %v2126_v18 = vcombine.low %v2117_v63, %v2124_v50  ;;  %v1203_v2 = vcombine.high %v11815_v16, %v11815_v16  ;;  %v2633_v10 = vcombine.low %v12479_v49, %v12483_v60 }
  0x60   :  { %19077 = vst [vmem:[#allocation64_spill] sm:$0xff] %v12488_v35  ;;  %19078 = vst [vmem:[#allocation65_spill] sm:$0xff] %v12492_v52  ;;  %v2642_v33 = vrot.slane %v2632_v0, %v11922_v12  ;;  %v12502_v63 = vcombine.high %v12472_v45, %v12472_v45  ;;  %v2634_v57 = vcombine.low %v12469_v48, %v12488_v35 }
  0x61   :  { %v2140_v50 = vrot.slane %v2126_v18, %v11922_v12  ;;  %v2635_v37 = vcombine.low %v12492_v52, %v12472_v45  ;;  %v12510_v8 = vrot.slane %v1203_v2, %v11922_v12  ;;  %v2649_v16 = vrot.slane %v2633_v10, %v11922_v12  ;;  %v11819_v2 = vld.sshfl [vmem:[%s18714_s1 + $0x44] sm:$0x13 pattern:$0x75316420] }
  0x62   :  { %19079 = vst [vmem:[#allocation66_spill] sm:$0xff] %v12502_v63  ;;  %v1226_v60 = vcombine.high %v11816_v43, %v11816_v43  ;;  %v12514_v0 = vrot.slane %v11816_v43, %v11922_v12  ;;  %v2656_v49 = vrot.slane %v2634_v57, %v11922_v12 }
  0x63   :  { %19080 = vst [vmem:[#allocation67_spill] sm:$0xff] %v12510_v8  ;;  %v2141_v18 = vcombine.low %v2133_v58, %v2140_v50  ;;  %v2663_v35 = vrot.slane %v2635_v37, %v11922_v12  ;;  %v2681_v45 = vcombine.low %v12510_v8, %v12502_v63  ;;  %v2664_v10 = vcombine.low %v2642_v33, %v2649_v16 }
  0x64   :  { %19081 = vst [vmem:[#allocation68_spill] sm:$0xff] %v12514_v0  ;;  %v12527_v43 = vrot.slane %v1226_v60, %v11922_v12  ;;  %v12531_v52 = vcombine.high %v12514_v0, %v12514_v0  ;;  %v1249_v58 = vcombine.high %v11817_v42, %v11817_v42  ;;  %v12534_v37 = vrot.slane %v11817_v42, %v11922_v12  ;;  %v11820_v42 = vld.sshfl [vmem:[%s18714_s1 + $0x48] sm:$0x13 pattern:$0x75316420] }
  0x65   :  { %11472 = vmatmul.mubr.f32.gmra.mxu0 %v2141_v18  ;;  %v2665_v50 = vcombine.low %v2656_v49, %v2663_v35  ;;  %v2691_v57 = vrot.slane %v2681_v45, %v11922_v12  ;;  %v2672_v63 = vrot.slane %v2664_v10, %v11922_v12  ;;  %v536_v35 = vcombine.high %v11818_v55, %v11818_v55 }
  0x66   :  { %19082 = vst [vmem:[#allocation69_spill] sm:$0xff] %v12527_v43  ;;  %19083 = vst [vmem:[#allocation70_spill] sm:$0xff] %v12531_v52  ;;  %v12539_v8 = vrot.slane %v1249_v58, %v11922_v12  ;;  %v2682_v60 = vcombine.low %v12514_v0, %v12527_v43  ;;  %v12546_v16 = vcombine.high %v12534_v37, %v12534_v37 }
  0x67   :  { %19084 = vst [vmem:[#allocation71_spill] sm:$0xff] %v12534_v37  ;;  %v2679_v33 = vrot.slane %v2665_v50, %v11922_v12  ;;  %v2683_v49 = vcombine.low %v12531_v52, %v12534_v37  ;;  %v12555_v18 = vrot.slane %v11818_v55, %v11922_v12  ;;  %v559_v10 = vcombine.high %v11819_v2, %v11819_v2  ;;  %v11821_v50 = vld.sshfl [vmem:[%s18714_s1 + $0x4c] sm:$0x13 pattern:$0x75316420] }
  0x68   :  { %19085 = vst [vmem:[#allocation72_spill] sm:$0xff] %v12539_v8  ;;  %19086 = vst [vmem:[#allocation73_spill] sm:$0xff] %v12546_v16  ;;  %v2698_v45 = vrot.slane %v2682_v60, %v11922_v12  ;;  %v12558_v58 = vrot.slane %v11819_v2, %v11922_v12  ;;  %v2684_v43 = vcombine.low %v12539_v8, %v12546_v16  ;;  %v11822_v55 = vld.sshfl [vmem:[%s18714_s1 + $0x50] sm:$0x13 pattern:$0x75316420] }
  0x69   :  { %19087 = vst [vmem:[#allocation74_spill] sm:$0xff] %v12555_v18  ;;  %v2680_v48 = vcombine.low %v2672_v63, %v2679_v33  ;;  %v2705_v60 = vrot.slane %v2683_v49, %v11922_v12  ;;  %v12567_v0 = vrot.slane %v536_v35, %v11922_v12  ;;  %v12574_v2 = vcombine.high %v12555_v18, %v12555_v18 }
  0x6a   :  { %19088 = vst [vmem:[#allocation75_spill] sm:$0xff] %v12558_v58  ;;  %v2713_v52 = vcombine.low %v2691_v57, %v2698_v45  ;;  %v12577_v37 = vrot.slane %v559_v10, %v11922_v12  ;;  %v12581_v63 = vcombine.high %v12558_v58, %v12558_v58  ;;  %v2712_v33 = vrot.slane %v2684_v43, %v11922_v12 }
  0x6b   :  { %19089 = vst [vmem:[#allocation76_spill] sm:$0xff] %v12567_v0  ;;  %19090 = vst [vmem:[#allocation77_spill] sm:$0xff] %v12574_v2  ;;  %11489 = vmatprep.mubr.f32.mxu1 %v2680_v48  ;;  %v2142_v49 = vcombine.low %v12555_v18, %v12567_v0  ;;  %v2143_v57 = vcombine.low %v12574_v2, %v12558_v58  ;;  %v582_v16 = vcombine.high %v11820_v42, %v11820_v42 }
  0x6c   :  { %19091 = vst [vmem:[#allocation78_spill] sm:$0xff] %v12577_v37  ;;  %19092 = vst [vmem:[#allocation79_spill] sm:$0xff] %v12581_v63  ;;  %v2721_v35 = vrot.slane %v2713_v52, %v11922_v12  ;;  %v2144_v45 = vcombine.low %v12577_v37, %v12581_v63  ;;  %v2714_v10 = vcombine.low %v2705_v60, %v2712_v33  ;;  %v12600_v52 = vld.sshfl [vmem:[%s18714_s1 + $0x54] sm:$0x13 pattern:$0x75316420] }
  0x6d   :  { %v12592_v8 = vrot.slane %v11820_v42, %v11922_v12  ;;  %v2152_v48 = vrot.slane %v2142_v49, %v11922_v12  ;;  %v2159_v43 = vrot.slane %v2143_v57, %v11922_v12  ;;  %v605_v58 = vcombine.high %v11821_v50, %v11821_v50 }
  0x6e   :  { %v2166_v7 = vrot.slane %v2144_v45, %v11922_v12  ;;  %v12603_v2 = vrot.slane %v11821_v50, %v11922_v12  ;;  %v2728_v60 = vrot.slane %v2714_v10, %v11922_v12  ;;  %v12607_v42 = vrot.slane %v582_v16, %v11922_v12  ;;  %v11824_v16 = vld.sshfl [vmem:[%s18714_s1 + $0xc0] sm:$0x13 pattern:$0x75316420] }
  0x6f   :  { %19093 = vst [vmem:[#allocation80_spill] sm:$0xff] %v12592_v8  ;;  %v12611_v33 = vcombine.high %v12592_v8, %v12592_v8  ;;  %v628_v49 = vcombine.high %v11822_v55, %v11822_v55  ;;  %v2174_v57 = vcombine.low %v2152_v48, %v2159_v43  ;;  %v12614_v45 = vrot.slane %v605_v58, %v11922_v12  ;;  %v11825_v58 = vld.sshfl [vmem:[%s18714_s1 + $0xc4] sm:$0x13 pattern:$0x75316420] }
  0x70   :  { %19094 = vst [vmem:[#allocation81_spill] sm:$0xff] %v12603_v2  ;;  %19095 = vst [vmem:[#allocation82_spill] sm:$0xff] %v12607_v42  ;;  %v12618_v63 = vcombine.high %v12603_v2, %v12603_v2  ;;  %v12621_v50 = vrot.slane %v11822_v55, %v11922_v12  ;;  %v2729_v10 = vcombine.low %v2721_v35, %v2728_v60  ;;  %v11826_v55 = vld.sshfl [vmem:[%s18714_s1 + $0xc8] sm:$0x13 pattern:$0x75316420] }
  0x71   :  { %19096 = vst [vmem:[#allocation83_spill] sm:$0xff] %v12611_v33  ;;  %19097 = vst [vmem:[#allocation84_spill] sm:$0xff] %v12614_v45  ;;  %v2145_v37 = vcombine.low %v12592_v8, %v12607_v42  ;;  %v12629_v48 = vrot.slane %v628_v49, %v11922_v12  ;;  %v2182_v43 = vrot.slane %v2174_v57, %v11922_v12 }
  0x72   :  { %19098 = vst [vmem:[#allocation85_spill] sm:$0xff] %v12618_v63  ;;  %19099 = vst [vmem:[#allocation86_spill] sm:$0xff] %v12621_v50  ;;  %v12640_v0 = vcombine.high %v12621_v50, %v12621_v50  ;;  %v2191_v35 = vcombine.low %v12611_v33, %v12603_v2  ;;  %v2192_v60 = vcombine.low %v12614_v45, %v12618_v63  ;;  %11490 = vmatmul.mubr.f32.gmra.mxu1 %v2729_v10 }
  0x73   :  { %19100 = vst [vmem:[#allocation87_spill] sm:$0xff] %v12629_v48  ;;  %v2173_v49 = vrot.slane %v2145_v37, %v11922_v12  ;;  %v12649_v42 = vrot.slane %v12600_v52, %v11922_v12  ;;  %v2193_v57 = vcombine.low %v12621_v50, %v12629_v48  ;;  %v1272_v10 = vcombine.high %v11824_v16, %v11824_v16 }
  0x74   :  { %19101 = vst [vmem:[#allocation88_spill] sm:$0xff] %v12640_v0  ;;  %v2201_v8 = vrot.slane %v2191_v35, %v11922_v12  ;;  %v2208_v18 = vrot.slane %v2192_v60, %v11922_v12  ;;  %v12659_v37 = vrot.slane %v11824_v16, %v11922_v12  ;;  %v1295_v2 = vcombine.high %v11825_v58, %v11825_v58 }
  0x75   :  { %19102 = vst [vmem:[#allocation89_spill] sm:$0xff] %v12649_v42  ;;  %v2175_v40 = vcombine.low %v2166_v7, %v2173_v49  ;;  %v2194_v33 = vcombine.low %v12640_v0, %v12649_v42  ;;  %v2215_v63 = vrot.slane %v2193_v57, %v11922_v12  ;;  %v12662_v46 = vrot.slane %v11825_v58, %v11922_v12  ;;  %v11827_v49 = vld.sshfl [vmem:[%s18714_s1 + $0xcc] sm:$0x13 pattern:$0x75316420] }
  0x76   :  { %v2223_v45 = vcombine.low %v2201_v8, %v2208_v18  ;;  %19103 = vst [vmem:[#allocation90_spill] sm:$0xff] %v12659_v37  ;;  %v12667_v7 = vrot.slane %v1272_v10, %v11922_v12  ;;  %v1318_v60 = vcombine.high %v11826_v55, %v11826_v55  ;;  %v12675_v18 = vcombine.high %v12659_v37, %v12659_v37 }
  0x77   :  { %19104 = vst [vmem:[#allocation91_spill] sm:$0xff] %v12662_v46  ;;  %v2189_v48 = vrot.slane %v2175_v40, %v11922_v12  ;;  %v2222_v35 = vrot.slane %v2194_v33, %v11922_v12  ;;  %v12678_v16 = vrot.slane %v1295_v2, %v11922_v12  ;;  %v12682_v40 = vcombine.high %v12662_v46, %v12662_v46  ;;  %v11828_v33 = vld.sshfl [vmem:[%s18714_s1 + $0xd0] sm:$0x13 pattern:$0x75316420] }
  0x78   :  { %19105 = vst [vmem:[#allocation92_spill] sm:$0xff] %v12667_v7  ;;  %v2231_v8 = vrot.slane %v2223_v45, %v11922_v12  ;;  %19106 = vst [vmem:[#allocation93_spill] sm:$0xff] %v12675_v18  ;;  %v12688_v10 = vrot.slane %v11826_v55, %v11922_v12  ;;  %v12691_v45 = vrot.slane %v1318_v60, %v11922_v12 }
  0x79   :  { %19107 = vst [vmem:[#allocation94_spill] sm:$0xff] %v12678_v16  ;;  %19108 = vst [vmem:[#allocation95_spill] sm:$0xff] %v12682_v40  ;;  %v2190_v58 = vcombine.low %v2182_v43, %v2189_v48  ;;  %v2224_v57 = vcombine.low %v2215_v63, %v2222_v35  ;;  %v2730_v2 = vcombine.low %v12659_v37, %v12667_v7  ;;  %v12705_v48 = vld.sshfl [vmem:[%s18714_s1 + $0xd4] sm:$0x13 pattern:$0x75316420] }
  0x7a   :  { %19109 = vst [vmem:[#allocation96_spill] sm:$0xff] %v12688_v10  ;;  %19110 = vst [vmem:[#allocation97_spill] sm:$0xff] %v12691_v45  ;;  %v2731_v0 = vcombine.low %v12675_v18, %v12662_v46  ;;  %v2732_v50 = vcombine.low %v12678_v16, %v12682_v40  ;;  %v2733_v63 = vcombine.low %v12688_v10, %v12691_v45 }
  0x7b   :  { %11474 = vmatprep.mubr.f32.mxu0 %v2190_v58  ;;  %v2238_v39 = vrot.slane %v2224_v57, %v11922_v12  ;;  %v12709_v55 = vcombine.high %v12688_v10, %v12688_v10  ;;  %v2740_v43 = vrot.slane %v2730_v2, %v11922_v12  ;;  %v1341_v58 = vcombine.high %v11827_v49, %v11827_v49 }
  0x7c   :  { %v2747_v35 = vrot.slane %v2731_v0, %v11922_v12  ;;  %v2754_v60 = vrot.slane %v2732_v50, %v11922_v12  ;;  %v2761_v40 = vrot.slane %v2733_v63, %v11922_v12  ;;  %v12716_v45 = vrot.slane %v11827_v49, %v11922_v12  ;;  %v11830_v49 = vld.sshfl [vmem:[%s18714_s1 + $0x58] sm:$0x13 pattern:$0x75316420] }
  0x7d   :  { %19111 = vst [vmem:[#allocation98_spill] sm:$0xff] %v12709_v55  ;;  %v2239_v57 = vcombine.low %v2231_v8, %v2238_v39  ;;  %v1364_v16 = vcombine.high %v11828_v33, %v11828_v33  ;;  %v12719_v18 = vrot.slane %v1341_v58, %v11922_v12  ;;  %v12722_v10 = vrot.slane %v11828_v33, %v11922_v12 }
  0x7e   :  { %19112 = vst [vmem:[#allocation99_spill] sm:$0xff] %v12716_v45  ;;  %v2762_v46 = vcombine.low %v2740_v43, %v2747_v35  ;;  %v2763_v2 = vcombine.low %v2754_v60, %v2761_v40  ;;  %v12726_v0 = vcombine.high %v12716_v45, %v12716_v45  ;;  %v2779_v50 = vcombine.low %v12709_v55, %v12716_v45  ;;  %v11640_v45 = vld [vmem:[%s18714_s1 + $0x90] sm:$0x7] }
  0x7f   :  { %19113 = vst [vmem:[#allocation100_spill] sm:$0xff] %v12719_v18  ;;  %19114 = vst [vmem:[#allocation101_spill] sm:$0xff] %v12722_v10  ;;  %11475 = vmatmul.mubr.f32.gmra.mxu0 %v2239_v57  ;;  %v12729_v39 = vrot.slane %v1364_v16, %v11922_v12  ;;  %v12739_v33 = vcombine.high %v12722_v10, %v12722_v10  ;;  %v12743_v40 = vrot.slane %v12705_v48, %v11922_v12  ;;  %v11831_v16 = vld.sshfl [vmem:[%s18714_s1 + $0x5c] sm:$0x13 pattern:$0x75316420] }
  0x80   :  { %19115 = vst [vmem:[#allocation102_spill] sm:$0xff] %v12726_v0  ;;  %v2770_v8 = vrot.slane %v2762_v46, %v11922_v12  ;;  %v651_v63 = vcombine.high %v12600_v52, %v12600_v52  ;;  %v2777_v43 = vrot.slane %v2763_v2, %v11922_v12  ;;  %v2780_v46 = vcombine.low %v12719_v18, %v12726_v0  ;;  %v11832_v52 = vld.sshfl [vmem:[%s18714_s1 + $0x60] sm:$0x13 pattern:$0x75316420] }
  0x81   :  { %19116 = vst [vmem:[#allocation103_spill] sm:$0xff] %v12729_v39  ;;  %19117 = vst [vmem:[#allocation104_spill] sm:$0xff] %v12739_v33  ;;  %v2781_v35 = vcombine.low %v12722_v10, %v12729_v39  ;;  %v2789_v60 = vrot.slane %v2779_v50, %v11922_v12  ;;  %v2782_v58 = vcombine.low %v12739_v33, %v12743_v40 }
  0x82   :  { %19118 = vst [vmem:[#allocation105_spill] sm:$0xff] %v12743_v40  ;;  %v12759_v57 = vrot.slane %v651_v63, %v11922_v12  ;;  %v12763_v55 = vcombine.high %v12649_v42, %v12649_v42  ;;  %v2778_v2 = vcombine.low %v2770_v8, %v2777_v43  ;;  %v2796_v7 = vrot.slane %v2780_v46, %v11922_v12 }
  0x83   :  { %v2803_v39 = vrot.slane %v2781_v35, %v11922_v12  ;;  %v2810_v50 = vrot.slane %v2782_v58, %v11922_v12  ;;  %v674_v10 = vcombine.high %v11830_v49, %v11830_v49  ;;  %v12772_v33 = vrot.slane %v11830_v49, %v11922_v12  ;;  %v11833_v35 = vld.sshfl [vmem:[%s18714_s1 + $0x64] sm:$0x13 pattern:$0x75316420] }
  0x84   :  { %19119 = vst [vmem:[#allocation106_spill] sm:$0xff] %v12759_v57  ;;  %19120 = vst [vmem:[#allocation107_spill] sm:$0xff] %v12763_v55  ;;  %v2240_v63 = vcombine.low %v12759_v57, %v12763_v55  ;;  %11492 = vmatprep.mubr.f32.mxu1 %v2778_v2  ;;  %v2811_v42 = vcombine.low %v2789_v60, %v2796_v7  ;;  %v697_v37 = vcombine.high %v11831_v16, %v11831_v16  ;;  %v11834_v7 = vld.sshfl [vmem:[%s18714_s1 + $0x68] sm:$0x13 pattern:$0x75316420] }
  0x85   :  { %19121 = vst [vmem:[#allocation108_spill] sm:$0xff] %v12772_v33  ;;  %v12777_v0 = vrot.slane %v11831_v16, %v11922_v12  ;;  %v2812_v8 = vcombine.low %v2803_v39, %v2810_v50  ;;  %v12780_v43 = vrot.slane %v674_v10, %v11922_v12  ;;  %v12784_v46 = vcombine.high %v12772_v33, %v12772_v33 }
  0x86   :  { %v2250_v49 = vrot.slane %v2240_v63, %v11922_v12  ;;  %v2819_v16 = vrot.slane %v2811_v42, %v11922_v12  ;;  %v12795_v39 = vrot.slane %v697_v37, %v11922_v12  ;;  %v720_v60 = vcombine.high %v11832_v52, %v11832_v52 }
  0x87   :  { %19122 = vst [vmem:[#allocation109_spill] sm:$0xff] %v12777_v0  ;;  %19123 = vst [vmem:[#allocation110_spill] sm:$0xff] %v12780_v43  ;;  %v12799_v10 = vcombine.high %v12777_v0, %v12777_v0  ;;  %v2826_v58 = vrot.slane %v2812_v8, %v11922_v12  ;;  %v2241_v2 = vcombine.low %v12772_v33, %v12780_v43 }
  0x88   :  { %19124 = vst [vmem:[#allocation111_spill] sm:$0xff] %v12784_v46  ;;  %19125 = vst [vmem:[#allocation112_spill] sm:$0xff] %v12795_v39  ;;  %v2242_v50 = vcombine.low %v12784_v46, %v12777_v0  ;;  %v12807_v63 = vrot.slane %v11832_v52, %v11922_v12  ;;  %v12812_v37 = vrot.slane %v720_v60, %v11922_v12 }
  0x89   :  { %19126 = vst [vmem:[#allocation113_spill] sm:$0xff] %v12799_v10  ;;  %v2243_v42 = vcombine.low %v12795_v39, %v12799_v10  ;;  %v2827_v55 = vcombine.low %v2819_v16, %v2826_v58  ;;  %v2257_v57 = vrot.slane %v2241_v2, %v11922_v12  ;;  %v743_v33 = vcombine.high %v11833_v35, %v11833_v35 }
  0x8a   :  { %19127 = vst [vmem:[#allocation114_spill] sm:$0xff] %v12807_v63  ;;  %19128 = vst [vmem:[#allocation115_spill] sm:$0xff] %v12812_v37  ;;  %v2264_v8 = vrot.slane %v2242_v50, %v11922_v12  ;;  %v12818_v43 = vcombine.high %v12807_v63, %v12807_v63  ;;  %v12822_v52 = vrot.slane %v11833_v35, %v11922_v12 }
  0x8b   :  { %v2271_v46 = vrot.slane %v2243_v42, %v11922_v12  ;;  %v766_v0 = vcombine.high %v11834_v7, %v11834_v7  ;;  %11493 = vmatmul.mubr.f32.gmra.mxu1 %v2827_v55  ;;  %v2272_v10 = vcombine.low %v2250_v49, %v2257_v57  ;;  %v12825_v60 = vrot.slane %v11834_v7, %v11922_v12  ;;  %v11835_v57 = vld.sshfl [vmem:[%s18714_s1 + $0xd8] sm:$0x13 pattern:$0x75316420] }
  0x8c   :  { %19129 = vst [vmem:[#allocation116_spill] sm:$0xff] %v12818_v43  ;;  %19130 = vst [vmem:[#allocation117_spill] sm:$0xff] %v12822_v52  ;;  %v2289_v16 = vcombine.low %v12807_v63, %v12812_v37  ;;  %v1387_v58 = vcombine.high %v12705_v48, %v12705_v48  ;;  %v12832_v50 = vrot.slane %v743_v33, %v11922_v12  ;;  %v11836_v49 = vld.sshfl [vmem:[%s18714_s1 + $0xdc] sm:$0x13 pattern:$0x75316420] }
  0x8d   :  { %19131 = vst [vmem:[#allocation118_spill] sm:$0xff] %v12825_v60  ;;  %v2273_v2 = vcombine.low %v2264_v8, %v2271_v46  ;;  %v12836_v35 = vcombine.high %v12822_v52, %v12822_v52  ;;  %v12839_v55 = vrot.slane %v766_v0, %v11922_v12  ;;  %v11837_v48 = vld.sshfl [vmem:[%s18714_s1 + $0xe0] sm:$0x13 pattern:$0x75316420]  ;;  %v2280_v33 = vrot.slane %v2272_v10, %v11922_v12 }
  0x8e   :  { %19132 = vst [vmem:[#allocation119_spill] sm:$0xff] %v12832_v50  ;;  %v2290_v46 = vcombine.low %v12818_v43, %v12822_v52  ;;  %v2299_v0 = vrot.slane %v2289_v16, %v11922_v12  ;;  %v12855_v7 = vrot.slane %v1387_v58, %v11922_v12  ;;  %v12864_v37 = vcombine.high %v12743_v40, %v12743_v40 }
  0x8f   :  { %19133 = vst [vmem:[#allocation120_spill] sm:$0xff] %v12836_v35  ;;  %19134 = vst [vmem:[#allocation121_spill] sm:$0xff] %v12839_v55  ;;  %v2287_v42 = vrot.slane %v2273_v2, %v11922_v12  ;;  %v2291_v8 = vcombine.low %v12832_v50, %v12836_v35  ;;  %v2292_v39 = vcombine.low %v12825_v60, %v12839_v55 }
  0x90   :  { %19135 = vst [vmem:[#allocation122_spill] sm:$0xff] %v12855_v7  ;;  %19136 = vst [vmem:[#allocation123_spill] sm:$0xff] %v12864_v37  ;;  %v2306_v10 = vrot.slane %v2290_v46, %v11922_v12  ;;  %v2828_v2 = vcombine.low %v12855_v7, %v12864_v37  ;;  %v1410_v63 = vcombine.high %v11835_v57, %v11835_v57  ;;  %v11839_v46 = vld.sshfl [vmem:[%s18714_s1 + $0xe8] sm:$0x13 pattern:$0x75316420] }
  0x91   :  { %v2288_v52 = vcombine.low %v2280_v33, %v2287_v42  ;;  %v2313_v16 = vrot.slane %v2291_v8, %v11922_v12  ;;  %v2320_v58 = vrot.slane %v2292_v39, %v11922_v12  ;;  %v12872_v35 = vrot.slane %v11835_v57, %v11922_v12  ;;  %v11838_v39 = vld.sshfl [vmem:[%s18714_s1 + $0xe4] sm:$0x13 pattern:$0x75316420] }
  0x92   :  { %v2321_v43 = vcombine.low %v2299_v0, %v2306_v10  ;;  %v1433_v55 = vcombine.high %v11836_v49, %v11836_v49  ;;  %v12875_v40 = vrot.slane %v11836_v49, %v11922_v12  ;;  %v2838_v33 = vrot.slane %v2828_v2, %v11922_v12 }
  0x93   :  { %19137 = vst [vmem:[#allocation124_spill] sm:$0xff] %v12872_v35  ;;  %11477 = vmatprep.mubr.f32.mxu0 %v2288_v52  ;;  %v2322_v50 = vcombine.low %v2313_v16, %v2320_v58  ;;  %v1456_v0 = vcombine.high %v11837_v48, %v11837_v48  ;;  %v12886_v42 = vrot.slane %v1410_v63, %v11922_v12 }
  0x94   :  { %19138 = vst [vmem:[#allocation125_spill] sm:$0xff] %v12875_v40  ;;  %v2329_v57 = vrot.slane %v2321_v43, %v11922_v12  ;;  %v12890_v52 = vcombine.high %v12872_v35, %v12872_v35  ;;  %v12893_v49 = vrot.slane %v1433_v55, %v11922_v12  ;;  %v12898_v10 = vcombine.high %v12875_v40, %v12875_v40 }
  0x95   :  { %19139 = vst [vmem:[#allocation126_spill] sm:$0xff] %v12886_v42  ;;  %v2336_v8 = vrot.slane %v2322_v50, %v11922_v12  ;;  %v12901_v16 = vrot.slane %v11837_v48, %v11922_v12  ;;  %v12904_v43 = vrot.slane %v1456_v0, %v11922_v12  ;;  %v2829_v63 = vcombine.low %v12872_v35, %v12886_v42 }
  0x96   :  { %19140 = vst [vmem:[#allocation127_spill] sm:$0xff] %v12890_v52  ;;  %19141 = vst [vmem:[#allocation128_spill] sm:$0xff] %v12893_v49  ;;  %v2830_v58 = vcombine.low %v12890_v52, %v12875_v40  ;;  %v2831_v50 = vcombine.low %v12893_v49, %v12898_v10  ;;  %v1479_v7 = vcombine.high %v11838_v39, %v11838_v39 }
  0x97   :  { %19142 = vst [vmem:[#allocation129_spill] sm:$0xff] %v12898_v10  ;;  %19143 = vst [vmem:[#allocation130_spill] sm:$0xff] %v12901_v16  ;;  %v2337_v55 = vcombine.low %v2329_v57, %v2336_v8  ;;  %v12914_v2 = vcombine.high %v12901_v16, %v12901_v16  ;;  %v2877_v48 = vcombine.low %v12901_v16, %v12904_v43  ;;  %v11840_v57 = vld.sshfl [vmem:[%s18714_s1 + $0x6c] sm:$0x13 pattern:$0x75316420] }
  0x98   :  { %19144 = vst [vmem:[#allocation131_spill] sm:$0xff] %v12904_v43  ;;  %v2845_v0 = vrot.slane %v2829_v63, %v11922_v12  ;;  %v2852_v37 = vrot.slane %v2830_v58, %v11922_v12  ;;  %v12921_v35 = vrot.slane %v11838_v39, %v11922_v12  ;;  %v2859_v8 = vrot.slane %v2831_v50, %v11922_v12  ;;  %v11841_v63 = vld.sshfl [vmem:[%s18714_s1 + $0x70] sm:$0x13 pattern:$0x75316420] }
  0x99   :  { %19145 = vst [vmem:[#allocation132_spill] sm:$0xff] %v12914_v2  ;;  %11478 = vmatmul.mubr.f32.gmra.mxu0 %v2337_v55  ;;  %v1502_v52 = vcombine.high %v11839_v46, %v11839_v46  ;;  %v12928_v42 = vrot.slane %v11839_v46, %v11922_v12  ;;  %v2887_v10 = vrot.slane %v2877_v48, %v11922_v12 }
  0x9a   :  { %19146 = vst [vmem:[#allocation133_spill] sm:$0xff] %v12921_v35  ;;  %v2860_v58 = vcombine.low %v2838_v33, %v2845_v0  ;;  %v12935_v39 = vrot.slane %v1479_v7, %v11922_v12  ;;  %v12939_v49 = vcombine.high %v12921_v35, %v12921_v35  ;;  %v2878_v55 = vcombine.low %v12914_v2, %v12921_v35 }
  0x9b   :  { %19147 = vst [vmem:[#allocation134_spill] sm:$0xff] %v12928_v42  ;;  %v2861_v50 = vcombine.low %v2852_v37, %v2859_v8  ;;  %v12944_v46 = vrot.slane %v1502_v52, %v11922_v12  ;;  %v12948_v48 = vcombine.high %v12825_v60, %v12825_v60  ;;  %v11842_v37 = vld.sshfl [vmem:[%s18714_s1 + $0x74] sm:$0x13 pattern:$0x75316420]  ;;  %v789_v52 = vcombine.high %v11840_v57, %v11840_v57 }
  0x9c   :  { %19148 = vst [vmem:[#allocation135_spill] sm:$0xff] %v12935_v39  ;;  %19149 = vst [vmem:[#allocation136_spill] sm:$0xff] %v12939_v49  ;;  %v2868_v33 = vrot.slane %v2860_v58, %v11922_v12  ;;  %v2879_v7 = vcombine.low %v12935_v39, %v12939_v49  ;;  %v2894_v0 = vrot.slane %v2878_v55, %v11922_v12  ;;  %v11843_v55 = vld.sshfl [vmem:[%s18714_s1 + $0x78] sm:$0x13 pattern:$0x75316420] }
  0x9d   :  { %19150 = vst [vmem:[#allocation137_spill] sm:$0xff] %v12944_v46  ;;  %19151 = vst [vmem:[#allocation138_spill] sm:$0xff] %v12948_v48  ;;  %v2875_v40 = vrot.slane %v2861_v50, %v11922_v12  ;;  %v2880_v35 = vcombine.low %v12928_v42, %v12944_v46  ;;  %v12961_v8 = vrot.slane %v11840_v57, %v11922_v12 }
  0x9e   :  { %v2901_v58 = vrot.slane %v2879_v7, %v11922_v12  ;;  %v2909_v60 = vcombine.low %v2887_v10, %v2894_v0  ;;  %v812_v2 = vcombine.high %v11841_v63, %v11841_v63  ;;  %v12965_v49 = vrot.slane %v11841_v63, %v11922_v12  ;;  %v11844_v10 = vld.sshfl [vmem:[%s18714_s1 + $0x7c] sm:$0x13 pattern:$0x75316420] }
  0x9f   :  { %19152 = vst [vmem:[#allocation139_spill] sm:$0xff] %v12961_v8  ;;  %v2876_v50 = vcombine.low %v2868_v33, %v2875_v40  ;;  %v2908_v46 = vrot.slane %v2880_v35, %v11922_v12  ;;  %v12972_v39 = vrot.slane %v789_v52, %v11922_v12  ;;  %v12976_v57 = vcombine.high %v12961_v8, %v12961_v8 }
  0xa0   :  { %19153 = vst [vmem:[#allocation140_spill] sm:$0xff] %v12965_v49  ;;  %v2917_v63 = vrot.slane %v2909_v60, %v11922_v12  ;;  %v12983_v7 = vrot.slane %v812_v2, %v11922_v12  ;;  %v12987_v40 = vcombine.high %v12965_v49, %v12965_v49  ;;  %v2338_v33 = vcombine.low %v12948_v48, %v12961_v8 }
  0xa1   :  { %19154 = vst [vmem:[#allocation141_spill] sm:$0xff] %v12972_v39  ;;  %19155 = vst [vmem:[#allocation142_spill] sm:$0xff] %v12976_v57  ;;  %11495 = vmatprep.mubr.f32.mxu1 %v2876_v50  ;;  %v2910_v35 = vcombine.low %v2901_v58, %v2908_v46  ;;  %v2339_v0 = vcombine.low %v12972_v39, %v12976_v57  ;;  %v12994_v52 = vrot.slane %v11842_v37, %v11922_v12 }
  0xa2   :  { %19156 = vst [vmem:[#allocation143_spill] sm:$0xff] %v12983_v7  ;;  %19157 = vst [vmem:[#allocation144_spill] sm:$0xff] %v12987_v40  ;;  %v2340_v60 = vcombine.low %v12965_v49, %v12983_v7  ;;  %v835_v2 = vcombine.high %v11842_v37, %v11842_v37  ;;  %v2348_v16 = vrot.slane %v2338_v33, %v11922_v12 }
  0xa3   :  { %19158 = vst [vmem:[#allocation145_spill] sm:$0xff] %v12994_v52  ;;  %v2924_v43 = vrot.slane %v2910_v35, %v11922_v12  ;;  %v2355_v50 = vrot.slane %v2339_v0, %v11922_v12  ;;  %v858_v46 = vcombine.high %v11843_v55, %v11843_v55  ;;  %v2341_v58 = vcombine.low %v12987_v40, %v12994_v52 }
  0xa4   :  { %v2362_v8 = vrot.slane %v2340_v60, %v11922_v12  ;;  %v13005_v57 = vrot.slane %v835_v2, %v11922_v12  ;;  %v13009_v39 = vcombine.high %v12994_v52, %v12994_v52  ;;  %v13012_v35 = vrot.slane %v11843_v55, %v11922_v12 }
  0xa5   :  { %v2925_v37 = vcombine.low %v2917_v63, %v2924_v43  ;;  %v2370_v7 = vcombine.low %v2348_v16, %v2355_v50  ;;  %v13015_v33 = vrot.slane %v858_v46, %v11922_v12  ;;  %v2369_v0 = vrot.slane %v2341_v58, %v11922_v12  ;;  %v11845_v43 = vld.sshfl [vmem:[%s18714_s1 + $0xec] sm:$0x13 pattern:$0x75316420] }
  0xa6   :  { %19159 = vst [vmem:[#allocation146_spill] sm:$0xff] %v13005_v57  ;;  %19160 = vst [vmem:[#allocation147_spill] sm:$0xff] %v13009_v39  ;;  %v881_v40 = vcombine.high %v11844_v10, %v11844_v10  ;;  %v13019_v60 = vrot.slane %v11844_v10, %v11922_v12  ;;  %v2387_v2 = vcombine.low %v13005_v57, %v13009_v39  ;;  %v11846_v16 = vld.sshfl [vmem:[%s18714_s1 + $0xf0] sm:$0x13 pattern:$0x75316420] }
  0xa7   :  { %19161 = vst [vmem:[#allocation148_spill] sm:$0xff] %v13012_v35  ;;  %19162 = vst [vmem:[#allocation149_spill] sm:$0xff] %v13015_v33  ;;  %11496 = vmatmul.mubr.f32.gmra.mxu1 %v2925_v37  ;;  %v2378_v55 = vrot.slane %v2370_v7, %v11922_v12  ;;  %v13032_v63 = vcombine.high %v13012_v35, %v13012_v35  ;;  %v2388_v10 = vcombine.low %v13012_v35, %v13015_v33  ;;  %v11847_v50 = vld.sshfl [vmem:[%s18714_s1 + $0xf4] sm:$0x13 pattern:$0x75316420] }
  0xa8   :  { %19163 = vst [vmem:[#allocation150_spill] sm:$0xff] %v13019_v60  ;;  %v13041_v46 = vcombine.high %v12928_v42, %v12928_v42  ;;  %v11848_v58 = vld.sshfl [vmem:[%s18714_s1 + $0xf8] sm:$0x13 pattern:$0x75316420]  ;;  %v2371_v7 = vcombine.low %v2362_v8, %v2369_v0  ;;  %v13047_v37 = vrot.slane %v881_v40, %v11922_v12  ;;  %v13051_v39 = vcombine.high %v13019_v60, %v13019_v60 }
  0xa9   :  { %19164 = vst [vmem:[#allocation151_spill] sm:$0xff] %v13032_v63  ;;  %v2397_v57 = vrot.slane %v2387_v2, %v11922_v12  ;;  %v2389_v52 = vcombine.low %v13032_v63, %v13019_v60  ;;  %v2404_v49 = vrot.slane %v2388_v10, %v11922_v12  ;;  %v1525_v0 = vcombine.high %v11845_v43, %v11845_v43 }
  0xaa   :  { %19165 = vst [vmem:[#allocation152_spill] sm:$0xff] %v13041_v46  ;;  %19166 = vst [vmem:[#allocation153_spill] sm:$0xff] %v13047_v37  ;;  %v2385_v33 = vrot.slane %v2371_v7, %v11922_v12  ;;  %v2390_v35 = vcombine.low %v13047_v37, %v13051_v39  ;;  %v13062_v42 = vrot.slane %v11845_v43, %v11922_v12 }
  0xab   :  { %19167 = vst [vmem:[#allocation154_spill] sm:$0xff] %v13051_v39  ;;  %v2411_v8 = vrot.slane %v2389_v52, %v11922_v12  ;;  %v2419_v40 = vcombine.low %v2397_v57, %v2404_v49  ;;  %v1548_v18 = vcombine.high %v11846_v16, %v11846_v16  ;;  %v13066_v63 = vrot.slane %v11846_v16, %v11922_v12 }
  0xac   :  { %19168 = vst [vmem:[#allocation155_spill] sm:$0xff] %v13062_v42  ;;  %v2386_v48 = vcombine.low %v2378_v55, %v2385_v33  ;;  %v2418_v2 = vrot.slane %v2390_v35, %v11922_v12  ;;  %v13070_v7 = vrot.slane %v1525_v0, %v11922_v12  ;;  %v13074_v52 = vcombine.high %v13062_v42, %v13062_v42  ;;  %v11849_v55 = vld.sshfl [vmem:[%s18714_s1 + $0xfc] sm:$0x13 pattern:$0x75316420] }
  0xad   :  { %19169 = vst [vmem:[#allocation156_spill] sm:$0xff] %v13066_v63  ;;  %v2427_v10 = vrot.slane %v2419_v40, %v11922_v12  ;;  %v13077_v49 = vrot.slane %v11847_v50, %v11922_v12  ;;  %v13080_v35 = vrot.slane %v1548_v18, %v11922_v12  ;;  %v13084_v33 = vcombine.high %v13066_v63, %v13066_v63 }
  0xae   :  { %19170 = vst [vmem:[#allocation157_spill] sm:$0xff] %v13070_v7  ;;  %19171 = vst [vmem:[#allocation158_spill] sm:$0xff] %v13074_v52  ;;  %11480 = vmatprep.mubr.f32.mxu0 %v2386_v48  ;;  %v2420_v57 = vcombine.low %v2411_v8, %v2418_v2  ;;  %v2926_v43 = vcombine.low %v13041_v46, %v13062_v42  ;;  %v2927_v16 = vcombine.low %v13070_v7, %v13074_v52  ;;  %v11639_v42 = vld [vmem:[%s18714_s1 + $0x14] sm:$0x7] }
  0xaf   :  { %19172 = vst [vmem:[#allocation159_spill] sm:$0xff] %v13077_v49  ;;  %19173 = vst [vmem:[#allocation160_spill] sm:$0xff] %v13080_v35  ;;  %v1571_v40 = vcombine.high %v11847_v50, %v11847_v50  ;;  %v13095_v48 = vcombine.high %v13077_v49, %v13077_v49  ;;  %v1594_v18 = vcombine.high %v11848_v58, %v11848_v58 }
  0xb0   :  { %19174 = vst [vmem:[#allocation161_spill] sm:$0xff] %v13084_v33  ;;  %v2434_v8 = vrot.slane %v2420_v57, %v11922_v12  ;;  %v2928_v0 = vcombine.low %v13066_v63, %v13080_v35  ;;  %v2929_v2 = vcombine.low %v13084_v33, %v13077_v49  ;;  %v2936_v39 = vrot.slane %v2926_v43, %v11922_v12 }
  0xb1   :  { %19175 = vst [vmem:[#allocation162_spill] sm:$0xff] %v13095_v48  ;;  %v2943_v37 = vrot.slane %v2927_v16, %v11922_v12  ;;  %v13105_v60 = vrot.slane %v1571_v40, %v11922_v12  ;;  %v13108_v50 = vrot.slane %v11848_v58, %v11922_v12  ;;  %v13111_v52 = vrot.slane %v1594_v18, %v11922_v12 }
  0xb2   :  { %v2435_v57 = vcombine.low %v2427_v10, %v2434_v8  ;;  %v2950_v7 = vrot.slane %v2928_v0, %v11922_v12  ;;  %v2957_v35 = vrot.slane %v2929_v2, %v11922_v12  ;;  %v1617_v18 = vcombine.high %v11849_v55, %v11849_v55 }
  0xb3   :  { %19176 = vst [vmem:[#allocation163_spill] sm:$0xff] %v13105_v60  ;;  %19177 = vst [vmem:[#allocation164_spill] sm:$0xff] %v13108_v50  ;;  %v2958_v63 = vcombine.low %v2936_v39, %v2943_v37  ;;  %v13117_v43 = vcombine.high %v13108_v50, %v13108_v50  ;;  %v2975_v16 = vcombine.low %v13105_v60, %v13095_v48 }
  0xb4   :  { %19178 = vst [vmem:[#allocation165_spill] sm:$0xff] %v13111_v52  ;;  %v2976_v58 = vcombine.low %v13108_v50, %v13111_v52  ;;  %11481 = vmatmul.mubr.f32.gmra.mxu0 %v2435_v57  ;;  %v2959_v40 = vcombine.low %v2950_v7, %v2957_v35  ;;  %v13124_v10 = vrot.slane %v11849_v55, %v11922_v12  ;;  %v11635_v50 = vld [vmem:[%s18714_s1] sm:$0x7] }
  0xb5   :  { %19179 = vst [vmem:[#allocation166_spill] sm:$0xff] %v13117_v43  ;;  %v2966_v8 = vrot.slane %v2958_v63, %v11922_v12  ;;  %v2985_v39 = vrot.slane %v2975_v16, %v11922_v12  ;;  %v13131_v2 = vrot.slane %v1617_v18, %v11922_v12 }
  0xb6   :  { %19180 = vst [vmem:[#allocation167_spill] sm:$0xff] %v13124_v10  ;;  %v2992_v37 = vrot.slane %v2976_v58, %v11922_v12  ;;  %v2973_v0 = vrot.slane %v2959_v40, %v11922_v12  ;;  %v13135_v49 = vcombine.high %v13124_v10, %v13124_v10  ;;  %v2977_v7 = vcombine.low %v13117_v43, %v13124_v10 }
  0xb7   :  { %19181 = vst [vmem:[#allocation168_spill] sm:$0xff] %v13131_v2 }
  0xb8   :  { %19182 = vst [vmem:[#allocation169_spill] sm:$0xff] %v13135_v49  ;;  %v2974_v35 = vcombine.low %v2966_v8, %v2973_v0  ;;  %v2978_v63 = vcombine.low %v13131_v2, %v13135_v49  ;;  %v2999_v55 = vrot.slane %v2977_v7, %v11922_v12  ;;  %v3007_v57 = vcombine.low %v2985_v39, %v2992_v37  ;;  %v13148_v8 = vld [vmem:[%s18717_s4] ss:$0 sm:$0xff] }
  0xba   :  { %11498 = vmatprep.mubr.f32.mxu1 %v2974_v35  ;;  %v3006_v16 = vrot.slane %v2978_v63, %v11922_v12  ;;  %v3015_v40 = vrot.slane %v3007_v57, %v11922_v12 }
  0xbc   :  { %v3008_v58 = vcombine.low %v2999_v55, %v3006_v16 }
  0xbe   :  { %v3022_v18 = vrot.slane %v3008_v58, %v11922_v12 }
  0xc0   :  { %v3023_v48 = vcombine.low %v3015_v40, %v3022_v18 }
  0xc2   :  { %11499 = vmatmul.mubr.f32.gmra.mxu1 %v3023_v48 }
  0xf5   :  { %v11467_v0 = vpop.f32.mrf.mxu0 }
  0xf6   :  { %v3120_v60 = vadd.f32 %v11467_v0, %v13148_v8 }
  0xf7   :  { %v3114_v7 = vpop.f32.mrf.mxu0 }
  0xf8   :  { %v11191_v39 = vmul.f32 -1.442695, %v3120_v60  ;;  %v3115_v37 = vadd.f32 %v13148_v8, %v3114_v7  ;;  %v13154_v7 = vstv %s11295_s24 }
  0xf9   :  { %19183 = vst [vmem:[#allocation170_spill] sm:$0xff] %v13154_v7  ;;  %v13234_v24 = vmul.f32 %v11642_v1, %v13154_v7 }
  0xfa   :  { %11537 = vpow2.f32 %v11191_v39  ;;  %v11190_v35 = vmul.f32 -1.442695, %v3115_v37  ;;  %v13156_v39 = vstv %s4961_s25 }
  0xfb   :  { %19184 = vst [vmem:[#allocation171_spill] sm:$0xff] %v13156_v39  ;;  %v13185_v43 = vmul.f32 %v11635_v50, %v13156_v39  ;;  %v13210_v46 = vmul.f32 %v11639_v42, %v13156_v39  ;;  %v13216_v3 = vmul.f32 %v11640_v45, %v13156_v39  ;;  %19190 = vst [vmem:[#allocation177_spill] sm:$0xff] %v13234_v24 }
  0xfc   :  { %11539 = vpow2.f32 %v11190_v35 }
  0xfd   :  { %v11485_v63 = vpop.f32.mrf.mxu1  ;;  %19186 = vst [vmem:[#allocation173_spill] sm:$0xff] %v13216_v3 }
  0xfe   :  { %v3180_v55 = vadd.f32 %v11485_v63, %v13148_v8  ;;  %v13158_v63 = vstv %s11296_s26 }
  0xff   :  { %v3174_v57 = vpop.f32.mrf.mxu1  ;;  %19185 = vst [vmem:[#allocation172_spill] sm:$0xff] %v13158_v63 }
 0x100   :  { %v11203_v48 = vmul.f32 -1.442695, %v3180_v55  ;;  %v3175_v16 = vadd.f32 %v13148_v8, %v3174_v57 }
 0x102   :  { %11541 = vpow2.f32 %v11203_v48  ;;  %v11202_v58 = vmul.f32 -1.442695, %v3175_v16  ;;  %v11633_v48 = vld [vmem:[%s18714_s1 + $0x8c] sm:$0x7] }
 0x103   :  { %v13164_v16 = vmul.f32 %v11633_v48, %v13154_v7  ;;  %v13179_v33 = vmul.f32 %v11633_v48, %v13156_v39  ;;  %v11638_v48 = vld [vmem:[%s18714_s1 + $0x10] sm:$0x7] }
 0x104   :  { %11543 = vpow2.f32 %v11202_v58  ;;  %v11634_v58 = vld [vmem:[%s18714_s1 + $0xc] sm:$0x7]  ;;  %v13203_v49 = vmul.f32 %v11638_v48, %v13156_v39  ;;  %v13237_v36 = vmul.f32 %v11638_v48, %v13154_v7  ;;  %v13253_v48 = vmul.f32 %v11642_v1, %v13156_v39 }
 0x106   :  { %19191 = vst [vmem:[#allocation178_spill] sm:$0xff] %v13237_v36  ;;  %19196 = vst [vmem:[#allocation183_spill] sm:$0xff] %v13253_v48 }
 0x107   :  { %v11538_v40 = vpop.eup %11537 }
 0x108   :  { %v3306_v18 = vadd.f32 1.0, %v11538_v40  ;;  %v13170_v40 = vmul.f32 %v11634_v58, %v13156_v39 }
 0x109   :  { %v11540_v60 = vpop.eup %11539 }
 0x10a   :  { %11545 = vrcp.f32 %v3306_v18  ;;  %v3305_v0 = vadd.f32 1.0, %v11540_v60  ;;  %v13172_v18 = vstv %s11214_s0  ;;  %v13175_v60 = vmul.f32 %v11634_v58, %v13154_v7  ;;  %v11636_v58 = vld [vmem:[%s18714_s1 + $0x80] sm:$0x7] }
 0x10b   :  { %v13228_v44 = vmul.f32 %v11636_v58, %v13154_v7 }
 0x10c   :  { %11547 = vrcp.f32 %v3305_v0 }
 0x10d   :  { %19189 = vst [vmem:[#allocation176_spill] sm:$0xff] %v13228_v44 }
 0x10f   :  { %v11542_v37 = vpop.eup %11541 }
 0x110   :  { %v3318_v35 = vadd.f32 1.0, %v11542_v37  ;;  %v11470_v57 = vpop.f32.mrf.mxu0 }
 0x111   :  { %v11544_v55 = vpop.eup %11543  ;;  %v3130_v37 = vadd.f32 %v11470_v57, %v13148_v8 }
 0x112   :  { %11549 = vrcp.f32 %v3318_v35  ;;  %v3317_v0 = vadd.f32 1.0, %v11544_v55  ;;  %v3124_v52 = vpop.f32.mrf.mxu0  ;;  %v13191_v35 = vmul.f32 %v11636_v58, %v13156_v39  ;;  %v11637_v55 = vld [vmem:[%s18714_s1 + $0x84] sm:$0x7] }
 0x113   :  { %v13197_v57 = vmul.f32 %v11637_v55, %v13156_v39  ;;  %v11193_v2 = vmul.f32 -1.442695, %v3130_v37  ;;  %v3125_v10 = vadd.f32 %v13148_v8, %v3124_v52  ;;  %v13225_v37 = vmul.f32 %v11635_v50, %v13154_v7 }
 0x114   :  { %11551 = vrcp.f32 %v3317_v0  ;;  %v11641_v0 = vld [vmem:[%s18714_s1 + $0x94] sm:$0x7]  ;;  %v13240_v14 = vmul.f32 %v11637_v55, %v13154_v7  ;;  %v13243_v50 = vmul.f32 %v11640_v45, %v13154_v7  ;;  %v11643_v45 = vld [vmem:[%s18714_s1 + $0x20] sm:$0x7] }
 0x115   :  { %v13222_v52 = vmul.f32 %v11641_v0, %v13156_v39  ;;  %19188 = vst [vmem:[#allocation175_spill] sm:$0xff] %v13225_v37  ;;  %11553 = vpow2.f32 %v11193_v2  ;;  %v11192_v30 = vmul.f32 -1.442695, %v3125_v10  ;;  %v13246_v2 = vmul.f32 %v11639_v42, %v13154_v7  ;;  %v11644_v42 = vld [vmem:[%s18714_s1 + $0x8] sm:$0x7] }
 0x116   :  { %19192 = vst [vmem:[#allocation179_spill] sm:$0xff] %v13240_v14  ;;  %19193 = vst [vmem:[#allocation180_spill] sm:$0xff] %v13243_v50  ;;  %v13249_v10 = vmul.f32 %v11641_v0, %v13154_v7  ;;  %v13261_v55 = vmul.f32 %v11643_v45, %v13156_v39  ;;  %v13267_v0 = vmul.f32 %v11644_v42, %v13156_v39  ;;  %v11646_v42 = vld [vmem:[%s18714_s1 + $0xa0] sm:$0x7] }
 0x117   :  { %19187 = vst [vmem:[#allocation174_spill] sm:$0xff] %v13222_v52  ;;  %v11546_v15 = vpop.eup %11545  ;;  %19194 = vst [vmem:[#allocation181_spill] sm:$0xff] %v13246_v2  ;;  %11555 = vpow2.f32 %v11192_v30  ;;  %v11645_v30 = vld [vmem:[%s18714_s1 + $0x24] sm:$0x7] }
 0x118   :  { %19195 = vst [vmem:[#allocation182_spill] sm:$0xff] %v13249_v10  ;;  %v3450_v58 = vcombine.high %v11546_v15, %v11546_v15  ;;  %v3457_v44 = vrot.slane %v11546_v15, %v11922_v12  ;;  %19198 = vst [vmem:[#allocation185_spill] sm:$0xff] %v13261_v55  ;;  %v13273_v1 = vmul.f32 %v11645_v30, %v13156_v39 }
 0x119   :  { %v13255_v24 = vpop.eup %11547  ;;  %19199 = vst [vmem:[#allocation186_spill] sm:$0xff] %v13267_v0  ;;  %v13276_v15 = vmul.f32 %v11643_v45, %v13154_v7  ;;  %v11488_v48 = vpop.f32.mrf.mxu1  ;;  %v13287_v0 = vmul.f32 %v11646_v42, %v13156_v39  ;;  %v13297_v50 = vmul.f32 %v11645_v30, %v13154_v7  ;;  %v11647_v30 = vld [vmem:[%s18714_s1 + $0xa4] sm:$0x7] }
 0x11a   :  { %19197 = vst [vmem:[#allocation184_spill] sm:$0xff] %v13255_v24  ;;  %19200 = vst [vmem:[#allocation187_spill] sm:$0xff] %v13273_v1  ;;  %v3408_v55 = vrot.slane %v13255_v24, %v11922_v12  ;;  %v3465_v10 = vcombine.high %v3457_v44, %v3457_v44  ;;  %v13281_v2 = vrot.slane %v3457_v44, %v11922_v12 }
 0x11b   :  { %19201 = vst [vmem:[#allocation188_spill] sm:$0xff] %v13276_v15  ;;  %19203 = vst [vmem:[#allocation190_spill] sm:$0xff] %v13287_v0  ;;  %v3190_v1 = vadd.f32 %v11488_v48, %v13148_v8  ;;  %v13291_v45 = vrot.slane %v3450_v58, %v11922_v12  ;;  %v13294_v15 = vmul.f32 %v11646_v42, %v13154_v7  ;;  %v3184_v44 = vpop.f32.mrf.mxu1 }
 0x11c   :  { %19202 = vst [vmem:[#allocation189_spill] sm:$0xff] %v13281_v2  ;;  %19205 = vst [vmem:[#allocation192_spill] sm:$0xff] %v13297_v50  ;;  %v3487_v14 = vrot.slane %v3465_v10, %v11922_v12  ;;  %v3495_v36 = vcombine.high %v13281_v2, %v13281_v2  ;;  %v3416_v29 = vcombine.high %v3408_v55, %v3408_v55 }
 0x11d   :  { %19204 = vst [vmem:[#allocation191_spill] sm:$0xff] %v13294_v15  ;;  %v3424_v0 = vrot.slane %v3408_v55, %v11922_v12  ;;  %v11205_v58 = vmul.f32 -1.442695, %v3190_v1  ;;  %v3185_v22 = vadd.f32 %v13148_v8, %v3184_v44  ;;  %v13310_v42 = vmul.f32 %v11647_v30, %v13156_v39 }
 0x11e   :  { %v3497_v10 = vcombine.high %v3487_v14, %v3487_v14  ;;  %v4778_v7 = vmul.f32 %v3487_v14, %v12068_v13  ;;  %v13314_v50 = vmul.f32 %v3495_v36, %v12079_v20  ;;  %v13317_v55 = vrot.slane %v3416_v29, %v11922_v12 }
 0x11f   :  { %19206 = vst [vmem:[#allocation193_spill] sm:$0xff] %v13310_v42  ;;  %v13319_v48 = vpop.eup %11549  ;;  %11557 = vpow2.f32 %v11205_v58  ;;  %v11204_v1 = vmul.f32 -1.442695, %v3185_v22  ;;  %v3446_v44 = vcombine.high %v3424_v0, %v3424_v0  ;;  %v13322_v15 = vmul.f32 %v3424_v0, %v11942_v19 }
 0x120   :  { %19207 = vst [vmem:[#allocation194_spill] sm:$0xff] %v13317_v55  ;;  %v4045_v30 = vrot.slane %v13319_v48, %v11922_v12  ;;  %v13327_v39 = vmul.f32 %v3497_v10, %v12083_v21  ;;  %v5006_v13 = vmul.f32 %v13172_v18, %v4778_v7  ;;  %v5007_v22 = vmul.f32 %v13172_v18, %v13314_v50 }
 0x121   :  { %v13332_v20 = vpop.eup %11551  ;;  %11559 = vpow2.f32 %v11204_v1  ;;  %v13338_v19 = vmul.f32 %v13317_v55, %v11954_v25  ;;  %v13341_v14 = vmul.f32 %v3446_v44, %v11958_v26  ;;  %v4997_v26 = vmul.f32 %v13172_v18, %v13322_v15 }
 0x122   :  { %v13347_v36 = vrot.slane %v13332_v20, %v11922_v12  ;;  %v4053_v0 = vcombine.high %v4045_v30, %v4045_v30  ;;  %v13350_v58 = vrot.slane %v4045_v30, %v11922_v12  ;;  %v11554_v10 = vpop.eup %11553  ;;  %v5008_v1 = vmul.f32 %v13172_v18, %v13327_v39 }
 0x123   :  { %19208 = vst [vmem:[#allocation195_spill] sm:$0xff] %v13338_v19  ;;  %19209 = vst [vmem:[#allocation196_spill] sm:$0xff] %v13341_v14  ;;  %v5258_v25 = vcombine.low %v5006_v13, %v5007_v22  ;;  %v4998_v44 = vmul.f32 %v13172_v18, %v13338_v19  ;;  %v3308_v29 = vadd.f32 1.0, %v11554_v10  ;;  %v4999_v30 = vmul.f32 %v13172_v18, %v13341_v14 }
 0x124   :  { %19210 = vst [vmem:[#allocation197_spill] sm:$0xff] %v13350_v58  ;;  %v4075_v21 = vrot.slane %v4053_v0, %v11922_v12  ;;  %v4083_v42 = vcombine.high %v13350_v58, %v13350_v58  ;;  %v11556_v2 = vpop.eup %11555  ;;  %v5272_v22 = vrot.slane %v5008_v1, %v11922_v12  ;;  %v8117_v27 = vmul.f32 %v13158_v63, %v4778_v7 }
 0x125   :  { %v11473_v37 = vpop.f32.mrf.mxu0  ;;  %v5265_v13 = vrot.slane %v5258_v25, %v11922_v12  ;;  %v5189_v52 = vcombine.low %v4997_v26, %v4998_v44  ;;  %11561 = vrcp.f32 %v3308_v29  ;;  %v3307_v10 = vadd.f32 1.0, %v11556_v2 }
 0x126   :  { %v3140_v0 = vadd.f32 %v11473_v37, %v13148_v8  ;;  %v4085_v55 = vcombine.high %v4075_v21, %v4075_v21  ;;  %v4874_v58 = vmul.f32 %v4075_v21, %v12125_v56  ;;  %v4875_v24 = vmul.f32 %v4083_v42, %v12132_v61 }
 0x127   :  { %v3134_v3 = vpop.f32.mrf.mxu0  ;;  %v5273_v14 = vcombine.low %v5265_v13, %v5272_v22  ;;  %v5196_v19 = vrot.slane %v5189_v52, %v11922_v12  ;;  %11563 = vrcp.f32 %v3307_v10  ;;  %v13380_v52 = vld [vmem:[%s18715_s2] sm:$0x7]  ;;  %v8118_v13 = vmul.f32 %v13158_v63, %v13314_v50 }
 0x128   :  { %v11195_v25 = vmul.f32 -1.442695, %v3140_v0  ;;  %v3135_v1 = vadd.f32 %v13148_v8, %v3134_v3  ;;  %v4876_v26 = vmul.f32 %v4085_v55, %v12136_v62  ;;  %v8165_v7 = vmul.f32 %v13158_v63, %v4874_v58 }
 0x129   :  { %v8166_v2 = vmul.f32 %v13158_v63, %v4875_v24  ;;  %v5280_v37 = vrot.slane %v5273_v14, %v11922_v12  ;;  %v5054_v29 = vmul.f32 %v13172_v18, %v4874_v58  ;;  %v5055_v3 = vmul.f32 %v13172_v18, %v4875_v24 }
 0x12a   :  { %11565 = vpow2.f32 %v11195_v25  ;;  %v11194_v56 = vmul.f32 -1.442695, %v3135_v1  ;;  %v8167_v61 = vmul.f32 %v13158_v63, %v4876_v26  ;;  %v5056_v55 = vmul.f32 %v13172_v18, %v4876_v26 }
 0x12b   :  { %v8737_v62 = vcombine.low %v8165_v7, %v8166_v2  ;;  %v5960_v42 = vsub.f32 %v13170_v40, %v5280_v37  ;;  %v5203_v14 = vrot.slane %v4999_v30, %v11922_v12  ;;  %v5626_v44 = vcombine.low %v5054_v29, %v5055_v3  ;;  %v13407_v3 = vld [vmem:[%s18715_s2 + $0x50] sm:$0x7] }
 0x12c   :  { %v11558_v21 = vpop.eup %11557  ;;  %11567 = vpow2.f32 %v11194_v56  ;;  %v8751_v58 = vrot.slane %v8167_v61, %v11922_v12  ;;  %v5640_v0 = vrot.slane %v5056_v55, %v11922_v12  ;;  %v8119_v30 = vmul.f32 %v13158_v63, %v13327_v39 }
 0x12d   :  { %v3320_v22 = vadd.f32 1.0, %v11558_v21  ;;  %v8744_v10 = vrot.slane %v8737_v62, %v11922_v12  ;;  %v6000_v24 = vmul.f32 %v13380_v52, %v5960_v42  ;;  %v5633_v25 = vrot.slane %v5626_v44, %v11922_v12 }
 0x12e   :  { %v11560_v40 = vpop.eup %11559  ;;  %v5204_v1 = vcombine.low %v5196_v19, %v5203_v14  ;;  %v8369_v26 = vcombine.low %v8117_v27, %v8118_v13  ;;  %v8383_v61 = vrot.slane %v8119_v30, %v11922_v12  ;;  %v4004_v39 = vcombine.high %v13347_v36, %v13347_v36 }
 0x12f   :  { %11569 = vrcp.f32 %v3320_v22  ;;  %v3319_v7 = vadd.f32 1.0, %v11560_v40  ;;  %v8752_v2 = vcombine.low %v8744_v10, %v8751_v58  ;;  %v6039_v50 = vsel %vm6029_vm0, %v6000_v24, 0.0 }
 0x130   :  { %6040 = vadd.xlane.f32.xlu1 %v6039_v50  ;;  %v5641_v37 = vcombine.low %v5633_v25, %v5640_v0  ;;  %v5211_v29 = vrot.slane %v5204_v1, %v11922_v12  ;;  %v8376_v56 = vrot.slane %v8369_v26, %v11922_v12  ;;  %v4012_v27 = vrot.slane %v13347_v36, %v11922_v12  ;;  %v13430_v0 = vld [vmem:[%s18715_s2 + $0x10] sm:$0x7] }
 0x131   :  { %11571 = vrcp.f32 %v3319_v7  ;;  %v8759_v19 = vrot.slane %v8752_v2, %v11922_v12  ;;  %v13413_v14 = vrot.slane %v13291_v45, %v11922_v12  ;;  %v4038_v58 = vcombine.high %v13319_v48, %v13319_v48 }
 0x132   :  { %v5648_v62 = vrot.slane %v5641_v37, %v11922_v12  ;;  %v5957_v42 = vsub.f32 %v13185_v43, %v5211_v29  ;;  %v8384_v55 = vcombine.low %v8376_v56, %v8383_v61  ;;  %v13415_v21 = vpop.eup %11561  ;;  %v11491_v36 = vpop.f32.mrf.mxu1  ;;  %v4026_v13 = vrot.slane %v4004_v39, %v11922_v12 }
 0x133   :  { %v9087_v44 = vsub.f32 %v13164_v16, %v8759_v19  ;;  %v19211_v22 = vcombine.high %v13332_v20, %v13332_v20  ;;  %v3200_v10 = vadd.f32 %v11491_v36, %v13148_v8  ;;  %v4034_v40 = vcombine.high %v4012_v27, %v4012_v27 }
 0x134   :  { %v5976_v24 = vsub.f32 %v13179_v33, %v5648_v62  ;;  %v13433_v25 = vmul.f32 %v4012_v27, %v11978_v34  ;;  %v11564_v16 = vpop.eup %11563  ;;  %v13439_v20 = vrot.slane %v13415_v21, %v11922_v12  ;;  %v3194_v30 = vpop.f32.mrf.mxu1  ;;  %v8391_v26 = vrot.slane %v8384_v55, %v11922_v12  ;;  %v13448_v34 = vld [vmem:[%s18715_s2 + $0x40] sm:$0x7] }
 0x135   :  { %v4003_v43 = vrot.slane %v19211_v22, %v11922_v12  ;;  %v9128_v33 = vmul.f32 %v13407_v3, %v9087_v44  ;;  %v11207_v7 = vmul.f32 -1.442695, %v3200_v10  ;;  %v3195_v2 = vadd.f32 %v13148_v8, %v3194_v30 }
 0x136   :  { %v5997_v50 = vmul.f32 %v13380_v52, %v5957_v42  ;;  %v13451_v37 = vmul.f32 %v4026_v13, %v11988_v38  ;;  %v3499_v56 = vcombine.high %v11564_v16, %v11564_v16  ;;  %v6016_v19 = vmul.f32 %v13430_v0, %v5976_v24 }
 0x137   :  { %v11566_v29 = vpop.eup %11565  ;;  %v9198_v61 = vsel %vm6029_vm0, %v9128_v33, 0.0  ;;  %v9071_v39 = vsub.f32 %v13175_v60, %v8391_v26  ;;  %v13457_v27 = vrot.slane %v11564_v16, %v11922_v12  ;;  %11573 = vpow2.f32 %v11207_v7 }
 0x138   :  { %v3310_v62 = vadd.f32 1.0, %v11566_v29  ;;  %v11206_v42 = vmul.f32 -1.442695, %v3195_v2  ;;  %9199 = vadd.xlane.f32.xlu0 %v9198_v61  ;;  %v6087_v36 = vsel %vm6029_vm0, %v6016_v19, 0.0  ;;  %v13462_v44 = vmul.f32 %v4034_v40, %v11994_v41 }
 0x139   :  { %v11568_v55 = vpop.eup %11567  ;;  %v9112_v38 = vmul.f32 %v13448_v34, %v9071_v39  ;;  %v5045_v22 = vmul.f32 %v13172_v18, %v13433_v25  ;;  %6088 = vadd.xlane.f32.xlu1 %v6087_v36  ;;  %v5046_v10 = vmul.f32 %v13172_v18, %v13451_v37  ;;  %v4005_v24 = vcombine.high %v4003_v43, %v4003_v43 }
 0x13a   :  { %11575 = vrcp.f32 %v3310_v62  ;;  %v3309_v60 = vadd.f32 1.0, %v11568_v55  ;;  %v6030_v16 = vsel %vm6029_vm0, %v5997_v50, 0.0  ;;  %v5047_v30 = vmul.f32 %v13172_v18, %v13462_v44 }
 0x13b   :  { %11577 = vpow2.f32 %v11206_v42  ;;  %v13472_v33 = vrot.slane %v4003_v43, %v11922_v12  ;;  %v13477_v40 = vrot.slane %v3499_v56, %v11922_v12  ;;  %v5557_v26 = vcombine.low %v5045_v22, %v5046_v10 }
 0x13c   :  { %v13474_v41 = vpop.eup %11569  ;;  %6031 = vadd.xlane.f32.xlu0 %v6030_v16  ;;  %v13480_v7 = vrot.slane %v4005_v24, %v11922_v12  ;;  %v4036_v2 = vcombine.high %v4026_v13, %v4026_v13  ;;  %11579 = vrcp.f32 %v3309_v60  ;;  %v9150_v50 = vsel %vm6029_vm0, %v9112_v38, 0.0 }
 0x13d   :  { %v5571_v29 = vrot.slane %v5047_v30, %v11922_v12  ;;  %v13486_v43 = vmul.f32 %v13472_v33, %v12010_v51  ;;  %9151 = vadd.xlane.f32.xlu1 %v9150_v50  ;;  %v5564_v56 = vrot.slane %v5557_v26, %v11922_v12  ;;  %v19212_v13 = vcombine.high %v13291_v45, %v13291_v45 }
 0x13e   :  { %v11572_v61 = vpop.eup %11571  ;;  %v13490_v19 = vmul.f32 %v4036_v2, %v12002_v47  ;;  %v13494_v39 = vmul.f32 %v13480_v7, %v12021_v54  ;;  %v3496_v47 = vcombine.high %v13413_v14, %v13413_v14  ;;  %v13512_v45 = vmul.f32 %v13413_v14, %v12075_v17 }
 0x13f   :  { %v3494_v62 = vrot.slane %v19212_v13, %v11922_v12  ;;  %v4087_v42 = vcombine.high %v11572_v61, %v11572_v61  ;;  %v5049_v55 = vmul.f32 %v13172_v18, %v13486_v43  ;;  %v5572_v36 = vcombine.low %v5564_v56, %v5571_v29 }
 0x140   :  { %v5048_v54 = vmul.f32 %v13172_v18, %v13490_v19  ;;  %v5050_v38 = vmul.f32 %v13172_v18, %v13494_v39  ;;  %v13515_v22 = vrot.slane %v11572_v61, %v11922_v12  ;;  %v13521_v10 = vmul.f32 %v3496_v47, %v12093_v31 }
 0x141   :  { %v13518_v60 = vmul.f32 %v3494_v62, %v12089_v28  ;;  %v3498_v24 = vcombine.high %v3494_v62, %v3494_v62  ;;  %v5579_v16 = vrot.slane %v5572_v36, %v11922_v12  ;;  %v6550_v2 = vmul.f32 %v13172_v18, %v13512_v45 }
 0x142   :  { %v5580_v30 = vcombine.low %v5048_v54, %v5049_v55  ;;  %v5594_v26 = vrot.slane %v5050_v38, %v11922_v12  ;;  %v6552_v14 = vmul.f32 %v13172_v18, %v13521_v10  ;;  %v3514_v28 = vcombine.high %v13457_v27, %v13457_v27 }
 0x143   :  { %v6551_v17 = vmul.f32 %v13172_v18, %v13518_v60  ;;  %v13535_v31 = vrot.slane %v13457_v27, %v11922_v12  ;;  %v5973_v50 = vsub.f32 %v13191_v35, %v5579_v16  ;;  %v13540_v61 = vmul.f32 %v3498_v24, %v12097_v32 }
 0x144   :  { %v5587_v29 = vrot.slane %v5580_v30, %v11922_v12  ;;  %v4052_v56 = vrot.slane %v4038_v58, %v11922_v12  ;;  %v11574_v13 = vpop.eup %11573  ;;  %v6756_v55 = vrot.slane %v6552_v14, %v11922_v12  ;;  %v13548_v47 = vrot.slane %v3514_v28, %v11922_v12 }
 0x145   :  { %v6742_v62 = vcombine.low %v6550_v2, %v6551_v17  ;;  %v13552_v35 = vmul.f32 %v13535_v31, %v12172_v23  ;;  %v3322_v27 = vadd.f32 1.0, %v11574_v13  ;;  %v6013_v32 = vmul.f32 %v13430_v0, %v5973_v50 }
 0x146   :  { %v5595_v36 = vcombine.low %v5587_v29, %v5594_v26  ;;  %v6553_v54 = vmul.f32 %v13172_v18, %v13540_v61  ;;  %v13560_v38 = vmul.f32 %v13548_v47, %v12164_v11  ;;  %v4054_v16 = vcombine.high %v4052_v56, %v4052_v56 }
 0x147   :  { %v11576_v48 = vpop.eup %11575  ;;  %v6749_v58 = vrot.slane %v6742_v62, %v11922_v12  ;;  %v6554_v24 = vmul.f32 %v13172_v18, %v13552_v35  ;;  %11581 = vrcp.f32 %v3322_v27  ;;  %v6078_v26 = vsel %vm6029_vm0, %v6013_v32, 0.0 }
 0x148   :  { %v11578_v23 = vpop.eup %11577  ;;  %v3646_v30 = vcombine.high %v11576_v48, %v11576_v48  ;;  %v13565_v2 = vrot.slane %v11576_v48, %v11922_v12  ;;  %v13570_v17 = vrot.slane %v13474_v41, %v11922_v12  ;;  %6079 = vadd.xlane.f32.xlu0 %v6078_v26  ;;  %v5602_v11 = vrot.slane %v5595_v36, %v11922_v12 }
 0x149   :  { %v6757_v14 = vcombine.low %v6749_v58, %v6756_v55  ;;  %v6555_v28 = vmul.f32 %v13172_v18, %v13560_v38  ;;  %v13575_v50 = vpop.eup %11579  ;;  %v13578_v29 = vrot.slane %v4087_v42, %v11922_v12  ;;  %v3321_v62 = vadd.f32 1.0, %v11578_v23  ;;  %v13591_v58 = vld [vmem:[%s18715_s2 + $0x20] sm:$0x7] }
 0x14a   :  { %19213 = vst [vmem:[#allocation198_spill] sm:$0xff] %v13575_v50  ;;  %v13581_v13 = vrot.slane %v3646_v30, %v11922_v12  ;;  %v6765_v27 = vcombine.low %v6553_v54, %v6554_v24  ;;  %v5974_v48 = vsub.f32 %v13197_v57, %v5602_v11  ;;  %v4068_v30 = vrot.slane %v4052_v56, %v11922_v12 }
 0x14b   :  { %v6764_v55 = vrot.slane %v6757_v14, %v11922_v12  ;;  %v6779_v36 = vrot.slane %v6555_v28, %v11922_v12  ;;  %v4082_v54 = vrot.slane %v4054_v16, %v11922_v12  ;;  %v4102_v24 = vcombine.high %v13515_v22, %v13515_v22 }
 0x14c   :  { %v6772_v42 = vrot.slane %v6765_v27, %v11922_v12  ;;  %v6014_v57 = vmul.f32 %v13430_v0, %v5974_v48  ;;  %v13602_v26 = vrot.slane %v13515_v22, %v11922_v12  ;;  %v8108_v11 = vmul.f32 %v13158_v63, %v13322_v15 }
 0x14d   :  { %v7510_v23 = vsub.f32 %v13203_v49, %v6764_v55  ;;  %v4084_v28 = vcombine.high %v4068_v30, %v4068_v30  ;;  %v13607_v56 = vmul.f32 %v4068_v30, %v12128_v59  ;;  %v13610_v16 = vmul.f32 %v4082_v54, %v12145_v4 }
 0x14e   :  { %v6780_v14 = vcombine.low %v6772_v42, %v6779_v36  ;;  %v6081_v27 = vsel %vm6029_vm0, %v6014_v57, 0.0  ;;  %v4086_v49 = vcombine.high %v4082_v54, %v4082_v54  ;;  %v13615_v55 = vrot.slane %v4102_v24, %v11922_v12 }
 0x14f   :  { %v7551_v48 = vmul.f32 %v13591_v58, %v7510_v23  ;;  %6082 = vadd.xlane.f32.xlu1 %v6081_v27  ;;  %v13619_v15 = vmul.f32 %v4084_v28, %v12149_v5  ;;  %v6598_v59 = vmul.f32 %v13172_v18, %v13607_v56  ;;  %v6599_v4 = vmul.f32 %v13172_v18, %v13610_v16  ;;  %v19214_v23 = vld [vmem:[#allocation195_spill] sm:$0xff]  ;;  %v19215_v28 = vld [vmem:[#allocation196_spill] sm:$0xff] }
 0x150   :  { %v6787_v22 = vrot.slane %v6780_v14, %v11922_v12  ;;  %v13627_v42 = vmul.f32 %v4086_v49, %v12152_v6  ;;  %v13631_v30 = vmul.f32 %v13602_v26, %v12198_v53  ;;  %v13635_v54 = vmul.f32 %v13615_v55, %v12219_v9 }
 0x151   :  { %v7583_v36 = vsel %vm6029_vm0, %v7551_v48, 0.0  ;;  %v6600_v24 = vmul.f32 %v13172_v18, %v13619_v15  ;;  %v7110_v57 = vcombine.low %v6598_v59, %v6599_v4  ;;  %v8109_v14 = vmul.f32 %v13158_v63, %v19214_v23 }
 0x152   :  { %7584 = vadd.xlane.f32.xlu0 %v7583_v36  ;;  %v7511_v5 = vsub.f32 %v13210_v46, %v6787_v22  ;;  %v6601_v6 = vmul.f32 %v13172_v18, %v13627_v42  ;;  %v6602_v53 = vmul.f32 %v13172_v18, %v13631_v30  ;;  %v6603_v9 = vmul.f32 %v13172_v18, %v13635_v54 }
 0x153   :  { %v8110_v27 = vmul.f32 %v13158_v63, %v19215_v28  ;;  %v7117_v48 = vrot.slane %v7110_v57, %v11922_v12  ;;  %v7124_v49 = vrot.slane %v6600_v24, %v11922_v12  ;;  %v8300_v22 = vcombine.low %v8108_v11, %v8109_v14 }
 0x154   :  { %v7552_v46 = vmul.f32 %v13591_v58, %v7511_v5  ;;  %v11582_v59 = vpop.eup %11581  ;;  %v7133_v36 = vcombine.low %v6601_v6, %v6602_v53  ;;  %v7147_v23 = vrot.slane %v6603_v9, %v11922_v12  ;;  %v8156_v5 = vmul.f32 %v13158_v63, %v13433_v25  ;;  %v19216_v9 = vld [vmem:[#allocation184_spill] sm:$0xff] }
 0x155   :  { %v8314_v32 = vrot.slane %v8110_v27, %v11922_v12  ;;  %v4234_v51 = vcombine.high %v11582_v59, %v11582_v59  ;;  %v7125_v28 = vcombine.low %v7117_v48, %v7124_v49  ;;  %v8307_v11 = vrot.slane %v8300_v22, %v11922_v12  ;;  %v19218_v49 = vld [vmem:[#allocation173_spill] sm:$0xff] }
 0x156   :  { %v7586_v1 = vsel %vm6029_vm0, %v7552_v46, 0.0  ;;  %v7140_v24 = vrot.slane %v7133_v36, %v11922_v12  ;;  %v8157_v57 = vmul.f32 %v13158_v63, %v13451_v37  ;;  %v8158_v14 = vmul.f32 %v13158_v63, %v13462_v44  ;;  %v13680_v37 = vld [vmem:[%s18715_s2 + $0x30] sm:$0x7] }
 0x157   :  { %7587 = vadd.xlane.f32.xlu1 %v7586_v1  ;;  %v13667_v6 = vrot.slane %v11582_v59, %v11922_v12  ;;  %11583 = vrcp.f32 %v3321_v62  ;;  %v7132_v53 = vrot.slane %v7125_v28, %v11922_v12  ;;  %v19217_v25 = vcombine.high %v19216_v9, %v19216_v9 }
 0x158   :  { %v13675_v27 = vrot.slane %v4234_v51, %v11922_v12  ;;  %v7148_v44 = vcombine.low %v7140_v24, %v7147_v23  ;;  %v8315_v46 = vcombine.low %v8307_v11, %v8314_v32  ;;  %v8668_v48 = vcombine.low %v8156_v5, %v8157_v57  ;;  %v19220_v5 = vld [vmem:[#allocation7_spill] sm:$0xff]  ;;  %v19221_v57 = vld [vmem:[#allocation174_spill] sm:$0xff] }
 0x159   :  { %v3415_v1 = vrot.slane %v19217_v25, %v11922_v12  ;;  %v7526_v62 = vsub.f32 %v19218_v49, %v7132_v53  ;;  %v8682_v22 = vrot.slane %v8158_v14, %v11922_v12  ;;  %v19219_v25 = vld [vmem:[#allocation194_spill] sm:$0xff]  ;;  %v9662_v11 = vmul.f32 %v13158_v63, %v13512_v45  ;;  %v19222_v53 = vld [vmem:[#allocation175_spill] sm:$0xff] }
 0x15a   :  { %v7155_v28 = vrot.slane %v7148_v44, %v11922_v12  ;;  %v8322_v51 = vrot.slane %v8315_v46, %v11922_v12  ;;  %v8675_v9 = vrot.slane %v8668_v48, %v11922_v12  ;;  %v3448_v4 = vcombine.high %v19219_v25, %v19219_v25  ;;  %v19223_v46 = vld [vmem:[#allocation5_spill] sm:$0xff] }
 0x15b   :  { %v3417_v59 = vcombine.high %v3415_v1, %v3415_v1  ;;  %v13685_v36 = vrot.slane %v3415_v1, %v11922_v12  ;;  %v7567_v32 = vmul.f32 %v13680_v37, %v7526_v62  ;;  %v19224_v62 = vld [vmem:[#allocation8_spill] sm:$0xff] }
 0x15c   :  { %v7527_v14 = vsub.f32 %v19221_v57, %v7155_v28  ;;  %v9068_v1 = vsub.f32 %v19222_v53, %v8322_v51  ;;  %v8683_v44 = vcombine.low %v8675_v9, %v8682_v22  ;;  %v4772_v48 = vmul.f32 %v3448_v4, %v19223_v46  ;;  %v19225_v53 = vld [vmem:[#allocation176_spill] sm:$0xff] }
 0x15d   :  { %v13694_v23 = vrot.slane %v3417_v59, %v11922_v12  ;;  %v13698_v24 = vmul.f32 %v13685_v36, %v19220_v5  ;;  %v7631_v49 = vsel %vm6029_vm0, %v7567_v32, 0.0  ;;  %v9663_v5 = vmul.f32 %v13158_v63, %v13518_v60 }
 0x15e   :  { %7632 = vadd.xlane.f32.xlu0 %v7631_v49  ;;  %v7568_v45 = vmul.f32 %v13680_v37, %v7527_v14  ;;  %v9109_v28 = vmul.f32 %v13448_v34, %v9068_v1  ;;  %v8690_v22 = vrot.slane %v8683_v44, %v11922_v12  ;;  %v8111_v4 = vmul.f32 %v13158_v63, %v4772_v48 }
 0x15f   :  { %v13708_v59 = vmul.f32 %v13694_v23, %v19224_v62  ;;  %v8112_v25 = vmul.f32 %v13158_v63, %v13698_v24  ;;  %v9664_v9 = vmul.f32 %v13158_v63, %v13521_v10  ;;  %v9854_v32 = vcombine.low %v9662_v11, %v9663_v5 }
 0x160   :  { %v8159_v57 = vmul.f32 %v13158_v63, %v13490_v19  ;;  %v7634_v60 = vsel %vm6029_vm0, %v7568_v45, 0.0  ;;  %v9141_v14 = vsel %vm6029_vm0, %v9109_v28, 0.0  ;;  %v9084_v1 = vsub.f32 %v19225_v53, %v8690_v22 }
 0x161   :  { %v8113_v51 = vmul.f32 %v13158_v63, %v13708_v59  ;;  %v8323_v46 = vcombine.low %v8111_v4, %v8112_v25  ;;  %7635 = vadd.xlane.f32.xlu1 %v7634_v60  ;;  %v9861_v49 = vrot.slane %v9854_v32, %v11922_v12  ;;  %v9868_v62 = vrot.slane %v9664_v9, %v11922_v12 }
 0x162   :  { %v8160_v10 = vmul.f32 %v13158_v63, %v13486_v43  ;;  %9142 = vadd.xlane.f32.xlu0 %v9141_v14  ;;  %v9125_v19 = vmul.f32 %v13407_v3, %v9084_v1  ;;  %v8161_v5 = vmul.f32 %v13158_v63, %v13494_v39  ;;  %v9710_v25 = vmul.f32 %v13158_v63, %v13607_v56  ;;  %v11345_v14 = vld [vmem:[%s18715_s2 + $0x60] sm:$0x7] }
 0x163   :  { %v8337_v44 = vrot.slane %v8113_v51, %v11922_v12  ;;  %v8330_v11 = vrot.slane %v8323_v46, %v11922_v12  ;;  %v9869_v45 = vcombine.low %v9861_v49, %v9868_v62  ;;  %v9711_v22 = vmul.f32 %v13158_v63, %v13610_v16  ;;  %v19227_v46 = vld [vmem:[#allocation178_spill] sm:$0xff] }
 0x164   :  { %v8691_v28 = vcombine.low %v8159_v57, %v8160_v10  ;;  %v9712_v4 = vmul.f32 %v13158_v63, %v13619_v15  ;;  %v13742_v43 = vpop.eup %11583  ;;  %v9189_v51 = vsel %vm6029_vm0, %v9125_v19, 0.0  ;;  %v8705_v32 = vrot.slane %v8161_v5, %v11922_v12  ;;  %v19228_v19 = vld [vmem:[#allocation177_spill] sm:$0xff] }
 0x165   :  { %19226 = vst [vmem:[#allocation195_spill] sm:$0xff] %v13742_v43  ;;  %v8338_v9 = vcombine.low %v8330_v11, %v8337_v44  ;;  %v9665_v39 = vmul.f32 %v13158_v63, %v13540_v61  ;;  %v9876_v56 = vrot.slane %v9869_v45, %v11922_v12  ;;  %v10222_v60 = vcombine.low %v9710_v25, %v9711_v22 }
 0x166   :  { %v8698_v57 = vrot.slane %v8691_v28, %v11922_v12  ;;  %v10236_v16 = vrot.slane %v9712_v4, %v11922_v12  ;;  %9190 = vadd.xlane.f32.xlu0 %v9189_v51  ;;  %v9666_v53 = vmul.f32 %v13158_v63, %v13552_v35  ;;  %v9667_v61 = vmul.f32 %v13158_v63, %v13560_v38 }
 0x167   :  { %v8345_v15 = vrot.slane %v8338_v9, %v11922_v12  ;;  %v9713_v1 = vmul.f32 %v13158_v63, %v13627_v42  ;;  %v10622_v44 = vsub.f32 %v19227_v46, %v9876_v56  ;;  %v10229_v62 = vrot.slane %v10222_v60, %v11922_v12 }
 0x168   :  { %v8706_v49 = vcombine.low %v8698_v57, %v8705_v32  ;;  %v9714_v10 = vmul.f32 %v13158_v63, %v13631_v30  ;;  %v9877_v5 = vcombine.low %v9665_v39, %v9666_v53  ;;  %v9891_v25 = vrot.slane %v9667_v61, %v11922_v12  ;;  %v19229_v32 = vld [vmem:[#allocation179_spill] sm:$0xff]  ;;  %v19230_v53 = vld [vmem:[#allocation180_spill] sm:$0xff] }
 0x169   :  { %v9069_v11 = vsub.f32 %v19228_v19, %v8345_v15  ;;  %v9715_v35 = vmul.f32 %v13158_v63, %v13635_v54  ;;  %v10663_v38 = vmul.f32 %v11345_v14, %v10622_v44  ;;  %v10237_v42 = vcombine.low %v10229_v62, %v10236_v16 }
 0x16a   :  { %v8713_v45 = vrot.slane %v8706_v49, %v11922_v12  ;;  %v10245_v28 = vcombine.low %v9713_v1, %v9714_v10  ;;  %v9884_v4 = vrot.slane %v9877_v5, %v11922_v12  ;;  %v5000_v30 = vmul.f32 %v13172_v18, %v4772_v48 }
 0x16b   :  { %v9110_v22 = vmul.f32 %v13448_v34, %v9069_v11  ;;  %v10259_v51 = vrot.slane %v9715_v35, %v11922_v12  ;;  %v10695_v9 = vsel %vm6029_vm0, %v10663_v38, 0.0  ;;  %v10244_v56 = vrot.slane %v10237_v42, %v11922_v12  ;;  %v11349_v34 = vld [vmem:[%s18715_s2 + $0x70] sm:$0x7]  ;;  %v19231_v11 = vld [vmem:[#allocation181_spill] sm:$0xff]  ;;  %v19232_v38 = vld [vmem:[#allocation26_spill] sm:$0xff] }
 0x16c   :  { %v9085_v39 = vsub.f32 %v19229_v32, %v8713_v45  ;;  %v10252_v54 = vrot.slane %v10245_v28, %v11922_v12  ;;  %10696 = vadd.xlane.f32.xlu0 %v10695_v9  ;;  %v9892_v60 = vcombine.low %v9884_v4, %v9891_v25  ;;  %v5001_v16 = vmul.f32 %v13172_v18, %v13698_v24  ;;  %v19235_v32 = vld [vmem:[#allocation28_spill] sm:$0xff] }
 0x16d   :  { %v9144_v57 = vsel %vm6029_vm0, %v9110_v22, 0.0  ;;  %v5002_v48 = vmul.f32 %v13172_v18, %v13708_v59  ;;  %v10638_v61 = vsub.f32 %v19230_v53, %v10244_v56  ;;  %v3563_v46 = vcombine.high %v13439_v20, %v13439_v20  ;;  %v19234_v22 = vld [vmem:[#allocation27_spill] sm:$0xff]  ;;  %v19237_v53 = vld [vmem:[#allocation12_spill] sm:$0xff] }
 0x16e   :  { %9145 = vadd.xlane.f32.xlu1 %v9144_v57  ;;  %v9126_v15 = vmul.f32 %v13407_v3, %v9085_v39  ;;  %v10260_v1 = vcombine.low %v10252_v54, %v10259_v51  ;;  %v9899_v44 = vrot.slane %v9892_v60, %v11922_v12  ;;  %v5212_v49 = vcombine.low %v5000_v30, %v5001_v16  ;;  %v19236_v16 = vld [vmem:[#allocation6_spill] sm:$0xff] }
 0x16f   :  { %v5226_v62 = vrot.slane %v5002_v48, %v11922_v12  ;;  %v3571_v24 = vrot.slane %v13439_v20, %v11922_v12  ;;  %v10679_v59 = vmul.f32 %v11349_v34, %v10638_v61  ;;  %v13797_v3 = vrot.slane %v3563_v46, %v11922_v12  ;;  %v19233_v20 = vld [vmem:[#allocation182_spill] sm:$0xff]  ;;  %v19238_v61 = vld [vmem:[#allocation189_spill] sm:$0xff] }
 0x170   :  { %v9192_v10 = vsel %vm6029_vm0, %v9126_v15, 0.0  ;;  %v10267_v19 = vrot.slane %v10260_v1, %v11922_v12  ;;  %v10623_v5 = vsub.f32 %v19231_v11, %v9899_v44  ;;  %v5219_v25 = vrot.slane %v5212_v49, %v11922_v12  ;;  %v19239_v44 = vld [vmem:[#allocation9_spill] sm:$0xff] }
 0x171   :  { %v3593_v35 = vcombine.high %v3571_v24, %v3571_v24  ;;  %v13802_v45 = vmul.f32 %v3571_v24, %v19232_v38  ;;  %v10743_v42 = vsel %vm6029_vm0, %v10679_v59, 0.0  ;;  %v13808_v4 = vmul.f32 %v13797_v3, %v19234_v22  ;;  %v19240_v24 = vld [vmem:[#allocation183_spill] sm:$0xff] }
 0x172   :  { %9193 = vadd.xlane.f32.xlu1 %v9192_v10  ;;  %v10639_v28 = vsub.f32 %v19233_v20, %v10267_v19  ;;  %v3447_v51 = vcombine.high %v13685_v36, %v13685_v36  ;;  %10744 = vadd.xlane.f32.xlu0 %v10743_v42  ;;  %v10664_v30 = vmul.f32 %v11345_v14, %v10623_v5 }
 0x173   :  { %v5227_v9 = vcombine.low %v5219_v25, %v5226_v62  ;;  %v13813_v39 = vmul.f32 %v3593_v35, %v19235_v32  ;;  %v5009_v56 = vmul.f32 %v13172_v18, %v13802_v45  ;;  %v5010_v57 = vmul.f32 %v13172_v18, %v13808_v4  ;;  %v11476_v62 = vpop.f32.mrf.mxu0 }
 0x174   :  { %v10680_v54 = vmul.f32 %v11349_v34, %v10639_v28  ;;  %v3449_v60 = vcombine.high %v13694_v23, %v13694_v23  ;;  %v13822_v48 = vmul.f32 %v3447_v51, %v19236_v16  ;;  %v10698_v36 = vsel %vm6029_vm0, %v10664_v30, 0.0  ;;  %v19243_v16 = vld [vmem:[#allocation35_spill] sm:$0xff] }
 0x175   :  { %v5234_v14 = vrot.slane %v5227_v9, %v11922_v12  ;;  %v5011_v15 = vmul.f32 %v13172_v18, %v13813_v39  ;;  %v13830_v1 = vmul.f32 %v19238_v61, %v19237_v53  ;;  %v5281_v46 = vcombine.low %v5009_v56, %v5010_v57  ;;  %v3144_v53 = vpop.f32.mrf.mxu0  ;;  %v13875_v61 = vld [vmem:[%s18715_s2 + $0x4] sm:$0x7] }
 0x176   :  { %10699 = vadd.xlane.f32.xlu1 %v10698_v36  ;;  %v10746_v34 = vsel %vm6029_vm0, %v10680_v54, 0.0  ;;  %v13834_v23 = vmul.f32 %v3449_v60, %v19239_v44  ;;  %v5003_v49 = vmul.f32 %v13172_v18, %v13822_v48  ;;  %v3150_v11 = vadd.f32 %v11476_v62, %v13148_v8  ;;  %v19245_v62 = vld [vmem:[#allocation185_spill] sm:$0xff] }
 0x177   :  { %v5958_v10 = vsub.f32 %v19240_v24, %v5234_v14  ;;  %v5295_v59 = vrot.slane %v5011_v15, %v11922_v12  ;;  %v5005_v19 = vmul.f32 %v13172_v18, %v13830_v1  ;;  %v5288_v5 = vrot.slane %v5281_v46, %v11922_v12  ;;  %v19244_v14 = vld [vmem:[#allocation36_spill] sm:$0xff] }
 0x178   :  { %v5004_v25 = vmul.f32 %v13172_v18, %v13834_v23  ;;  %v4151_v35 = vcombine.high %v13570_v17, %v13570_v17  ;;  %v4159_v38 = vrot.slane %v13570_v17, %v11922_v12  ;;  %v11197_v28 = vmul.f32 -1.442695, %v3150_v11  ;;  %v19242_v17 = vld [vmem:[#allocation34_spill] sm:$0xff]  ;;  %v19246_v11 = vld [vmem:[#allocation29_spill] sm:$0xff] }
 0x179   :  { %v5998_v42 = vmul.f32 %v13380_v52, %v5958_v10  ;;  %v5249_v20 = vrot.slane %v5005_v19, %v11922_v12  ;;  %v19241_v8 = vcombine.high %v13415_v21, %v13415_v21  ;;  %v5296_v51 = vcombine.low %v5288_v5, %v5295_v59 }
 0x17a   :  { %10747 = vadd.xlane.f32.xlu1 %v10746_v34  ;;  %v5235_v30 = vcombine.low %v5003_v49, %v5004_v25  ;;  %v13857_v9 = vrot.slane %v4151_v35, %v11922_v12  ;;  %v4181_v32 = vcombine.high %v4159_v38, %v4159_v38  ;;  %11585 = vpow2.f32 %v11197_v28  ;;  %v19247_v25 = vld [vmem:[#allocation31_spill] sm:$0xff] }
 0x17b   :  { %v3562_v22 = vrot.slane %v19241_v8, %v11922_v12  ;;  %v6033_v56 = vsel %vm6029_vm0, %v5998_v42, 0.0  ;;  %v13861_v54 = vmul.f32 %v4159_v38, %v19242_v17  ;;  %v5303_v60 = vrot.slane %v5296_v51, %v11922_v12  ;;  %v19248_v38 = vld [vmem:[#allocation32_spill] sm:$0xff] }
 0x17c   :  { %6034 = vadd.xlane.f32.xlu0 %v6033_v56  ;;  %v5242_v21 = vrot.slane %v5235_v30, %v11922_v12  ;;  %v13867_v36 = vmul.f32 %v13857_v9, %v19243_v16  ;;  %v13870_v15 = vmul.f32 %v4181_v32, %v19244_v14  ;;  %v3595_v49 = vcombine.high %v13797_v3, %v13797_v3  ;;  %v13906_v3 = vld [vmem:[%s18717_s4] ss:$0 sm:$0xff] }
 0x17d   :  { %v3564_v57 = vcombine.high %v3562_v22, %v3562_v22  ;;  %v5057_v34 = vmul.f32 %v13172_v18, %v13861_v54  ;;  %v13880_v46 = vrot.slane %v3562_v22, %v11922_v12  ;;  %v5961_v24 = vsub.f32 %v19245_v62, %v5303_v60 }
 0x17e   :  { %v5250_v10 = vcombine.low %v5242_v21, %v5249_v20  ;;  %v5058_v59 = vmul.f32 %v13172_v18, %v13867_v36  ;;  %v5059_v19 = vmul.f32 %v13172_v18, %v13870_v15  ;;  %v13893_v5 = vmul.f32 %v3595_v49, %v19246_v11  ;;  %v19249_v21 = vld [vmem:[#allocation186_spill] sm:$0xff] }
 0x17f   :  { %v13883_v44 = vrot.slane %v3564_v57, %v11922_v12  ;;  %v13897_v35 = vmul.f32 %v13880_v46, %v19247_v25  ;;  %v3145_v20 = vadd.f32 %v13906_v3, %v3144_v53  ;;  %v6001_v28 = vmul.f32 %v13875_v61, %v5961_v24  ;;  %v11494_v57 = vpop.f32.mrf.mxu1 }
 0x180   :  { %v5257_v8 = vrot.slane %v5250_v10, %v11922_v12  ;;  %v5649_v22 = vcombine.low %v5057_v34, %v5058_v59  ;;  %v5663_v51 = vrot.slane %v5059_v19, %v11922_v12  ;;  %v5012_v30 = vmul.f32 %v13172_v18, %v13893_v5 }
 0x181   :  { %v13901_v42 = vmul.f32 %v13883_v44, %v19248_v38  ;;  %v5013_v32 = vmul.f32 %v13172_v18, %v13897_v35  ;;  %v11196_v17 = vmul.f32 -1.442695, %v3145_v20  ;;  %v6042_v60 = vsel %vm6029_vm0, %v6001_v28, 0.0  ;;  %v3204_v28 = vpop.f32.mrf.mxu1 }
 0x182   :  { %v5959_v16 = vsub.f32 %v19249_v21, %v5257_v8  ;;  %v5656_v14 = vrot.slane %v5649_v22, %v11922_v12  ;;  %v3210_v53 = vadd.f32 %v13906_v3, %v11494_v57  ;;  %6043 = vadd.xlane.f32.xlu0 %v6042_v60  ;;  %v8120_v62 = vmul.f32 %v13158_v63, %v13802_v45  ;;  %v19252_v57 = vld [vmem:[#allocation37_spill] sm:$0xff] }
 0x183   :  { %v5014_v56 = vmul.f32 %v13172_v18, %v13901_v42  ;;  %v5304_v34 = vcombine.low %v5012_v30, %v5013_v32  ;;  %11587 = vpow2.f32 %v11196_v17  ;;  %v8121_v19 = vmul.f32 %v13158_v63, %v13808_v4  ;;  %v19251_v32 = vld [vmem:[#allocation190_spill] sm:$0xff] }
 0x184   :  { %v5999_v24 = vmul.f32 %v13380_v52, %v5959_v16  ;;  %v5664_v10 = vcombine.low %v5656_v14, %v5663_v51  ;;  %v11209_v59 = vmul.f32 -1.442695, %v3210_v53  ;;  %v8122_v25 = vmul.f32 %v13158_v63, %v13813_v39  ;;  %v13942_v39 = vld [vmem:[%s18715_s2 + $0x14] sm:$0x7] }
 0x185   :  { %v5318_v49 = vrot.slane %v5014_v56, %v11922_v12  ;;  %v5311_v11 = vrot.slane %v5304_v34, %v11922_v12  ;;  %v19250_v38 = vcombine.high %v13474_v41, %v13474_v41  ;;  %v4183_v45 = vcombine.high %v13857_v9, %v13857_v9  ;;  %v19253_v34 = vld [vmem:[#allocation38_spill] sm:$0xff] }
 0x186   :  { %v6036_v52 = vsel %vm6029_vm0, %v5999_v24, 0.0  ;;  %v5671_v8 = vrot.slane %v5664_v10, %v11922_v12  ;;  %11589 = vpow2.f32 %v11209_v59  ;;  %v8392_v4 = vcombine.low %v8120_v62, %v8121_v19  ;;  %v19254_v19 = vld [vmem:[#allocation187_spill] sm:$0xff] }
 0x187   :  { %v4150_v20 = vrot.slane %v19250_v38, %v11922_v12  ;;  %6037 = vadd.xlane.f32.xlu1 %v6036_v52  ;;  %v5319_v22 = vcombine.low %v5311_v11, %v5318_v49  ;;  %v8406_v41 = vrot.slane %v8122_v25, %v11922_v12  ;;  %v11586_v9 = vpop.eup %11585  ;;  %v13951_v60 = vmul.f32 %v4183_v45, %v19252_v57  ;;  %v19255_v25 = vld [vmem:[#allocation39_spill] sm:$0xff] }
 0x188   :  { %v5977_v56 = vsub.f32 %v19251_v32, %v5671_v8  ;;  %v8399_v17 = vrot.slane %v8392_v4, %v11922_v12  ;;  %v3205_v21 = vadd.f32 %v13906_v3, %v3204_v28  ;;  %v3312_v16 = vadd.f32 1.0, %v11586_v9  ;;  %v13980_v4 = vld [vmem:[%s18715_s2 + $0x44] sm:$0x7]  ;;  %v19256_v9 = vld [vmem:[#allocation188_spill] sm:$0xff] }
 0x189   :  { %v4152_v51 = vcombine.high %v4150_v20, %v4150_v20  ;;  %v13946_v30 = vrot.slane %v4150_v20, %v11922_v12  ;;  %v5326_v14 = vrot.slane %v5319_v22, %v11922_v12  ;;  %v5060_v10 = vmul.f32 %v13172_v18, %v13951_v60 }
 0x18a   :  { %v6017_v62 = vmul.f32 %v13942_v39, %v5977_v56  ;;  %v8407_v24 = vcombine.low %v8399_v17, %v8406_v41  ;;  %v11208_v59 = vmul.f32 -1.442695, %v3205_v21  ;;  %11591 = vrcp.f32 %v3312_v16 }
 0x18b   :  { %v13956_v53 = vrot.slane %v4152_v51, %v11922_v12  ;;  %v13960_v49 = vmul.f32 %v13946_v30, %v19253_v34  ;;  %v5962_v11 = vsub.f32 %v19254_v19, %v5326_v14  ;;  %v8168_v52 = vmul.f32 %v13158_v63, %v13861_v54 }
 0x18c   :  { %v6090_v45 = vsel %vm6029_vm0, %v6017_v62, 0.0  ;;  %v8414_v28 = vrot.slane %v8407_v24, %v11922_v12  ;;  %11593 = vpow2.f32 %v11208_v59  ;;  %v8169_v51 = vmul.f32 %v13158_v63, %v13867_v36 }
 0x18d   :  { %v13968_v38 = vmul.f32 %v13956_v53, %v19255_v25  ;;  %v5061_v20 = vmul.f32 %v13172_v18, %v13960_v49  ;;  %6091 = vadd.xlane.f32.xlu0 %v6090_v45  ;;  %v6002_v8 = vmul.f32 %v13875_v61, %v5962_v11  ;;  %v8170_v54 = vmul.f32 %v13158_v63, %v13870_v15 }
 0x18e   :  { %v9072_v32 = vsub.f32 %v19256_v9, %v8414_v28  ;;  %v8123_v56 = vmul.f32 %v13158_v63, %v13893_v5  ;;  %v8124_v17 = vmul.f32 %v13158_v63, %v13897_v35  ;;  %v8760_v14 = vcombine.low %v8168_v52, %v8169_v51  ;;  %v19257_v52 = vld [vmem:[#allocation10_spill] sm:$0xff]  ;;  %v19259_v9 = vld [vmem:[#allocation13_spill] sm:$0xff] }
 0x18f   :  { %v5062_v22 = vmul.f32 %v13172_v18, %v13968_v38  ;;  %v5672_v41 = vcombine.low %v5060_v10, %v5061_v20  ;;  %v6045_v57 = vsel %vm6029_vm0, %v6002_v8, 0.0  ;;  %v8774_v62 = vrot.slane %v8170_v54, %v11922_v12 }
 0x190   :  { %v11588_v34 = vpop.eup %11587  ;;  %6046 = vadd.xlane.f32.xlu1 %v6045_v57  ;;  %v9113_v36 = vmul.f32 %v13980_v4, %v9072_v32  ;;  %v8125_v15 = vmul.f32 %v13158_v63, %v13901_v42  ;;  %v8415_v5 = vcombine.low %v8123_v56, %v8124_v17  ;;  %v8767_v35 = vrot.slane %v8760_v14, %v11922_v12  ;;  %v19260_v32 = vld [vmem:[#allocation197_spill] sm:$0xff]  ;;  %v11479_v56 = vpop.f32.mrf.mxu0  ;;  %v14028_v14 = vld [vmem:[%s18715_s2 + $0x54] sm:$0x7] }
 0x191   :  { %v5679_v21 = vrot.slane %v5672_v41, %v11922_v12  ;;  %v5686_v16 = vrot.slane %v5062_v22, %v11922_v12  ;;  %v3311_v24 = vadd.f32 1.0, %v11588_v34  ;;  %v4035_v59 = vcombine.high %v13472_v33, %v13472_v33  ;;  %v19258_v41 = vld [vmem:[#allocation11_spill] sm:$0xff]  ;;  %v19261_v17 = vld [vmem:[#allocation193_spill] sm:$0xff] }
 0x192   :  { %v9153_v19 = vsel %vm6029_vm0, %v9113_v36, 0.0  ;;  %v8422_v11 = vrot.slane %v8415_v5, %v11922_v12  ;;  %v8429_v25 = vrot.slane %v8125_v15, %v11922_v12  ;;  %v4037_v20 = vcombine.high %v13480_v7, %v13480_v7 }
 0x193   :  { %v5687_v10 = vcombine.low %v5679_v21, %v5686_v16  ;;  %v11590_v45 = vpop.eup %11589  ;;  %11595 = vrcp.f32 %v3311_v24  ;;  %9154 = vadd.xlane.f32.xlu0 %v9153_v19  ;;  %v8775_v28 = vcombine.low %v8767_v35, %v8774_v62  ;;  %v14010_v8 = vmul.f32 %v4035_v59, %v19257_v52  ;;  %v19262_v24 = vld [vmem:[#allocation191_spill] sm:$0xff]  ;;  %v19264_v19 = vld [vmem:[#allocation192_spill] sm:$0xff]  ;;  %v3154_v52 = vpop.f32.mrf.mxu0 }
 0x194   :  { %v3324_v22 = vadd.f32 1.0, %v11590_v45  ;;  %v8430_v33 = vcombine.low %v8422_v11, %v8429_v25  ;;  %v14013_v51 = vmul.f32 %v4037_v20, %v19258_v41  ;;  %v14017_v54 = vmul.f32 %v19260_v32, %v19259_v9  ;;  %v14047_v25 = vld [vmem:[%s18714_s1 + $0x88] sm:$0x7]  ;;  %v19265_v20 = vld [vmem:[#allocation171_spill] sm:$0xff]  ;;  %v11650_v9 = vld [vmem:[%s18714_s1 + $0xa4] sm:$0x7] }
 0x195   :  { %v5694_v42 = vrot.slane %v5687_v10, %v11922_v12  ;;  %v8782_v21 = vrot.slane %v8775_v28, %v11922_v12  ;;  %v5051_v16 = vmul.f32 %v13172_v18, %v14010_v8  ;;  %v8171_v35 = vmul.f32 %v13158_v63, %v13951_v60  ;;  %v19266_v32 = vld [vmem:[#allocation170_spill] sm:$0xff] }
 0x196   :  { %11597 = vrcp.f32 %v3324_v22  ;;  %v8437_v34 = vrot.slane %v8430_v33, %v11922_v12  ;;  %v5052_v36 = vmul.f32 %v13172_v18, %v14013_v51  ;;  %v5053_v62 = vmul.f32 %v13172_v18, %v14017_v54 }
 0x197   :  { %v5978_v57 = vsub.f32 %v19261_v17, %v5694_v42  ;;  %v9088_v10 = vsub.f32 %v19262_v24, %v8782_v21  ;;  %v14041_v59 = vpop.eup %11591  ;;  %v4982_v45 = vmul.f32 %v14047_v25, %v19265_v20  ;;  %v8172_v28 = vmul.f32 %v13158_v63, %v13960_v49 }
 0x198   :  { %19263 = vst [vmem:[#allocation196_spill] sm:$0xff] %v14041_v59  ;;  %v9073_v11 = vsub.f32 %v19264_v19, %v8437_v34  ;;  %v5603_v42 = vcombine.low %v5051_v16, %v5052_v36  ;;  %v5617_v41 = vrot.slane %v5053_v62, %v11922_v12  ;;  %v8096_v17 = vmul.f32 %v11650_v9, %v19266_v32  ;;  %v11497_v9 = vpop.f32.mrf.mxu1 }
 0x199   :  { %v6018_v5 = vmul.f32 %v13942_v39, %v5978_v57  ;;  %v11594_v22 = vpop.eup %11593  ;;  %v9129_v33 = vmul.f32 %v14028_v14, %v9088_v10  ;;  %v8173_v16 = vmul.f32 %v13158_v63, %v13968_v38  ;;  %v8783_v36 = vcombine.low %v8171_v35, %v8172_v28 }
 0x19a   :  { %v3323_v57 = vadd.f32 1.0, %v11594_v22  ;;  %v9114_v21 = vmul.f32 %v13980_v4, %v9073_v11  ;;  %v5610_v49 = vrot.slane %v5603_v42, %v11922_v12  ;;  %v3160_v62 = vadd.f32 %v13906_v3, %v11479_v56 }
 0x19b   :  { %v6093_v60 = vsel %vm6029_vm0, %v6018_v5, 0.0  ;;  %v9201_v34 = vsel %vm6029_vm0, %v9129_v33, 0.0  ;;  %v3155_v5 = vadd.f32 %v13906_v3, %v3154_v52  ;;  %v8797_v19 = vrot.slane %v8173_v16, %v11922_v12 }
 0x19c   :  { %6094 = vadd.xlane.f32.xlu1 %v6093_v60  ;;  %11599 = vrcp.f32 %v3323_v57  ;;  %9202 = vadd.xlane.f32.xlu0 %v9201_v34  ;;  %v5618_v10 = vcombine.low %v5610_v49, %v5617_v41  ;;  %v9156_v11 = vsel %vm6029_vm0, %v9114_v21, 0.0  ;;  %v8790_v42 = vrot.slane %v8783_v36, %v11922_v12  ;;  %v11651_v49 = vld [vmem:[%s18714_s1 + $0x8] sm:$0x7] }
 0x19d   :  { %v11199_v38 = vmul.f32 -1.442695, %v3160_v62  ;;  %v11198_v22 = vmul.f32 -1.442695, %v3155_v5  ;;  %v8114_v56 = vmul.f32 %v13158_v63, %v13822_v48  ;;  %v8115_v28 = vmul.f32 %v13158_v63, %v13834_v23 }
 0x19e   :  { %v5625_v35 = vrot.slane %v5618_v10, %v11922_v12  ;;  %v8116_v52 = vmul.f32 %v13158_v63, %v13830_v1  ;;  %v8798_v60 = vcombine.low %v8790_v42, %v8797_v19  ;;  %v3515_v33 = vcombine.high %v13477_v40, %v13477_v40  ;;  %v19270_v42 = vld [vmem:[#allocation15_spill] sm:$0xff] }
 0x19f   :  { %11601 = vpow2.f32 %v11199_v38  ;;  %v14083_v41 = vrot.slane %v13477_v40, %v11922_v12  ;;  %v14089_v48 = vrot.slane %v14041_v59, %v11922_v12  ;;  %v8346_v21 = vcombine.low %v8114_v56, %v8115_v28 }
 0x1a0   :  { %9157 = vadd.xlane.f32.xlu1 %v9156_v11  ;;  %v14085_v57 = vpop.eup %11595  ;;  %v5975_v23 = vsub.f32 %v4982_v45, %v5625_v35  ;;  %11603 = vpow2.f32 %v11198_v22  ;;  %v8805_v1 = vrot.slane %v8798_v60, %v11922_v12  ;;  %v8077_v16 = vmul.f32 %v11651_v49, %v19266_v32  ;;  %v3214_v35 = vpop.f32.mrf.mxu1  ;;  %v19276_v49 = vld [vmem:[#allocation21_spill] sm:$0xff] }
 0x1a1   :  { %19267 = vst [vmem:[#allocation184_spill] sm:$0xff] %v14085_v57  ;;  %19268 = vst [vmem:[#allocation173_spill] sm:$0xff] %v14089_v48  ;;  %v8360_v40 = vrot.slane %v8116_v52, %v11922_v12  ;;  %v3543_v34 = vrot.slane %v3515_v33, %v11922_v12  ;;  %v8353_v45 = vrot.slane %v8346_v21, %v11922_v12  ;;  %v14118_v52 = vld [vmem:[%s18714_s1 + $0x1c] sm:$0x7]  ;;  %v19272_v33 = vld [vmem:[#allocation18_spill] sm:$0xff] }
 0x1a2   :  { %v6015_v62 = vmul.f32 %v13430_v0, %v5975_v23  ;;  %v3545_v5 = vcombine.high %v14083_v41, %v14083_v41  ;;  %v9089_v19 = vsub.f32 %v8096_v17, %v8805_v1  ;;  %v3220_v22 = vadd.f32 %v13906_v3, %v11497_v9  ;;  %v19273_v23 = vld [vmem:[#allocation19_spill] sm:$0xff] }
 0x1a3   :  { %v14104_v10 = vpop.eup %11597  ;;  %v3547_v11 = vcombine.high %v3543_v34, %v3543_v34  ;;  %v14107_v38 = vmul.f32 %v3543_v34, %v19270_v42  ;;  %v14112_v56 = vrot.slane %v14085_v57, %v11922_v12  ;;  %v8361_v28 = vcombine.low %v8353_v45, %v8360_v40 }
 0x1a4   :  { %19269 = vst [vmem:[#allocation194_spill] sm:$0xff] %v14104_v10  ;;  %v6084_v0 = vsel %vm6029_vm0, %v6015_v62, 0.0  ;;  %v6521_v17 = vmul.f32 %v14118_v52, %v19265_v20  ;;  %v9130_v60 = vmul.f32 %v14028_v14, %v9089_v19  ;;  %v14124_v9 = vmul.f32 %v3545_v5, %v19272_v33 }
 0x1a5   :  { %19271 = vst [vmem:[#allocation7_spill] sm:$0xff] %v14112_v56  ;;  %6085 = vadd.xlane.f32.xlu0 %v6084_v0  ;;  %v14127_v21 = vmul.f32 %v3547_v11, %v19273_v23  ;;  %v6559_v1 = vmul.f32 %v13172_v18, %v14107_v38  ;;  %v8368_v40 = vrot.slane %v8361_v28, %v11922_v12  ;;  %v11211_v34 = vmul.f32 -1.442695, %v3220_v22 }
 0x1a6   :  { %v3215_v62 = vadd.f32 %v13906_v3, %v3214_v35  ;;  %v9204_v45 = vsel %vm6029_vm0, %v9130_v60, 0.0  ;;  %v6560_v5 = vmul.f32 %v13172_v18, %v14124_v9  ;;  %v8162_v11 = vmul.f32 %v13158_v63, %v14010_v8 }
 0x1a7   :  { %v6561_v19 = vmul.f32 %v13172_v18, %v14127_v21  ;;  %9205 = vadd.xlane.f32.xlu1 %v9204_v45  ;;  %v9070_v42 = vsub.f32 %v8077_v16, %v8368_v40  ;;  %11605 = vpow2.f32 %v11211_v34  ;;  %v8163_v22 = vmul.f32 %v13158_v63, %v14013_v51  ;;  %v11653_v16 = vld [vmem:[%s18715_s2 + $0x40] sm:$0x7] }
 0x1a8   :  { %v11210_v0 = vmul.f32 -1.442695, %v3215_v62  ;;  %v6811_v35 = vcombine.low %v6559_v1, %v6560_v5  ;;  %v8164_v33 = vmul.f32 %v13158_v63, %v14017_v54  ;;  %v4103_v23 = vcombine.high %v13578_v29, %v13578_v29 }
 0x1a9   :  { %v14144_v28 = vpop.eup %11599  ;;  %v6825_v60 = vrot.slane %v6561_v19, %v11922_v12  ;;  %v14153_v8 = vrot.slane %v14104_v10, %v11922_v12  ;;  %v9111_v51 = vmul.f32 %v11653_v16, %v9070_v42  ;;  %v8093_v1 = vmul.f32 %v14047_v25, %v19266_v32 }
 0x1aa   :  { %19274 = vst [vmem:[#allocation174_spill] sm:$0xff] %v14144_v28  ;;  %11607 = vpow2.f32 %v11210_v0  ;;  %v6818_v54 = vrot.slane %v6811_v35, %v11922_v12  ;;  %v8714_v34 = vcombine.low %v8162_v11, %v8163_v22  ;;  %v14165_v62 = vrot.slane %v13578_v29, %v11922_v12 }
 0x1ab   :  { %19275 = vst [vmem:[#allocation175_spill] sm:$0xff] %v14153_v8  ;;  %v9147_v5 = vsel %vm6029_vm0, %v9111_v51, 0.0  ;;  %v8728_v19 = vrot.slane %v8164_v33, %v11922_v12  ;;  %v4131_v42 = vrot.slane %v4103_v23, %v11922_v12  ;;  %v3594_v25 = vcombine.high %v13880_v46, %v13880_v46 }
 0x1ac   :  { %v11602_v45 = vpop.eup %11601  ;;  %9148 = vadd.xlane.f32.xlu0 %v9147_v5  ;;  %v6826_v40 = vcombine.low %v6818_v54, %v6825_v60  ;;  %v8721_v11 = vrot.slane %v8714_v34, %v11922_v12  ;;  %v4133_v29 = vcombine.high %v14165_v62, %v14165_v62  ;;  %v3596_v33 = vcombine.high %v13883_v44, %v13883_v44  ;;  %v19278_v60 = vld [vmem:[#allocation25_spill] sm:$0xff] }
 0x1ad   :  { %v11604_v0 = vpop.eup %11603  ;;  %v3314_v16 = vadd.f32 1.0, %v11602_v45  ;;  %v4135_v35 = vcombine.high %v4131_v42, %v4131_v42  ;;  %v14176_v51 = vmul.f32 %v4131_v42, %v19276_v49  ;;  %v19277_v45 = vld [vmem:[#allocation24_spill] sm:$0xff]  ;;  %v14191_v49 = vrot.slane %v13575_v50, %v11922_v12 }
 0x1ae   :  { %v3313_v22 = vadd.f32 1.0, %v11604_v0  ;;  %v6833_v46 = vrot.slane %v6826_v40, %v11922_v12  ;;  %v8729_v23 = vcombine.low %v8721_v11, %v8728_v19  ;;  %v14182_v5 = vmul.f32 %v4133_v29, %v19277_v45  ;;  %v19279_v19 = vld [vmem:[#allocation30_spill] sm:$0xff] }
 0x1af   :  { %11609 = vrcp.f32 %v3314_v16  ;;  %v14185_v54 = vmul.f32 %v4135_v35, %v19278_v60  ;;  %v6607_v34 = vmul.f32 %v13172_v18, %v14176_v51  ;;  %v14197_v0 = vmul.f32 %v3594_v25, %v19279_v19  ;;  %v14202_v16 = vld [vmem:[%s18714_s1 + $0x9c] sm:$0x7] }
 0x1b0   :  { %11611 = vrcp.f32 %v3313_v22  ;;  %v7513_v42 = vsub.f32 %v6521_v17, %v6833_v46  ;;  %v8736_v44 = vrot.slane %v8729_v23, %v11922_v12  ;;  %v6608_v40 = vmul.f32 %v13172_v18, %v14182_v5  ;;  %v19280_v22 = vld [vmem:[#allocation33_spill] sm:$0xff]  ;;  %v19281_v19 = vld [vmem:[#allocation40_spill] sm:$0xff] }
 0x1b1   :  { %v6537_v11 = vmul.f32 %v14202_v16, %v19265_v20  ;;  %v6609_v29 = vmul.f32 %v13172_v18, %v14185_v54  ;;  %v14210_v17 = vrot.slane %v14191_v49, %v11922_v12  ;;  %v14213_v35 = vmul.f32 %v3596_v33, %v19280_v22 }
 0x1b2   :  { %v7554_v25 = vmul.f32 %v13591_v58, %v7513_v42  ;;  %v9086_v46 = vsub.f32 %v8093_v1, %v8736_v44  ;;  %v7179_v23 = vcombine.low %v6607_v34, %v6608_v40  ;;  %v5015_v45 = vmul.f32 %v13172_v18, %v14197_v0  ;;  %v11655_v1 = vld [vmem:[%s18715_s2 + $0x50] sm:$0x7] }
 0x1b3   :  { %v7193_v60 = vrot.slane %v6609_v29, %v11922_v12  ;;  %v14221_v36 = vmul.f32 %v14210_v17, %v19281_v19  ;;  %v5016_v24 = vmul.f32 %v13172_v18, %v14213_v35  ;;  %v4182_v33 = vcombine.high %v13946_v30, %v13946_v30 }
 0x1b4   :  { %v11606_v22 = vpop.eup %11605  ;;  %v7592_v58 = vsel %vm6029_vm0, %v7554_v25, 0.0  ;;  %v9127_v34 = vmul.f32 %v11655_v1, %v9086_v46  ;;  %v7186_v42 = vrot.slane %v7179_v23, %v11922_v12  ;;  %v4184_v44 = vcombine.high %v13956_v53, %v13956_v53  ;;  %v19282_v46 = vld [vmem:[#allocation41_spill] sm:$0xff]  ;;  %v19283_v23 = vld [vmem:[#allocation42_spill] sm:$0xff] }
 0x1b5   :  { %7593 = vadd.xlane.f32.xlu1 %v7592_v58  ;;  %v3326_v40 = vadd.f32 1.0, %v11606_v22  ;;  %v5017_v29 = vmul.f32 %v13172_v18, %v14221_v36  ;;  %v5327_v19 = vcombine.low %v5015_v45, %v5016_v24  ;;  %v14238_v30 = vrot.slane %v13742_v43, %v11922_v12 }
 0x1b6   :  { %v9195_v15 = vsel %vm6029_vm0, %v9127_v34, 0.0  ;;  %v7194_v7 = vcombine.low %v7186_v42, %v7193_v60  ;;  %v4895_v1 = vmul.f32 %v4182_v33, %v19282_v46  ;;  %v4896_v10 = vmul.f32 %v4184_v44, %v19283_v23 }
 0x1b7   :  { %v11608_v25 = vpop.eup %11607  ;;  %11613 = vrcp.f32 %v3326_v40  ;;  %9196 = vadd.xlane.f32.xlu0 %v9195_v15  ;;  %v5334_v22 = vrot.slane %v5327_v19, %v11922_v12  ;;  %v5341_v58 = vrot.slane %v5017_v29, %v11922_v12  ;;  %v14247_v24 = vrot.slane %v14144_v28, %v11922_v12  ;;  %v14258_v15 = vld [vmem:[%s18714_s1 + $0x28] sm:$0x7] }
 0x1b8   :  { %v3325_v53 = vadd.f32 1.0, %v11608_v25  ;;  %v7201_v45 = vrot.slane %v7194_v7, %v11922_v12  ;;  %v14252_v60 = vrot.slane %v14238_v30, %v11922_v12  ;;  %v8174_v33 = vmul.f32 %v13158_v63, %v4895_v1  ;;  %v19285_v7 = vld [vmem:[#allocation58_spill] sm:$0xff] }
 0x1b9   :  { %19284 = vst [vmem:[#allocation5_spill] sm:$0xff] %v14247_v24  ;;  %v4970_v34 = vmul.f32 %v14258_v15, %v19265_v20  ;;  %v5342_v42 = vcombine.low %v5334_v22, %v5341_v58  ;;  %v8175_v44 = vmul.f32 %v13158_v63, %v4896_v10  ;;  %v5063_v19 = vmul.f32 %v13172_v18, %v4895_v1  ;;  %v11657_v1 = vld [vmem:[%s18714_s1 + $0xa8] sm:$0x7] }
 0x1ba   :  { %11615 = vrcp.f32 %v3325_v53  ;;  %v7529_v40 = vsub.f32 %v6537_v11, %v7201_v45  ;;  %v4897_v29 = vmul.f32 %v14252_v60, %v19285_v7  ;;  %v5064_v25 = vmul.f32 %v13172_v18, %v4896_v10  ;;  %v19288_v24 = vld [vmem:[#allocation46_spill] sm:$0xff] }
 0x1bb   :  { %v5349_v23 = vrot.slane %v5342_v42, %v11922_v12  ;;  %v8806_v53 = vcombine.low %v8174_v33, %v8175_v44  ;;  %v3612_v28 = vcombine.high %v14191_v49, %v14191_v49  ;;  %v3642_v22 = vcombine.high %v14210_v17, %v14210_v17 }
 0x1bc   :  { %v14267_v46 = vpop.eup %11609  ;;  %v7570_v11 = vmul.f32 %v13680_v37, %v7529_v40  ;;  %v8097_v10 = vmul.f32 %v11657_v1, %v19266_v32  ;;  %v8176_v45 = vmul.f32 %v13158_v63, %v4897_v29  ;;  %v4986_v42 = vmul.f32 %v11657_v1, %v19265_v20 }
 0x1bd   :  { %19286 = vst [vmem:[#allocation8_spill] sm:$0xff] %v14267_v46  ;;  %v11612_v58 = vpop.eup %11611  ;;  %v14285_v49 = vrot.slane %v14267_v46, %v11922_v12  ;;  %v5963_v17 = vsub.f32 %v4970_v34, %v5349_v23  ;;  %v8813_v37 = vrot.slane %v8806_v53, %v11922_v12  ;;  %v5065_v7 = vmul.f32 %v13172_v18, %v4897_v29  ;;  %v19302_v46 = vld [vmem:[#allocation20_spill] sm:$0xff] }
 0x1be   :  { %v7640_v44 = vsel %vm6029_vm0, %v7570_v11, 0.0  ;;  %v8820_v40 = vrot.slane %v8176_v45, %v11922_v12  ;;  %v5695_v57 = vcombine.low %v5063_v19, %v5064_v25  ;;  %v3793_v59 = vcombine.high %v11612_v58, %v11612_v58  ;;  %v19290_v25 = vld [vmem:[#allocation43_spill] sm:$0xff] }
 0x1bf   :  { %19287 = vst [vmem:[#allocation176_spill] sm:$0xff] %v14285_v49  ;;  %7641 = vadd.xlane.f32.xlu1 %v7640_v44  ;;  %v6003_v1 = vmul.f32 %v13875_v61, %v5963_v17  ;;  %v3634_v33 = vrot.slane %v3612_v28, %v11922_v12  ;;  %v14294_v56 = vmul.f32 %v3642_v22, %v19288_v24  ;;  %v19303_v49 = vld [vmem:[#allocation22_spill] sm:$0xff] }
 0x1c0   :  { %v14297_v34 = vrot.slane %v11612_v58, %v11922_v12  ;;  %v8821_v23 = vcombine.low %v8813_v37, %v8820_v40  ;;  %v5702_v53 = vrot.slane %v5695_v57, %v11922_v12  ;;  %v5709_v11 = vrot.slane %v5065_v7, %v11922_v12  ;;  %v19292_v37 = vld [vmem:[#allocation47_spill] sm:$0xff]  ;;  %v19293_v40 = vld [vmem:[#allocation17_spill] sm:$0xff] }
 0x1c1   :  { %v6048_v29 = vsel %vm6029_vm0, %v6003_v1, 0.0  ;;  %v3644_v19 = vcombine.high %v3634_v33, %v3634_v33  ;;  %v14303_v45 = vmul.f32 %v3634_v33, %v19290_v25  ;;  %v5019_v28 = vmul.f32 %v13172_v18, %v14294_v56  ;;  %v14345_v25 = vld [vmem:[%s18714_s1 + $0x18] sm:$0x7] }
 0x1c2   :  { %19289 = vst [vmem:[#allocation178_spill] sm:$0xff] %v14297_v34  ;;  %6049 = vadd.xlane.f32.xlu0 %v6048_v29  ;;  %v8828_v24 = vrot.slane %v8821_v23, %v11922_v12  ;;  %v5710_v22 = vcombine.low %v5702_v53, %v5709_v11  ;;  %v3544_v58 = vcombine.high %v13535_v31, %v13535_v31  ;;  %v19295_v53 = vld [vmem:[#allocation14_spill] sm:$0xff] }
 0x1c3   :  { %v3546_v57 = vcombine.high %v13548_v47, %v13548_v47  ;;  %v14313_v17 = vrot.slane %v3793_v59, %v11922_v12  ;;  %v14316_v44 = vmul.f32 %v3644_v19, %v19292_v37  ;;  %v5018_v33 = vmul.f32 %v13172_v18, %v14303_v45  ;;  %v19296_v59 = vld [vmem:[#allocation16_spill] sm:$0xff]  ;;  %v14336_v29 = vld [vmem:[%s18714_s1 + $0x2c] sm:$0x7] }
 0x1c4   :  { %v14322_v7 = vmul.f32 %v14083_v41, %v19293_v40  ;;  %v14324_v1 = vpop.eup %11613  ;;  %v9090_v23 = vsub.f32 %v8097_v10, %v8828_v24  ;;  %v5717_v31 = vrot.slane %v5710_v22, %v11922_v12  ;;  %v14328_v47 = vmul.f32 %v3544_v58, %v19295_v53 }
 0x1c5   :  { %19291 = vst [vmem:[#allocation177_spill] sm:$0xff] %v14313_v17  ;;  %19294 = vst [vmem:[#allocation179_spill] sm:$0xff] %v14324_v1  ;;  %v14331_v11 = vmul.f32 %v3546_v57, %v19296_v59  ;;  %v4971_v41 = vmul.f32 %v14336_v29, %v19265_v20  ;;  %v5020_v19 = vmul.f32 %v13172_v18, %v14316_v44 }
 0x1c6   :  { %v5350_v10 = vcombine.low %v5018_v33, %v5019_v28  ;;  %v6520_v24 = vmul.f32 %v14345_v25, %v19265_v20  ;;  %v9131_v58 = vmul.f32 %v14028_v14, %v9090_v23  ;;  %v5979_v57 = vsub.f32 %v4986_v42, %v5717_v31 }
 0x1c7   :  { %v14349_v22 = vpop.eup %11615  ;;  %v6556_v37 = vmul.f32 %v13172_v18, %v14328_v47  ;;  %v6557_v40 = vmul.f32 %v13172_v18, %v14331_v11  ;;  %v14360_v33 = vrot.slane %v14324_v1, %v11922_v12  ;;  %v5364_v59 = vrot.slane %v5020_v19, %v11922_v12 }
 0x1c8   :  { %v5357_v53 = vrot.slane %v5350_v10, %v11922_v12  ;;  %v9207_v23 = vsel %vm6029_vm0, %v9131_v58, 0.0  ;;  %v6019_v42 = vmul.f32 %v13942_v39, %v5979_v57  ;;  %v6558_v31 = vmul.f32 %v13172_v18, %v14322_v7 }
 0x1c9   :  { %19297 = vst [vmem:[#allocation180_spill] sm:$0xff] %v14360_v33  ;;  %v6788_v17 = vcombine.low %v6556_v37, %v6557_v40  ;;  %9208 = vadd.xlane.f32.xlu1 %v9207_v23  ;;  %v4200_v1 = vcombine.high %v14238_v30, %v14238_v30  ;;  %v4230_v10 = vcombine.high %v14252_v60, %v14252_v60 }
 0x1ca   :  { %v5365_v28 = vcombine.low %v5357_v53, %v5364_v59  ;;  %v14376_v19 = vrot.slane %v14349_v22, %v11922_v12  ;;  %v6096_v58 = vsel %vm6029_vm0, %v6019_v42, 0.0  ;;  %v6802_v37 = vrot.slane %v6558_v31, %v11922_v12  ;;  %v19299_v59 = vld [vmem:[#allocation62_spill] sm:$0xff]  ;;  %v19300_v31 = vld [vmem:[#allocation23_spill] sm:$0xff] }
 0x1cb   :  { %v6795_v57 = vrot.slane %v6788_v17, %v11922_v12  ;;  %6097 = vadd.xlane.f32.xlu0 %v6096_v58  ;;  %v4222_v53 = vrot.slane %v4200_v1, %v11922_v12  ;;  %v14384_v30 = vmul.f32 %v4230_v10, %v19299_v59  ;;  %v4132_v60 = vcombine.high %v13602_v26, %v13602_v26  ;;  %v14391_v42 = vld [vmem:[%s18714_s1 + $0xac] sm:$0x7]  ;;  %v19301_v59 = vld [vmem:[#allocation59_spill] sm:$0xff] }
 0x1cc   :  { %19298 = vst [vmem:[#allocation181_spill] sm:$0xff] %v14376_v19  ;;  %v5372_v40 = vrot.slane %v5365_v28, %v11922_v12  ;;  %v4987_v17 = vmul.f32 %v14391_v42, %v19265_v20  ;;  %v4134_v28 = vcombine.high %v13615_v55, %v13615_v55  ;;  %v14399_v1 = vmul.f32 %v14165_v62, %v19300_v31 }
 0x1cd   :  { %v6803_v23 = vcombine.low %v6795_v57, %v6802_v37  ;;  %v4232_v58 = vcombine.high %v4222_v53, %v4222_v53  ;;  %v14402_v26 = vmul.f32 %v4222_v53, %v19301_v59  ;;  %v5067_v57 = vmul.f32 %v13172_v18, %v14384_v30  ;;  %v11662_v59 = vld [vmem:[%s18715_s2 + $0x20] sm:$0x7] }
 0x1ce   :  { %v5964_v10 = vsub.f32 %v4971_v41, %v5372_v40  ;;  %v14408_v33 = vmul.f32 %v4132_v60, %v19302_v46  ;;  %v14411_v19 = vmul.f32 %v4134_v28, %v19303_v49  ;;  %v6606_v55 = vmul.f32 %v13172_v18, %v14399_v1  ;;  %v19304_v41 = vld [vmem:[#allocation63_spill] sm:$0xff]  ;;  %v14426_v46 = vld [vmem:[%s18714_s1 + $0x98] sm:$0x7] }
 0x1cf   :  { %v6810_v37 = vrot.slane %v6803_v23, %v11922_v12  ;;  %v14417_v40 = vmul.f32 %v4232_v58, %v19304_v41  ;;  %v5066_v53 = vmul.f32 %v13172_v18, %v14402_v26  ;;  %v3662_v23 = vcombine.high %v13581_v13, %v13581_v13 }
 0x1d0   :  { %v6004_v62 = vmul.f32 %v13875_v61, %v5964_v10  ;;  %v6536_v49 = vmul.f32 %v14426_v46, %v19265_v20  ;;  %v6604_v61 = vmul.f32 %v13172_v18, %v14408_v33  ;;  %v6605_v60 = vmul.f32 %v13172_v18, %v14411_v19 }
 0x1d1   :  { %v7512_v31 = vsub.f32 %v6520_v24, %v6810_v37  ;;  %v5068_v10 = vmul.f32 %v13172_v18, %v14417_v40  ;;  %v5718_v24 = vcombine.low %v5066_v53, %v5067_v57  ;;  %v14439_v58 = vrot.slane %v13581_v13, %v11922_v12  ;;  %v14453_v13 = vld [vmem:[%s18714_s1 + $0x3c] sm:$0x7] }
 0x1d2   :  { %v6051_v28 = vsel %vm6029_vm0, %v6004_v62, 0.0  ;;  %v7156_v41 = vcombine.low %v6604_v61, %v6605_v60  ;;  %v7170_v34 = vrot.slane %v6606_v55, %v11922_v12  ;;  %v3690_v8 = vrot.slane %v3662_v23, %v11922_v12  ;;  %19305 = vst [vmem:[#allocation26_spill] sm:$0xff] %v14453_v13  ;;  %v19306_v61 = vld [vmem:[#allocation55_spill] sm:$0xff] }
 0x1d3   :  { %6052 = vadd.xlane.f32.xlu1 %v6051_v28  ;;  %v7553_v37 = vmul.f32 %v11662_v59, %v7512_v31  ;;  %v5725_v62 = vrot.slane %v5718_v24, %v11922_v12  ;;  %v5732_v43 = vrot.slane %v5068_v10, %v11922_v12  ;;  %v3692_v57 = vcombine.high %v14439_v58, %v14439_v58  ;;  %v19307_v10 = vld [vmem:[#allocation56_spill] sm:$0xff] }
 0x1d4   :  { %v6525_v53 = vmul.f32 %v14453_v13, %v19265_v20  ;;  %v7163_v55 = vrot.slane %v7156_v41, %v11922_v12  ;;  %v3694_v23 = vcombine.high %v3690_v8, %v3690_v8  ;;  %v14460_v60 = vmul.f32 %v3690_v8, %v19306_v61  ;;  %v19308_v13 = vld [vmem:[#allocation57_spill] sm:$0xff] }
 0x1d5   :  { %v7589_v31 = vsel %vm6029_vm0, %v7553_v37, 0.0  ;;  %v5733_v28 = vcombine.low %v5725_v62, %v5732_v43  ;;  %v14463_v24 = vmul.f32 %v3692_v57, %v19307_v10  ;;  %v8126_v59 = vmul.f32 %v13158_v63, %v14197_v0 }
 0x1d6   :  { %7590 = vadd.xlane.f32.xlu0 %v7589_v31  ;;  %v8127_v48 = vmul.f32 %v13158_v63, %v14213_v35  ;;  %v7171_v50 = vcombine.low %v7163_v55, %v7170_v34  ;;  %v14470_v37 = vmul.f32 %v3694_v23, %v19308_v13  ;;  %v6571_v41 = vmul.f32 %v13172_v18, %v14460_v60 }
 0x1d7   :  { %v8128_v8 = vmul.f32 %v13158_v63, %v14221_v36  ;;  %v5740_v43 = vrot.slane %v5733_v28, %v11922_v12  ;;  %v6572_v62 = vmul.f32 %v13172_v18, %v14463_v24  ;;  %v4250_v0 = vcombine.high %v13675_v27, %v13675_v27 }
 0x1d8   :  { %v8438_v57 = vcombine.low %v8126_v59, %v8127_v48  ;;  %v7178_v35 = vrot.slane %v7171_v50, %v11922_v12  ;;  %v6573_v34 = vmul.f32 %v13172_v18, %v14470_v37  ;;  %v14487_v31 = vrot.slane %v13675_v27, %v11922_v12 }
 0x1d9   :  { %v8452_v13 = vrot.slane %v8128_v8, %v11922_v12  ;;  %v5980_v36 = vsub.f32 %v4987_v17, %v5740_v43  ;;  %v6903_v55 = vcombine.low %v6571_v41, %v6572_v62  ;;  %v4278_v48 = vrot.slane %v4250_v0, %v11922_v12  ;;  %v11664_v41 = vld [vmem:[%s18715_s2 + $0x30] sm:$0x7] }
 0x1da   :  { %v8445_v23 = vrot.slane %v8438_v57, %v11922_v12  ;;  %v7528_v61 = vsub.f32 %v6536_v49, %v7178_v35  ;;  %v6917_v28 = vrot.slane %v6573_v34, %v11922_v12  ;;  %v8081_v50 = vmul.f32 %v14258_v15, %v19266_v32  ;;  %v19309_v49 = vld [vmem:[#allocation71_spill] sm:$0xff]  ;;  %v19310_v57 = vld [vmem:[#allocation72_spill] sm:$0xff] }
 0x1db   :  { %v4280_v10 = vcombine.high %v14487_v31, %v14487_v31  ;;  %v6020_v59 = vmul.f32 %v13942_v39, %v5980_v36  ;;  %v6910_v27 = vrot.slane %v6903_v55, %v11922_v12  ;;  %v4282_v17 = vcombine.high %v4278_v48, %v4278_v48  ;;  %v14510_v15 = vld [vmem:[%s18714_s1 + $0xbc] sm:$0x7]  ;;  %v19311_v36 = vld [vmem:[#allocation73_spill] sm:$0xff] }
 0x1dc   :  { %v8453_v8 = vcombine.low %v8445_v23, %v8452_v13  ;;  %v7569_v43 = vmul.f32 %v11664_v41, %v7528_v61  ;;  %v14502_v62 = vmul.f32 %v4278_v48, %v19309_v49  ;;  %v6541_v39 = vmul.f32 %v14510_v15, %v19265_v20 }
 0x1dd   :  { %v14505_v0 = vmul.f32 %v4280_v10, %v19310_v57  ;;  %v6099_v35 = vsel %vm6029_vm0, %v6020_v59, 0.0  ;;  %v6918_v34 = vcombine.low %v6910_v27, %v6917_v28  ;;  %v14517_v55 = vmul.f32 %v4282_v17, %v19311_v36 }
 0x1de   :  { %v8460_v13 = vrot.slane %v8453_v8, %v11922_v12  ;;  %6100 = vadd.xlane.f32.xlu1 %v6099_v35  ;;  %v7637_v23 = vsel %vm6029_vm0, %v7569_v43, 0.0  ;;  %v6619_v48 = vmul.f32 %v13172_v18, %v14502_v62  ;;  %v9668_v10 = vmul.f32 %v13158_v63, %v14328_v47 }
 0x1df   :  { %v6620_v61 = vmul.f32 %v13172_v18, %v14505_v0  ;;  %7638 = vadd.xlane.f32.xlu0 %v7637_v23  ;;  %v6925_v28 = vrot.slane %v6918_v34, %v11922_v12  ;;  %v6621_v27 = vmul.f32 %v13172_v18, %v14517_v55  ;;  %v9669_v8 = vmul.f32 %v13158_v63, %v14331_v11  ;;  %v14542_v11 = vld [vmem:[%s18715_s2 + $0x24] sm:$0x7] }
 0x1e0   :  { %v9074_v59 = vsub.f32 %v8081_v50, %v8460_v13  ;;  %v9632_v41 = vmul.f32 %v14345_v25, %v19266_v32  ;;  %v9670_v43 = vmul.f32 %v13158_v63, %v14322_v7  ;;  %v8129_v47 = vmul.f32 %v13158_v63, %v14303_v45 }
 0x1e1   :  { %v7271_v17 = vcombine.low %v6619_v48, %v6620_v61  ;;  %v7517_v49 = vsub.f32 %v6525_v53, %v6925_v28  ;;  %v7285_v50 = vrot.slane %v6621_v27, %v11922_v12  ;;  %v9900_v35 = vcombine.low %v9668_v10, %v9669_v8 }
 0x1e2   :  { %v9115_v57 = vmul.f32 %v13980_v4, %v9074_v59  ;;  %v9914_v25 = vrot.slane %v9670_v43, %v11922_v12  ;;  %v8130_v7 = vmul.f32 %v13158_v63, %v14294_v56  ;;  %v8131_v45 = vmul.f32 %v13158_v63, %v14316_v44 }
 0x1e3   :  { %v7278_v34 = vrot.slane %v7271_v17, %v11922_v12  ;;  %v7558_v53 = vmul.f32 %v14542_v11, %v7517_v49  ;;  %v9907_v36 = vrot.slane %v9900_v35, %v11922_v12  ;;  %v8082_v23 = vmul.f32 %v14336_v29, %v19266_v32 }
 0x1e4   :  { %v9159_v13 = vsel %vm6029_vm0, %v9115_v57, 0.0  ;;  %v8461_v61 = vcombine.low %v8129_v47, %v8130_v7  ;;  %v8475_v10 = vrot.slane %v8131_v45, %v11922_v12  ;;  %v9716_v56 = vmul.f32 %v13158_v63, %v14408_v33  ;;  %v11482_v47 = vpop.f32.mrf.mxu0  ;;  %v19313_v57 = vld [vmem:[#allocation54_spill] sm:$0xff]  ;;  %v14588_v7 = vld [vmem:[%s18715_s2 + $0x34] sm:$0x7] }
 0x1e5   :  { %9160 = vadd.xlane.f32.xlu0 %v9159_v13  ;;  %v7286_v48 = vcombine.low %v7278_v34, %v7285_v50  ;;  %v7604_v28 = vsel %vm6029_vm0, %v7558_v53, 0.0  ;;  %v9915_v44 = vcombine.low %v9907_v36, %v9914_v25  ;;  %v9717_v59 = vmul.f32 %v13158_v63, %v14411_v19 }
 0x1e6   :  { %v9718_v27 = vmul.f32 %v13158_v63, %v14399_v1  ;;  %7605 = vadd.xlane.f32.xlu1 %v7604_v28  ;;  %v8468_v8 = vrot.slane %v8461_v61, %v11922_v12  ;;  %v14567_v17 = vrot.slane %v13565_v2, %v11922_v12  ;;  %v19312_v33 = vcombine.high %v13565_v2, %v13565_v2  ;;  %v3164_v28 = vpop.f32.mrf.mxu0 }
 0x1e7   :  { %v7293_v29 = vrot.slane %v7286_v48, %v11922_v12  ;;  %v9922_v19 = vrot.slane %v9915_v44, %v11922_v12  ;;  %v10268_v49 = vcombine.low %v9716_v56, %v9717_v59  ;;  %v14579_v50 = vmul.f32 %v14439_v58, %v19313_v57  ;;  %v19314_v48 = vld [vmem:[#allocation52_spill] sm:$0xff] }
 0x1e8   :  { %v14573_v43 = vrot.slane %v19312_v33, %v11922_v12  ;;  %v10282_v1 = vrot.slane %v9718_v27, %v11922_v12  ;;  %v8476_v34 = vcombine.low %v8468_v8, %v8475_v10  ;;  %v3691_v25 = vcombine.high %v14567_v17, %v14567_v17  ;;  %v19315_v10 = vld [vmem:[#allocation53_spill] sm:$0xff]  ;;  %v14612_v59 = vld [vmem:[%s18714_s1 + $0x38] sm:$0x7] }
 0x1e9   :  { %v7533_v35 = vsub.f32 %v6541_v39, %v7293_v29  ;;  %v10624_v45 = vsub.f32 %v9632_v41, %v9922_v19  ;;  %v9648_v53 = vmul.f32 %v14426_v46, %v19266_v32  ;;  %v10275_v58 = vrot.slane %v10268_v49, %v11922_v12  ;;  %v14606_v46 = vld [vmem:[%s18715_s2 + $0x60] sm:$0x7] }
 0x1ea   :  { %v3693_v2 = vcombine.high %v14573_v43, %v14573_v43  ;;  %v9682_v39 = vmul.f32 %v13158_v63, %v14579_v50  ;;  %v8483_v36 = vrot.slane %v8476_v34, %v11922_v12  ;;  %v14598_v61 = vmul.f32 %v3691_v25, %v19314_v48 }
 0x1eb   :  { %v7574_v13 = vmul.f32 %v14588_v7, %v7533_v35  ;;  %v10665_v41 = vmul.f32 %v14606_v46, %v10624_v45  ;;  %v10283_v44 = vcombine.low %v10275_v58, %v10282_v1  ;;  %v9636_v27 = vmul.f32 %v14612_v59, %v19266_v32  ;;  %v11500_v45 = vpop.f32.mrf.mxu1 }
 0x1ec   :  { %v14601_v56 = vmul.f32 %v3693_v2, %v19315_v10  ;;  %v3170_v29 = vadd.f32 %v13906_v3, %v11482_v47  ;;  %v9075_v33 = vsub.f32 %v8082_v23, %v8483_v36  ;;  %v9680_v19 = vmul.f32 %v13158_v63, %v14598_v61 }
 0x1ed   :  { %v7652_v8 = vsel %vm6029_vm0, %v7574_v13, 0.0  ;;  %v10701_v1 = vsel %vm6029_vm0, %v10665_v41, 0.0  ;;  %v10290_v57 = vrot.slane %v10283_v44, %v11922_v12  ;;  %v3165_v34 = vadd.f32 %v13906_v3, %v3164_v28 }
 0x1ee   :  { %v9681_v49 = vmul.f32 %v13158_v63, %v14601_v56  ;;  %7653 = vadd.xlane.f32.xlu1 %v7652_v8  ;;  %v11201_v35 = vmul.f32 -1.442695, %v3170_v29  ;;  %10702 = vadd.xlane.f32.xlu0 %v10701_v1  ;;  %v9116_v47 = vmul.f32 %v13980_v4, %v9075_v33  ;;  %v10006_v23 = vrot.slane %v9682_v39, %v11922_v12  ;;  %v19317_v29 = vld [vmem:[#allocation70_spill] sm:$0xff]  ;;  %v3224_v33 = vpop.f32.mrf.mxu1 }
 0x1ef   :  { %v9671_v2 = vmul.f32 %v13158_v63, %v14107_v38  ;;  %v10640_v58 = vsub.f32 %v9648_v53, %v10290_v57  ;;  %v11200_v13 = vmul.f32 -1.442695, %v3165_v34  ;;  %v9672_v36 = vmul.f32 %v13158_v63, %v14124_v9  ;;  %v14642_v38 = vld [vmem:[%s18715_s2 + $0x70] sm:$0x7] }
 0x1f0   :  { %v9992_v25 = vcombine.low %v9680_v19, %v9681_v49  ;;  %11617 = vpow2.f32 %v11201_v35  ;;  %v9162_v48 = vsel %vm6029_vm0, %v9116_v47, 0.0  ;;  %v9673_v4 = vmul.f32 %v13158_v63, %v14127_v21  ;;  %v19318_v35 = vld [vmem:[#allocation68_spill] sm:$0xff] }
 0x1f1   :  { %v14637_v39 = vrot.slane %v13667_v6, %v11922_v12  ;;  %v10681_v53 = vmul.f32 %v14642_v38, %v10640_v58  ;;  %11619 = vpow2.f32 %v11200_v13  ;;  %v9923_v9 = vcombine.low %v9671_v2, %v9672_v36  ;;  %v19319_v58 = vld [vmem:[#allocation69_spill] sm:$0xff] }
 0x1f2   :  { %v9999_v3 = vrot.slane %v9992_v25, %v11922_v12  ;;  %9163 = vadd.xlane.f32.xlu1 %v9162_v48  ;;  %v19316_v10 = vcombine.high %v13667_v6, %v13667_v6  ;;  %v9937_v41 = vrot.slane %v9673_v4, %v11922_v12  ;;  %v14656_v8 = vmul.f32 %v14487_v31, %v19317_v29  ;;  %v14671_v31 = vld [vmem:[%s18714_s1 + $0xb8] sm:$0x7] }
 0x1f3   :  { %v4279_v44 = vcombine.high %v14637_v39, %v14637_v39  ;;  %v10749_v19 = vsel %vm6029_vm0, %v10681_v53, 0.0  ;;  %v9633_v49 = vmul.f32 %v14118_v52, %v19266_v32  ;;  %v9930_v6 = vrot.slane %v9923_v9, %v11922_v12  ;;  %v11670_v52 = vld [vmem:[%s18717_s4] ss:$0 sm:$0xff] }
 0x1f4   :  { %v14649_v28 = vrot.slane %v19316_v10, %v11922_v12  ;;  %v10007_v21 = vcombine.low %v9999_v3, %v10006_v23  ;;  %10750 = vadd.xlane.f32.xlu0 %v10749_v19  ;;  %v9652_v47 = vmul.f32 %v14671_v31, %v19266_v32  ;;  %v3230_v25 = vadd.f32 %v11670_v52, %v11500_v45  ;;  %v14681_v23 = vld [vmem:[%s18715_s2 + $0x64] sm:$0x7] }
 0x1f5   :  { %v14666_v34 = vmul.f32 %v4279_v44, %v19318_v35  ;;  %v9938_v2 = vcombine.low %v9930_v6, %v9937_v41  ;;  %v9730_v36 = vmul.f32 %v13158_v63, %v14656_v8  ;;  %v3225_v48 = vadd.f32 %v11670_v52, %v3224_v33 }
 0x1f6   :  { %v4281_v1 = vcombine.high %v14649_v28, %v14649_v28  ;;  %v10014_v57 = vrot.slane %v10007_v21, %v11922_v12  ;;  %v11213_v53 = vmul.f32 -1.442695, %v3230_v25  ;;  %v9649_v45 = vmul.f32 %v14202_v16, %v19266_v32 }
 0x1f7   :  { %v9728_v4 = vmul.f32 %v13158_v63, %v14666_v34  ;;  %v9945_v9 = vrot.slane %v9938_v2, %v11922_v12  ;;  %v11212_v21 = vmul.f32 -1.442695, %v3225_v48  ;;  %v9719_v41 = vmul.f32 %v13158_v63, %v14176_v51 }
 0x1f8   :  { %v14684_v13 = vmul.f32 %v4281_v1, %v19319_v58  ;;  %v10628_v3 = vsub.f32 %v9636_v27, %v10014_v57  ;;  %11621 = vpow2.f32 %v11213_v53  ;;  %v9720_v27 = vmul.f32 %v13158_v63, %v14182_v5 }
 0x1f9   :  { %v9721_v29 = vmul.f32 %v13158_v63, %v14185_v54  ;;  %v10625_v33 = vsub.f32 %v9633_v49, %v9945_v9  ;;  %v10374_v19 = vrot.slane %v9730_v36, %v11922_v12  ;;  %11623 = vpow2.f32 %v11212_v21 }
 0x1fa   :  { %v9729_v10 = vmul.f32 %v13158_v63, %v14684_v13  ;;  %v10669_v44 = vmul.f32 %v14681_v23, %v10628_v3  ;;  %v10291_v1 = vcombine.low %v9719_v41, %v9720_v27  ;;  %v8177_v51 = vmul.f32 %v13158_v63, %v14402_v26 }
 0x1fb   :  { %v10305_v57 = vrot.slane %v9721_v29, %v11922_v12  ;;  %v10666_v35 = vmul.f32 %v14606_v46, %v10625_v33  ;;  %v8178_v54 = vmul.f32 %v13158_v63, %v14384_v30  ;;  %v8179_v49 = vmul.f32 %v13158_v63, %v14417_v40 }
 0x1fc   :  { %v10360_v16 = vcombine.low %v9728_v4, %v9729_v10  ;;  %v10713_v6 = vsel %vm6029_vm0, %v10669_v44, 0.0  ;;  %v10298_v25 = vrot.slane %v10291_v1, %v11922_v12  ;;  %v8098_v2 = vmul.f32 %v14391_v42, %v19266_v32  ;;  %v14729_v10 = vld [vmem:[%s18715_s2 + $0x74] sm:$0x7] }
 0x1fd   :  { %10714 = vadd.xlane.f32.xlu1 %v10713_v6  ;;  %v11618_v52 = vpop.eup %11617  ;;  %v6568_v26 = vmul.f32 %v13172_v18, %v14598_v61  ;;  %v6569_v46 = vmul.f32 %v13172_v18, %v14601_v56  ;;  %v10704_v36 = vsel %vm6029_vm0, %v10666_v35, 0.0  ;;  %v8829_v30 = vcombine.low %v8177_v51, %v8178_v54 }
 0x1fe   :  { %v10367_v5 = vrot.slane %v10360_v16, %v11922_v12  ;;  %v3316_v58 = vadd.f32 1.0, %v11618_v52  ;;  %v11620_v3 = vpop.eup %11619  ;;  %10705 = vadd.xlane.f32.xlu0 %v10704_v36  ;;  %v10306_v40 = vcombine.low %v10298_v25, %v10305_v57  ;;  %v8843_v4 = vrot.slane %v8179_v49, %v11922_v12 }
 0x1ff   :  { %v6570_v53 = vmul.f32 %v13172_v18, %v14579_v50  ;;  %v6880_v42 = vcombine.low %v6568_v26, %v6569_v46  ;;  %v3315_v9 = vadd.f32 1.0, %v11620_v3  ;;  %v8836_v56 = vrot.slane %v8829_v30, %v11922_v12 }
 0x200   :  { %v10375_v48 = vcombine.low %v10367_v5, %v10374_v19  ;;  %11625 = vrcp.f32 %v3316_v58  ;;  %v10313_v21 = vrot.slane %v10306_v40, %v11922_v12  ;;  %v6524_v41 = vmul.f32 %v14612_v59, %v19265_v20 }
 0x201   :  { %v6887_v44 = vrot.slane %v6880_v42, %v11922_v12  ;;  %v6894_v50 = vrot.slane %v6570_v53, %v11922_v12  ;;  %11627 = vrcp.f32 %v3315_v9  ;;  %v8844_v29 = vcombine.low %v8836_v56, %v8843_v4 }
 0x202   :  { %v10382_v61 = vrot.slane %v10375_v48, %v11922_v12  ;;  %v9683_v33 = vmul.f32 %v13158_v63, %v14460_v60  ;;  %v10641_v16 = vsub.f32 %v9649_v45, %v10313_v21  ;;  %v9684_v6 = vmul.f32 %v13158_v63, %v14463_v24 }
 0x203   :  { %v6895_v19 = vcombine.low %v6887_v44, %v6894_v50  ;;  %v9685_v1 = vmul.f32 %v13158_v63, %v14470_v37  ;;  %v19320_v59 = vcombine.high %v14349_v22, %v14349_v22  ;;  %v8851_v51 = vrot.slane %v8844_v29, %v11922_v12  ;;  %v19325_v50 = vld [vmem:[#allocation173_spill] sm:$0xff] }
 0x204   :  { %v10644_v27 = vsub.f32 %v9652_v47, %v10382_v61  ;;  %v6616_v60 = vmul.f32 %v13172_v18, %v14666_v34  ;;  %v10682_v45 = vmul.f32 %v14642_v38, %v10641_v16  ;;  %v10015_v35 = vcombine.low %v9683_v33, %v9684_v6 }
 0x205   :  { %v14746_v57 = vrot.slane %v19320_v59, %v11922_v12  ;;  %v6902_v24 = vrot.slane %v6895_v19, %v11922_v12  ;;  %v10029_v37 = vrot.slane %v9685_v1, %v11922_v12  ;;  %v11622_v5 = vpop.eup %11621  ;;  %v9091_v22 = vsub.f32 %v8098_v2, %v8851_v51 }
 0x206   :  { %v10685_v47 = vmul.f32 %v14729_v10, %v10644_v27  ;;  %v6617_v49 = vmul.f32 %v13172_v18, %v14684_v13  ;;  %v6618_v52 = vmul.f32 %v13172_v18, %v14656_v8  ;;  %v11624_v25 = vpop.eup %11623  ;;  %v3328_v34 = vadd.f32 1.0, %v11622_v5  ;;  %v19322_v8 = vld [vmem:[#allocation26_spill] sm:$0xff] }
 0x207   :  { %19321 = vst [vmem:[#allocation182_spill] sm:$0xff] %v14746_v57  ;;  %v10752_v38 = vsel %vm6029_vm0, %v10682_v45, 0.0  ;;  %v7516_v26 = vsub.f32 %v6524_v41, %v6902_v24  ;;  %v10022_v46 = vrot.slane %v10015_v35, %v11922_v12  ;;  %v3327_v58 = vadd.f32 1.0, %v11624_v25  ;;  %v19323_v41 = vld [vmem:[#allocation198_spill] sm:$0xff]  ;;  %v14807_v35 = vld [vmem:[%s18714_s1 + $0x30] sm:$0x7] }
 0x208   :  { %v10761_v54 = vsel %vm6029_vm0, %v10685_v47, 0.0  ;;  %10753 = vadd.xlane.f32.xlu0 %v10752_v38  ;;  %v9132_v36 = vmul.f32 %v14028_v14, %v9091_v22  ;;  %v7248_v48 = vcombine.low %v6616_v60, %v6617_v49  ;;  %v7262_v2 = vrot.slane %v6618_v52, %v11922_v12 }
 0x209   :  { %10762 = vadd.xlane.f32.xlu1 %v10761_v54  ;;  %11629 = vrcp.f32 %v3328_v34  ;;  %v7557_v13 = vmul.f32 %v14542_v11, %v7516_v26  ;;  %v9637_v30 = vmul.f32 %v19322_v8, %v19266_v32  ;;  %v10030_v3 = vcombine.low %v10022_v46, %v10029_v37  ;;  %v19329_v26 = vld [vmem:[#allocation44_spill] sm:$0xff] }
 0x20a   :  { %11631 = vrcp.f32 %v3327_v58  ;;  %v9210_v40 = vsel %vm6029_vm0, %v9132_v36, 0.0  ;;  %v7255_v4 = vrot.slane %v7248_v48, %v11922_v12  ;;  %v9731_v53 = vmul.f32 %v13158_v63, %v14502_v62 }
 0x20b   :  { %v7601_v14 = vsel %vm6029_vm0, %v7557_v13, 0.0  ;;  %v10037_v42 = vrot.slane %v10030_v3, %v11922_v12  ;;  %v9732_v9 = vmul.f32 %v13158_v63, %v14505_v0  ;;  %v9733_v61 = vmul.f32 %v13158_v63, %v14517_v55  ;;  %v19331_v13 = vld [vmem:[#allocation48_spill] sm:$0xff] }
 0x20c   :  { %7602 = vadd.xlane.f32.xlu0 %v7601_v14  ;;  %v6540_v56 = vmul.f32 %v14671_v31, %v19265_v20  ;;  %v7263_v21 = vcombine.low %v7255_v4, %v7262_v2  ;;  %v19324_v62 = vcombine.high %v19323_v41, %v19323_v41  ;;  %v3759_v27 = vcombine.high %v19325_v50, %v19325_v50 }
 0x20d   :  { %9211 = vadd.xlane.f32.xlu1 %v9210_v40  ;;  %v11626_v29 = vpop.eup %11625  ;;  %v10629_v33 = vsub.f32 %v9637_v30, %v10037_v42  ;;  %v9653_v0 = vmul.f32 %v14510_v15, %v19266_v32  ;;  %v10383_v16 = vcombine.low %v9731_v53, %v9732_v9  ;;  %v10397_v55 = vrot.slane %v9733_v61, %v11922_v12  ;;  %v19332_v30 = vld [vmem:[#allocation49_spill] sm:$0xff] }
 0x20e   :  { %v3611_v44 = vrot.slane %v19324_v62, %v11922_v12  ;;  %v3940_v19 = vcombine.high %v11626_v29, %v11626_v29  ;;  %v14789_v31 = vrot.slane %v11626_v29, %v11922_v12  ;;  %v7270_v6 = vrot.slane %v7263_v21, %v11922_v12  ;;  %v11628_v59 = vpop.eup %11627  ;;  %v19334_v9 = vld [vmem:[#allocation81_spill] sm:$0xff]  ;;  %v19351_v21 = vld [vmem:[#allocation102_spill] sm:$0xff] }
 0x20f   :  { %v10670_v47 = vmul.f32 %v14681_v23, %v10629_v33  ;;  %v10390_v51 = vrot.slane %v10383_v16, %v11922_v12  ;;  %v14797_v15 = vrot.slane %v19325_v50, %v11922_v12  ;;  %v14811_v37 = vmul.f32 %v14807_v35, %v19265_v20  ;;  %v19337_v16 = vld [vmem:[#allocation85_spill] sm:$0xff] }
 0x210   :  { %19326 = vst [vmem:[#allocation27_spill] sm:$0xff] %v14789_v31  ;;  %v3613_v1 = vcombine.high %v3611_v44, %v3611_v44  ;;  %v3627_v60 = vrot.slane %v3611_v44, %v11922_v12  ;;  %v14800_v45 = vrot.slane %v3940_v19, %v11922_v12  ;;  %v3781_v5 = vrot.slane %v3759_v27, %v11922_v12  ;;  %v19335_v44 = vld [vmem:[#allocation84_spill] sm:$0xff] }
 0x211   :  { %v3891_v54 = vcombine.high %v11628_v59, %v11628_v59  ;;  %v10716_v22 = vsel %vm6029_vm0, %v10670_v47, 0.0  ;;  %v7532_v49 = vsub.f32 %v6540_v56, %v7270_v6  ;;  %v10398_v52 = vcombine.low %v10390_v51, %v10397_v55 }
 0x212   :  { %19327 = vst [vmem:[#allocation28_spill] sm:$0xff] %v14800_v45  ;;  %v14817_v25 = vrot.slane %v14789_v31, %v11922_v12  ;;  %10717 = vadd.xlane.f32.xlu1 %v10716_v22  ;;  %v14820_v34 = vrot.slane %v3613_v1, %v11922_v12  ;;  %v3643_v38 = vcombine.high %v3627_v60, %v3627_v60  ;;  %v19350_v22 = vld [vmem:[#allocation65_spill] sm:$0xff]  ;;  %v19390_v45 = vld [vmem:[#allocation104_spill] sm:$0xff] }
 0x213   :  { %v14823_v46 = vmul.f32 %v3627_v60, %v19329_v26  ;;  %v14826_v58 = vrot.slane %v11628_v59, %v11922_v12  ;;  %v7573_v36 = vmul.f32 %v14588_v7, %v7532_v49  ;;  %v10405_v48 = vrot.slane %v10398_v52, %v11922_v12 }
 0x214   :  { %19328 = vst [vmem:[#allocation6_spill] sm:$0xff] %v14817_v25  ;;  %v3789_v2 = vcombine.high %v14797_v15, %v14797_v15  ;;  %v14834_v8 = vmul.f32 %v14820_v34, %v19331_v13  ;;  %v14837_v3 = vmul.f32 %v3643_v38, %v19332_v30  ;;  %v3791_v4 = vcombine.high %v3781_v5, %v3781_v5  ;;  %v19344_v30 = vld [vmem:[#allocation175_spill] sm:$0xff]  ;;  %v19385_v25 = vld [vmem:[#allocation101_spill] sm:$0xff] }
 0x215   :  { %19330 = vst [vmem:[#allocation12_spill] sm:$0xff] %v14826_v58  ;;  %v6562_v40 = vmul.f32 %v13172_v18, %v14823_v46  ;;  %v14842_v53 = vrot.slane %v3891_v54, %v11922_v12  ;;  %v7649_v14 = vsel %vm6029_vm0, %v7573_v36, 0.0  ;;  %v10645_v42 = vsub.f32 %v9653_v0, %v10405_v48  ;;  %v19342_v48 = vld [vmem:[#allocation195_spill] sm:$0xff] }
 0x216   :  { %v14846_v61 = vmul.f32 %v3781_v5, %v19334_v9  ;;  %v11630_v56 = vpop.eup %11629  ;;  %7650 = vadd.xlane.f32.xlu0 %v7649_v14  ;;  %v6563_v41 = vmul.f32 %v13172_v18, %v14834_v8  ;;  %v6564_v62 = vmul.f32 %v13172_v18, %v14837_v3  ;;  %v14855_v50 = vmul.f32 %v3789_v2, %v19335_v44  ;;  %v14877_v5 = vld [vmem:[%s18714_s1 + $0x4c] sm:$0x7] }
 0x217   :  { %19333 = vst [vmem:[#allocation189_spill] sm:$0xff] %v14842_v53  ;;  %v11632_v27 = vpop.eup %11631  ;;  %v4528_v29 = vcombine.high %v11630_v56, %v11630_v56  ;;  %v14858_v33 = vrot.slane %v11630_v56, %v11922_v12  ;;  %v10686_v0 = vmul.f32 %v14729_v10, %v10645_v42  ;;  %v14862_v55 = vmul.f32 %v3791_v4, %v19337_v16  ;;  %v14904_v42 = vld [vmem:[%s18714_s1 + $0xb0] sm:$0x7] }
 0x218   :  { %v4479_v19 = vcombine.high %v11632_v27, %v11632_v27  ;;  %v6834_v6 = vcombine.low %v6562_v40, %v6563_v41  ;;  %v6848_v1 = vrot.slane %v6564_v62, %v11922_v12  ;;  %v5030_v59 = vmul.f32 %v13172_v18, %v14846_v61 }
 0x219   :  { %19336 = vst [vmem:[#allocation9_spill] sm:$0xff] %v14858_v33  ;;  %v14868_v47 = vrot.slane %v4528_v29, %v11922_v12  ;;  %v14871_v51 = vrot.slane %v11632_v27, %v11922_v12  ;;  %v10764_v60 = vsel %vm6029_vm0, %v10686_v0, 0.0  ;;  %v4975_v54 = vmul.f32 %v14877_v5, %v19265_v20 }
 0x21a   :  { %v14885_v49 = vrot.slane %v14858_v33, %v11922_v12  ;;  %10765 = vadd.xlane.f32.xlu1 %v10764_v60  ;;  %v6841_v52 = vrot.slane %v6834_v6, %v11922_v12  ;;  %v5031_v38 = vmul.f32 %v13172_v18, %v14855_v50  ;;  %v14891_v26 = vrot.slane %v4479_v19, %v11922_v12  ;;  %v14924_v19 = vld [vmem:[%s18714_s1 + $0xcc] sm:$0x7]  ;;  %v19346_v60 = vld [vmem:[#allocation60_spill] sm:$0xff] }
 0x21b   :  { %19338 = vst [vmem:[#allocation183_spill] sm:$0xff] %v14868_v47  ;;  %19339 = vst [vmem:[#allocation34_spill] sm:$0xff] %v14871_v51  ;;  %v5032_v36 = vmul.f32 %v13172_v18, %v14862_v55  ;;  %v19343_v2 = vcombine.high %v19342_v48, %v19342_v48  ;;  %v4347_v40 = vcombine.high %v19344_v30, %v19344_v30 }
 0x21c   :  { %19340 = vst [vmem:[#allocation35_spill] sm:$0xff] %v14885_v49  ;;  %19341 = vst [vmem:[#allocation36_spill] sm:$0xff] %v14891_v26  ;;  %v6849_v4 = vcombine.low %v6841_v52, %v6848_v1  ;;  %v5442_v14 = vcombine.low %v5030_v59, %v5031_v38  ;;  %v14908_v9 = vmul.f32 %v14904_v42, %v19265_v20 }
 0x21d   :  { %v4199_v13 = vrot.slane %v19343_v2, %v11922_v12  ;;  %v14912_v56 = vrot.slane %v19344_v30, %v11922_v12  ;;  %v5456_v41 = vrot.slane %v5032_v36, %v11922_v12  ;;  %v4369_v27 = vrot.slane %v4347_v40, %v11922_v12  ;;  %v19347_v2 = vld [vmem:[#allocation99_spill] sm:$0xff]  ;;  %v19348_v30 = vld [vmem:[#allocation100_spill] sm:$0xff] }
 0x21e   :  { %v6856_v29 = vrot.slane %v6849_v4, %v11922_v12  ;;  %v5449_v0 = vrot.slane %v5442_v14, %v11922_v12  ;;  %v4991_v6 = vmul.f32 %v14924_v19, %v19265_v20  ;;  %v19349_v4 = vld [vmem:[#allocation64_spill] sm:$0xff] }
 0x21f   :  { %19345 = vst [vmem:[#allocation185_spill] sm:$0xff] %v14912_v56  ;;  %v4201_v62 = vcombine.high %v4199_v13, %v4199_v13  ;;  %v4215_v44 = vrot.slane %v4199_v13, %v11922_v12  ;;  %v4377_v16 = vcombine.high %v14912_v56, %v14912_v56  ;;  %v4379_v38 = vcombine.high %v4369_v27, %v4369_v27 }
 0x220   :  { %v7514_v36 = vsub.f32 %v14811_v37, %v6856_v29  ;;  %v5457_v48 = vcombine.low %v5449_v0, %v5456_v41  ;;  %v14934_v13 = vmul.f32 %v4369_v27, %v19347_v2 }
 0x221   :  { %v14929_v1 = vrot.slane %v4201_v62, %v11922_v12  ;;  %v4231_v59 = vcombine.high %v4215_v44, %v4215_v44  ;;  %v4901_v52 = vmul.f32 %v4215_v44, %v19346_v60  ;;  %v14937_v40 = vmul.f32 %v4377_v16, %v19348_v30 }
 0x222   :  { %v14944_v26 = vmul.f32 %v4379_v38, %v19351_v21  ;;  %v7555_v44 = vmul.f32 %v14542_v11, %v7514_v36  ;;  %v5464_v37 = vrot.slane %v5457_v48, %v11922_v12  ;;  %v5078_v41 = vmul.f32 %v13172_v18, %v14934_v13  ;;  %v14964_v36 = vld [vmem:[%s18715_s2 + $0x8] sm:$0x7] }
 0x223   :  { %v4902_v14 = vmul.f32 %v14929_v1, %v19349_v4  ;;  %v4903_v24 = vmul.f32 %v4231_v59, %v19350_v22  ;;  %v6610_v62 = vmul.f32 %v13172_v18, %v4901_v52  ;;  %v5079_v27 = vmul.f32 %v13172_v18, %v14937_v40 }
 0x224   :  { %v5080_v22 = vmul.f32 %v13172_v18, %v14944_v26  ;;  %v9674_v21 = vmul.f32 %v13158_v63, %v14823_v46  ;;  %v7595_v16 = vsel %vm6029_vm0, %v7555_v44, 0.0  ;;  %v5968_v59 = vsub.f32 %v4975_v54, %v5464_v37 }
 0x225   :  { %v6611_v29 = vmul.f32 %v13172_v18, %v4902_v14  ;;  %v6612_v0 = vmul.f32 %v13172_v18, %v4903_v24  ;;  %v5810_v60 = vcombine.low %v5078_v41, %v5079_v27  ;;  %v9675_v38 = vmul.f32 %v13158_v63, %v14834_v8  ;;  %7596 = vadd.xlane.f32.xlu0 %v7595_v16 }
 0x226   :  { %v5824_v30 = vrot.slane %v5080_v22, %v11922_v12  ;;  %v9676_v46 = vmul.f32 %v13158_v63, %v14837_v3  ;;  %v6008_v54 = vmul.f32 %v14964_v36, %v5968_v59  ;;  %v9634_v8 = vmul.f32 %v14807_v35, %v19266_v32 }
 0x227   :  { %v7202_v48 = vcombine.low %v6610_v62, %v6611_v29  ;;  %v7216_v2 = vrot.slane %v6612_v0, %v11922_v12  ;;  %v5817_v4 = vrot.slane %v5810_v60, %v11922_v12  ;;  %v9946_v44 = vcombine.low %v9674_v21, %v9675_v38 }
 0x228   :  { %v9960_v41 = vrot.slane %v9676_v46, %v11922_v12  ;;  %v8141_v62 = vmul.f32 %v13158_v63, %v14846_v61  ;;  %v8142_v27 = vmul.f32 %v13158_v63, %v14855_v50  ;;  %v6063_v3 = vsel %vm6029_vm0, %v6008_v54, 0.0  ;;  %v19352_v54 = vld [vmem:[#allocation51_spill] sm:$0xff] }
 0x229   :  { %v7209_v37 = vrot.slane %v7202_v48, %v11922_v12  ;;  %v5825_v29 = vcombine.low %v5817_v4, %v5824_v30  ;;  %v9953_v0 = vrot.slane %v9946_v44, %v11922_v12  ;;  %v8143_v22 = vmul.f32 %v13158_v63, %v14862_v55  ;;  %6064 = vadd.xlane.f32.xlu1 %v6063_v3 }
 0x22a   :  { %v8086_v21 = vmul.f32 %v14877_v5, %v19266_v32  ;;  %v8553_v16 = vcombine.low %v8141_v62, %v8142_v27  ;;  %v9722_v59 = vmul.f32 %v13158_v63, %v4901_v52  ;;  %v9723_v38 = vmul.f32 %v13158_v63, %v4902_v14  ;;  %v15004_v14 = vld [vmem:[%s18715_s2 + $0x18] sm:$0x7] }
 0x22b   :  { %v7217_v35 = vcombine.low %v7209_v37, %v7216_v2  ;;  %v5832_v61 = vrot.slane %v5825_v29, %v11922_v12  ;;  %v9961_v60 = vcombine.low %v9953_v0, %v9960_v41  ;;  %v8567_v50 = vrot.slane %v8143_v22, %v11922_v12  ;;  %v19353_v41 = vld [vmem:[#allocation45_spill] sm:$0xff] }
 0x22c   :  { %v8560_v30 = vrot.slane %v8553_v16, %v11922_v12  ;;  %v9724_v55 = vmul.f32 %v13158_v63, %v4903_v24  ;;  %v3645_v2 = vcombine.high %v14820_v34, %v14820_v34  ;;  %v10314_v52 = vcombine.low %v9722_v59, %v9723_v38 }
 0x22d   :  { %v7224_v48 = vrot.slane %v7217_v35, %v11922_v12  ;;  %v5984_v5 = vsub.f32 %v4991_v6, %v5832_v61  ;;  %v9968_v46 = vrot.slane %v9961_v60, %v11922_v12  ;;  %v14998_v4 = vmul.f32 %v14567_v17, %v19352_v54  ;;  %v19354_v17 = vld [vmem:[#allocation50_spill] sm:$0xff]  ;;  %v15030_v60 = vld [vmem:[%s18714_s1 + $0x34] sm:$0x7] }
 0x22e   :  { %v8568_v37 = vcombine.low %v8560_v30, %v8567_v50  ;;  %v10328_v24 = vrot.slane %v9724_v55, %v11922_v12  ;;  %v15008_v34 = vmul.f32 %v3645_v2, %v19353_v41  ;;  %v10321_v27 = vrot.slane %v10314_v52, %v11922_v12 }
 0x22f   :  { %v7530_v44 = vsub.f32 %v14908_v9, %v7224_v48  ;;  %v6024_v6 = vmul.f32 %v15004_v14, %v5984_v5  ;;  %v10626_v62 = vsub.f32 %v9634_v8, %v9968_v46  ;;  %v15014_v3 = vmul.f32 %v14573_v43, %v19354_v17  ;;  %v15040_v48 = vld [vmem:[%s18715_s2 + $0x48] sm:$0x7] }
 0x230   :  { %v8575_v29 = vrot.slane %v8568_v37, %v11922_v12  ;;  %v9650_v0 = vmul.f32 %v14904_v42, %v19266_v32  ;;  %v6565_v22 = vmul.f32 %v13172_v18, %v15008_v34  ;;  %v10329_v16 = vcombine.low %v10321_v27, %v10328_v24  ;;  %v19355_v24 = vld [vmem:[#allocation67_spill] sm:$0xff]  ;;  %v19356_v27 = vld [vmem:[#allocation66_spill] sm:$0xff] }
 0x231   :  { %v7571_v9 = vmul.f32 %v14588_v7, %v7530_v44  ;;  %v6111_v35 = vsel %vm6029_vm0, %v6024_v6, 0.0  ;;  %v10667_v8 = vmul.f32 %v14681_v23, %v10626_v62  ;;  %v6566_v59 = vmul.f32 %v13172_v18, %v14998_v4 }
 0x232   :  { %6112 = vadd.xlane.f32.xlu1 %v6111_v35  ;;  %v9079_v61 = vsub.f32 %v8086_v21, %v8575_v29  ;;  %v6523_v42 = vmul.f32 %v15030_v60, %v19265_v20  ;;  %v6567_v50 = vmul.f32 %v13172_v18, %v15014_v3  ;;  %v10336_v21 = vrot.slane %v10329_v16, %v11922_v12  ;;  %v19358_v16 = vld [vmem:[#allocation7_spill] sm:$0xff] }
 0x233   :  { %v7643_v43 = vsel %vm6029_vm0, %v7571_v9, 0.0  ;;  %v10707_v38 = vsel %vm6029_vm0, %v10667_v8, 0.0  ;;  %v6857_v30 = vcombine.low %v6565_v22, %v6566_v59  ;;  %v8189_v55 = vmul.f32 %v13158_v63, %v14934_v13  ;;  %v19357_v9 = vld [vmem:[#allocation61_spill] sm:$0xff] }
 0x234   :  { %7644 = vadd.xlane.f32.xlu0 %v7643_v43  ;;  %v9120_v2 = vmul.f32 %v15040_v48, %v9079_v61  ;;  %v6871_v5 = vrot.slane %v6567_v50, %v11922_v12  ;;  %v8190_v46 = vmul.f32 %v13158_v63, %v14937_v40  ;;  %v8191_v52 = vmul.f32 %v13158_v63, %v14944_v26  ;;  %v15083_v50 = vld [vmem:[%s18714_s1 + $0xb4] sm:$0x7] }
 0x235   :  { %v10642_v54 = vsub.f32 %v9650_v0, %v10336_v21  ;;  %v6864_v44 = vrot.slane %v6857_v30, %v11922_v12  ;;  %v4233_v37 = vcombine.high %v14929_v1, %v14929_v1  ;;  %v15056_v41 = vmul.f32 %v14637_v39, %v19355_v24 }
 0x236   :  { %v9174_v13 = vsel %vm6029_vm0, %v9120_v2, 0.0  ;;  %v8921_v6 = vcombine.low %v8189_v55, %v8190_v46  ;;  %v8935_v62 = vrot.slane %v8191_v52, %v11922_v12  ;;  %v15062_v40 = vmul.f32 %v14649_v28, %v19356_v27  ;;  %v19359_v52 = vld [vmem:[#allocation74_spill] sm:$0xff]  ;;  %v19361_v27 = vld [vmem:[#allocation77_spill] sm:$0xff] }
 0x237   :  { %9175 = vadd.xlane.f32.xlu1 %v9174_v13  ;;  %v10683_v26 = vmul.f32 %v14729_v10, %v10642_v54  ;;  %v6872_v17 = vcombine.low %v6864_v44, %v6871_v5  ;;  %v4904_v1 = vmul.f32 %v4233_v37, %v19357_v9  ;;  %v6614_v0 = vmul.f32 %v13172_v18, %v15056_v41  ;;  %v15118_v9 = vld [vmem:[%s18715_s2 + $0x58] sm:$0x7] }
 0x238   :  { %10708 = vadd.xlane.f32.xlu0 %v10707_v38  ;;  %v8928_v29 = vrot.slane %v8921_v6, %v11922_v12  ;;  %v6615_v22 = vmul.f32 %v13172_v18, %v15062_v40  ;;  %v8102_v35 = vmul.f32 %v14924_v19, %v19266_v32  ;;  %v3710_v59 = vcombine.high %v19358_v16, %v19358_v16 }
 0x239   :  { %v6879_v28 = vrot.slane %v6872_v17, %v11922_v12  ;;  %v6613_v8 = vmul.f32 %v13172_v18, %v4904_v1  ;;  %v10755_v43 = vsel %vm6029_vm0, %v10683_v26, 0.0  ;;  %v6539_v38 = vmul.f32 %v15083_v50, %v19265_v20 }
 0x23a   :  { %v8936_v61 = vcombine.low %v8928_v29, %v8935_v62  ;;  %v3718_v21 = vrot.slane %v19358_v16, %v11922_v12  ;;  %v7239_v55 = vrot.slane %v6615_v22, %v11922_v12  ;;  %v15091_v2 = vrot.slane %v3710_v59, %v11922_v12 }
 0x23b   :  { %v7515_v19 = vsub.f32 %v6523_v42, %v6879_v28  ;;  %v7225_v30 = vcombine.low %v6613_v8, %v6614_v0  ;;  %v9677_v44 = vmul.f32 %v13158_v63, %v15008_v34  ;;  %v19360_v42 = vld [vmem:[#allocation76_spill] sm:$0xff]  ;;  %v9678_v6 = vmul.f32 %v13158_v63, %v14998_v4 }
 0x23c   :  { %10756 = vadd.xlane.f32.xlu0 %v10755_v43  ;;  %v8943_v5 = vrot.slane %v8936_v61, %v11922_v12  ;;  %v3740_v46 = vcombine.high %v3718_v21, %v3718_v21  ;;  %v15095_v54 = vmul.f32 %v3718_v21, %v19359_v52  ;;  %v15103_v13 = vmul.f32 %v15091_v2, %v19360_v42  ;;  %v19363_v42 = vld [vmem:[#allocation90_spill] sm:$0xff] }
 0x23d   :  { %v7556_v37 = vmul.f32 %v14542_v11, %v7515_v19  ;;  %v7232_v24 = vrot.slane %v7225_v30, %v11922_v12  ;;  %v9679_v34 = vmul.f32 %v13158_v63, %v15014_v3  ;;  %v9969_v0 = vcombine.low %v9677_v44, %v9678_v6 }
 0x23e   :  { %v9095_v62 = vsub.f32 %v8102_v35, %v8943_v5  ;;  %v15108_v26 = vmul.f32 %v3740_v46, %v19361_v27  ;;  %v5021_v17 = vmul.f32 %v13172_v18, %v15095_v54  ;;  %v5022_v4 = vmul.f32 %v13172_v18, %v15103_v13  ;;  %v19362_v35 = vld [vmem:[#allocation5_spill] sm:$0xff] }
 0x23f   :  { %v7598_v11 = vsel %vm6029_vm0, %v7556_v37, 0.0  ;;  %v7240_v29 = vcombine.low %v7232_v24, %v7239_v55  ;;  %v9983_v3 = vrot.slane %v9679_v34, %v11922_v12  ;;  %v4298_v8 = vcombine.high %v19362_v35, %v19362_v35  ;;  %v15143_v37 = vld [vmem:[%s18714_s1 + $0x40] sm:$0x7] }
 0x240   :  { %7599 = vadd.xlane.f32.xlu1 %v7598_v11  ;;  %v9136_v22 = vmul.f32 %v15118_v9, %v9095_v62  ;;  %v5023_v28 = vmul.f32 %v13172_v18, %v15108_v26  ;;  %v5373_v59 = vcombine.low %v5021_v17, %v5022_v4  ;;  %v9976_v43 = vrot.slane %v9969_v0, %v11922_v12  ;;  %v19365_v11 = vld [vmem:[#allocation93_spill] sm:$0xff] }
 0x241   :  { %v7247_v16 = vrot.slane %v7240_v29, %v11922_v12  ;;  %v4306_v61 = vrot.slane %v19362_v35, %v11922_v12  ;;  %v9635_v30 = vmul.f32 %v15030_v60, %v19266_v32  ;;  %v15137_v55 = vrot.slane %v4298_v8, %v11922_v12  ;;  %v19364_v60 = vld [vmem:[#allocation92_spill] sm:$0xff]  ;;  %v15175_v8 = vld [vmem:[%s18714_s1 + $0xc0] sm:$0x7] }
 0x242   :  { %v9222_v21 = vsel %vm6029_vm0, %v9136_v22, 0.0  ;;  %v5387_v19 = vrot.slane %v5023_v28, %v11922_v12  ;;  %v5380_v46 = vrot.slane %v5373_v59, %v11922_v12  ;;  %v9984_v52 = vcombine.low %v9976_v43, %v9983_v3 }
 0x243   :  { %9223 = vadd.xlane.f32.xlu0 %v9222_v21  ;;  %v7531_v5 = vsub.f32 %v6539_v38, %v7247_v16  ;;  %v4328_v44 = vcombine.high %v4306_v61, %v4306_v61  ;;  %v4972_v24 = vmul.f32 %v15143_v37, %v19265_v20  ;;  %v15148_v6 = vmul.f32 %v4306_v61, %v19363_v42  ;;  %v19368_v42 = vld [vmem:[#allocation184_spill] sm:$0xff] }
 0x244   :  { %v15152_v62 = vmul.f32 %v15137_v55, %v19364_v60  ;;  %v9725_v38 = vmul.f32 %v13158_v63, %v4904_v1  ;;  %v5388_v17 = vcombine.low %v5380_v46, %v5387_v19  ;;  %v9991_v34 = vrot.slane %v9984_v52, %v11922_v12  ;;  %v19366_v19 = vld [vmem:[#allocation196_spill] sm:$0xff] }
 0x245   :  { %v7572_v27 = vmul.f32 %v14588_v7, %v7531_v5  ;;  %v15158_v29 = vmul.f32 %v4328_v44, %v19365_v11  ;;  %v5069_v4 = vmul.f32 %v13172_v18, %v15148_v6  ;;  %v9726_v22 = vmul.f32 %v13158_v63, %v15056_v41 }
 0x246   :  { %v5070_v0 = vmul.f32 %v13172_v18, %v15152_v62  ;;  %v9727_v1 = vmul.f32 %v13158_v63, %v15062_v40  ;;  %v5395_v28 = vrot.slane %v5388_v17, %v11922_v12  ;;  %v10627_v3 = vsub.f32 %v9635_v30, %v9991_v34 }
 0x247   :  { %v7646_v7 = vsel %vm6029_vm0, %v7572_v27, 0.0  ;;  %v5071_v35 = vmul.f32 %v13172_v18, %v15158_v29  ;;  %v4988_v41 = vmul.f32 %v15175_v8, %v19265_v20  ;;  %v10337_v59 = vcombine.low %v9725_v38, %v9726_v22 }
 0x248   :  { %7647 = vadd.xlane.f32.xlu1 %v7646_v7  ;;  %v5741_v16 = vcombine.low %v5069_v4, %v5070_v0  ;;  %v10351_v40 = vrot.slane %v9727_v1, %v11922_v12  ;;  %v5965_v43 = vsub.f32 %v4972_v24, %v5395_v28  ;;  %v10668_v61 = vmul.f32 %v14681_v23, %v10627_v3  ;;  %v15197_v4 = vpop.xlane.xlu1 %6040  ;;  %v15203_v1 = vpop.xlane.xlu0 %9199  ;;  %v19371_v3 = vld [vmem:[#allocation86_spill] sm:$0xff] }
 0x249   :  { %v5755_v21 = vrot.slane %v5071_v35, %v11922_v12  ;;  %v19367_v30 = vcombine.high %v19366_v19, %v19366_v19  ;;  %v9651_v52 = vmul.f32 %v15083_v50, %v19266_v32  ;;  %v10344_v44 = vrot.slane %v10337_v59, %v11922_v12  ;;  %19370 = vst [vmem:[#allocation29_spill] sm:$0xff] %v15203_v1  ;;  %v19373_v19 = vld [vmem:[#allocation88_spill] sm:$0xff] }
 0x24a   :  { %v5748_v46 = vrot.slane %v5741_v16, %v11922_v12  ;;  %v19369_v24 = vcombine.high %v19368_v42, %v19368_v42  ;;  %v6005_v23 = vmul.f32 %v14964_v36, %v5965_v43  ;;  %v10710_v38 = vsel %vm6029_vm0, %v10668_v61, 0.0  ;;  %v19372_v61 = vld [vmem:[#allocation87_spill] sm:$0xff] }
 0x24b   :  { %v3758_v5 = vrot.slane %v19367_v30, %v11922_v12  ;;  %v10352_v11 = vcombine.low %v10344_v44, %v10351_v40  ;;  %v3742_v43 = vcombine.high %v15091_v2, %v15091_v2  ;;  %v19376_v2 = vld [vmem:[#allocation79_spill] sm:$0xff]  ;;  %v8134_v58 = vmul.f32 %v13158_v63, %v15108_v26 }
 0x24c   :  { %v3709_v60 = vrot.slane %v19369_v24, %v11922_v12  ;;  %10711 = vadd.xlane.f32.xlu1 %v10710_v38  ;;  %v5756_v34 = vcombine.low %v5748_v46, %v5755_v21  ;;  %v6054_v22 = vsel %vm6029_vm0, %v6005_v23, 0.0  ;;  %v19374_v46 = vld [vmem:[#allocation78_spill] sm:$0xff]  ;;  %v8181_v57 = vmul.f32 %v13158_v63, %v15152_v62 }
 0x24d   :  { %v3760_v27 = vcombine.high %v3758_v5, %v3758_v5  ;;  %v3774_v17 = vrot.slane %v3758_v5, %v11922_v12  ;;  %6055 = vadd.xlane.f32.xlu0 %v6054_v22  ;;  %v10359_v59 = vrot.slane %v10352_v11, %v11922_v12 }
 0x24e   :  { %v3711_v50 = vcombine.high %v3709_v60, %v3709_v60  ;;  %v15200_v0 = vrot.slane %v3709_v60, %v11922_v12  ;;  %v5763_v16 = vrot.slane %v5756_v34, %v11922_v12  ;;  %v19375_v60 = vld [vmem:[#allocation75_spill] sm:$0xff] }
 0x24f   :  { %v15206_v7 = vrot.slane %v3760_v27, %v11922_v12  ;;  %v3790_v28 = vcombine.high %v3774_v17, %v3774_v17  ;;  %v15209_v35 = vmul.f32 %v3774_v17, %v19371_v3  ;;  %v10643_v24 = vsub.f32 %v9651_v52, %v10359_v59 }
 0x250   :  { %v15214_v40 = vrot.slane %v3711_v50, %v11922_v12  ;;  %v15229_v44 = vmul.f32 %v15200_v0, %v19374_v46  ;;  %v5981_v42 = vsub.f32 %v4988_v41, %v5763_v16  ;;  %v15232_v23 = vmul.f32 %v3742_v43, %v19375_v60  ;;  %v15263_v16 = vld [vmem:[%s18714_s1 + $0x50] sm:$0x7] }
 0x251   :  { %v15220_v21 = vmul.f32 %v15206_v7, %v19372_v61  ;;  %v15223_v30 = vmul.f32 %v3790_v28, %v19373_v19  ;;  %v6574_v5 = vmul.f32 %v13172_v18, %v15209_v35  ;;  %v15240_v27 = vsel %vm6029_vm0, %v15203_v1, inf  ;;  %v15254_v28 = vpop.xlane.xlu1 %6088  ;;  %v15268_v61 = vpop.xlane.xlu0 %6031 }
 0x252   :  { %v15236_v38 = vmul.f32 %v15214_v40, %v19376_v2  ;;  %19377 = vst [vmem:[#allocation31_spill] sm:$0xff] %v15240_v27  ;;  %v5025_v41 = vmul.f32 %v13172_v18, %v15229_v44  ;;  %v6021_v52 = vmul.f32 %v15004_v14, %v5981_v42  ;;  %v10684_v11 = vmul.f32 %v14729_v10, %v10643_v24  ;;  %v15277_v2 = vld [vmem:[%s18714_s1 + $0x44] sm:$0x7]  ;;  %v19391_v27 = vld [vmem:[#allocation95_spill] sm:$0xff] }
 0x253   :  { %v6575_v17 = vmul.f32 %v13172_v18, %v15220_v21  ;;  %v6576_v34 = vmul.f32 %v13172_v18, %v15223_v30  ;;  %v5024_v50 = vmul.f32 %v13172_v18, %v15232_v23  ;;  %19378 = vst [vmem:[#allocation32_spill] sm:$0xff] %v15254_v28  ;;  %v15258_v3 = vsel %vm6029_vm0, %v15197_v4, -inf }
 0x254   :  { %v5026_v22 = vmul.f32 %v13172_v18, %v15236_v38  ;;  %v6526_v10 = vmul.f32 %v15263_v16, %v19265_v20  ;;  %v6102_v19 = vsel %vm6029_vm0, %v6021_v52, 0.0  ;;  %v10758_v46 = vsel %vm6029_vm0, %v10684_v11, 0.0 }
 0x255   :  { %v6926_v59 = vcombine.low %v6574_v5, %v6575_v17  ;;  %v6940_v43 = vrot.slane %v6576_v34, %v11922_v12  ;;  %v5396_v42 = vcombine.low %v5024_v50, %v5025_v41  ;;  %6103 = vadd.xlane.f32.xlu0 %v6102_v19  ;;  %10759 = vadd.xlane.f32.xlu1 %v10758_v46  ;;  %v15283_v17 = vsel %vm6029_vm0, %v15254_v28, -inf  ;;  %v19380_v34 = vld [vmem:[#allocation194_spill] sm:$0xff]  ;;  %v15323_v47 = vpop.xlane.xlu1 %9151 }
 0x256   :  { %v5410_v24 = vrot.slane %v5026_v22, %v11922_v12  ;;  %v4973_v5 = vmul.f32 %v15277_v2, %v19265_v20  ;;  %19379 = vst [vmem:[#allocation186_spill] sm:$0xff] %v15283_v17  ;;  %v19381_v41 = vcombine.high %v19380_v34, %v19380_v34  ;;  %v15292_v50 = vsel %vm6029_vm0, %v15268_v61, -inf  ;;  %v19382_v22 = vld [vmem:[#allocation174_spill] sm:$0xff]  ;;  %19386 = vst [vmem:[#allocation190_spill] sm:$0xff] %v15323_v47 }
 0x257   :  { %v6933_v60 = vrot.slane %v6926_v59, %v11922_v12  ;;  %v5403_v11 = vrot.slane %v5396_v42, %v11922_v12  ;;  %v19383_v59 = vcombine.high %v19382_v22, %v19382_v22  ;;  %v4330_v46 = vcombine.high %v15137_v55, %v15137_v55  ;;  %v15304_v42 = vld [vmem:[%s18714_s1 + $0xd0] sm:$0x7] }
 0x258   :  { %v4346_v52 = vrot.slane %v19381_v41, %v11922_v12  ;;  %v15308_v34 = vmul.f32 %v15304_v42, %v19265_v20 }
 0x259   :  { %v4297_v19 = vrot.slane %v19383_v59, %v11922_v12  ;;  %v6941_v39 = vcombine.low %v6933_v60, %v6940_v43  ;;  %v5411_v41 = vcombine.low %v5403_v11, %v5410_v24  ;;  %v19384_v59 = vld [vmem:[#allocation91_spill] sm:$0xff]  ;;  %v15328_v24 = vld [vmem:[%s18715_s2 + $0x28] sm:$0x7]  ;;  %v15384_v26 = vpop.xlane.xlu1 %6082 }
 0x25a   :  { %v4348_v53 = vcombine.high %v4346_v52, %v4346_v52  ;;  %v4362_v49 = vrot.slane %v4346_v52, %v11922_v12  ;;  %v15314_v55 = vmul.f32 %v4330_v46, %v19384_v59  ;;  %v19389_v46 = vld [vmem:[#allocation103_spill] sm:$0xff]  ;;  %19394 = vst [vmem:[#allocation187_spill] sm:$0xff] %v15384_v26 }
 0x25b   :  { %v4299_v33 = vcombine.high %v4297_v19, %v4297_v19  ;;  %v15311_v22 = vrot.slane %v4297_v19, %v11922_v12  ;;  %v6948_v43 = vrot.slane %v6941_v39, %v11922_v12  ;;  %v5418_v11 = vrot.slane %v5411_v41, %v11922_v12  ;;  %v19388_v39 = vld [vmem:[#allocation94_spill] sm:$0xff] }
 0x25c   :  { %v15318_v60 = vrot.slane %v4348_v53, %v11922_v12  ;;  %v4378_v52 = vcombine.high %v4362_v49, %v4362_v49  ;;  %v15321_v31 = vmul.f32 %v4362_v49, %v19385_v25  ;;  %v5072_v25 = vmul.f32 %v13172_v18, %v15314_v55 }
 0x25d   :  { %v15332_v19 = vrot.slane %v4299_v33, %v11922_v12  ;;  %v15336_v53 = vmul.f32 %v15311_v22, %v19388_v39  ;;  %v7518_v49 = vsub.f32 %v6526_v10, %v6948_v43  ;;  %v5966_v33 = vsub.f32 %v4973_v5, %v5418_v11  ;;  %v15464_v62 = vpop.xlane.xlu1 %7587 }
 0x25e   :  { %v15342_v59 = vmul.f32 %v15318_v60, %v19389_v46  ;;  %v15345_v1 = vmul.f32 %v4378_v52, %v19390_v45  ;;  %v6622_v41 = vmul.f32 %v13172_v18, %v15321_v31  ;;  %v15357_v10 = vsel %vm6029_vm0, %v15323_v47, inf  ;;  %19401 = vst [vmem:[#allocation11_spill] sm:$0xff] %v15464_v62 }
 0x25f   :  { %19387 = vst [vmem:[#allocation37_spill] sm:$0xff] %v15332_v19  ;;  %v15351_v51 = vmul.f32 %v15332_v19, %v19391_v27  ;;  %v5073_v39 = vmul.f32 %v13172_v18, %v15336_v53  ;;  %19392 = vst [vmem:[#allocation38_spill] sm:$0xff] %v15357_v10  ;;  %v7559_v43 = vmul.f32 %v15328_v24, %v7518_v49 }
 0x260   :  { %v6623_v45 = vmul.f32 %v13172_v18, %v15342_v59  ;;  %v6624_v52 = vmul.f32 %v13172_v18, %v15345_v1  ;;  %v8132_v5 = vmul.f32 %v13158_v63, %v15095_v54  ;;  %v6006_v27 = vmul.f32 %v14964_v36, %v5966_v33 }
 0x261   :  { %v5074_v11 = vmul.f32 %v13172_v18, %v15351_v51  ;;  %v5764_v46 = vcombine.low %v5072_v25, %v5073_v39  ;;  %v8133_v47 = vmul.f32 %v13158_v63, %v15103_v13  ;;  %v7607_v49 = vsel %vm6029_vm0, %v7559_v43, 0.0  ;;  %v19393_v39 = vld [vmem:[#allocation178_spill] sm:$0xff] }
 0x262   :  { %v7294_v10 = vcombine.low %v6622_v41, %v6623_v45  ;;  %v7308_v28 = vrot.slane %v6624_v52, %v11922_v12  ;;  %7608 = vadd.xlane.f32.xlu0 %v7607_v49  ;;  %v6057_v54 = vsel %vm6029_vm0, %v6006_v27, 0.0  ;;  %v8498_v13 = vrot.slane %v8134_v58, %v11922_v12  ;;  %v15389_v45 = vld [vmem:[%s18714_s1 + $0xc4] sm:$0x7] }
 0x263   :  { %v5771_v36 = vrot.slane %v5764_v46, %v11922_v12  ;;  %v5778_v33 = vrot.slane %v5074_v11, %v11922_v12  ;;  %v8484_v17 = vcombine.low %v8132_v5, %v8133_v47  ;;  %6058 = vadd.xlane.f32.xlu1 %v6057_v54  ;;  %v3792_v41 = vcombine.high %v15206_v7, %v15206_v7  ;;  %v19397_v46 = vld [vmem:[#allocation89_spill] sm:$0xff] }
 0x264   :  { %v7301_v25 = vrot.slane %v7294_v10, %v11922_v12  ;;  %v3808_v43 = vcombine.high %v19393_v39, %v19393_v39  ;;  %v4989_v47 = vmul.f32 %v15389_v45, %v19265_v20  ;;  %v15393_v10 = vpop.xlane.xlu0 %6079  ;;  %v15398_v7 = vrot.slane %v19393_v39, %v11922_v12 }
 0x265   :  { %v5779_v52 = vcombine.low %v5771_v36, %v5778_v33  ;;  %19395 = vst [vmem:[#allocation39_spill] sm:$0xff] %v15393_v10  ;;  %v8491_v58 = vrot.slane %v8484_v17, %v11922_v12  ;;  %v8083_v27 = vmul.f32 %v15143_v37, %v19266_v32  ;;  %v15406_v49 = vmul.f32 %v3792_v41, %v19397_v46  ;;  %v19398_v33 = vld [vmem:[#allocation106_spill] sm:$0xff] }
 0x266   :  { %19396 = vst [vmem:[#allocation188_spill] sm:$0xff] %v15398_v7  ;;  %v7309_v5 = vcombine.low %v7301_v25, %v7308_v28  ;;  %v15403_v11 = vrot.slane %v3808_v43, %v11922_v12  ;;  %v15411_v17 = vmul.f32 %v15398_v7, %v19398_v33  ;;  %v15415_v39 = vsel %vm6029_vm0, %v15384_v26, -inf  ;;  %v19399_v25 = vld [vmem:[#allocation107_spill] sm:$0xff]  ;;  %v15431_v43 = vld [vmem:[%s18715_s2 + $0x38] sm:$0x7] }
 0x267   :  { %v5786_v54 = vrot.slane %v5779_v52, %v11922_v12  ;;  %v8499_v36 = vcombine.low %v8491_v58, %v8498_v13  ;;  %v15420_v37 = vsel %vm6029_vm0, %v15393_v10, -inf  ;;  %v6577_v13 = vmul.f32 %v13172_v18, %v15406_v49 }
 0x268   :  { %v7316_v28 = vrot.slane %v7309_v5, %v11922_v12  ;;  %v15424_v41 = vmul.f32 %v15403_v11, %v19399_v25  ;;  %v15437_v5 = vld [vmem:[%s18714_s1 + $0x54] sm:$0x7]  ;;  %v6578_v33 = vmul.f32 %v13172_v18, %v15411_v17  ;;  %v8182_v19 = vmul.f32 %v13158_v63, %v15158_v29 }
 0x269   :  { %v5982_v52 = vsub.f32 %v4989_v47, %v5786_v54  ;;  %v8506_v58 = vrot.slane %v8499_v36, %v11922_v12  ;;  %v6527_v46 = vmul.f32 %v15437_v5, %v19265_v20  ;;  %v8180_v54 = vmul.f32 %v13158_v63, %v15148_v6 }
 0x26a   :  { %v7534_v25 = vsub.f32 %v15308_v34, %v7316_v28  ;;  %v6579_v7 = vmul.f32 %v13172_v18, %v15424_v41  ;;  %v6949_v10 = vcombine.low %v6577_v13, %v6578_v33  ;;  %v15455_v28 = vpop.xlane.xlu0 %7584  ;;  %v4380_v47 = vcombine.high %v15318_v60, %v15318_v60  ;;  %v19404_v33 = vld [vmem:[#allocation105_spill] sm:$0xff] }
 0x26b   :  { %v6022_v36 = vmul.f32 %v15004_v14, %v5982_v52  ;;  %v9076_v26 = vsub.f32 %v8083_v27, %v8506_v58  ;;  %19400 = vst [vmem:[#allocation10_spill] sm:$0xff] %v15455_v28  ;;  %v8852_v13 = vcombine.low %v8180_v54, %v8181_v57  ;;  %v19402_v58 = vld [vmem:[#allocation181_spill] sm:$0xff]  ;;  %v19406_v54 = vld [vmem:[#allocation122_spill] sm:$0xff] }
 0x26c   :  { %v7575_v56 = vmul.f32 %v15431_v43, %v7534_v25  ;;  %v6963_v34 = vrot.slane %v6579_v7, %v11922_v12  ;;  %v6956_v27 = vrot.slane %v6949_v10, %v11922_v12  ;;  %v8866_v7 = vrot.slane %v8182_v19, %v11922_v12 }
 0x26d   :  { %v6105_v6 = vsel %vm6029_vm0, %v6022_v36, 0.0  ;;  %v9117_v14 = vmul.f32 %v15040_v48, %v9076_v26  ;;  %v4396_v29 = vcombine.high %v19402_v58, %v19402_v58  ;;  %v15472_v60 = vrot.slane %v19402_v58, %v11922_v12  ;;  %v19408_v58 = vld [vmem:[#allocation123_spill] sm:$0xff] }
 0x26e   :  { %v7655_v52 = vsel %vm6029_vm0, %v7575_v56, 0.0  ;;  %6106 = vadd.xlane.f32.xlu1 %v6105_v6  ;;  %v6964_v10 = vcombine.low %v6956_v27, %v6963_v34  ;;  %v8859_v57 = vrot.slane %v8852_v13, %v11922_v12  ;;  %v15478_v25 = vmul.f32 %v4380_v47, %v19404_v33  ;;  %v15508_v33 = vld [vmem:[%s18714_s1 + $0xd4] sm:$0x7] }
 0x26f   :  { %19403 = vst [vmem:[#allocation13_spill] sm:$0xff] %v15472_v60  ;;  %7656 = vadd.xlane.f32.xlu0 %v7655_v52  ;;  %v15482_v56 = vsel %vm6029_vm0, %v15455_v28, -inf  ;;  %v15485_v19 = vrot.slane %v4396_v29, %v11922_v12  ;;  %v15489_v36 = vmul.f32 %v15472_v60, %v19406_v54  ;;  %v15493_v6 = vsel %vm6029_vm0, %v15464_v62, -inf }
 0x270   :  { %19405 = vst [vmem:[#allocation197_spill] sm:$0xff] %v15482_v56  ;;  %19407 = vst [vmem:[#allocation193_spill] sm:$0xff] %v15493_v6  ;;  %v6971_v34 = vrot.slane %v6964_v10, %v11922_v12  ;;  %v8099_v47 = vmul.f32 %v15175_v8, %v19266_v32  ;;  %v8867_v27 = vcombine.low %v8859_v57, %v8866_v7  ;;  %v9165_v52 = vsel %vm6029_vm0, %v9117_v14, 0.0  ;;  %v15514_v7 = vpop.xlane.xlu0 %7632 }
 0x271   :  { %v6625_v13 = vmul.f32 %v13172_v18, %v15478_v25  ;;  %v15503_v29 = vmul.f32 %v15485_v19, %v19408_v58  ;;  %v6543_v10 = vmul.f32 %v15508_v33, %v19265_v20  ;;  %v6626_v8 = vmul.f32 %v13172_v18, %v15489_v36  ;;  %19409 = vst [vmem:[#allocation191_spill] sm:$0xff] %v15514_v7 }
 0x272   :  { %v7519_v57 = vsub.f32 %v6527_v46, %v6971_v34  ;;  %v8874_v14 = vrot.slane %v8867_v27, %v11922_v12  ;;  %v9686_v58 = vmul.f32 %v13158_v63, %v15209_v35  ;;  %v9687_v28 = vmul.f32 %v13158_v63, %v15220_v21 }
 0x273   :  { %9166 = vadd.xlane.f32.xlu0 %v9165_v52  ;;  %v6627_v26 = vmul.f32 %v13172_v18, %v15503_v29  ;;  %v7317_v62 = vcombine.low %v6625_v13, %v6626_v8  ;;  %v9688_v60 = vmul.f32 %v13158_v63, %v15223_v30  ;;  %v8135_v52 = vmul.f32 %v13158_v63, %v15232_v23 }
 0x274   :  { %v7560_v46 = vmul.f32 %v15328_v24, %v7519_v57  ;;  %v9092_v34 = vsub.f32 %v8099_v47, %v8874_v14  ;;  %v10038_v13 = vcombine.low %v9686_v58, %v9687_v28  ;;  %v8136_v24 = vmul.f32 %v13158_v63, %v15229_v44  ;;  %v15541_v57 = vpop.xlane.xlu1 %7635 }
 0x275   :  { %v7324_v35 = vrot.slane %v7317_v62, %v11922_v12  ;;  %v7331_v54 = vrot.slane %v6627_v26, %v11922_v12  ;;  %v10052_v8 = vrot.slane %v9688_v60, %v11922_v12  ;;  %v8137_v47 = vmul.f32 %v13158_v63, %v15236_v38  ;;  %19410 = vst [vmem:[#allocation192_spill] sm:$0xff] %v15541_v57  ;;  %v15550_v26 = vpop.xlane.xlu0 %9142 }
 0x276   :  { %v7610_v21 = vsel %vm6029_vm0, %v7560_v46, 0.0  ;;  %v9133_v30 = vmul.f32 %v15118_v9, %v9092_v34  ;;  %v15545_v62 = vsel %vm6029_vm0, %v15514_v7, -inf  ;;  %v9638_v28 = vmul.f32 %v15263_v16, %v19266_v32 }
 0x277   :  { %7611 = vadd.xlane.f32.xlu1 %v7610_v21  ;;  %v7332_v23 = vcombine.low %v7324_v35, %v7331_v54  ;;  %19411 = vst [vmem:[#allocation171_spill] sm:$0xff] %v15545_v62  ;;  %v10045_v60 = vrot.slane %v10038_v13, %v11922_v12  ;;  %v8084_v38 = vmul.f32 %v15277_v2, %v19266_v32  ;;  %v15559_v34 = vsel %vm6029_vm0, %v15541_v57, -inf  ;;  %v19441_v62 = vld [vmem:[#allocation80_spill] sm:$0xff] }
 0x278   :  { %v9213_v44 = vsel %vm6029_vm0, %v9133_v30, 0.0  ;;  %v8507_v14 = vcombine.low %v8135_v52, %v8136_v24  ;;  %v8521_v58 = vrot.slane %v8137_v47, %v11922_v12  ;;  %19412 = vst [vmem:[#allocation15_spill] sm:$0xff] %v15559_v34  ;;  %v9734_v16 = vmul.f32 %v13158_v63, %v15321_v31  ;;  %v15580_v24 = vld [vmem:[%s18715_s2 + $0x68] sm:$0x7] }
 0x279   :  { %9214 = vadd.xlane.f32.xlu0 %v9213_v44  ;;  %v7339_v54 = vrot.slane %v7332_v23, %v11922_v12  ;;  %v10053_v46 = vcombine.low %v10045_v60, %v10052_v8  ;;  %v15566_v13 = vsel %vm6029_vm0, %v15550_v26, inf  ;;  %v9735_v2 = vmul.f32 %v13158_v63, %v15342_v59 }
 0x27a   :  { %v8514_v35 = vrot.slane %v8507_v14, %v11922_v12  ;;  %v9736_v52 = vmul.f32 %v13158_v63, %v15345_v1  ;;  %v8183_v30 = vmul.f32 %v13158_v63, %v15314_v55  ;;  %v8184_v31 = vmul.f32 %v13158_v63, %v15336_v53  ;;  %v19421_v55 = vld [vmem:[#allocation131_spill] sm:$0xff] }
 0x27b   :  { %v7535_v8 = vsub.f32 %v6543_v10, %v7339_v54  ;;  %v10060_v21 = vrot.slane %v10053_v46, %v11922_v12  ;;  %v10406_v23 = vcombine.low %v9734_v16, %v9735_v2  ;;  %v8185_v1 = vmul.f32 %v13158_v63, %v15351_v51  ;;  %v15593_v46 = vpop.xlane.xlu0 %9190  ;;  %v15595_v16 = vpop.xlane.xlu1 %9145 }
 0x27c   :  { %v8522_v47 = vcombine.low %v8514_v35, %v8521_v58  ;;  %v10420_v59 = vrot.slane %v9736_v52, %v11922_v12  ;;  %v8875_v44 = vcombine.low %v8183_v30, %v8184_v31  ;;  %v9654_v14 = vmul.f32 %v15304_v42, %v19266_v32  ;;  %v19413_v52 = vld [vmem:[#allocation176_spill] sm:$0xff] }
 0x27d   :  { %v7576_v10 = vmul.f32 %v15431_v43, %v7535_v8  ;;  %v10630_v60 = vsub.f32 %v9638_v28, %v10060_v21  ;;  %v10413_v58 = vrot.slane %v10406_v23, %v11922_v12  ;;  %v8889_v54 = vrot.slane %v8185_v1, %v11922_v12 }
 0x27e   :  { %v8529_v53 = vrot.slane %v8522_v47, %v11922_v12  ;;  %v8100_v28 = vmul.f32 %v15389_v45, %v19266_v32  ;;  %v8882_v35 = vrot.slane %v8875_v44, %v11922_v12  ;;  %v3857_v8 = vcombine.high %v19413_v52, %v19413_v52  ;;  %v19414_v44 = vld [vmem:[#allocation114_spill] sm:$0xff] }
 0x27f   :  { %v7658_v51 = vsel %vm6029_vm0, %v7576_v10, 0.0  ;;  %v10671_v43 = vmul.f32 %v15580_v24, %v10630_v60  ;;  %v10421_v42 = vcombine.low %v10413_v58, %v10420_v59  ;;  %v3865_v21 = vrot.slane %v19413_v52, %v11922_v12  ;;  %v15623_v10 = vld [vmem:[%s18715_s2 + $0x78] sm:$0x7] }
 0x280   :  { %7659 = vadd.xlane.f32.xlu1 %v7658_v51  ;;  %v9077_v2 = vsub.f32 %v8084_v38, %v8529_v53  ;;  %v8890_v31 = vcombine.low %v8882_v35, %v8889_v54  ;;  %v15609_v47 = vsel %vm6029_vm0, %v15593_v46, inf  ;;  %v15613_v45 = vsel %vm6029_vm0, %v15595_v16, inf }
 0x281   :  { %v10719_v30 = vsel %vm6029_vm0, %v10671_v43, 0.0  ;;  %v10428_v23 = vrot.slane %v10421_v42, %v11922_v12  ;;  %v15618_v59 = vrot.slane %v3857_v8, %v11922_v12  ;;  %v3887_v1 = vcombine.high %v3865_v21, %v3865_v21  ;;  %v19415_v43 = vld [vmem:[#allocation115_spill] sm:$0xff] }
 0x282   :  { %10720 = vadd.xlane.f32.xlu0 %v10719_v30  ;;  %v9118_v38 = vmul.f32 %v15040_v48, %v9077_v2  ;;  %v8897_v60 = vrot.slane %v8890_v31, %v11922_v12  ;;  %v15627_v53 = vmul.f32 %v3865_v21, %v19414_v44  ;;  %v9689_v58 = vmul.f32 %v13158_v63, %v15406_v49  ;;  %v19416_v2 = vld [vmem:[#allocation116_spill] sm:$0xff] }
 0x283   :  { %v9690_v48 = vmul.f32 %v13158_v63, %v15411_v17  ;;  %v10646_v51 = vsub.f32 %v9654_v14, %v10428_v23  ;;  %v15636_v35 = vmul.f32 %v15618_v59, %v19415_v43  ;;  %v15639_v42 = vmul.f32 %v3887_v1, %v19416_v2  ;;  %v15645_v17 = vpop.xlane.xlu1 %9193 }
 0x284   :  { %v9168_v54 = vsel %vm6029_vm0, %v9118_v38, 0.0  ;;  %v9093_v52 = vsub.f32 %v8100_v28, %v8897_v60  ;;  %v5033_v8 = vmul.f32 %v13172_v18, %v15627_v53  ;;  %v9691_v49 = vmul.f32 %v13158_v63, %v15424_v41  ;;  %v15659_v60 = vpop.xlane.xlu0 %10696 }
 0x285   :  { %9169 = vadd.xlane.f32.xlu1 %v9168_v54  ;;  %v10061_v21 = vcombine.low %v9689_v58, %v9690_v48  ;;  %v10687_v14 = vmul.f32 %v15623_v10, %v10646_v51  ;;  %v5034_v31 = vmul.f32 %v13172_v18, %v15636_v35  ;;  %v5035_v28 = vmul.f32 %v13172_v18, %v15639_v42 }
 0x286   :  { %v9134_v38 = vmul.f32 %v15118_v9, %v9093_v52  ;;  %v9639_v23 = vmul.f32 %v15437_v5, %v19266_v32  ;;  %v10075_v1 = vrot.slane %v9691_v49, %v11922_v12  ;;  %19417 = vst [vmem:[#allocation18_spill] sm:$0xff] %v15659_v60  ;;  %v15665_v54 = vsel %vm6029_vm0, %v15645_v17, inf  ;;  %v19418_v5 = vld [vmem:[#allocation180_spill] sm:$0xff]  ;;  %v11685_v52 = vld [vmem:[%s18714_s1 + $0x60] sm:$0x7] }
 0x287   :  { %v10068_v41 = vrot.slane %v10061_v21, %v11922_v12  ;;  %v10767_v44 = vsel %vm6029_vm0, %v10687_v14, 0.0  ;;  %v5465_v58 = vcombine.low %v5033_v8, %v5034_v31  ;;  %v5479_v48 = vrot.slane %v5035_v28, %v11922_v12 }
 0x288   :  { %10768 = vadd.xlane.f32.xlu0 %v10767_v44  ;;  %v9216_v9 = vsel %vm6029_vm0, %v9134_v38, 0.0  ;;  %v4445_v43 = vcombine.high %v19418_v5, %v19418_v5  ;;  %v4453_v2 = vrot.slane %v19418_v5, %v11922_v12  ;;  %v4976_v8 = vmul.f32 %v11685_v52, %v19265_v20 }
 0x289   :  { %v10076_v51 = vcombine.low %v10068_v41, %v10075_v1  ;;  %9217 = vadd.xlane.f32.xlu1 %v9216_v9  ;;  %v5472_v49 = vrot.slane %v5465_v58, %v11922_v12  ;;  %v15679_v21 = vsel %vm6029_vm0, %v15659_v60, inf  ;;  %v9737_v14 = vmul.f32 %v13158_v63, %v15478_v25  ;;  %v19420_v41 = vld [vmem:[#allocation130_spill] sm:$0xff]  ;;  %v15728_v58 = vpop.xlane.xlu1 %10699 }
 0x28a   :  { %19419 = vst [vmem:[#allocation19_spill] sm:$0xff] %v15679_v21  ;;  %v15685_v28 = vrot.slane %v4445_v43, %v11922_v12  ;;  %v4475_v38 = vcombine.high %v4453_v2, %v4453_v2  ;;  %v15688_v1 = vmul.f32 %v4453_v2, %v19420_v41  ;;  %v9738_v9 = vmul.f32 %v13158_v63, %v15489_v36  ;;  %v19422_v43 = vld [vmem:[#allocation132_spill] sm:$0xff]  ;;  %v15705_v2 = vpop.xlane.xlu0 %10744  ;;  %v15711_v36 = vld [vmem:[%s18714_s1 + $0xe0] sm:$0x7] }
 0x28b   :  { %v10083_v31 = vrot.slane %v10076_v51, %v11922_v12  ;;  %v5480_v44 = vcombine.low %v5472_v49, %v5479_v48  ;;  %v9739_v5 = vmul.f32 %v13158_v63, %v15503_v29  ;;  %19423 = vst [vmem:[#allocation21_spill] sm:$0xff] %v15705_v2  ;;  %v4992_v29 = vmul.f32 %v15711_v36, %v19265_v20 }
 0x28c   :  { %v15698_v51 = vmul.f32 %v15685_v28, %v19421_v55  ;;  %v15701_v27 = vmul.f32 %v4475_v38, %v19422_v43  ;;  %v5081_v48 = vmul.f32 %v13172_v18, %v15688_v1  ;;  %v10429_v55 = vcombine.low %v9737_v14, %v9738_v9  ;;  %19424 = vst [vmem:[#allocation24_spill] sm:$0xff] %v15728_v58 }
 0x28d   :  { %v10631_v25 = vsub.f32 %v9639_v23, %v10083_v31  ;;  %v5487_v49 = vrot.slane %v5480_v44, %v11922_v12  ;;  %v10443_v23 = vrot.slane %v9739_v5, %v11922_v12  ;;  %v15719_v31 = vld [vmem:[%s18715_s2 + $0xc] sm:$0x7]  ;;  %v9655_v43 = vmul.f32 %v15508_v33, %v19266_v32 }
 0x28e   :  { %v5082_v41 = vmul.f32 %v13172_v18, %v15698_v51  ;;  %v5083_v44 = vmul.f32 %v13172_v18, %v15701_v27  ;;  %v10436_v9 = vrot.slane %v10429_v55, %v11922_v12  ;;  %v15733_v5 = vsel %vm6029_vm0, %v15705_v2, inf  ;;  %v19426_v55 = vld [vmem:[#allocation8_spill] sm:$0xff] }
 0x28f   :  { %v10672_v38 = vmul.f32 %v15580_v24, %v10631_v25  ;;  %v5969_v14 = vsub.f32 %v4976_v8, %v5487_v49  ;;  %19425 = vst [vmem:[#allocation25_spill] sm:$0xff] %v15733_v5  ;;  %v8144_v24 = vmul.f32 %v13158_v63, %v15627_v53  ;;  %v8145_v33 = vmul.f32 %v13158_v63, %v15636_v35 }
 0x290   :  { %v5833_v30 = vcombine.low %v5081_v48, %v5082_v41  ;;  %v5847_v60 = vrot.slane %v5083_v44, %v11922_v12  ;;  %v10444_v8 = vcombine.low %v10436_v9, %v10443_v23  ;;  %v8146_v49 = vmul.f32 %v13158_v63, %v15639_v42 }
 0x291   :  { %v10722_v25 = vsel %vm6029_vm0, %v10672_v38, 0.0  ;;  %v6009_v57 = vmul.f32 %v15719_v31, %v5969_v14  ;;  %v19427_v2 = vcombine.high %v19426_v55, %v19426_v55  ;;  %v15751_v48 = vsel %vm6029_vm0, %v15728_v58, inf }
 0x292   :  { %10723 = vadd.xlane.f32.xlu1 %v10722_v25  ;;  %v5840_v38 = vrot.slane %v5833_v30, %v11922_v12  ;;  %19428 = vst [vmem:[#allocation30_spill] sm:$0xff] %v15751_v48  ;;  %v8576_v41 = vcombine.low %v8144_v24, %v8145_v33  ;;  %v3889_v35 = vcombine.high %v15618_v59, %v15618_v59  ;;  %v19429_v25 = vld [vmem:[#allocation117_spill] sm:$0xff]  ;;  %v15765_v24 = vpop.xlane.xlu1 %10747 }
 0x293   :  { %v3856_v53 = vrot.slane %v19427_v2, %v11922_v12  ;;  %v6066_v23 = vsel %vm6029_vm0, %v6009_v57, 0.0  ;;  %v10451_v44 = vrot.slane %v10444_v8, %v11922_v12  ;;  %v8590_v42 = vrot.slane %v8146_v49, %v11922_v12  ;;  %19430 = vst [vmem:[#allocation33_spill] sm:$0xff] %v15765_v24  ;;  %v19434_v57 = vld [vmem:[#allocation179_spill] sm:$0xff] }
 0x294   :  { %6067 = vadd.xlane.f32.xlu0 %v6066_v23  ;;  %v5848_v9 = vcombine.low %v5840_v38, %v5847_v60  ;;  %v8583_v2 = vrot.slane %v8576_v41, %v11922_v12  ;;  %v15763_v55 = vmul.f32 %v3889_v35, %v19429_v25  ;;  %v8087_v33 = vmul.f32 %v11685_v52, %v19266_v32  ;;  %v15773_v60 = vpop.xlane.xlu0 %6034  ;;  %v19431_v38 = vld [vmem:[#allocation119_spill] sm:$0xff]  ;;  %v15785_v35 = vld [vmem:[%s18715_s2 + $0x1c] sm:$0x7] }
 0x295   :  { %v3858_v14 = vcombine.high %v3856_v53, %v3856_v53  ;;  %v15760_v30 = vrot.slane %v3856_v53, %v11922_v12  ;;  %v10647_v59 = vsub.f32 %v9655_v43, %v10451_v44  ;;  %v19432_v23 = vld [vmem:[#allocation120_spill] sm:$0xff]  ;;  %v8194_v21 = vmul.f32 %v13158_v63, %v15701_v27 }
 0x296   :  { %v5855_v49 = vrot.slane %v5848_v9, %v11922_v12  ;;  %v8591_v53 = vcombine.low %v8583_v2, %v8590_v42  ;;  %v5036_v43 = vmul.f32 %v13172_v18, %v15763_v55  ;;  %v15795_v42 = vld [vmem:[%s18714_s1 + $0x64] sm:$0x7]  ;;  %v15801_v9 = vsel %vm6029_vm0, %v15765_v24, inf }
 0x297   :  { %v15771_v8 = vrot.slane %v3858_v14, %v11922_v12  ;;  %v15778_v41 = vmul.f32 %v15760_v30, %v19431_v38  ;;  %v10688_v52 = vmul.f32 %v15623_v10, %v10647_v59  ;;  %v4977_v14 = vmul.f32 %v15795_v42, %v19265_v20  ;;  %19433 = vst [vmem:[#allocation40_spill] sm:$0xff] %v15801_v9 }
 0x298   :  { %v5985_v2 = vsub.f32 %v4992_v29, %v5855_v49  ;;  %v8598_v25 = vrot.slane %v8591_v53, %v11922_v12  ;;  %v6127_v59 = vsel %vm6029_vm0, %v15773_v60, -inf  ;;  %v8192_v49 = vmul.f32 %v13158_v63, %v15688_v1 }
 0x299   :  { %v15790_v44 = vmul.f32 %v15771_v8, %v19432_v23  ;;  %v5037_v10 = vmul.f32 %v13172_v18, %v15778_v41  ;;  %v10770_v38 = vsel %vm6029_vm0, %v10688_v52, 0.0  ;;  %v15812_v23 = vld [vmem:[%s18715_s2 + $0x4c] sm:$0x7]  ;;  %v8193_v52 = vmul.f32 %v13158_v63, %v15698_v51 }
 0x29a   :  { %v6025_v53 = vmul.f32 %v15785_v35, %v5985_v2  ;;  %10771 = vadd.xlane.f32.xlu1 %v10770_v38  ;;  %v9080_v24 = vsub.f32 %v8087_v33, %v8598_v25  ;;  %v19435_v7 = vcombine.high %v19434_v57, %v19434_v57  ;;  %v4477_v1 = vcombine.high %v15685_v28, %v15685_v28  ;;  %v19436_v38 = vld [vmem:[#allocation133_spill] sm:$0xff] }
 0x29b   :  { %v5038_v29 = vmul.f32 %v13172_v18, %v15790_v44  ;;  %v5488_v58 = vcombine.low %v5036_v43, %v5037_v10  ;;  %v8944_v51 = vcombine.low %v8192_v49, %v8193_v52  ;;  %v8958_v25 = vrot.slane %v8194_v21, %v11922_v12  ;;  %v6038_v49 = vpop.xlane.xlu1 %6037 }
 0x29c   :  { %v4444_v34 = vrot.slane %v19435_v7, %v11922_v12  ;;  %v6114_v2 = vsel %vm6029_vm0, %v6025_v53, 0.0  ;;  %v9121_v33 = vmul.f32 %v15812_v23, %v9080_v24  ;;  %v15840_v57 = vmul.f32 %v4477_v1, %v19436_v38  ;;  %v19438_v53 = vld [vmem:[#allocation135_spill] sm:$0xff] }
 0x29d   :  { %v5502_v48 = vrot.slane %v5038_v29, %v11922_v12  ;;  %v5495_v43 = vrot.slane %v5488_v58, %v11922_v12  ;;  %6115 = vadd.xlane.f32.xlu0 %v6114_v2  ;;  %v6128_v29 = vmax.f32 %v15292_v50, %v6127_v59  ;;  %v8951_v24 = vrot.slane %v8944_v51, %v11922_v12  ;;  %v15846_v58 = vpop.xlane.xlu0 %6043  ;;  %v15864_v2 = vld [vmem:[%s18714_s1 + $0xe4] sm:$0x7] }
 0x29e   :  { %v4446_v10 = vcombine.high %v4444_v34, %v4444_v34  ;;  %v15837_v27 = vrot.slane %v4444_v34, %v11922_v12  ;;  %19437 = vst [vmem:[#allocation41_spill] sm:$0xff] %v15846_v58  ;;  %v8103_v21 = vmul.f32 %v15711_v36, %v19266_v32  ;;  %v9177_v50 = vsel %vm6029_vm0, %v9121_v33, 0.0 }
 0x29f   :  { %v5503_v7 = vcombine.low %v5495_v43, %v5502_v48  ;;  %v5084_v48 = vmul.f32 %v13172_v18, %v15840_v57  ;;  %v8959_v1 = vcombine.low %v8951_v24, %v8958_v25  ;;  %v4993_v36 = vmul.f32 %v15864_v2, %v19265_v20  ;;  %v19439_v43 = vld [vmem:[#allocation136_spill] sm:$0xff] }
 0x2a0   :  { %v15851_v34 = vrot.slane %v4446_v10, %v11922_v12  ;;  %v15855_v52 = vmul.f32 %v15837_v27, %v19438_v53  ;;  %v15876_v33 = vsel %vm6029_vm0, %v15846_v58, -inf  ;;  %v6129_v25 = vsel %vm6029_vm0, %v6038_v49, -inf }
 0x2a1   :  { %v5510_v59 = vrot.slane %v5503_v7, %v11922_v12  ;;  %9178 = vadd.xlane.f32.xlu0 %v9177_v50  ;;  %v8966_v7 = vrot.slane %v8959_v1, %v11922_v12  ;;  %v6130_v24 = vmax.f32 %v6128_v29, %v6129_v25  ;;  %v3741_v53 = vcombine.high %v15200_v0, %v15200_v0  ;;  %v15885_v50 = vld [vmem:[%s18715_s2 + $0x5c] sm:$0x7]  ;;  %v19440_v1 = vld [vmem:[#allocation83_spill] sm:$0xff] }
 0x2a2   :  { %v15870_v51 = vmul.f32 %v15851_v34, %v19439_v43  ;;  %v5085_v10 = vmul.f32 %v13172_v18, %v15855_v52  ;;  %v3743_v9 = vcombine.high %v15214_v40, %v15214_v40  ;;  %v15895_v0 = vmul.f32 %v14797_v15, %v19440_v1 }
 0x2a3   :  { %v5970_v38 = vsub.f32 %v4977_v14, %v5510_v59  ;;  %v9096_v59 = vsub.f32 %v8103_v21, %v8966_v7  ;;  %v6132_v29 = vmax.f32 %v6130_v24, %v15258_v3  ;;  %v15900_v6 = vmul.f32 %v3741_v53, %v19441_v62 }
 0x2a4   :  { %v5086_v43 = vmul.f32 %v13172_v18, %v15870_v51  ;;  %v5856_v28 = vcombine.low %v5084_v48, %v5085_v10  ;;  %v19442_v48 = vld [vmem:[#allocation82_spill] sm:$0xff]  ;;  %v18962_v3 = vmov 4   ;;  %v8147_v1 = vmul.f32 %v13158_v63, %v15763_v55 }
 0x2a5   :  { %v6010_v14 = vmul.f32 %v15719_v31, %v5970_v38  ;;  %v15903_v10 = vmul.f32 %v3743_v9, %v19442_v48  ;;  %v9137_v21 = vmul.f32 %v15885_v50, %v9096_v59  ;;  %vm6182_vm1 = vcmp.ge.f32.partialorder %v15268_v61, %v6132_v29 }
 0x2a6   :  { %v5863_v25 = vrot.slane %v5856_v28, %v11922_v12  ;;  %v5870_v5 = vrot.slane %v5086_v43, %v11922_v12  ;;  %vm6183_vm2 = vcmp.ge.f32.partialorder %v15773_v60, %v6132_v29  ;;  %vm6184_vm3 = vcmp.ge.f32.partialorder %v6038_v49, %v6132_v29 }
 0x2a7   :  { %v6069_v40 = vsel %vm6029_vm0, %v6010_v14, 0.0  ;;  %vm6185_vm4 = vcmp.ge.f32.partialorder %v15197_v4, %v6132_v29  ;;  %v6214_v62 = vsel %vm6182_vm1, 0, %v18962_v3  ;;  %v9225_v28 = vsel %vm6029_vm0, %v9137_v21, 0.0 }
 0x2a8   :  { %6070 = vadd.xlane.f32.xlu1 %v6069_v40  ;;  %v5871_v15 = vcombine.low %v5863_v25, %v5870_v5  ;;  %v6215_v9 = vsel %vm6183_vm2, 1, %v18962_v3  ;;  %v6216_v38 = vsel %vm6184_vm3, 2, %v18962_v3  ;;  %9226 = vadd.xlane.f32.xlu0 %v9225_v28  ;;  %v6246_v5 = vsel %vm6029_vm0, %v6214_v62, 2147483647 }
 0x2a9   :  { %v6247_v49 = vsel %vm6029_vm0, %v6215_v9, 2147483647  ;;  %v6217_v4 = vsel %vm6185_vm4, 3, %v18962_v3  ;;  %v5027_v7 = vmul.f32 %v13172_v18, %v15900_v6  ;;  %v5028_v24 = vmul.f32 %v13172_v18, %v15903_v10  ;;  %v19447_v3 = vld [vmem:[#allocation98_spill] sm:$0xff] }
 0x2aa   :  { %v5878_v60 = vrot.slane %v5871_v15, %v11922_v12  ;;  %vm6248_vm5 = vcmp.lt.s32.totalorder %v6246_v5, %v6247_v49  ;;  %v6250_v14 = vsel %vm6029_vm0, %v6216_v38, 2147483647  ;;  %v5029_v59 = vmul.f32 %v13172_v18, %v15895_v0  ;;  %v15938_v15 = vld [vmem:[%s18714_s1 + $0x48] sm:$0x7] }
 0x2ab   :  { %v6249_v43 = vsel %vm6248_vm5, %v6246_v5, %v6247_v49  ;;  %v5419_v29 = vcombine.low %v5027_v7, %v5028_v24  ;;  %v8148_v25 = vmul.f32 %v13158_v63, %v15778_v41  ;;  %v6253_v21 = vsel %vm6029_vm0, %v6217_v4, 2147483647  ;;  %v15950_v24 = vpop.xlane.xlu0 %6091 }
 0x2ac   :  { %v5986_v53 = vsub.f32 %v4993_v36, %v5878_v60  ;;  %vm6251_vm6 = vcmp.lt.s32.totalorder %v6249_v43, %v6250_v14  ;;  %v8149_v36 = vmul.f32 %v13158_v63, %v15790_v44  ;;  %v4974_v55 = vmul.f32 %v15938_v15, %v19265_v20  ;;  %19443 = vst [vmem:[#allocation42_spill] sm:$0xff] %v15950_v24 }
 0x2ad   :  { %v6252_v40 = vsel %vm6251_vm6, %v6249_v43, %v6250_v14  ;;  %v5426_v62 = vrot.slane %v5419_v29, %v11922_v12  ;;  %v5433_v41 = vrot.slane %v5029_v59, %v11922_v12  ;;  %v8599_v38 = vcombine.low %v8147_v1, %v8148_v25  ;;  %v15957_v43 = vld [vmem:[%s18714_s1] sm:$0x7]  ;;  %v15963_v59 = vld [vmem:[%s18714_s1 + $0x4] sm:$0x7]  ;;  %v15969_v1 = vld [vmem:[%s18714_s1 + $0x8] sm:$0x7] }
 0x2ae   :  { %v6026_v48 = vmul.f32 %v15785_v35, %v5986_v53  ;;  %vm6254_vm7 = vcmp.lt.s32.totalorder %v6252_v40, %v6253_v21  ;;  %v8613_v60 = vrot.slane %v8149_v36, %v11922_v12  ;;  %v18960_v44 = vmov 0.0   ;;  %v15952_v53 = vpop.xlane.xlu1 %6046 }
 0x2af   :  { %v6255_v9 = vsel %vm6254_vm7, %v6252_v40, %v6253_v21  ;;  %19444 = vst [vmem:[#allocation58_spill] sm:$0xff] %v15952_v53  ;;  %v5434_v21 = vcombine.low %v5426_v62, %v5433_v41  ;;  %v8088_v36 = vmul.f32 %v15795_v42, %v19266_v32 }
 0x2b0   :  { %v6117_v28 = vsel %vm6029_vm0, %v6026_v48, 0.0  ;;  %vm6326_vm8 = vcmp.eq.s32.totalorder %v6255_v9, 0  ;;  %vm6327_vm9 = vcmp.eq.s32.totalorder %v6255_v9, 1  ;;  %vm6328_vm10 = vcmp.eq.s32.totalorder %v6255_v9, 2  ;;  %v15975_v48 = vld [vmem:[%s18714_s1 + $0xc] sm:$0x7] }
 0x2b1   :  { %6118 = vadd.xlane.f32.xlu1 %v6117_v28  ;;  %vm6329_vm11 = vcmp.eq.s32.totalorder %v6255_v9, 3  ;;  %v11215_v5 = vsel %vm6326_vm8, 1.0, %v18960_v44  ;;  %v11216_v49 = vsel %vm6327_vm9, 1.0, %v18960_v44  ;;  %v11217_v4 = vsel %vm6328_vm10, 1.0, %v18960_v44 }
 0x2b2   :  { %v11218_v7 = vsel %vm6329_vm11, 1.0, %v18960_v44  ;;  %v6422_v14 = vmul.f32 %v15957_v43, %v11215_v5  ;;  %v6423_v29 = vmul.f32 %v15963_v59, %v11216_v49  ;;  %v6424_v25 = vmul.f32 %v15969_v1, %v11217_v4 }
 0x2b3   :  { %v6425_v40 = vmul.f32 %v15975_v48, %v11218_v7  ;;  %v8606_v28 = vrot.slane %v8599_v38, %v11922_v12  ;;  %v4329_v9 = vcombine.high %v15311_v22, %v15311_v22  ;;  %v15987_v4 = vsel %vm6029_vm0, %v15950_v24, -inf  ;;  %v19445_v38 = vld [vmem:[#allocation37_spill] sm:$0xff] }
 0x2b4   :  { %v6454_v5 = vsel %vm6029_vm0, %v6422_v14, 0.0  ;;  %v6455_v49 = vsel %vm6029_vm0, %v6423_v29, 0.0  ;;  %v15991_v7 = vsel %vm6029_vm0, %v15952_v53, -inf  ;;  %v5441_v42 = vrot.slane %v5434_v21, %v11922_v12  ;;  %v19446_v29 = vld [vmem:[#allocation96_spill] sm:$0xff]  ;;  %v19448_v24 = vld [vmem:[#allocation185_spill] sm:$0xff] }
 0x2b5   :  { %v6456_v62 = vadd.f32 %v6455_v49, %v6454_v5  ;;  %v8614_v41 = vcombine.low %v8606_v28, %v8613_v60  ;;  %v4331_v44 = vcombine.high %v19445_v38, %v19445_v38  ;;  %v6457_v22 = vsel %vm6029_vm0, %v6424_v25, 0.0  ;;  %v19449_v49 = vld [vmem:[#allocation97_spill] sm:$0xff] }
 0x2b6   :  { %v6459_v14 = vsel %vm6029_vm0, %v6425_v40, 0.0  ;;  %v4919_v61 = vmul.f32 %v4329_v9, %v19446_v29  ;;  %v16001_v56 = vmul.f32 %v19448_v24, %v19447_v3  ;;  %v5967_v53 = vsub.f32 %v4974_v55, %v5441_v42  ;;  %v11694_v55 = vld [vmem:[%s18715_s2 + $0x8] sm:$0x7]  ;;  %v19460_v42 = vld [vmem:[#allocation113_spill] sm:$0xff] }
 0x2b7   :  { %v6458_v58 = vadd.f32 %v6457_v22, %v6456_v62  ;;  %v8621_v5 = vrot.slane %v8614_v41, %v11922_v12  ;;  %v16005_v21 = vmul.f32 %v4331_v44, %v19449_v49  ;;  %v8195_v40 = vmul.f32 %v13158_v63, %v15840_v57  ;;  %v16019_v62 = vpop.xlane.xlu1 %6094  ;;  %v16026_v57 = vld [vmem:[%s18714_s1 + $0xc8] sm:$0x7] }
 0x2b8   :  { %v5075_v60 = vmul.f32 %v13172_v18, %v4919_v61  ;;  %v5077_v25 = vmul.f32 %v13172_v18, %v16001_v56  ;;  %v8196_v28 = vmul.f32 %v13158_v63, %v15855_v52  ;;  %v6007_v24 = vmul.f32 %v11694_v55, %v5967_v53  ;;  %19450 = vst [vmem:[#allocation46_spill] sm:$0xff] %v16019_v62 }
 0x2b9   :  { %v6460_v3 = vadd.f32 %v6459_v14, %v6458_v58  ;;  %v9081_v9 = vsub.f32 %v8088_v36, %v8621_v5  ;;  %v5076_v44 = vmul.f32 %v13172_v18, %v16005_v21  ;;  %v4990_v58 = vmul.f32 %v16026_v57, %v19265_v20  ;;  %v16032_v36 = vpop.xlane.xlu0 %9154 }
 0x2ba   :  { %v8197_v52 = vmul.f32 %v13158_v63, %v15870_v51  ;;  %v8967_v53 = vcombine.low %v8195_v40, %v8196_v28  ;;  %19451 = vst [vmem:[#allocation43_spill] sm:$0xff] %v16032_v36  ;;  %v6060_v41 = vsel %vm6029_vm0, %v6007_v24, 0.0  ;;  %v5801_v14 = vrot.slane %v5077_v25, %v11922_v12 }
 0x2bb   :  { %6510 = vst [vmem:[%s18718_s5] sm:$0x7] %v6460_v3  ;;  %v9122_v38 = vmul.f32 %v15812_v23, %v9081_v9  ;;  %v5787_v22 = vcombine.low %v5075_v60, %v5076_v44  ;;  %6061 = vadd.xlane.f32.xlu0 %v6060_v41  ;;  %v8104_v29 = vmul.f32 %v15864_v2, %v19266_v32  ;;  %v16046_v49 = vsel %vm6029_vm0, %v16019_v62, -inf  ;;  %v19453_v3 = vld [vmem:[#allocation177_spill] sm:$0xff]  ;;  %v16281_v62 = vld [vmem:[%s18714_s1 + $0x68] sm:$0x7] }
 0x2bc   :  { %v8974_v51 = vrot.slane %v8967_v53, %v11922_v12  ;;  %v8981_v5 = vrot.slane %v8197_v52, %v11922_v12  ;;  %19452 = vst [vmem:[#allocation47_spill] sm:$0xff] %v16046_v49  ;;  %v8138_v23 = vmul.f32 %v13158_v63, %v15900_v6  ;;  %v8139_v60 = vmul.f32 %v13158_v63, %v15903_v10  ;;  %v19495_v49 = vld [vmem:[#allocation38_spill] sm:$0xff] }
 0x2bd   :  { %v9180_v40 = vsel %vm6029_vm0, %v9122_v38, 0.0  ;;  %v5794_v28 = vrot.slane %v5787_v22, %v11922_v12  ;;  %v8140_v25 = vmul.f32 %v13158_v63, %v15895_v0  ;;  %v3809_v55 = vcombine.high %v19453_v3, %v19453_v3  ;;  %v16073_v38 = vpop.xlane.xlu0 %9202  ;;  %19493 = vst [vmem:[#allocation54_spill] sm:$0xff] %v16281_v62 }
 0x2be   :  { %9181 = vadd.xlane.f32.xlu1 %v9180_v40  ;;  %v8982_v2 = vcombine.low %v8974_v51, %v8981_v5  ;;  %v16060_v24 = vrot.slane %v19453_v3, %v11922_v12  ;;  %v16064_v44 = vsel %vm6029_vm0, %v16032_v36, inf  ;;  %v8530_v10 = vcombine.low %v8138_v23, %v8139_v60  ;;  %19455 = vst [vmem:[#allocation14_spill] sm:$0xff] %v16073_v38  ;;  %v11696_v5 = vld [vmem:[%s18714_s1 + $0x5c] sm:$0x7]  ;;  %v19456_v60 = vld [vmem:[#allocation109_spill] sm:$0xff] }
 0x2bf   :  { %v5802_v9 = vcombine.low %v5794_v28, %v5801_v14  ;;  %19454 = vst [vmem:[#allocation17_spill] sm:$0xff] %v16064_v44  ;;  %v8544_v0 = vrot.slane %v8140_v25, %v11922_v12  ;;  %v3837_v53 = vrot.slane %v3809_v55, %v11922_v12  ;;  %v8085_v14 = vmul.f32 %v15938_v15, %v19266_v32  ;;  %v19458_v25 = vld [vmem:[#allocation112_spill] sm:$0xff] }
 0x2c0   :  { %v8989_v52 = vrot.slane %v8982_v2, %v11922_v12  ;;  %v3839_v41 = vcombine.high %v16060_v24, %v16060_v24  ;;  %v8537_v51 = vrot.slane %v8530_v10, %v11922_v12  ;;  %v6529_v40 = vmul.f32 %v11696_v5, %v19265_v20  ;;  %v16240_v44 = vld [vmem:[%s18715_s2 + $0x38] sm:$0x7] }
 0x2c1   :  { %v5809_v22 = vrot.slane %v5802_v9, %v11922_v12  ;;  %v3841_v23 = vcombine.high %v3837_v53, %v3837_v53  ;;  %v16084_v2 = vmul.f32 %v3837_v53, %v19456_v60  ;;  %v16091_v15 = vsel %vm6029_vm0, %v16073_v38, inf  ;;  %19491 = vst [vmem:[#allocation73_spill] sm:$0xff] %v16240_v44 }
 0x2c2   :  { %v9097_v28 = vsub.f32 %v8104_v29, %v8989_v52  ;;  %v16087_v3 = vmul.f32 %v3839_v41, %v19458_v25  ;;  %v8545_v9 = vcombine.low %v8537_v51, %v8544_v0  ;;  %v8186_v10 = vmul.f32 %v13158_v63, %v4919_v61  ;;  %v6086_v25 = vpop.xlane.xlu0 %6085 }
 0x2c3   :  { %19457 = vst [vmem:[#allocation16_spill] sm:$0xff] %v16084_v2  ;;  %v5983_v55 = vsub.f32 %v4990_v58, %v5809_v22  ;;  %v16096_v5 = vmul.f32 %v3841_v23, %v19460_v42  ;;  %v6583_v29 = vmul.f32 %v13172_v18, %v16084_v2  ;;  %v11697_v58 = vld [vmem:[%s18715_s2 + $0x18] sm:$0x7]  ;;  %v8187_v61 = vmul.f32 %v13158_v63, %v16005_v21  ;;  %v19463_v23 = vld [vmem:[#allocation182_spill] sm:$0xff] }
 0x2c4   :  { %19459 = vst [vmem:[#allocation62_spill] sm:$0xff] %v16087_v3  ;;  %v9138_v6 = vmul.f32 %v15885_v50, %v9097_v28  ;;  %v6584_v52 = vmul.f32 %v13172_v18, %v16087_v3  ;;  %v8552_v53 = vrot.slane %v8545_v9, %v11922_v12  ;;  %v8188_v42 = vmul.f32 %v13158_v63, %v16001_v56  ;;  %v16113_v28 = vpop.xlane.xlu1 %9157 }
 0x2c5   :  { %19461 = vst [vmem:[#allocation23_spill] sm:$0xff] %v16096_v5  ;;  %v6023_v0 = vmul.f32 %v11697_v58, %v5983_v55  ;;  %v6585_v22 = vmul.f32 %v13172_v18, %v16096_v5  ;;  %19462 = vst [vmem:[#allocation59_spill] sm:$0xff] %v16113_v28  ;;  %v4397_v60 = vcombine.high %v19463_v23, %v19463_v23 }
 0x2c6   :  { %v9228_v41 = vsel %vm6029_vm0, %v9138_v6, 0.0  ;;  %v6995_v51 = vcombine.low %v6583_v29, %v6584_v52  ;;  %v9078_v9 = vsub.f32 %v8085_v14, %v8552_v53  ;;  %v8898_v21 = vcombine.low %v8186_v10, %v8187_v61 }
 0x2c7   :  { %v6108_v55 = vsel %vm6029_vm0, %v6023_v0, 0.0  ;;  %9229 = vadd.xlane.f32.xlu1 %v9228_v41  ;;  %v8912_v58 = vrot.slane %v8188_v42, %v11922_v12  ;;  %v7009_v6 = vrot.slane %v6585_v22, %v11922_v12  ;;  %v16123_v29 = vrot.slane %v19463_v23, %v11922_v12  ;;  %v11698_v0 = vld [vmem:[%s18715_s2 + $0x48] sm:$0x7] }
 0x2c8   :  { %6109 = vadd.xlane.f32.xlu0 %v6108_v55  ;;  %v7002_v56 = vrot.slane %v6995_v51, %v11922_v12  ;;  %v4425_v52 = vrot.slane %v4397_v60, %v11922_v12  ;;  %v9119_v41 = vmul.f32 %v11698_v0, %v9078_v9  ;;  %v16131_v14 = vsel %vm6029_vm0, %v16113_v28, inf  ;;  %v19465_v51 = vld [vmem:[#allocation125_spill] sm:$0xff] }
 0x2c9   :  { %19464 = vst [vmem:[#allocation20_spill] sm:$0xff] %v16131_v14  ;;  %v8905_v10 = vrot.slane %v8898_v21, %v11922_v12  ;;  %v6157_v53 = vsel %vm6029_vm0, %v6086_v25, -inf  ;;  %v4427_v42 = vcombine.high %v16123_v29, %v16123_v29  ;;  %v8101_v55 = vmul.f32 %v16026_v57, %v19266_v32  ;;  %v19470_v28 = vld [vmem:[#allocation129_spill] sm:$0xff] }
 0x2ca   :  { %v7010_v61 = vcombine.low %v7002_v56, %v7009_v6  ;;  %v4429_v22 = vcombine.high %v4425_v52, %v4425_v52  ;;  %v16138_v23 = vmul.f32 %v4425_v52, %v19465_v51  ;;  %v9171_v60 = vsel %vm6029_vm0, %v9119_v41, 0.0  ;;  %v19468_v6 = vld [vmem:[#allocation128_spill] sm:$0xff]  ;;  %v19472_v41 = vld [vmem:[#allocation186_spill] sm:$0xff]  ;;  %v19473_v51 = vld [vmem:[#allocation39_spill] sm:$0xff] }
 0x2cb   :  { %v8913_v9 = vcombine.low %v8905_v10, %v8912_v58  ;;  %v19467_v0 = vmax.f32 %v15420_v37, %v15415_v39  ;;  %v16148_v38 = vmul.f32 %v4427_v42, %v19468_v6  ;;  %v11699_v39 = vld [vmem:[%s18714_s1 + $0xdc] sm:$0x7]  ;;  %v3888_v42 = vcombine.high %v15760_v30, %v15760_v30 }
 0x2cc   :  { %19466 = vst [vmem:[#allocation22_spill] sm:$0xff] %v16138_v23  ;;  %9172 = vadd.xlane.f32.xlu0 %v9171_v60  ;;  %v7017_v56 = vrot.slane %v7010_v61, %v11922_v12  ;;  %v16151_v36 = vmul.f32 %v4429_v22, %v19470_v28  ;;  %v6631_v52 = vmul.f32 %v13172_v18, %v16138_v23  ;;  %v19474_v60 = vld [vmem:[#allocation187_spill] sm:$0xff]  ;;  %v19476_v30 = vld [vmem:[#allocation12_spill] sm:$0xff] }
 0x2cd   :  { %v6158_v21 = vmax.f32 %v19467_v0, %v6157_v53  ;;  %19469 = vst [vmem:[#allocation63_spill] sm:$0xff] %v16148_v38  ;;  %v8920_v58 = vrot.slane %v8913_v9, %v11922_v12  ;;  %v6545_v37 = vmul.f32 %v11699_v39, %v19265_v20  ;;  %v6632_v28 = vmul.f32 %v13172_v18, %v16148_v38  ;;  %v16174_v9 = vld [vmem:[%s18715_s2 + $0x28] sm:$0x7] }
 0x2ce   :  { %19471 = vst [vmem:[#allocation55_spill] sm:$0xff] %v16151_v36  ;;  %v7521_v53 = vsub.f32 %v6529_v40, %v7017_v56  ;;  %v6633_v61 = vmul.f32 %v13172_v18, %v16151_v36  ;;  %v16178_v56 = vpop.xlane.xlu1 %9205  ;;  %v19478_v39 = vmov 4   ;;  %v19484_v36 = vld [vmem:[#allocation138_spill] sm:$0xff] }
 0x2cf   :  { %v6160_v10 = vmax.f32 %v6158_v21, %v19472_v41  ;;  %v9094_v22 = vsub.f32 %v8101_v55, %v8920_v58  ;;  %v7363_v0 = vcombine.low %v6631_v52, %v6632_v28  ;;  %19475 = vst [vmem:[#allocation56_spill] sm:$0xff] %v16178_v56  ;;  %v16182_v55 = vrot.slane %v19476_v30, %v11922_v12  ;;  %v19477_v58 = vld [vmem:[#allocation32_spill] sm:$0xff] }
 0x2d0   :  { %v7562_v40 = vmul.f32 %v16174_v9, %v7521_v53  ;;  %v7377_v21 = vrot.slane %v6633_v61, %v11922_v12 }
 0x2d1   :  { %vm6198_vm12 = vcmp.ge.f32.partialorder %v19473_v51, %v6160_v10  ;;  %vm6199_vm13 = vcmp.ge.f32.partialorder %v19474_v60, %v6160_v10  ;;  %vm6200_vm14 = vcmp.ge.f32.partialorder %v6086_v25, %v6160_v10  ;;  %v11701_v25 = vld [vmem:[%s18715_s2 + $0x58] sm:$0x7]  ;;  %vm6201_vm15 = vcmp.ge.f32.partialorder %v19477_v58, %v6160_v10  ;;  %v19481_v58 = vld [vmem:[#allocation121_spill] sm:$0xff] }
 0x2d2   :  { %v9135_v6 = vmul.f32 %v11701_v25, %v9094_v22  ;;  %v6230_v41 = vsel %vm6198_vm12, 0, %v19478_v39  ;;  %v6231_v53 = vsel %vm6199_vm13, 1, %v19478_v39  ;;  %v7616_v52 = vsel %vm6029_vm0, %v7562_v40, 0.0  ;;  %v19479_v22 = vld [vmem:[#allocation118_spill] sm:$0xff] }
 0x2d3   :  { %v7370_v28 = vrot.slane %v7363_v0, %v11922_v12  ;;  %v6232_v61 = vsel %vm6200_vm14, 2, %v19478_v39  ;;  %v6286_v51 = vsel %vm6029_vm0, %v6230_v41, 2147483647  ;;  %7617 = vadd.xlane.f32.xlu1 %v7616_v52  ;;  %v6287_v57 = vsel %vm6029_vm0, %v6231_v53, 2147483647 }
 0x2d4   :  { %v9219_v60 = vsel %vm6029_vm0, %v9135_v6, 0.0  ;;  %v16198_v10 = vsel %vm6029_vm0, %v16178_v56, inf  ;;  %v16201_v25 = vmul.f32 %v3888_v42, %v19479_v22  ;;  %v6233_v0 = vsel %vm6201_vm15, 3, %v19478_v39 }
 0x2d5   :  { %9220 = vadd.xlane.f32.xlu0 %v9219_v60  ;;  %v7378_v40 = vcombine.low %v7370_v28, %v7377_v21  ;;  %vm6288_vm1 = vcmp.lt.s32.totalorder %v6286_v51, %v6287_v57  ;;  %v19482_v41 = vcombine.high %v15771_v8, %v15771_v8  ;;  %v6290_v53 = vsel %vm6029_vm0, %v6232_v61, 2147483647 }
 0x2d6   :  { %19480 = vst [vmem:[#allocation57_spill] sm:$0xff] %v16201_v25  ;;  %v6289_v6 = vsel %vm6288_vm1, %v6286_v51, %v6287_v57  ;;  %v16213_v38 = vmul.f32 %v16182_v55, %v19484_v36  ;;  %v5039_v42 = vmul.f32 %v13172_v18, %v16201_v25  ;;  %v4476_v8 = vcombine.high %v15837_v27, %v15837_v27  ;;  %v19486_v36 = vld [vmem:[#allocation34_spill] sm:$0xff] }
 0x2d7   :  { %v16208_v52 = vmul.f32 %v19482_v41, %v19481_v58  ;;  %v7385_v21 = vrot.slane %v7378_v40, %v11922_v12  ;;  %vm6291_vm2 = vcmp.lt.s32.totalorder %v6289_v6, %v6290_v53  ;;  %v6293_v57 = vsel %vm6029_vm0, %v6233_v0, 2147483647  ;;  %v19487_v58 = vld [vmem:[#allocation137_spill] sm:$0xff] }
 0x2d8   :  { %19485 = vst [vmem:[#allocation72_spill] sm:$0xff] %v16213_v38  ;;  %v6292_v60 = vsel %vm6291_vm2, %v6289_v6, %v6290_v53  ;;  %v5041_v61 = vmul.f32 %v13172_v18, %v16213_v38  ;;  %v16227_v51 = vrot.slane %v19486_v36, %v11922_v12  ;;  %v19488_v41 = vcombine.high %v15851_v34, %v15851_v34  ;;  %v19489_v6 = vld [vmem:[#allocation134_spill] sm:$0xff]  ;;  %v19490_v53 = vld [vmem:[#allocation152_spill] sm:$0xff] }
 0x2d9   :  { %19483 = vst [vmem:[#allocation71_spill] sm:$0xff] %v16208_v52  ;;  %v5040_v28 = vmul.f32 %v13172_v18, %v16208_v52  ;;  %v7537_v22 = vsub.f32 %v6545_v37, %v7385_v21  ;;  %vm6294_vm3 = vcmp.lt.s32.totalorder %v6292_v60, %v6293_v57  ;;  %v4943_v0 = vmul.f32 %v4476_v8, %v19489_v6  ;;  %v16269_v6 = vld [vmem:[%s18714_s1 + $0x8c] sm:$0x7] }
 0x2da   :  { %v4944_v23 = vmul.f32 %v19488_v41, %v19487_v58  ;;  %v6295_v56 = vsel %vm6294_vm3, %v6292_v60, %v6293_v57  ;;  %v5525_v27 = vrot.slane %v5041_v61, %v11922_v12  ;;  %v4945_v14 = vmul.f32 %v16227_v51, %v19490_v53  ;;  %v16251_v57 = vld [vmem:[%s18714_s1 + $0x80] sm:$0x7]  ;;  %v16263_v58 = vld [vmem:[%s18714_s1 + $0x88] sm:$0x7] }
 0x2db   :  { %v5511_v40 = vcombine.low %v5039_v42, %v5040_v28  ;;  %v7578_v37 = vmul.f32 %v16240_v44, %v7537_v22  ;;  %vm6342_vm4 = vcmp.eq.s32.totalorder %v6295_v56, 0  ;;  %vm6343_vm5 = vcmp.eq.s32.totalorder %v6295_v56, 1 }
 0x2dc   :  { %vm6344_vm6 = vcmp.eq.s32.totalorder %v6295_v56, 2  ;;  %vm6345_vm7 = vcmp.eq.s32.totalorder %v6295_v56, 3  ;;  %v19492_v34 = vmov 0.0   ;;  %v16257_v56 = vld [vmem:[%s18714_s1 + $0x84] sm:$0x7]  ;;  %v8199_v3 = vmul.f32 %v13158_v63, %v4944_v23 }
 0x2dd   :  { %v11231_v42 = vsel %vm6342_vm4, 1.0, %v19492_v34  ;;  %v11232_v21 = vsel %vm6343_vm5, 1.0, %v19492_v34  ;;  %v11233_v28 = vsel %vm6344_vm6, 1.0, %v19492_v34  ;;  %v7664_v8 = vsel %vm6029_vm0, %v7578_v37, 0.0 }
 0x2de   :  { %v11234_v60 = vsel %vm6345_vm7, 1.0, %v19492_v34  ;;  %v6438_v61 = vmul.f32 %v16251_v57, %v11231_v42  ;;  %v6439_v22 = vmul.f32 %v16257_v56, %v11232_v21  ;;  %7665 = vadd.xlane.f32.xlu1 %v7664_v8  ;;  %v6440_v41 = vmul.f32 %v16263_v58, %v11233_v28  ;;  %v9149_v21 = vpop.xlane.xlu0 %9148 }
 0x2df   :  { %v6441_v53 = vmul.f32 %v16269_v6, %v11234_v60  ;;  %v5518_v37 = vrot.slane %v5511_v40, %v11922_v12  ;;  %v8198_v42 = vmul.f32 %v13158_v63, %v4943_v0  ;;  %v8200_v28 = vmul.f32 %v13158_v63, %v4945_v14 }
 0x2e0   :  { %v6482_v8 = vsel %vm6029_vm0, %v6438_v61, 0.0  ;;  %v6483_v5 = vsel %vm6029_vm0, %v6439_v22, 0.0  ;;  %v4978_v40 = vmul.f32 %v16281_v62, %v19265_v20  ;;  %v11708_v61 = vld [vmem:[%s18714_s1 + $0xe8] sm:$0x7]  ;;  %v6485_v44 = vsel %vm6029_vm0, %v6440_v41, 0.0 }
 0x2e1   :  { %v6484_v2 = vadd.f32 %v6483_v5, %v6482_v8  ;;  %v5526_v60 = vcombine.low %v5518_v37, %v5525_v27  ;;  %v8105_v22 = vmul.f32 %v11708_v61, %v19266_v32  ;;  %v8990_v38 = vcombine.low %v8198_v42, %v8199_v3 }
 0x2e2   :  { %v9004_v5 = vrot.slane %v8200_v28, %v11922_v12  ;;  %v9240_v8 = vsel %vm6029_vm0, %v9149_v21, inf  ;;  %v6487_v63 = vsel %vm6029_vm0, %v6441_v53, 0.0  ;;  %v19494_v27 = vmin.f32 %v15566_v13, %v15613_v45 }
 0x2e3   :  { %v6486_v52 = vadd.f32 %v6485_v44, %v6484_v2  ;;  %v5533_v25 = vrot.slane %v5526_v60, %v11922_v12  ;;  %v8997_v62 = vrot.slane %v8990_v38, %v11922_v12  ;;  %v5087_v32 = vmul.f32 %v13172_v18, %v4943_v0 }
 0x2e4   :  { %v9241_v37 = vmin.f32 %v19494_v27, %v9240_v8  ;;  %v5088_v41 = vmul.f32 %v13172_v18, %v4944_v23  ;;  %v5089_v3 = vmul.f32 %v13172_v18, %v4945_v14  ;;  %v19496_v2 = vcombine.high %v19476_v30, %v19476_v30  ;;  %v9197_v27 = vpop.xlane.xlu0 %9196 }
 0x2e5   :  { %v6488_v42 = vadd.f32 %v6487_v63, %v6486_v52  ;;  %v5971_v28 = vsub.f32 %v4978_v40, %v5533_v25  ;;  %v9005_v60 = vcombine.low %v8997_v62, %v9004_v5  ;;  %v3936_v38 = vcombine.high %v16182_v55, %v16182_v55  ;;  %v19497_v62 = vld [vmem:[#allocation190_spill] sm:$0xff]  ;;  %v19498_v5 = vld [vmem:[#allocation139_spill] sm:$0xff] }
 0x2e6   :  { %v9243_v44 = vmin.f32 %v9241_v37, %v19495_v49  ;;  %v3928_v53 = vrot.slane %v19496_v2, %v11922_v12  ;;  %v5879_v13 = vcombine.low %v5087_v32, %v5088_v41  ;;  %v5893_v45 = vrot.slane %v5089_v3, %v11922_v12 }
 0x2e7   :  { %6514 = vst [vmem:[%s18718_s5 + $0x10] sm:$0x7] %v6488_v42  ;;  %v6011_v63 = vmul.f32 %v15719_v31, %v5971_v28  ;;  %v9012_v49 = vrot.slane %v9005_v60, %v11922_v12  ;;  %v4994_v0 = vmul.f32 %v11708_v61, %v19265_v20 }
 0x2e8   :  { %vm9293_vm8 = vcmp.le.f32.partialorder %v15550_v26, %v9243_v44  ;;  %vm9294_vm9 = vcmp.le.f32.partialorder %v15595_v16, %v9243_v44  ;;  %vm9295_vm10 = vcmp.le.f32.partialorder %v9149_v21, %v9243_v44  ;;  %vm9296_vm11 = vcmp.le.f32.partialorder %v19497_v62, %v9243_v44  ;;  %v19500_v44 = vld [vmem:[#allocation142_spill] sm:$0xff] }
 0x2e9   :  { %v9325_v32 = vsel %vm9293_vm8, 0, %v19478_v39  ;;  %v9326_v14 = vsel %vm9294_vm9, 1, %v19478_v39  ;;  %v6072_v23 = vsel %vm6029_vm0, %v6011_v63, 0.0  ;;  %v9327_v30 = vsel %vm9295_vm10, 2, %v19478_v39 }
 0x2ea   :  { %v9328_v55 = vsel %vm9296_vm11, 3, %v19478_v39  ;;  %v9357_v25 = vsel %vm6029_vm0, %v9325_v32, 2147483647  ;;  %6073 = vadd.xlane.f32.xlu0 %v6072_v23  ;;  %v9098_v26 = vsub.f32 %v8105_v22, %v9012_v49  ;;  %v9358_v16 = vsel %vm6029_vm0, %v9326_v14, 2147483647  ;;  %v19499_v22 = vld [vmem:[#allocation141_spill] sm:$0xff] }
 0x2eb   :  { %v9361_v52 = vsel %vm6029_vm0, %v9327_v30, 2147483647  ;;  %vm9359_vm12 = vcmp.lt.s32.totalorder %v9357_v25, %v9358_v16  ;;  %v5886_v21 = vrot.slane %v5879_v13, %v11922_v12  ;;  %v3938_v40 = vcombine.high %v3928_v53, %v3928_v53  ;;  %v19502_v30 = vld [vmem:[#allocation188_spill] sm:$0xff] }
 0x2ec   :  { %v16328_v8 = vmul.f32 %v3928_v53, %v19498_v5  ;;  %v9139_v37 = vmul.f32 %v15885_v50, %v9098_v26  ;;  %v9360_v41 = vsel %vm9359_vm12, %v9357_v25, %v9358_v16  ;;  %v9364_v3 = vsel %vm6029_vm0, %v9328_v55, 2147483647 }
 0x2ed   :  { %v16333_v42 = vmul.f32 %v3936_v38, %v19499_v22  ;;  %vm9362_vm13 = vcmp.lt.s32.totalorder %v9360_v41, %v9361_v52  ;;  %v5894_v28 = vcombine.low %v5886_v21, %v5893_v45  ;;  %v16336_v61 = vmul.f32 %v3938_v40, %v19500_v44  ;;  %v16348_v45 = vld [vmem:[%s18714_s1 + $0x6c] sm:$0x7] }
 0x2ee   :  { %v5042_v2 = vmul.f32 %v13172_v18, %v16328_v8  ;;  %v9231_v53 = vsel %vm6029_vm0, %v9139_v37, 0.0  ;;  %v9363_v60 = vsel %vm9362_vm13, %v9360_v41, %v9361_v52  ;;  %v9268_v13 = vsel %vm6029_vm0, %v9197_v27, inf }
 0x2ef   :  { %v5043_v50 = vmul.f32 %v13172_v18, %v16333_v42  ;;  %9232 = vadd.xlane.f32.xlu1 %v9231_v53  ;;  %vm9365_vm14 = vcmp.lt.s32.totalorder %v9363_v60, %v9364_v3  ;;  %v5901_v38 = vrot.slane %v5894_v28, %v11922_v12  ;;  %v4979_v63 = vmul.f32 %v16348_v45, %v19265_v20 }
 0x2f0   :  { %v5044_v49 = vmul.f32 %v13172_v18, %v16336_v61  ;;  %v9366_v62 = vsel %vm9365_vm14, %v9363_v60, %v9364_v3  ;;  %v19501_v14 = vmin.f32 %v15609_v47, %v15665_v54  ;;  %v3838_v55 = vcombine.high %v19502_v30, %v19502_v30  ;;  %v19503_v3 = vld [vmem:[#allocation31_spill] sm:$0xff] }
 0x2f1   :  { %v5534_v32 = vcombine.low %v5042_v2, %v5043_v50  ;;  %vm9437_vm15 = vcmp.eq.s32.totalorder %v9366_v62, 0  ;;  %vm9438_vm1 = vcmp.eq.s32.totalorder %v9366_v62, 1  ;;  %vm9439_vm2 = vcmp.eq.s32.totalorder %v9366_v62, 2 }
 0x2f2   :  { %v9269_v23 = vmin.f32 %v19501_v14, %v9268_v13  ;;  %vm9440_vm3 = vcmp.eq.s32.totalorder %v9366_v62, 3  ;;  %v11305_v25 = vsel %vm9437_vm15, 1.0, %v19492_v34  ;;  %v11306_v26 = vsel %vm9438_vm1, 1.0, %v19492_v34 }
 0x2f3   :  { %v11307_v16 = vsel %vm9439_vm2, 1.0, %v19492_v34  ;;  %v11308_v52 = vsel %vm9440_vm3, 1.0, %v19492_v34  ;;  %v9533_v21 = vmul.f32 %v15957_v43, %v11305_v25  ;;  %v9534_v47 = vmul.f32 %v15963_v59, %v11306_v26  ;;  %v19505_v25 = vld [vmem:[#allocation108_spill] sm:$0xff] }
 0x2f4   :  { %v9535_v54 = vmul.f32 %v15969_v1, %v11307_v16  ;;  %v9536_v40 = vmul.f32 %v15975_v48, %v11308_v52  ;;  %v5987_v5 = vsub.f32 %v4994_v0, %v5901_v38  ;;  %v5541_v37 = vrot.slane %v5534_v32, %v11922_v12  ;;  %v19504_v48 = vld [vmem:[#allocation29_spill] sm:$0xff]  ;;  %v16388_v32 = vpop.xlane.xlu1 %7593  ;;  %v19506_v16 = vld [vmem:[#allocation110_spill] sm:$0xff] }
 0x2f5   :  { %v5548_v41 = vrot.slane %v5044_v49, %v11922_v12  ;;  %v9271_v22 = vmin.f32 %v9269_v23, %v19503_v3  ;;  %v9565_v28 = vsel %vm6029_vm0, %v9533_v21, 0.0  ;;  %v9566_v44 = vsel %vm6029_vm0, %v9534_v47, 0.0 }
 0x2f6   :  { %v9568_v2 = vsel %vm6029_vm0, %v9535_v54, 0.0  ;;  %v9570_v43 = vsel %vm6029_vm0, %v9536_v40, 0.0  ;;  %v9567_v59 = vadd.f32 %v9566_v44, %v9565_v28  ;;  %v6027_v1 = vmul.f32 %v15785_v35, %v5987_v5  ;;  %v19508_v54 = vld [vmem:[#allocation111_spill] sm:$0xff] }
 0x2f7   :  { %v5549_v53 = vcombine.low %v5541_v37, %v5548_v41  ;;  %vm9309_vm4 = vcmp.le.f32.partialorder %v15593_v46, %v9271_v22  ;;  %vm9310_vm5 = vcmp.le.f32.partialorder %v15645_v17, %v9271_v22  ;;  %vm9311_vm6 = vcmp.le.f32.partialorder %v9197_v27, %v9271_v22 }
 0x2f8   :  { %vm9312_vm7 = vcmp.le.f32.partialorder %v19504_v48, %v9271_v22  ;;  %v9341_v0 = vsel %vm9309_vm4, 0, %v19478_v39  ;;  %v9569_v60 = vadd.f32 %v9568_v2, %v9567_v59  ;;  %v6120_v50 = vsel %vm6029_vm0, %v6027_v1, 0.0  ;;  %v19510_v2 = vld [vmem:[#allocation155_spill] sm:$0xff] }
 0x2f9   :  { %v5556_v13 = vrot.slane %v5549_v53, %v11922_v12  ;;  %v9342_v38 = vsel %vm9310_vm5, 1, %v19478_v39  ;;  %6121 = vadd.xlane.f32.xlu0 %v6120_v50  ;;  %v9343_v35 = vsel %vm9311_vm6, 2, %v19478_v39  ;;  %v9344_v49 = vsel %vm9312_vm7, 3, %v19478_v39 }
 0x2fa   :  { %v9397_v46 = vsel %vm6029_vm0, %v9341_v0, 2147483647  ;;  %v9398_v17 = vsel %vm6029_vm0, %v9342_v38, 2147483647  ;;  %v9571_v62 = vadd.f32 %v9570_v43, %v9569_v60  ;;  %v9401_v30 = vsel %vm6029_vm0, %v9343_v35, 2147483647 }
 0x2fb   :  { %v5972_v14 = vsub.f32 %v4979_v63, %v5556_v13  ;;  %vm9399_vm8 = vcmp.lt.s32.totalorder %v9397_v46, %v9398_v17  ;;  %v16392_v26 = vmul.f32 %v3838_v55, %v19505_v25  ;;  %v19507_v52 = vcombine.high %v15403_v11, %v15403_v11  ;;  %v19511_v35 = vld [vmem:[#allocation157_spill] sm:$0xff] }
 0x2fc   :  { %v9400_v23 = vsel %vm9399_vm8, %v9397_v46, %v9398_v17  ;;  %11337 = vst [vmem:[%s18718_s5 + $0x40] sm:$0x7] %v9571_v62  ;;  %v9404_v63 = vsel %vm6029_vm0, %v9344_v49, 2147483647  ;;  %v16407_v40 = vmul.f32 %v16060_v24, %v19508_v54  ;;  %v19509_v37 = vcombine.high %v19486_v36, %v19486_v36  ;;  %v16425_v36 = vpop.xlane.xlu1 %7641  ;;  %v19512_v46 = vld [vmem:[#allocation158_spill] sm:$0xff]  ;;  %v16443_v62 = vpop.xlane.xlu0 %6049 }
 0x2fd   :  { %v16398_v21 = vmul.f32 %v19507_v52, %v19506_v16  ;;  %v6012_v47 = vmul.f32 %v15719_v31, %v5972_v14  ;;  %vm9402_vm9 = vcmp.lt.s32.totalorder %v9400_v23, %v9401_v30  ;;  %v6580_v5 = vmul.f32 %v13172_v18, %v16392_v26 }
 0x2fe   :  { %v9403_v55 = vsel %vm9402_vm9, %v9400_v23, %v9401_v30  ;;  %v4516_v41 = vrot.slane %v19509_v37, %v11922_v12  ;;  %v6582_v3 = vmul.f32 %v13172_v18, %v16407_v40  ;;  %v4524_v24 = vcombine.high %v16227_v51, %v16227_v51  ;;  %v16458_v23 = vld [vmem:[%s18714_s1 + $0x58] sm:$0x7] }
 0x2ff   :  { %v6581_v11 = vmul.f32 %v13172_v18, %v16398_v21  ;;  %v6075_v31 = vsel %vm6029_vm0, %v6012_v47, 0.0  ;;  %vm9405_vm10 = vcmp.lt.s32.totalorder %v9403_v55, %v9404_v63  ;;  %v6528_v30 = vmul.f32 %v16458_v23, %v19265_v20 }
 0x300   :  { %6076 = vadd.xlane.f32.xlu1 %v6075_v31  ;;  %v9406_v22 = vsel %vm9405_vm10, %v9403_v55, %v9404_v63  ;;  %v4526_v44 = vcombine.high %v4516_v41, %v4516_v41  ;;  %v16423_v43 = vmul.f32 %v4516_v41, %v19510_v2  ;;  %v6986_v38 = vrot.slane %v6582_v3, %v11922_v12  ;;  %v16471_v55 = vpop.xlane.xlu1 %9208  ;;  %v16478_v41 = vld [vmem:[%s18714_s1 + $0xec] sm:$0x7] }
 0x301   :  { %v6972_v28 = vcombine.low %v6580_v5, %v6581_v11  ;;  %vm9453_vm11 = vcmp.eq.s32.totalorder %v9406_v22, 0  ;;  %vm9454_vm12 = vcmp.eq.s32.totalorder %v9406_v22, 1  ;;  %vm9455_vm13 = vcmp.eq.s32.totalorder %v9406_v22, 2 }
 0x302   :  { %vm9456_vm14 = vcmp.eq.s32.totalorder %v9406_v22, 3  ;;  %v11321_v59 = vsel %vm9453_vm11, 1.0, %v19492_v34  ;;  %v11322_v1 = vsel %vm9454_vm12, 1.0, %v19492_v34  ;;  %v11323_v53 = vsel %vm9455_vm13, 1.0, %v19492_v34  ;;  %v19513_v22 = vld [vmem:[#allocation13_spill] sm:$0xff] }
 0x303   :  { %v11324_v51 = vsel %vm9456_vm14, 1.0, %v19492_v34  ;;  %v9549_v48 = vmul.f32 %v16251_v57, %v11321_v59  ;;  %v9550_v0 = vmul.f32 %v16257_v56, %v11322_v1  ;;  %v9551_v60 = vmul.f32 %v16263_v58, %v11323_v53 }
 0x304   :  { %v9552_v50 = vmul.f32 %v16269_v6, %v11324_v51  ;;  %v6979_v13 = vrot.slane %v6972_v28, %v11922_v12  ;;  %v16438_v49 = vmul.f32 %v4524_v24, %v19511_v35  ;;  %v16441_v17 = vmul.f32 %v4526_v44, %v19512_v46  ;;  %v19514_v44 = vld [vmem:[#allocation126_spill] sm:$0xff]  ;;  %v19519_v46 = vld [vmem:[#allocation28_spill] sm:$0xff] }
 0x305   :  { %v16447_v57 = vsel %vm6029_vm0, %v16388_v32, -inf  ;;  %v9593_v56 = vsel %vm6029_vm0, %v9549_v48, 0.0  ;;  %v9594_v58 = vsel %vm6029_vm0, %v9550_v0, 0.0  ;;  %v16453_v6 = vsel %vm6029_vm0, %v16425_v36, -inf  ;;  %v19517_v0 = vld [vmem:[#allocation127_spill] sm:$0xff] }
 0x306   :  { %v9595_v14 = vadd.f32 %v9594_v58, %v9593_v56  ;;  %v6987_v25 = vcombine.low %v6979_v13, %v6986_v38  ;;  %v5090_v16 = vmul.f32 %v13172_v18, %v16423_v43  ;;  %v9596_v52 = vsel %vm6029_vm0, %v9551_v60, 0.0  ;;  %v19518_v38 = vld [vmem:[#allocation124_spill] sm:$0xff] }
 0x307   :  { %v5091_v47 = vmul.f32 %v13172_v18, %v16438_v49  ;;  %v5092_v63 = vmul.f32 %v13172_v18, %v16441_v17  ;;  %v6136_v54 = vsel %vm6029_vm0, %v16443_v62, -inf  ;;  %v9598_v11 = vsel %vm6029_vm0, %v9552_v50, 0.0  ;;  %v16498_v50 = vpop.xlane.xlu0 %6097 }
 0x308   :  { %v9597_v5 = vadd.f32 %v9596_v52, %v9595_v14  ;;  %v6994_v37 = vrot.slane %v6987_v25, %v11922_v12  ;;  %v4995_v31 = vmul.f32 %v16478_v41, %v19265_v20  ;;  %v4426_v28 = vcombine.high %v19513_v22, %v19513_v22  ;;  %v6053_v52 = vpop.xlane.xlu1 %6052  ;;  %v19521_v22 = vld [vmem:[#allocation150_spill] sm:$0xff] }
 0x309   :  { %v5902_v3 = vcombine.low %v5090_v16, %v5091_v47  ;;  %v5916_v24 = vrot.slane %v5092_v63, %v11922_v12  ;;  %v19515_v2 = vcombine.high %v15485_v19, %v15485_v19  ;;  %v19516_v51 = vmax.f32 %v15876_v33, %v15991_v7  ;;  %v16515_v7 = vld [vmem:[%s18714_s1 + $0xd8] sm:$0x7] }
 0x30a   :  { %v9599_v1 = vadd.f32 %v9598_v11, %v9597_v5  ;;  %v7520_v53 = vsub.f32 %v6528_v30, %v6994_v37  ;;  %v16496_v60 = vmul.f32 %v16123_v29, %v19517_v0  ;;  %v16502_v35 = vmul.f32 %v4426_v28, %v19518_v38  ;;  %v16537_v5 = vld [vmem:[%s18714_s1 + $0x7c] sm:$0x7] }
 0x30b   :  { %v16489_v59 = vmul.f32 %v19515_v2, %v19514_v44  ;;  %v6137_v48 = vmax.f32 %v19516_v51, %v6136_v54  ;;  %v5909_v13 = vrot.slane %v5902_v3, %v11922_v12  ;;  %v3956_v56 = vcombine.high %v19519_v46, %v19519_v46  ;;  %19520 = vst [vmem:[#allocation52_spill] sm:$0xff] %v16537_v5  ;;  %v19522_v44 = vld [vmem:[#allocation153_spill] sm:$0xff]  ;;  %v19526_v38 = vld [vmem:[#allocation172_spill] sm:$0xff] }
 0x30c   :  { %11341 = vst [vmem:[%s18718_s5 + $0x50] sm:$0x7] %v9599_v1  ;;  %v7561_v33 = vmul.f32 %v16174_v9, %v7520_v53  ;;  %v6544_v29 = vmul.f32 %v16515_v7, %v19265_v20  ;;  %v6630_v58 = vmul.f32 %v13172_v18, %v16496_v60  ;;  %v16523_v14 = vrot.slane %v19519_v46, %v11922_v12  ;;  %v19523_v1 = vld [vmem:[#allocation47_spill] sm:$0xff] }
 0x30d   :  { %v6629_v19 = vmul.f32 %v13172_v18, %v16489_v59  ;;  %v5917_v30 = vcombine.low %v5909_v13, %v5916_v24  ;;  %v6628_v25 = vmul.f32 %v13172_v18, %v16502_v35  ;;  %v3984_v9 = vrot.slane %v3956_v56, %v11922_v12  ;;  %v19525_v13 = vld [vmem:[#allocation57_spill] sm:$0xff] }
 0x30e   :  { %v6164_v16 = vsel %vm6029_vm0, %v16498_v50, -inf  ;;  %v7613_v47 = vsel %vm6029_vm0, %v7561_v33, 0.0  ;;  %v7354_v63 = vrot.slane %v6630_v58, %v11922_v12  ;;  %v3986_v54 = vcombine.high %v16523_v14, %v16523_v14  ;;  %v19527_v33 = vld [vmem:[#allocation154_spill] sm:$0xff] }
 0x30f   :  { %v6533_v11 = vmul.f32 %v16537_v5, %v19265_v20  ;;  %7614 = vadd.xlane.f32.xlu0 %v7613_v47  ;;  %v5924_v37 = vrot.slane %v5917_v30, %v11922_v12  ;;  %v7340_v3 = vcombine.low %v6628_v25, %v6629_v19  ;;  %v3988_v24 = vcombine.high %v3984_v9, %v3984_v9  ;;  %v19530_v47 = vld [vmem:[#allocation72_spill] sm:$0xff] }
 0x310   :  { %v16543_v28 = vmul.f32 %v3984_v9, %v19521_v22  ;;  %v16546_v2 = vmul.f32 %v3986_v54, %v19522_v44  ;;  %v19524_v53 = vmax.f32 %v15987_v4, %v19523_v1  ;;  %v6138_v0 = vsel %vm6029_vm0, %v6053_v52, -inf  ;;  %v19529_v9 = vld [vmem:[#allocation71_spill] sm:$0xff] }
 0x311   :  { %v8150_v46 = vmul.f32 %v19526_v38, %v19525_v13  ;;  %v5988_v56 = vsub.f32 %v4995_v31, %v5924_v37  ;;  %v7347_v19 = vrot.slane %v7340_v3, %v11922_v12  ;;  %v16558_v58 = vmul.f32 %v3988_v24, %v19527_v33  ;;  %v11714_v31 = vld [vmem:[%s18715_s2 + $0x1c] sm:$0x7]  ;;  %v19531_v22 = vld [vmem:[#allocation183_spill] sm:$0xff] }
 0x312   :  { %v16551_v51 = vmax.f32 %v19524_v53, %v6164_v16  ;;  %v6595_v30 = vmul.f32 %v13172_v18, %v16543_v28  ;;  %v6596_v25 = vmul.f32 %v13172_v18, %v16546_v2  ;;  %v6139_v4 = vmax.f32 %v6137_v48, %v6138_v0  ;;  %v19532_v48 = vld [vmem:[#allocation41_spill] sm:$0xff]  ;;  %v19533_v53 = vld [vmem:[#allocation58_spill] sm:$0xff] }
 0x313   :  { %19528 = vst [vmem:[#allocation53_spill] sm:$0xff] %v16558_v58  ;;  %v8151_v16 = vmul.f32 %v19526_v38, %v19529_v9  ;;  %v8152_v54 = vmul.f32 %v19526_v38, %v19530_v47  ;;  %v6028_v37 = vmul.f32 %v11714_v31, %v5988_v56  ;;  %v7355_v3 = vcombine.low %v7347_v19, %v7354_v63  ;;  %v19534_v47 = vld [vmem:[#allocation170_spill] sm:$0xff] }
 0x314   :  { %v6597_v24 = vmul.f32 %v13172_v18, %v16558_v58  ;;  %v4544_v44 = vcombine.high %v19531_v22, %v19531_v22  ;;  %v7087_v1 = vcombine.low %v6595_v30, %v6596_v25  ;;  %vm6186_vm15 = vcmp.ge.f32.partialorder %v19532_v48, %v6139_v4  ;;  %v19535_v31 = vld [vmem:[#allocation54_spill] sm:$0xff] }
 0x315   :  { %vm6187_vm1 = vcmp.ge.f32.partialorder %v19533_v53, %v6139_v4  ;;  %vm6188_vm2 = vcmp.ge.f32.partialorder %v16443_v62, %v6139_v4  ;;  %v6123_v0 = vsel %vm6029_vm0, %v6028_v37, 0.0  ;;  %v7362_v13 = vrot.slane %v7355_v3, %v11922_v12 }
 0x316   :  { %v7101_v56 = vrot.slane %v6597_v24, %v11922_v12  ;;  %vm6189_vm3 = vcmp.ge.f32.partialorder %v6053_v52, %v6139_v4  ;;  %6124 = vadd.xlane.f32.xlu1 %v6123_v0  ;;  %v7094_v63 = vrot.slane %v7087_v1, %v11922_v12  ;;  %v6218_v19 = vsel %vm6186_vm15, 0, %v19478_v39  ;;  %v19536_v24 = vld [vmem:[#allocation73_spill] sm:$0xff] }
 0x317   :  { %v6219_v33 = vsel %vm6187_vm1, 1, %v19478_v39  ;;  %v6220_v30 = vsel %vm6188_vm2, 2, %v19478_v39  ;;  %v7536_v25 = vsub.f32 %v6544_v29, %v7362_v13  ;;  %v6256_v9 = vsel %vm6029_vm0, %v6218_v19, 2147483647 }
 0x318   :  { %v6257_v62 = vsel %vm6029_vm0, %v6219_v33, 2147483647  ;;  %v8089_v37 = vmul.f32 %v19535_v31, %v19534_v47  ;;  %v7102_v3 = vcombine.low %v7094_v63, %v7101_v56  ;;  %v6221_v52 = vsel %vm6189_vm3, 3, %v19478_v39  ;;  %v16599_v63 = vpop.xlane.xlu0 %7590 }
 0x319   :  { %vm6258_vm4 = vcmp.lt.s32.totalorder %v6256_v9, %v6257_v62  ;;  %v6260_v4 = vsel %vm6029_vm0, %v6220_v30, 2147483647  ;;  %v7577_v1 = vmul.f32 %v19536_v24, %v7536_v25  ;;  %v8622_v53 = vcombine.low %v8150_v46, %v8151_v16 }
 0x31a   :  { %v6259_v48 = vsel %vm6258_vm4, %v6256_v9, %v6257_v62  ;;  %v8636_v0 = vrot.slane %v8152_v54, %v11922_v12  ;;  %v7109_v29 = vrot.slane %v7102_v3, %v11922_v12  ;;  %v16596_v13 = vrot.slane %v19531_v22, %v11922_v12  ;;  %v16609_v22 = vld [vmem:[%s18715_s2 + $0x2c] sm:$0x7]  ;;  %v19537_v62 = vld [vmem:[#allocation167_spill] sm:$0xff] }
 0x31b   :  { %vm6261_vm5 = vcmp.lt.s32.totalorder %v6259_v48, %v6260_v4  ;;  %v4572_v56 = vrot.slane %v4544_v44, %v11922_v12  ;;  %v7661_v19 = vsel %vm6029_vm0, %v7577_v1, 0.0  ;;  %v6263_v30 = vsel %vm6029_vm0, %v6221_v52, 2147483647 }
 0x31c   :  { %v6262_v33 = vsel %vm6261_vm5, %v6259_v48, %v6260_v4  ;;  %v8629_v46 = vrot.slane %v8622_v53, %v11922_v12  ;;  %7662 = vadd.xlane.f32.xlu0 %v7661_v19  ;;  %v7525_v16 = vsub.f32 %v6533_v11, %v7109_v29  ;;  %v4574_v54 = vcombine.high %v16596_v13, %v16596_v13  ;;  %v16625_v53 = vld [vmem:[%s18714_s1 + $0x20] sm:$0x7]  ;;  %v16631_v29 = vld [vmem:[%s18714_s1 + $0x24] sm:$0x7]  ;;  %v16637_v19 = vld [vmem:[%s18714_s1 + $0x28] sm:$0x7] }
 0x31d   :  { %vm6264_vm6 = vcmp.lt.s32.totalorder %v6262_v33, %v6263_v30  ;;  %v4576_v25 = vcombine.high %v4572_v56, %v4572_v56  ;;  %v16612_v31 = vmul.f32 %v4572_v56, %v19537_v62  ;;  %v7682_v3 = vsel %vm6029_vm0, %v16599_v63, -inf }
 0x31e   :  { %v6265_v44 = vsel %vm6264_vm6, %v6262_v33, %v6263_v30  ;;  %v8637_v9 = vcombine.low %v8629_v46, %v8636_v0  ;;  %v7566_v11 = vmul.f32 %v16609_v22, %v7525_v16  ;;  %v16643_v30 = vld [vmem:[%s18714_s1 + $0x2c] sm:$0x7] }
 0x31f   :  { %19538 = vst [vmem:[#allocation70_spill] sm:$0xff] %v16612_v31  ;;  %vm6330_vm7 = vcmp.eq.s32.totalorder %v6265_v44, 0  ;;  %vm6331_vm8 = vcmp.eq.s32.totalorder %v6265_v44, 1  ;;  %vm6332_vm9 = vcmp.eq.s32.totalorder %v6265_v44, 2  ;;  %vm6333_vm10 = vcmp.eq.s32.totalorder %v6265_v44, 3  ;;  %v19539_v44 = vld [vmem:[#allocation168_spill] sm:$0xff] }
 0x320   :  { %v11219_v52 = vsel %vm6330_vm7, 1.0, %v19492_v34  ;;  %v11220_v4 = vsel %vm6331_vm8, 1.0, %v19492_v34  ;;  %v11221_v24 = vsel %vm6332_vm9, 1.0, %v19492_v34  ;;  %v7628_v1 = vsel %vm6029_vm0, %v7566_v11, 0.0  ;;  %v6101_v11 = vpop.xlane.xlu1 %6100 }
 0x321   :  { %v11222_v48 = vsel %vm6333_vm10, 1.0, %v19492_v34  ;;  %v6426_v0 = vmul.f32 %v16625_v53, %v11219_v52  ;;  %v6427_v56 = vmul.f32 %v16631_v29, %v11220_v4  ;;  %7629 = vadd.xlane.f32.xlu1 %v7628_v1  ;;  %v6428_v33 = vmul.f32 %v16637_v19, %v11221_v24  ;;  %v19541_v1 = vld [vmem:[#allocation169_spill] sm:$0xff] }
 0x322   :  { %v6429_v46 = vmul.f32 %v16643_v30, %v11222_v48  ;;  %v8644_v16 = vrot.slane %v8637_v9, %v11922_v12  ;;  %v16648_v62 = vmul.f32 %v4574_v54, %v19539_v44  ;;  %v16653_v27 = vmul.f32 %v4576_v25, %v19541_v1  ;;  %v11719_v54 = vld [vmem:[%s18714_s1 + $0xfc] sm:$0x7]  ;;  %v19544_v44 = vld [vmem:[#allocation193_spill] sm:$0xff] }
 0x323   :  { %v6461_v52 = vsel %vm6029_vm0, %v6426_v0, 0.0  ;;  %v6462_v4 = vsel %vm6029_vm0, %v6427_v56, 0.0  ;;  %v6643_v24 = vmul.f32 %v13172_v18, %v16612_v31  ;;  %v6464_v58 = vsel %vm6029_vm0, %v6428_v33, 0.0  ;;  %v19543_v56 = vld [vmem:[#allocation197_spill] sm:$0xff] }
 0x324   :  { %19540 = vst [vmem:[#allocation68_spill] sm:$0xff] %v16648_v62  ;;  %19542 = vst [vmem:[#allocation69_spill] sm:$0xff] %v16653_v27  ;;  %v6463_v5 = vadd.f32 %v6462_v4, %v6461_v52  ;;  %v9082_v48 = vsub.f32 %v8089_v37, %v8644_v16  ;;  %v6549_v9 = vmul.f32 %v11719_v54, %v19265_v20  ;;  %v6166_v52 = vsel %vm6029_vm0, %v6101_v11, -inf  ;;  %v16674_v16 = vld [vmem:[%s18715_s2 + $0x4c] sm:$0x7] }
 0x325   :  { %v6644_v0 = vmul.f32 %v13172_v18, %v16648_v62  ;;  %v6645_v25 = vmul.f32 %v13172_v18, %v16653_v27  ;;  %v19545_v1 = vmax.f32 %v19543_v56, %v19544_v44  ;;  %v6466_v37 = vsel %vm6029_vm0, %v6429_v46, 0.0  ;;  %v19546_v46 = vld [vmem:[#allocation42_spill] sm:$0xff] }
 0x326   :  { %v6465_v33 = vadd.f32 %v6464_v58, %v6463_v5  ;;  %v9123_v4 = vmul.f32 %v16674_v16, %v9082_v48  ;;  %v6167_v54 = vmax.f32 %v16551_v51, %v6166_v52  ;;  %v19547_v44 = vld [vmem:[#allocation46_spill] sm:$0xff] }
 0x327   :  { %v7683_v31 = vmax.f32 %v19545_v1, %v7682_v3  ;;  %v7455_v62 = vcombine.low %v6643_v24, %v6644_v0  ;;  %v7469_v27 = vrot.slane %v6645_v25, %v11922_v12  ;;  %v16682_v3 = vmul.f32 %v16458_v23, %v19534_v47  ;;  %v19548_v51 = vld [vmem:[#allocation10_spill] sm:$0xff]  ;;  %v19549_v24 = vld [vmem:[#allocation11_spill] sm:$0xff] }
 0x328   :  { %v6467_v5 = vadd.f32 %v6466_v37, %v6465_v33  ;;  %v9183_v58 = vsel %vm6029_vm0, %v9123_v4, 0.0  ;;  %vm6202_vm11 = vcmp.ge.f32.partialorder %v19546_v46, %v6167_v54  ;;  %vm6203_vm12 = vcmp.ge.f32.partialorder %v19547_v44, %v6167_v54 }
 0x329   :  { %v7685_v56 = vmax.f32 %v7683_v31, %v16447_v57  ;;  %9184 = vadd.xlane.f32.xlu0 %v9183_v58  ;;  %v7462_v48 = vrot.slane %v7455_v62, %v11922_v12  ;;  %vm6204_vm3 = vcmp.ge.f32.partialorder %v16498_v50, %v6167_v54  ;;  %vm6205_vm4 = vcmp.ge.f32.partialorder %v6101_v11, %v6167_v54  ;;  %v16719_v11 = vld [vmem:[%s18715_s2 + $0x3c] sm:$0x7] }
 0x32a   :  { %6511 = vst [vmem:[%s18718_s5 + $0x4] sm:$0x7] %v6467_v5  ;;  %v6235_v4 = vsel %vm6203_vm12, 1, %v19478_v39  ;;  %v6236_v50 = vsel %vm6204_vm3, 2, %v19478_v39  ;;  %v6237_v46 = vsel %vm6205_vm4, 3, %v19478_v39 }
 0x32b   :  { %vm7735_vm13 = vcmp.ge.f32.partialorder %v19548_v51, %v7685_v56  ;;  %vm7736_vm14 = vcmp.ge.f32.partialorder %v19549_v24, %v7685_v56  ;;  %vm7737_vm15 = vcmp.ge.f32.partialorder %v16599_v63, %v7685_v56  ;;  %vm7738_vm1 = vcmp.ge.f32.partialorder %v16388_v32, %v7685_v56 }
 0x32c   :  { %v7767_v57 = vsel %vm7735_vm13, 0, %v19478_v39  ;;  %v7768_v23 = vsel %vm7736_vm14, 1, %v19478_v39  ;;  %v7769_v31 = vsel %vm7737_vm15, 2, %v19478_v39  ;;  %v7470_v0 = vcombine.low %v7462_v48, %v7469_v27 }
 0x32d   :  { %v7770_v62 = vsel %vm7738_vm1, 3, %v19478_v39  ;;  %v7799_v25 = vsel %vm6029_vm0, %v7767_v57, 2147483647  ;;  %v7800_v1 = vsel %vm6029_vm0, %v7768_v23, 2147483647  ;;  %v9692_v32 = vmul.f32 %v19526_v38, %v16392_v26 }
 0x32e   :  { %vm7801_vm2 = vcmp.lt.s32.totalorder %v7799_v25, %v7800_v1  ;;  %v7803_v63 = vsel %vm6029_vm0, %v7769_v31, 2147483647  ;;  %v7477_v52 = vrot.slane %v7470_v0, %v11922_v12  ;;  %v6234_v27 = vsel %vm6202_vm11, 0, %v19478_v39 }
 0x32f   :  { %v7802_v33 = vsel %vm7801_vm2, %v7799_v25, %v7800_v1  ;;  %v7806_v37 = vsel %vm6029_vm0, %v7770_v62, 2147483647  ;;  %v6296_v26 = vsel %vm6029_vm0, %v6234_v27, 2147483647  ;;  %v6297_v58 = vsel %vm6029_vm0, %v6235_v4, 2147483647 }
 0x330   :  { %vm7804_vm5 = vcmp.lt.s32.totalorder %v7802_v33, %v7803_v63  ;;  %v7541_v56 = vsub.f32 %v6549_v9, %v7477_v52  ;;  %vm6298_vm7 = vcmp.lt.s32.totalorder %v6296_v26, %v6297_v58  ;;  %v6300_v54 = vsel %vm6029_vm0, %v6236_v50, 2147483647  ;;  %v16734_v62 = vld [vmem:[%s18714_s1 + $0x10] sm:$0x7]  ;;  %v16740_v25 = vld [vmem:[%s18714_s1 + $0x14] sm:$0x7] }
 0x331   :  { %v7805_v5 = vsel %vm7804_vm5, %v7802_v33, %v7803_v63  ;;  %v6299_v9 = vsel %vm6298_vm7, %v6296_v26, %v6297_v58  ;;  %v9693_v51 = vmul.f32 %v19526_v38, %v16398_v21  ;;  %v16746_v63 = vld [vmem:[%s18714_s1 + $0x18] sm:$0x7]  ;;  %v16752_v33 = vld [vmem:[%s18714_s1 + $0x1c] sm:$0x7]  ;;  %v6303_v26 = vsel %vm6029_vm0, %v6237_v46, 2147483647 }
 0x332   :  { %vm7807_vm6 = vcmp.lt.s32.totalorder %v7805_v5, %v7806_v37  ;;  %v7582_v44 = vmul.f32 %v16719_v11, %v7541_v56  ;;  %vm6301_vm12 = vcmp.lt.s32.totalorder %v6299_v9, %v6300_v54 }
 0x333   :  { %v7808_v48 = vsel %vm7807_vm6, %v7805_v5, %v7806_v37  ;;  %v9694_v37 = vmul.f32 %v19526_v38, %v16407_v40  ;;  %v10084_v4 = vcombine.low %v9692_v32, %v9693_v51  ;;  %v6302_v5 = vsel %vm6301_vm12, %v6299_v9, %v6300_v54  ;;  %v7639_v51 = vpop.xlane.xlu0 %7638 }
 0x334   :  { %vm7879_vm8 = vcmp.eq.s32.totalorder %v7808_v48, 0  ;;  %vm7880_vm9 = vcmp.eq.s32.totalorder %v7808_v48, 1  ;;  %vm7881_vm10 = vcmp.eq.s32.totalorder %v7808_v48, 2  ;;  %vm7882_vm11 = vcmp.eq.s32.totalorder %v7808_v48, 3 }
 0x335   :  { %v7676_v24 = vsel %vm6029_vm0, %v7582_v44, 0.0  ;;  %v11255_v57 = vsel %vm7879_vm8, 1.0, %v19492_v34  ;;  %v11256_v23 = vsel %vm7880_vm9, 1.0, %v19492_v34  ;;  %v11257_v31 = vsel %vm7881_vm10, 1.0, %v19492_v34 }
 0x336   :  { %7677 = vadd.xlane.f32.xlu1 %v7676_v24  ;;  %v11258_v0 = vsel %vm7882_vm11, 1.0, %v19492_v34  ;;  %v7975_v21 = vmul.f32 %v16734_v62, %v11255_v57  ;;  %v7976_v1 = vmul.f32 %v16740_v25, %v11256_v23  ;;  %v7977_v52 = vmul.f32 %v16746_v63, %v11257_v31 }
 0x337   :  { %v7978_v27 = vmul.f32 %v16752_v33, %v11258_v0  ;;  %vm6304_vm13 = vcmp.lt.s32.totalorder %v6302_v5, %v6303_v26  ;;  %v10091_v57 = vrot.slane %v10084_v4, %v11922_v12  ;;  %v10098_v23 = vrot.slane %v9694_v37, %v11922_v12  ;;  %v16791_v4 = vld [vmem:[%s18714_s1 + $0xac] sm:$0x7] }
 0x338   :  { %v8007_v50 = vsel %vm6029_vm0, %v7975_v21, 0.0  ;;  %v8008_v56 = vsel %vm6029_vm0, %v7976_v1, 0.0  ;;  %v8010_v44 = vsel %vm6029_vm0, %v7977_v52, 0.0  ;;  %v6305_v24 = vsel %vm6304_vm13, %v6302_v5, %v6303_v26  ;;  %v16773_v21 = vld [vmem:[%s18714_s1 + $0xa0] sm:$0x7]  ;;  %19553 = vst [vmem:[#allocation44_spill] sm:$0xff] %v16791_v4 }
 0x339   :  { %v8009_v58 = vadd.f32 %v8008_v56, %v8007_v50  ;;  %v8012_v48 = vsel %vm6029_vm0, %v7978_v27, 0.0  ;;  %v8153_v40 = vmul.f32 %v19526_v38, %v16328_v8  ;;  %vm6346_vm14 = vcmp.eq.s32.totalorder %v6305_v24, 0  ;;  %19550 = vst [vmem:[#allocation26_spill] sm:$0xff] %v16773_v21  ;;  %v16779_v1 = vld [vmem:[%s18714_s1 + $0xa4] sm:$0x7] }
 0x33a   :  { %vm6347_vm15 = vcmp.eq.s32.totalorder %v6305_v24, 1  ;;  %vm6348_vm1 = vcmp.eq.s32.totalorder %v6305_v24, 2  ;;  %vm6349_vm2 = vcmp.eq.s32.totalorder %v6305_v24, 3  ;;  %v11235_v46 = vsel %vm6346_vm14, 1.0, %v19492_v34  ;;  %19551 = vst [vmem:[#allocation198_spill] sm:$0xff] %v16779_v1 }
 0x33b   :  { %v8011_v32 = vadd.f32 %v8010_v44, %v8009_v58  ;;  %v11236_v54 = vsel %vm6347_vm15, 1.0, %v19492_v34  ;;  %v11237_v9 = vsel %vm6348_vm1, 1.0, %v19492_v34  ;;  %v11238_v0 = vsel %vm6349_vm2, 1.0, %v19492_v34  ;;  %v16785_v27 = vld [vmem:[%s18714_s1 + $0xa8] sm:$0x7] }
 0x33c   :  { %v6442_v8 = vmul.f32 %v16773_v21, %v11235_v46  ;;  %v6443_v52 = vmul.f32 %v16779_v1, %v11236_v54  ;;  %19552 = vst [vmem:[#allocation173_spill] sm:$0xff] %v16785_v27  ;;  %v6444_v37 = vmul.f32 %v16785_v27, %v11237_v9  ;;  %v6445_v50 = vmul.f32 %v16791_v4, %v11238_v0  ;;  %v19554_v9 = vld [vmem:[#allocation171_spill] sm:$0xff] }
 0x33d   :  { %v8013_v31 = vadd.f32 %v8012_v48, %v8011_v32  ;;  %v10099_v56 = vcombine.low %v10091_v57, %v10098_v23  ;;  %v8154_v5 = vmul.f32 %v19526_v38, %v16333_v42  ;;  %v8155_v44 = vmul.f32 %v19526_v38, %v16336_v61 }
 0x33e   :  { %v6489_v26 = vsel %vm6029_vm0, %v6442_v8, 0.0  ;;  %v6490_v58 = vsel %vm6029_vm0, %v6443_v52, 0.0  ;;  %v7710_v48 = vsel %vm6029_vm0, %v7639_v51, -inf  ;;  %v9275_v24 = vsel %vm6029_vm0, %v16471_v55, inf }
 0x33f   :  { %11287 = vst [vmem:[%s18718_s5 + $0x20] sm:$0x7] %v8013_v31  ;;  %v6491_v57 = vadd.f32 %v6490_v58, %v6489_v26  ;;  %v10106_v23 = vrot.slane %v10099_v56, %v11922_v12  ;;  %v8090_v42 = vmul.f32 %v16348_v45, %v19534_v47  ;;  %v6492_v32 = vsel %vm6029_vm0, %v6444_v37, 0.0  ;;  %v19555_v31 = vld [vmem:[#allocation15_spill] sm:$0xff] }
 0x340   :  { %v8645_v46 = vcombine.low %v8153_v40, %v8154_v5  ;;  %v8659_v54 = vrot.slane %v8155_v44, %v11922_v12  ;;  %v19556_v0 = vmax.f32 %v19554_v9, %v19555_v31  ;;  %v6494_v52 = vsel %vm6029_vm0, %v6445_v50, 0.0  ;;  %v16827_v50 = vld [vmem:[%s18715_s2 + $0x68] sm:$0x7] }
 0x341   :  { %v6493_v8 = vadd.f32 %v6492_v32, %v6491_v57  ;;  %v10632_v4 = vsub.f32 %v16682_v3, %v10106_v23  ;;  %v9740_v56 = vmul.f32 %v19526_v38, %v16502_v35  ;;  %v9741_v40 = vmul.f32 %v19526_v38, %v16489_v59  ;;  %v19557_v35 = vld [vmem:[#allocation27_spill] sm:$0xff] }
 0x342   :  { %v7711_v61 = vmax.f32 %v19556_v0, %v7710_v48  ;;  %v8652_v26 = vrot.slane %v8645_v46, %v11922_v12  ;;  %v9742_v37 = vmul.f32 %v19526_v38, %v16496_v60  ;;  %v19558_v58 = vcombine.high %v19557_v35, %v19557_v35  ;;  %v19560_v57 = vld [vmem:[#allocation191_spill] sm:$0xff]  ;;  %v19561_v60 = vld [vmem:[#allocation192_spill] sm:$0xff] }
 0x343   :  { %v6495_v5 = vadd.f32 %v6494_v52, %v6493_v8  ;;  %v10673_v3 = vmul.f32 %v16827_v50, %v10632_v4  ;;  %v19562_v46 = vmin.f32 %v16091_v15, %v16198_v10  ;;  %v16858_v8 = vpop.xlane.xlu1 %7605  ;;  %v10452_v52 = vcombine.low %v9740_v56, %v9741_v40  ;;  %v19565_v35 = vld [vmem:[#allocation151_spill] sm:$0xff]  ;;  %v19567_v40 = vld [vmem:[#allocation149_spill] sm:$0xff] }
 0x344   :  { %v7713_v45 = vmax.f32 %v7711_v61, %v16453_v6  ;;  %v16834_v44 = vrot.slane %v19558_v58, %v11922_v12  ;;  %v19559_v6 = vld [vmem:[#allocation6_spill] sm:$0xff]  ;;  %v8660_v48 = vcombine.low %v8652_v26, %v8659_v54  ;;  %19563 = vst [vmem:[#allocation48_spill] sm:$0xff] %v16858_v8  ;;  %v10466_v15 = vrot.slane %v9742_v37, %v11922_v12 }
 0x345   :  { %v3985_v59 = vcombine.high %v19559_v6, %v19559_v6  ;;  %6515 = vst [vmem:[%s18718_s5 + $0x14] sm:$0x7] %v6495_v5  ;;  %v10725_v4 = vsel %vm6029_vm0, %v10673_v3, 0.0  ;;  %v16850_v54 = vmin.f32 %v19562_v46, %v9275_v24  ;;  %v19564_v5 = vld [vmem:[#allocation148_spill] sm:$0xff]  ;;  %v16869_v58 = vmul.f32 %v16523_v14, %v19565_v35 }
 0x346   :  { %vm7751_vm3 = vcmp.ge.f32.partialorder %v19560_v57, %v7713_v45  ;;  %vm7752_vm4 = vcmp.ge.f32.partialorder %v19561_v60, %v7713_v45  ;;  %vm7753_vm5 = vcmp.ge.f32.partialorder %v7639_v51, %v7713_v45  ;;  %vm7754_vm6 = vcmp.ge.f32.partialorder %v16425_v36, %v7713_v45  ;;  %10726 = vadd.xlane.f32.xlu0 %v10725_v4  ;;  %v16928_v35 = vld [vmem:[%s18714_s1 + $0x9c] sm:$0x7] }
 0x347   :  { %v7783_v23 = vsel %vm7751_vm3, 0, %v19478_v39  ;;  %v7784_v32 = vsel %vm7752_vm4, 1, %v19478_v39  ;;  %v8667_v51 = vrot.slane %v8660_v48, %v11922_v12  ;;  %v7785_v9 = vsel %vm7753_vm5, 2, %v19478_v39  ;;  %v16871_v48 = vpop.xlane.xlu0 %9160  ;;  %19570 = vst [vmem:[#allocation85_spill] sm:$0xff] %v16928_v35 }
 0x348   :  { %v7839_v31 = vsel %vm6029_vm0, %v7783_v23, 2147483647  ;;  %v7786_v0 = vsel %vm7754_vm6, 3, %v19478_v39  ;;  %v7840_v36 = vsel %vm6029_vm0, %v7784_v32, 2147483647  ;;  %v3987_v10 = vcombine.high %v16834_v44, %v16834_v44 }
 0x349   :  { %v7843_v61 = vsel %vm6029_vm0, %v7785_v9, 2147483647  ;;  %v9083_v26 = vsub.f32 %v8090_v42, %v8667_v51  ;;  %vm7841_vm7 = vcmp.lt.s32.totalorder %v7839_v31, %v7840_v36  ;;  %v10459_v45 = vrot.slane %v10452_v52, %v11922_v12 }
 0x34a   :  { %v7842_v24 = vsel %vm7841_vm7, %v7839_v31, %v7840_v36  ;;  %v16865_v3 = vmul.f32 %v3985_v59, %v19564_v5  ;;  %v16876_v56 = vsel %vm6029_vm0, %v16858_v8, -inf  ;;  %v16879_v37 = vmul.f32 %v3987_v10, %v19567_v40  ;;  %v16916_v10 = vld [vmem:[%s18714_s1 + $0x94] sm:$0x7]  ;;  %v16931_v40 = vpop.xlane.xlu1 %7653 }
 0x34b   :  { %v9124_v42 = vmul.f32 %v16674_v16, %v9083_v26  ;;  %vm7844_vm8 = vcmp.lt.s32.totalorder %v7842_v24, %v7843_v61  ;;  %19566 = vst [vmem:[#allocation49_spill] sm:$0xff] %v16876_v56  ;;  %v7846_v59 = vsel %vm6029_vm0, %v7786_v0, 2147483647  ;;  %v9656_v60 = vmul.f32 %v16515_v7, %v19534_v47  ;;  %v16888_v16 = vld [vmem:[%s18714_s1 + $0x78] sm:$0x7]  ;;  %v16905_v52 = vpop.xlane.xlu0 %10702  ;;  %19568 = vst [vmem:[#allocation81_spill] sm:$0xff] %v16916_v10 }
 0x34c   :  { %v7845_v57 = vsel %vm7844_vm8, %v7842_v24, %v7843_v61  ;;  %v10467_v14 = vcombine.low %v10459_v45, %v10466_v15  ;;  %v16892_v23 = vmul.f32 %v16888_v16, %v19534_v47  ;;  %v9704_v32 = vmul.f32 %v19526_v38, %v16865_v3  ;;  %v16910_v26 = vld [vmem:[%s18714_s1 + $0x90] sm:$0x7]  ;;  %v16922_v45 = vld [vmem:[%s18714_s1 + $0x98] sm:$0x7] }
 0x34d   :  { %v9186_v4 = vsel %vm6029_vm0, %v9124_v42, 0.0  ;;  %vm7847_vm9 = vcmp.lt.s32.totalorder %v7845_v57, %v7846_v59  ;;  %v9705_v51 = vmul.f32 %v19526_v38, %v16879_v37  ;;  %v9706_v9 = vmul.f32 %v19526_v38, %v16869_v58  ;;  %19569 = vst [vmem:[#allocation84_spill] sm:$0xff] %v16922_v45  ;;  %v19578_v56 = vld [vmem:[#allocation35_spill] sm:$0xff] }
 0x34e   :  { %9187 = vadd.xlane.f32.xlu1 %v9186_v4  ;;  %v7848_v46 = vsel %vm7847_vm9, %v7845_v57, %v7846_v59  ;;  %v10474_v7 = vrot.slane %v10467_v14, %v11922_v12  ;;  %v9247_v4 = vsel %vm6029_vm0, %v16871_v48, inf }
 0x34f   :  { %vm7895_vm10 = vcmp.eq.s32.totalorder %v7848_v46, 0  ;;  %vm7896_vm11 = vcmp.eq.s32.totalorder %v7848_v46, 1  ;;  %vm7897_vm12 = vcmp.eq.s32.totalorder %v7848_v46, 2  ;;  %vm7898_vm13 = vcmp.eq.s32.totalorder %v7848_v46, 3 }
 0x350   :  { %v11271_v31 = vsel %vm7895_vm10, 1.0, %v19492_v34  ;;  %v11272_v0 = vsel %vm7896_vm11, 1.0, %v19492_v34  ;;  %v11273_v36 = vsel %vm7897_vm12, 1.0, %v19492_v34  ;;  %v11274_v61 = vsel %vm7898_vm13, 1.0, %v19492_v34 }
 0x351   :  { %v7991_v15 = vmul.f32 %v16910_v26, %v11271_v31  ;;  %v7992_v24 = vmul.f32 %v16916_v10, %v11272_v0  ;;  %v7993_v5 = vmul.f32 %v16922_v45, %v11273_v36  ;;  %v7994_v42 = vmul.f32 %v16928_v35, %v11274_v61  ;;  %v16943_v61 = vld [vmem:[%s18715_s2 + $0x78] sm:$0x7]  ;;  %v19585_v45 = vld [vmem:[#allocation43_spill] sm:$0xff] }
 0x352   :  { %v10648_v57 = vsub.f32 %v9656_v60, %v10474_v7  ;;  %v10176_v59 = vcombine.low %v9704_v32, %v9705_v51  ;;  %v10190_v14 = vrot.slane %v9706_v9, %v11922_v12  ;;  %19571 = vst [vmem:[#allocation195_spill] sm:$0xff] %v16943_v61  ;;  %v19572_v7 = vld [vmem:[#allocation16_spill] sm:$0xff]  ;;  %v19573_v9 = vld [vmem:[#allocation62_spill] sm:$0xff] }
 0x353   :  { %v8035_v46 = vsel %vm6029_vm0, %v7991_v15, 0.0  ;;  %v8036_v31 = vsel %vm6029_vm0, %v7992_v24, 0.0  ;;  %v8038_v0 = vsel %vm6029_vm0, %v7993_v5, 0.0  ;;  %v8040_v36 = vsel %vm6029_vm0, %v7994_v42, 0.0  ;;  %v19574_v24 = vld [vmem:[#allocation23_spill] sm:$0xff]  ;;  %v19575_v42 = vld [vmem:[#allocation9_spill] sm:$0xff] }
 0x354   :  { %v8037_v8 = vadd.f32 %v8036_v31, %v8035_v46  ;;  %v10689_v60 = vmul.f32 %v16943_v61, %v10648_v57  ;;  %v10183_v32 = vrot.slane %v10176_v59, %v11922_v12  ;;  %v9695_v51 = vmul.f32 %v19526_v38, %v19572_v7  ;;  %v19579_v7 = vld [vmem:[#allocation166_spill] sm:$0xff] }
 0x355   :  { %v9696_v15 = vmul.f32 %v19526_v38, %v19573_v9  ;;  %v9697_v5 = vmul.f32 %v19526_v38, %v19574_v24  ;;  %v19576_v46 = vcombine.high %v19575_v42, %v19575_v42  ;;  %v4573_v57 = vcombine.high %v19578_v56, %v19578_v56  ;;  %v16966_v9 = vpop.xlane.xlu0 %10750 }
 0x356   :  { %v8039_v61 = vadd.f32 %v8038_v0, %v8037_v8  ;;  %v10773_v59 = vsel %vm6029_vm0, %v10689_v60, 0.0  ;;  %v10191_v27 = vcombine.low %v10183_v32, %v10190_v14  ;;  %v16964_v1 = vmul.f32 %v16596_v13, %v19579_v7  ;;  %v9164_v8 = vpop.xlane.xlu1 %9163  ;;  %v19581_v60 = vld [vmem:[#allocation17_spill] sm:$0xff]  ;;  %v19582_v32 = vld [vmem:[#allocation20_spill] sm:$0xff] }
 0x357   :  { %v16957_v31 = vrot.slane %v19576_v46, %v11922_v12  ;;  %10774 = vadd.xlane.f32.xlu0 %v10773_v59  ;;  %v10107_v24 = vcombine.low %v9695_v51, %v9696_v15  ;;  %v10121_v21 = vrot.slane %v9697_v5, %v11922_v12  ;;  %v19580_v46 = vld [vmem:[#allocation164_spill] sm:$0xff]  ;;  %v19583_v13 = vmin.f32 %v19581_v60, %v19582_v32  ;;  %v16983_v51 = vld [vmem:[%s18715_s2 + $0x6c] sm:$0x7] }
 0x358   :  { %v16972_v35 = vmul.f32 %v4573_v57, %v19580_v46  ;;  %v8041_v0 = vadd.f32 %v8040_v36, %v8039_v61  ;;  %v10198_v14 = vrot.slane %v10191_v27, %v11922_v12  ;;  %v9754_v59 = vmul.f32 %v19526_v38, %v16964_v1  ;;  %v11736_v15 = vld [vmem:[%s18714_s1 + $0x5c] sm:$0x7]  ;;  %v19584_v61 = vld [vmem:[#allocation165_spill] sm:$0xff]  ;;  %v17002_v46 = vld [vmem:[%s18714_s1 + $0xf8] sm:$0x7] }
 0x359   :  { %19577 = vst [vmem:[#allocation175_spill] sm:$0xff] %v16957_v31  ;;  %v4575_v42 = vcombine.high %v16957_v31, %v16957_v31  ;;  %v9248_v7 = vmin.f32 %v19583_v13, %v9247_v4  ;;  %v9641_v36 = vmul.f32 %v11736_v15, %v19534_v47  ;;  %v10114_v27 = vrot.slane %v10107_v24, %v11922_v12  ;;  %v17019_v56 = vpop.xlane.xlu0 %10705 }
 0x35a   :  { %v9752_v4 = vmul.f32 %v19526_v38, %v16972_v35  ;;  %11291 = vst [vmem:[%s18718_s5 + $0x30] sm:$0x7] %v8041_v0  ;;  %v10636_v57 = vsub.f32 %v16892_v23, %v10198_v14  ;;  %v9660_v24 = vmul.f32 %v17002_v46, %v19534_v47  ;;  %v9249_v60 = vsel %vm6029_vm0, %v9164_v8, inf }
 0x35b   :  { %v16991_v5 = vmul.f32 %v4575_v42, %v19584_v61  ;;  %v10794_v42 = vsel %vm6029_vm0, %v16905_v52, inf  ;;  %v10122_v32 = vcombine.low %v10114_v27, %v10121_v21  ;;  %v10558_v0 = vrot.slane %v9754_v59, %v11922_v12  ;;  %v19586_v59 = vld [vmem:[#allocation59_spill] sm:$0xff] }
 0x35c   :  { %v9250_v23 = vmin.f32 %v9248_v7, %v9249_v60  ;;  %v10677_v14 = vmul.f32 %v16983_v51, %v10636_v57  ;;  %v6592_v15 = vmul.f32 %v13172_v18, %v16865_v3  ;;  %v6593_v61 = vmul.f32 %v13172_v18, %v16879_v37 }
 0x35d   :  { %v9753_v13 = vmul.f32 %v19526_v38, %v16991_v5  ;;  %v6594_v31 = vmul.f32 %v13172_v18, %v16869_v58  ;;  %v10129_v21 = vrot.slane %v10122_v32, %v11922_v12 }
 0x35e   :  { %vm9297_vm14 = vcmp.le.f32.partialorder %v19585_v45, %v9250_v23  ;;  %vm9298_vm15 = vcmp.le.f32.partialorder %v19586_v59, %v9250_v23  ;;  %v10737_v7 = vsel %vm6029_vm0, %v10677_v14, 0.0  ;;  %vm9299_vm1 = vcmp.le.f32.partialorder %v16871_v48, %v9250_v23  ;;  %v19588_v14 = vld [vmem:[#allocation19_spill] sm:$0xff] }
 0x35f   :  { %v10544_v27 = vcombine.low %v9752_v4, %v9753_v13  ;;  %vm9300_vm2 = vcmp.le.f32.partialorder %v9164_v8, %v9250_v23  ;;  %v9329_v3 = vsel %vm9297_vm14, 0, %v19478_v39  ;;  %10738 = vadd.xlane.f32.xlu1 %v10737_v7  ;;  %v10633_v37 = vsub.f32 %v9641_v36, %v10129_v21  ;;  %v17030_v4 = vpop.xlane.xlu1 %10714  ;;  %v19589_v36 = vld [vmem:[#allocation30_spill] sm:$0xff] }
 0x360   :  { %v9330_v57 = vsel %vm9298_vm15, 1, %v19478_v39  ;;  %v9331_v60 = vsel %vm9299_vm1, 2, %v19478_v39  ;;  %19587 = vst [vmem:[#allocation60_spill] sm:$0xff] %v17030_v4  ;;  %v9332_v45 = vsel %vm9300_vm2, 3, %v19478_v39  ;;  %v9367_v32 = vsel %vm6029_vm0, %v9329_v3, 2147483647  ;;  %v17044_v3 = vpop.xlane.xlu0 %10753 }
 0x361   :  { %v10551_v58 = vrot.slane %v10544_v27, %v11922_v12  ;;  %v9368_v13 = vsel %vm6029_vm0, %v9330_v57, 2147483647  ;;  %v7064_v48 = vcombine.low %v6592_v15, %v6593_v61  ;;  %v10674_v8 = vmul.f32 %v16827_v50, %v10633_v37 }
 0x362   :  { %v19590_v21 = vmin.f32 %v19588_v14, %v19589_v36  ;;  %vm9369_vm3 = vcmp.lt.s32.totalorder %v9367_v32, %v9368_v13  ;;  %v9371_v7 = vsel %vm6029_vm0, %v9331_v60, 2147483647  ;;  %v7078_v10 = vrot.slane %v6594_v31, %v11922_v12 }
 0x363   :  { %v10559_v23 = vcombine.low %v10551_v58, %v10558_v0  ;;  %v9370_v59 = vsel %vm9369_vm3, %v9367_v32, %v9368_v13  ;;  %v7071_v4 = vrot.slane %v7064_v48, %v11922_v12  ;;  %v10728_v15 = vsel %vm6029_vm0, %v10674_v8, 0.0  ;;  %v17062_v32 = vpop.xlane.xlu1 %10762 }
 0x364   :  { %v17039_v27 = vmin.f32 %v19590_v21, %v10794_v42  ;;  %vm9372_vm4 = vcmp.lt.s32.totalorder %v9370_v59, %v9371_v7  ;;  %v9374_v0 = vsel %vm6029_vm0, %v9332_v45, 2147483647  ;;  %10729 = vadd.xlane.f32.xlu0 %v10728_v15  ;;  %v17052_v42 = vld [vmem:[%s18715_s2 + $0x7c] sm:$0x7]  ;;  %v8201_v31 = vmul.f32 %v19526_v38, %v16423_v43  ;;  %19591 = vst [vmem:[#allocation99_spill] sm:$0xff] %v17062_v32 }
 0x365   :  { %v10566_v50 = vrot.slane %v10559_v23, %v11922_v12  ;;  %v9373_v61 = vsel %vm9372_vm4, %v9370_v59, %v9371_v7  ;;  %v7079_v37 = vcombine.low %v7071_v4, %v7078_v10  ;;  %v8202_v58 = vmul.f32 %v19526_v38, %v16438_v49 }
 0x366   :  { %vm9375_vm5 = vcmp.lt.s32.totalorder %v9373_v61, %v9374_v0  ;;  %v6532_v60 = vmul.f32 %v16888_v16, %v19265_v20  ;;  %v8203_v45 = vmul.f32 %v19526_v38, %v16441_v17  ;;  %v10822_v43 = vsel %vm6029_vm0, %v16966_v9, inf }
 0x367   :  { %v10652_v57 = vsub.f32 %v9660_v24, %v10566_v50  ;;  %v9376_v13 = vsel %vm9375_vm5, %v9373_v61, %v9374_v0  ;;  %v7086_v48 = vrot.slane %v7079_v37, %v11922_v12  ;;  %v9013_v10 = vcombine.low %v8201_v31, %v8202_v58  ;;  %v17071_v24 = vpop.xlane.xlu0 %7602  ;;  %v19593_v58 = vld [vmem:[#allocation40_spill] sm:$0xff] }
 0x368   :  { %vm9441_vm6 = vcmp.eq.s32.totalorder %v9376_v13, 0  ;;  %vm9442_vm7 = vcmp.eq.s32.totalorder %v9376_v13, 1  ;;  %vm9443_vm8 = vcmp.eq.s32.totalorder %v9376_v13, 2  ;;  %vm9444_vm9 = vcmp.eq.s32.totalorder %v9376_v13, 3 }
 0x369   :  { %v10693_v4 = vmul.f32 %v17052_v42, %v10652_v57  ;;  %v11309_v49 = vsel %vm9441_vm6, 1.0, %v19492_v34  ;;  %v11310_v16 = vsel %vm9442_vm7, 1.0, %v19492_v34  ;;  %v11311_v17 = vsel %vm9443_vm8, 1.0, %v19492_v34 }
 0x36a   :  { %v11312_v23 = vsel %vm9444_vm9, 1.0, %v19492_v34  ;;  %v9537_v14 = vmul.f32 %v16625_v53, %v11309_v49  ;;  %v9538_v36 = vmul.f32 %v16631_v29, %v11310_v16  ;;  %v9539_v21 = vmul.f32 %v16637_v19, %v11311_v17  ;;  %v17085_v53 = vpop.xlane.xlu1 %9211 }
 0x36b   :  { %v10785_v8 = vsel %vm6029_vm0, %v10693_v4, 0.0  ;;  %v9540_v59 = vmul.f32 %v16643_v30, %v11312_v23  ;;  %v7524_v7 = vsub.f32 %v6532_v60, %v7086_v48  ;;  %v9020_v15 = vrot.slane %v9013_v10, %v11922_v12  ;;  %v19592_v30 = vld [vmem:[#allocation25_spill] sm:$0xff] }
 0x36c   :  { %10786 = vadd.xlane.f32.xlu1 %v10785_v8  ;;  %v9572_v50 = vsel %vm6029_vm0, %v9537_v14, 0.0  ;;  %v9573_v0 = vsel %vm6029_vm0, %v9538_v36, 0.0  ;;  %v8106_v61 = vmul.f32 %v16478_v41, %v19534_v47  ;;  %v9027_v37 = vrot.slane %v8203_v45, %v11922_v12  ;;  %v19595_v36 = vld [vmem:[#allocation53_spill] sm:$0xff] }
 0x36d   :  { %v9574_v29 = vadd.f32 %v9573_v0, %v9572_v50  ;;  %v9575_v31 = vsel %vm6029_vm0, %v9539_v21, 0.0  ;;  %v7565_v19 = vmul.f32 %v16609_v22, %v7524_v7  ;;  %v19594_v57 = vmin.f32 %v19592_v30, %v19593_v58  ;;  %v19598_v58 = vld [vmem:[#allocation18_spill] sm:$0xff] }
 0x36e   :  { %v9577_v13 = vsel %vm6029_vm0, %v9540_v59, 0.0  ;;  %v9028_v48 = vcombine.low %v9020_v15, %v9027_v37  ;;  %v6640_v41 = vmul.f32 %v13172_v18, %v16972_v35  ;;  %v6641_v45 = vmul.f32 %v13172_v18, %v16991_v5  ;;  %v17118_v50 = vpop.xlane.xlu1 %10717  ;;  %v19597_v37 = vld [vmem:[#allocation189_spill] sm:$0xff] }
 0x36f   :  { %v17092_v60 = vmin.f32 %v19594_v57, %v10822_v43  ;;  %v9576_v10 = vadd.f32 %v9575_v31, %v9574_v29  ;;  %v7625_v4 = vsel %vm6029_vm0, %v7565_v19, 0.0  ;;  %v6548_v49 = vmul.f32 %v17002_v46, %v19265_v20  ;;  %v17104_v43 = vpop.xlane.xlu0 %7650  ;;  %v19599_v57 = vld [vmem:[#allocation24_spill] sm:$0xff] }
 0x370   :  { %v6642_v16 = vmul.f32 %v13172_v18, %v16964_v1  ;;  %7626 = vadd.xlane.f32.xlu0 %v7625_v4  ;;  %v9035_v17 = vrot.slane %v9028_v48, %v11922_v12  ;;  %v7432_v8 = vcombine.low %v6640_v41, %v6641_v45  ;;  %v9707_v35 = vmul.f32 %v19526_v38, %v16543_v28  ;;  %v19596_v28 = vld [vmem:[#allocation52_spill] sm:$0xff] }
 0x371   :  { %v9708_v5 = vmul.f32 %v19526_v38, %v16546_v2  ;;  %v9578_v23 = vadd.f32 %v9577_v13, %v9576_v10  ;;  %v9709_v46 = vmul.f32 %v19526_v38, %v19595_v36  ;;  %v10796_v1 = vsel %vm6029_vm0, %v17019_v56, inf }
 0x372   :  { %v7446_v14 = vrot.slane %v6642_v16, %v11922_v12  ;;  %v9099_v21 = vsub.f32 %v8106_v61, %v9035_v17  ;;  %v7439_v59 = vrot.slane %v7432_v8, %v11922_v12  ;;  %v10797_v15 = vmin.f32 %v17039_v27, %v10796_v1  ;;  %v11738_v27 = vld [vmem:[%s18715_s2 + $0x5c] sm:$0x7] }
 0x373   :  { %v10199_v7 = vcombine.low %v9707_v35, %v9708_v5  ;;  %11338 = vst [vmem:[%s18718_s5 + $0x44] sm:$0x7] %v9578_v23  ;;  %v9645_v2 = vmul.f32 %v19596_v28, %v19534_v47  ;;  %v10213_v0 = vrot.slane %v9709_v46, %v11922_v12  ;;  %v3907_v29 = vcombine.high %v19597_v37, %v19597_v37  ;;  %v17139_v48 = vpop.xlane.xlu0 %7596  ;;  %v17150_v23 = vpop.xlane.xlu1 %10765  ;;  %v19601_v28 = vld [vmem:[#allocation143_spill] sm:$0xff] }
 0x374   :  { %v3921_v61 = vrot.slane %v19597_v37, %v11922_v12  ;;  %v9140_v31 = vmul.f32 %v11738_v27, %v9099_v21  ;;  %v7447_v19 = vcombine.low %v7439_v59, %v7446_v14  ;;  %vm10847_vm10 = vcmp.le.f32.partialorder %v19598_v58, %v10797_v15  ;;  %v19602_v37 = vld [vmem:[#allocation144_spill] sm:$0xff] }
 0x375   :  { %v10206_v30 = vrot.slane %v10199_v7, %v11922_v12  ;;  %vm10848_vm11 = vcmp.le.f32.partialorder %v19599_v57, %v10797_v15  ;;  %vm10849_vm12 = vcmp.le.f32.partialorder %v16905_v52, %v10797_v15  ;;  %vm10850_vm13 = vcmp.le.f32.partialorder %v17019_v56, %v10797_v15  ;;  %v19600_v7 = vld [vmem:[#allocation140_spill] sm:$0xff] }
 0x376   :  { %v10879_v13 = vsel %vm10847_vm10, 0, %v19478_v39  ;;  %v9234_v41 = vsel %vm6029_vm0, %v9140_v31, 0.0  ;;  %v7454_v45 = vrot.slane %v7447_v19, %v11922_v12  ;;  %v10880_v4 = vsel %vm10848_vm11, 1, %v19478_v39  ;;  %v17167_v31 = vld [vmem:[%s18714_s1 + $0x70] sm:$0x7] }
 0x377   :  { %v10214_v10 = vcombine.low %v10206_v30, %v10213_v0  ;;  %9235 = vadd.xlane.f32.xlu1 %v9234_v41  ;;  %v10881_v16 = vsel %vm10849_vm12, 2, %v19478_v39  ;;  %v10882_v17 = vsel %vm10850_vm13, 3, %v19478_v39  ;;  %v10911_v52 = vsel %vm6029_vm0, %v10879_v13, 2147483647 }
 0x378   :  { %v10912_v56 = vsel %vm6029_vm0, %v10880_v4, 2147483647  ;;  %v7540_v8 = vsub.f32 %v6548_v49, %v7454_v45  ;;  %v10915_v5 = vsel %vm6029_vm0, %v10881_v16, 2147483647  ;;  %v10918_v36 = vsel %vm6029_vm0, %v10882_v17, 2147483647  ;;  %v17182_v45 = vpop.xlane.xlu1 %6064 }
 0x379   :  { %v10221_v35 = vrot.slane %v10214_v10, %v11922_v12  ;;  %vm10913_vm14 = vcmp.lt.s32.totalorder %v10911_v52, %v10912_v56  ;;  %v3935_v46 = vrot.slane %v3907_v29, %v11922_v12  ;;  %v3937_v1 = vcombine.high %v3921_v61, %v3921_v61 }
 0x37a   :  { %v10914_v14 = vsel %vm10913_vm14, %v10911_v52, %v10912_v56  ;;  %v7581_v21 = vmul.f32 %v16719_v11, %v7540_v8  ;;  %v17156_v15 = vmul.f32 %v3921_v61, %v19600_v7  ;;  %v6530_v11 = vmul.f32 %v17167_v31, %v19265_v20  ;;  %v19604_v7 = vld [vmem:[#allocation146_spill] sm:$0xff] }
 0x37b   :  { %v10637_v59 = vsub.f32 %v9645_v2, %v10221_v35  ;;  %vm10916_vm15 = vcmp.lt.s32.totalorder %v10914_v14, %v10915_v5  ;;  %v17159_v0 = vmul.f32 %v3935_v46, %v19601_v28  ;;  %v17162_v27 = vmul.f32 %v3937_v1, %v19602_v37  ;;  %v17171_v2 = vpop.xlane.xlu0 %7644  ;;  %v19605_v28 = vld [vmem:[#allocation147_spill] sm:$0xff] }
 0x37c   :  { %v10917_v49 = vsel %vm10916_vm15, %v10914_v14, %v10915_v5  ;;  %v7673_v29 = vsel %vm6029_vm0, %v7581_v21, 0.0  ;;  %v6586_v19 = vmul.f32 %v13172_v18, %v17156_v15  ;;  %v3939_v13 = vcombine.high %v3935_v46, %v3935_v46 }
 0x37d   :  { %v10678_v61 = vmul.f32 %v16983_v51, %v10637_v59  ;;  %vm10919_vm1 = vcmp.lt.s32.totalorder %v10917_v49, %v10918_v36  ;;  %7674 = vadd.xlane.f32.xlu0 %v7673_v29  ;;  %v6587_v58 = vmul.f32 %v13172_v18, %v17159_v0  ;;  %v6588_v57 = vmul.f32 %v13172_v18, %v17162_v27  ;;  %v17214_v29 = vld [vmem:[%s18714_s1 + $0x74] sm:$0x7] }
 0x37e   :  { %v10920_v30 = vsel %vm10919_vm1, %v10917_v49, %v10918_v36  ;;  %v19603_v36 = vld [vmem:[#allocation145_spill] sm:$0xff]  ;;  %v17209_v37 = vmul.f32 %v16834_v44, %v19605_v28 }
 0x37f   :  { %v10740_v41 = vsel %vm6029_vm0, %v10678_v61, 0.0  ;;  %vm10991_vm2 = vcmp.eq.s32.totalorder %v10920_v30, 0  ;;  %vm10992_vm3 = vcmp.eq.s32.totalorder %v10920_v30, 1  ;;  %vm10993_vm4 = vcmp.eq.s32.totalorder %v10920_v30, 2  ;;  %v17196_v1 = vpop.xlane.xlu0 %10708 }
 0x380   :  { %10741 = vadd.xlane.f32.xlu1 %v10740_v41  ;;  %vm10994_vm5 = vcmp.eq.s32.totalorder %v10920_v30, 3  ;;  %v11353_v10 = vsel %vm10991_vm2, 1.0, %v19492_v34  ;;  %v11354_v4 = vsel %vm10992_vm3, 1.0, %v19492_v34  ;;  %v11355_v16 = vsel %vm10993_vm4, 1.0, %v19492_v34 }
 0x381   :  { %v11356_v17 = vsel %vm10994_vm5, 1.0, %v19492_v34  ;;  %v11087_v52 = vmul.f32 %v16734_v62, %v11353_v10  ;;  %v11088_v56 = vmul.f32 %v16740_v25, %v11354_v4  ;;  %v11089_v8 = vmul.f32 %v16746_v63, %v11355_v16  ;;  %v19606_v16 = vld [vmem:[#allocation36_spill] sm:$0xff] }
 0x382   :  { %v11090_v35 = vmul.f32 %v16752_v33, %v11356_v17  ;;  %v7018_v5 = vcombine.low %v6586_v19, %v6587_v58  ;;  %v7032_v14 = vrot.slane %v6588_v57, %v11922_v12  ;;  %v17194_v46 = vmul.f32 %v3939_v13, %v19603_v36  ;;  %v17224_v58 = vpop.xlane.xlu1 %6112  ;;  %v19608_v36 = vld [vmem:[#allocation33_spill] sm:$0xff] }
 0x383   :  { %v11119_v21 = vsel %vm6029_vm0, %v11087_v52, 0.0  ;;  %v11120_v59 = vsel %vm6029_vm0, %v11088_v56, 0.0  ;;  %v11122_v62 = vsel %vm6029_vm0, %v11089_v8, 0.0  ;;  %v17203_v25 = vmul.f32 %v19559_v6, %v19604_v7 }
 0x384   :  { %v11121_v63 = vadd.f32 %v11120_v59, %v11119_v21  ;;  %v11124_v33 = vsel %vm6029_vm0, %v11090_v35, 0.0  ;;  %v7025_v49 = vrot.slane %v7018_v5, %v11922_v12  ;;  %v6531_v61 = vmul.f32 %v17214_v29, %v19265_v20  ;;  %v19607_v5 = vld [vmem:[#allocation21_spill] sm:$0xff] }
 0x385   :  { %v6589_v6 = vmul.f32 %v13172_v18, %v17194_v46  ;;  %v6590_v19 = vmul.f32 %v13172_v18, %v17203_v25  ;;  %v10824_v30 = vsel %vm6029_vm0, %v17044_v3, inf  ;;  %v6591_v13 = vmul.f32 %v13172_v18, %v17209_v37 }
 0x386   :  { %v11123_v44 = vadd.f32 %v11122_v62, %v11121_v63  ;;  %v7033_v57 = vcombine.low %v7025_v49, %v7032_v14  ;;  %v10825_v41 = vmin.f32 %v17092_v60, %v10824_v30  ;;  %v9277_v4 = vsel %vm6029_vm0, %v17085_v53, inf  ;;  %v17240_v14 = vpop.xlane.xlu0 %10756  ;;  %v17255_v28 = vpop.xlane.xlu1 %9175 }
 0x387   :  { %v7041_v10 = vcombine.low %v6589_v6, %v6590_v19  ;;  %v4495_v17 = vcombine.high %v19606_v16, %v19606_v16  ;;  %v17235_v52 = vrot.slane %v19606_v16, %v11922_v12  ;;  %v7055_v35 = vrot.slane %v6591_v13, %v11922_v12 }
 0x388   :  { %v11125_v56 = vadd.f32 %v11124_v33, %v11123_v44  ;;  %v7040_v8 = vrot.slane %v7033_v57, %v11922_v12  ;;  %vm10863_vm6 = vcmp.le.f32.partialorder %v19607_v5, %v10825_v41  ;;  %vm10864_vm7 = vcmp.le.f32.partialorder %v19608_v36, %v10825_v41  ;;  %v19610_v5 = vld [vmem:[#allocation56_spill] sm:$0xff] }
 0x389   :  { %v7048_v60 = vrot.slane %v7041_v10, %v11922_v12  ;;  %vm10865_vm8 = vcmp.le.f32.partialorder %v16966_v9, %v10825_v41  ;;  %vm10866_vm9 = vcmp.le.f32.partialorder %v17044_v3, %v10825_v41  ;;  %v10895_v59 = vsel %vm10863_vm6, 0, %v19478_v39 }
 0x38a   :  { %11385 = vst [vmem:[%s18718_s5 + $0x60] sm:$0x7] %v11125_v56  ;;  %v7522_v21 = vsub.f32 %v6530_v11, %v7040_v8  ;;  %v10896_v62 = vsel %vm10864_vm7, 1, %v19478_v39  ;;  %v10897_v7 = vsel %vm10865_vm8, 2, %v19478_v39  ;;  %v10898_v33 = vsel %vm10866_vm9, 3, %v19478_v39  ;;  %v17272_v16 = vpop.xlane.xlu0 %9223 }
 0x38b   :  { %v7056_v63 = vcombine.low %v7048_v60, %v7055_v35  ;;  %v10951_v49 = vsel %vm6029_vm0, %v10895_v59, 2147483647  ;;  %v10952_v9 = vsel %vm6029_vm0, %v10896_v62, 2147483647  ;;  %v17259_v3 = vsel %vm6029_vm0, %v16931_v40, -inf  ;;  %v19609_v35 = vld [vmem:[#allocation14_spill] sm:$0xff] }
 0x38c   :  { %v7563_v11 = vmul.f32 %v16609_v22, %v7522_v21  ;;  %vm10953_vm10 = vcmp.lt.s32.totalorder %v10951_v49, %v10952_v9  ;;  %v10955_v6 = vsel %vm6029_vm0, %v10897_v7, 2147483647  ;;  %v10958_v44 = vsel %vm6029_vm0, %v10898_v33, 2147483647 }
 0x38d   :  { %v7063_v19 = vrot.slane %v7056_v63, %v11922_v12  ;;  %v10954_v30 = vsel %vm10953_vm10, %v10951_v49, %v10952_v9  ;;  %v9278_v57 = vmin.f32 %v16850_v54, %v9277_v4  ;;  %v17268_v41 = vrot.slane %v4495_v17, %v11922_v12  ;;  %v19611_v63 = vld [vmem:[#allocation81_spill] sm:$0xff]  ;;  %v19612_v49 = vld [vmem:[#allocation84_spill] sm:$0xff] }
 0x38e   :  { %v7619_v13 = vsel %vm6029_vm0, %v7563_v11, 0.0  ;;  %vm10956_vm11 = vcmp.lt.s32.totalorder %v10954_v30, %v10955_v6  ;;  %v4525_v10 = vcombine.high %v17235_v52, %v17235_v52  ;;  %v17292_v11 = vpop.xlane.xlu0 %6055 }
 0x38f   :  { %7620 = vadd.xlane.f32.xlu0 %v7619_v13  ;;  %v7523_v56 = vsub.f32 %v6531_v61, %v7063_v19  ;;  %v10957_v8 = vsel %vm10956_vm11, %v10954_v30, %v10955_v6  ;;  %vm9313_vm12 = vcmp.le.f32.partialorder %v19609_v35, %v9278_v57  ;;  %vm9314_vm13 = vcmp.le.f32.partialorder %v19610_v5, %v9278_v57  ;;  %v17282_v61 = vpop.xlane.xlu1 %7599  ;;  %v19613_v6 = vld [vmem:[#allocation85_spill] sm:$0xff]  ;;  %v19614_v13 = vld [vmem:[#allocation156_spill] sm:$0xff] }
 0x390   :  { %vm10959_vm14 = vcmp.lt.s32.totalorder %v10957_v8, %v10958_v44  ;;  %vm9315_vm15 = vcmp.le.f32.partialorder %v16471_v55, %v9278_v57  ;;  %vm9316_vm1 = vcmp.le.f32.partialorder %v17085_v53, %v9278_v57  ;;  %v9345_v54 = vsel %vm9313_vm12, 0, %v19478_v39 }
 0x391   :  { %v7564_v4 = vmul.f32 %v16609_v22, %v7523_v56  ;;  %v10960_v17 = vsel %vm10959_vm14, %v10957_v8, %v10958_v44  ;;  %v9346_v60 = vsel %vm9314_vm13, 1, %v19478_v39  ;;  %v9347_v36 = vsel %vm9315_vm15, 2, %v19478_v39 }
 0x392   :  { %vm11007_vm2 = vcmp.eq.s32.totalorder %v10960_v17, 0  ;;  %vm11008_vm3 = vcmp.eq.s32.totalorder %v10960_v17, 1  ;;  %vm11009_vm4 = vcmp.eq.s32.totalorder %v10960_v17, 2  ;;  %vm11010_vm5 = vcmp.eq.s32.totalorder %v10960_v17, 3 }
 0x393   :  { %v7622_v21 = vsel %vm6029_vm0, %v7564_v4, 0.0  ;;  %v11369_v55 = vsel %vm11007_vm2, 1.0, %v19492_v34  ;;  %v11370_v59 = vsel %vm11008_vm3, 1.0, %v19492_v34  ;;  %v11371_v62 = vsel %vm11009_vm4, 1.0, %v19492_v34 }
 0x394   :  { %7623 = vadd.xlane.f32.xlu1 %v7622_v21  ;;  %v11372_v22 = vsel %vm11010_vm5, 1.0, %v19492_v34  ;;  %v11103_v7 = vmul.f32 %v16910_v26, %v11369_v55  ;;  %v11104_v33 = vmul.f32 %v19611_v63, %v11370_v59  ;;  %v11105_v9 = vmul.f32 %v19612_v49, %v11371_v62  ;;  %v19615_v21 = vld [vmem:[#allocation160_spill] sm:$0xff]  ;;  %v19616_v59 = vld [vmem:[#allocation161_spill] sm:$0xff]  ;;  %v17327_v49 = vpop.xlane.xlu0 %6103 }
 0x395   :  { %v11106_v19 = vmul.f32 %v19613_v6, %v11372_v22  ;;  %v9407_v30 = vsel %vm6029_vm0, %v9345_v54, 2147483647  ;;  %v9408_v44 = vsel %vm6029_vm0, %v9346_v60, 2147483647  ;;  %v17299_v56 = vmul.f32 %v17235_v52, %v19614_v13  ;;  %v17308_v60 = vpop.xlane.xlu1 %7647  ;;  %v19617_v6 = vld [vmem:[#allocation163_spill] sm:$0xff] }
 0x396   :  { %v11147_v8 = vsel %vm6029_vm0, %v11103_v7, 0.0  ;;  %v11148_v26 = vsel %vm6029_vm0, %v11104_v33, 0.0  ;;  %v9348_v35 = vsel %vm9316_vm1, 3, %v19478_v39  ;;  %vm9409_vm6 = vcmp.lt.s32.totalorder %v9407_v30, %v9408_v44  ;;  %v19620_v13 = vld [vmem:[#allocation175_spill] sm:$0xff] }
 0x397   :  { %v11149_v5 = vadd.f32 %v11148_v26, %v11147_v8  ;;  %v11150_v4 = vsel %vm6029_vm0, %v11105_v9, 0.0  ;;  %v9410_v17 = vsel %vm9409_vm6, %v9407_v30, %v9408_v44  ;;  %v9411_v54 = vsel %vm6029_vm0, %v9347_v36, 2147483647  ;;  %v19619_v44 = vld [vmem:[#allocation162_spill] sm:$0xff] }
 0x398   :  { %v11152_v52 = vsel %vm6029_vm0, %v11106_v19, 0.0  ;;  %vm9412_vm7 = vcmp.lt.s32.totalorder %v9410_v17, %v9411_v54  ;;  %v17313_v55 = vmul.f32 %v17268_v41, %v19615_v21  ;;  %v17316_v62 = vmul.f32 %v4525_v10, %v19616_v59  ;;  %v19618_v19 = vld [vmem:[#allocation35_spill] sm:$0xff]  ;;  %v19623_v59 = vld [vmem:[#allocation173_spill] sm:$0xff] }
 0x399   :  { %v11151_v53 = vadd.f32 %v11150_v4, %v11149_v5  ;;  %v9413_v57 = vsel %vm9412_vm7, %v9410_v17, %v9411_v54  ;;  %v9414_v22 = vsel %vm6029_vm0, %v9348_v35, 2147483647  ;;  %v6634_v7 = vmul.f32 %v13172_v18, %v17299_v56  ;;  %v17344_v4 = vpop.xlane.xlu1 %10711  ;;  %v19621_v17 = vld [vmem:[#allocation26_spill] sm:$0xff] }
 0x39a   :  { %vm9415_vm8 = vcmp.lt.s32.totalorder %v9413_v57, %v9414_v22  ;;  %v6635_v36 = vmul.f32 %v13172_v18, %v17313_v55  ;;  %v6636_v63 = vmul.f32 %v13172_v18, %v17316_v62  ;;  %v4527_v33 = vcombine.high %v17268_v41, %v17268_v41 }
 0x39b   :  { %v11153_v10 = vadd.f32 %v11152_v52, %v11151_v53  ;;  %v9416_v9 = vsel %vm9415_vm8, %v9413_v57, %v9414_v22  ;;  %v17331_v30 = vmul.f32 %v19618_v19, %v19617_v6  ;;  %v17335_v8 = vmul.f32 %v19620_v13, %v19619_v44  ;;  %v19622_v52 = vld [vmem:[#allocation198_spill] sm:$0xff]  ;;  %v19624_v57 = vld [vmem:[#allocation44_spill] sm:$0xff]  ;;  %v19626_v44 = vld [vmem:[#allocation159_spill] sm:$0xff] }
 0x39c   :  { %vm9457_vm9 = vcmp.eq.s32.totalorder %v9416_v9, 0  ;;  %vm9458_vm10 = vcmp.eq.s32.totalorder %v9416_v9, 1  ;;  %vm9459_vm11 = vcmp.eq.s32.totalorder %v9416_v9, 2  ;;  %vm9460_vm12 = vcmp.eq.s32.totalorder %v9416_v9, 3  ;;  %v19625_v9 = vld [vmem:[#allocation60_spill] sm:$0xff] }
 0x39d   :  { %11389 = vst [vmem:[%s18718_s5 + $0x70] sm:$0x7] %v11153_v10  ;;  %v11325_v41 = vsel %vm9457_vm9, 1.0, %v19492_v34  ;;  %v11326_v26 = vsel %vm9458_vm10, 1.0, %v19492_v34  ;;  %v11327_v35 = vsel %vm9459_vm11, 1.0, %v19492_v34  ;;  %v11328_v5 = vsel %vm9460_vm12, 1.0, %v19492_v34 }
 0x39e   :  { %v9553_v54 = vmul.f32 %v19621_v17, %v11325_v41  ;;  %v9554_v21 = vmul.f32 %v19622_v52, %v11326_v26  ;;  %v9555_v53 = vmul.f32 %v19623_v59, %v11327_v35  ;;  %v9556_v22 = vmul.f32 %v19624_v57, %v11328_v5  ;;  %v17365_v35 = vld [vmem:[%s18714_s1 + $0xf0] sm:$0x7] }
 0x39f   :  { %v17352_v10 = vsel %vm6029_vm0, %v19625_v9, inf  ;;  %v7386_v6 = vcombine.low %v6634_v7, %v6635_v36  ;;  %v7400_v19 = vrot.slane %v6636_v63, %v11922_v12  ;;  %v4952_v13 = vmul.f32 %v4527_v33, %v19626_v44  ;;  %v17369_v36 = vpop.xlane.xlu0 %7608 }
 0x3a0   :  { %v17358_v34 = vsel %vm6029_vm0, %v17062_v32, inf  ;;  %v9600_v41 = vsel %vm6029_vm0, %v9553_v54, 0.0  ;;  %v9601_v26 = vsel %vm6029_vm0, %v9554_v21, 0.0  ;;  %v6546_v7 = vmul.f32 %v17365_v35, %v19265_v20  ;;  %v11742_v21 = vld [vmem:[%s18714_s1 + $0xf4] sm:$0x7]  ;;  %v17385_v32 = vpop.xlane.xlu1 %10759 }
 0x3a1   :  { %v9602_v63 = vadd.f32 %v9601_v26, %v9600_v41  ;;  %v7393_v33 = vrot.slane %v7386_v6, %v11922_v12  ;;  %v6637_v5 = vmul.f32 %v13172_v18, %v4952_v13  ;;  %v6638_v17 = vmul.f32 %v13172_v18, %v17331_v30 }
 0x3a2   :  { %v9603_v54 = vsel %vm6029_vm0, %v9555_v53, 0.0  ;;  %v9605_v52 = vsel %vm6029_vm0, %v9556_v22, 0.0  ;;  %v6547_v59 = vmul.f32 %v11742_v21, %v19265_v20  ;;  %v6639_v57 = vmul.f32 %v13172_v18, %v17335_v8 }
 0x3a3   :  { %v9604_v44 = vadd.f32 %v9603_v54, %v9602_v63  ;;  %v7401_v6 = vcombine.low %v7393_v33, %v7400_v19  ;;  %v7409_v41 = vcombine.low %v6637_v5, %v6638_v17  ;;  %v9698_v26 = vmul.f32 %v19526_v38, %v17156_v15 }
 0x3a4   :  { %v7423_v53 = vrot.slane %v6639_v57, %v11922_v12  ;;  %v17390_v22 = vsel %vm6029_vm0, %v17071_v24, -inf  ;;  %v9699_v20 = vmul.f32 %v19526_v38, %v17159_v0  ;;  %v9700_v18 = vmul.f32 %v19526_v38, %v17162_v27  ;;  %v17405_v57 = vpop.xlane.xlu0 %7656 }
 0x3a5   :  { %v9606_v63 = vadd.f32 %v9605_v52, %v9604_v44  ;;  %v7408_v19 = vrot.slane %v7401_v6, %v11922_v12  ;;  %v7416_v33 = vrot.slane %v7409_v41, %v11922_v12  ;;  %v9701_v15 = vmul.f32 %v19526_v38, %v17194_v46  ;;  %19627 = vst [vmem:[#allocation100_spill] sm:$0xff] %v17405_v57 }
 0x3a6   :  { %v10130_v5 = vcombine.low %v9698_v26, %v9699_v20  ;;  %v10144_v17 = vrot.slane %v9700_v18, %v11922_v12  ;;  %v9702_v54 = vmul.f32 %v19526_v38, %v17203_v25  ;;  %v9703_v0 = vmul.f32 %v19526_v38, %v17209_v37  ;;  %v17428_v18 = vpop.xlane.xlu1 %6058 }
 0x3a7   :  { %11342 = vst [vmem:[%s18718_s5 + $0x54] sm:$0x7] %v9606_v63  ;;  %v7538_v27 = vsub.f32 %v6546_v7, %v7408_v19  ;;  %v7424_v52 = vcombine.low %v7416_v33, %v7423_v53  ;;  %v17412_v46 = vsel %vm6029_vm0, %v17118_v50, inf  ;;  %v9642_v44 = vmul.f32 %v17167_v31, %v19534_v47  ;;  %v11743_v7 = vld [vmem:[%s18715_s2 + $0x3c] sm:$0x7] }
 0x3a8   :  { %v10137_v25 = vrot.slane %v10130_v5, %v11922_v12  ;;  %v9643_v37 = vmul.f32 %v17214_v29, %v19534_v47  ;;  %v10153_v6 = vcombine.low %v9701_v15, %v9702_v54  ;;  %v10167_v41 = vrot.slane %v9703_v0, %v11922_v12 }
 0x3a9   :  { %v7579_v26 = vmul.f32 %v11743_v7, %v7538_v27  ;;  %v7431_v53 = vrot.slane %v7424_v52, %v11922_v12  ;;  %v9746_v20 = vmul.f32 %v19526_v38, %v17299_v56  ;;  %v9747_v31 = vmul.f32 %v19526_v38, %v17313_v55  ;;  %v17443_v52 = vpop.xlane.xlu0 %9166 }
 0x3aa   :  { %v10145_v63 = vcombine.low %v10137_v25, %v10144_v17  ;;  %v10160_v29 = vrot.slane %v10153_v6, %v11922_v12  ;;  %v17433_v19 = vsel %vm6029_vm0, %v17104_v43, -inf  ;;  %v9748_v33 = vmul.f32 %v19526_v38, %v17316_v62 }
 0x3ab   :  { %v7667_v15 = vsel %vm6029_vm0, %v7579_v26, 0.0  ;;  %v7539_v5 = vsub.f32 %v6547_v59, %v7431_v53  ;;  %v10498_v54 = vcombine.low %v9746_v20, %v9747_v31  ;;  %v9749_v56 = vmul.f32 %v19526_v38, %v4952_v13 }
 0x3ac   :  { %7668 = vadd.xlane.f32.xlu0 %v7667_v15  ;;  %v10152_v55 = vrot.slane %v10145_v63, %v11922_v12  ;;  %v10168_v0 = vcombine.low %v10160_v29, %v10167_v41  ;;  %v10512_v17 = vrot.slane %v9748_v33, %v11922_v12  ;;  %v9750_v27 = vmul.f32 %v19526_v38, %v17331_v30  ;;  %v17458_v63 = vpop.xlane.xlu1 %6106  ;;  %v19628_v33 = vld [vmem:[#allocation22_spill] sm:$0xff] }
 0x3ad   :  { %v7580_v25 = vmul.f32 %v11743_v7, %v7539_v5  ;;  %v17447_v62 = vsel %vm6029_vm0, %v17150_v23, inf  ;;  %v10505_v59 = vrot.slane %v10498_v54, %v11922_v12  ;;  %v9751_v13 = vmul.f32 %v19526_v38, %v17335_v8  ;;  %v19629_v54 = vld [vmem:[#allocation63_spill] sm:$0xff] }
 0x3ae   :  { %v10634_v6 = vsub.f32 %v9642_v44, %v10152_v55  ;;  %v10175_v41 = vrot.slane %v10168_v0, %v11922_v12  ;;  %v9658_v26 = vmul.f32 %v17365_v35, %v19534_v47  ;;  %v10521_v53 = vcombine.low %v9749_v56, %v9750_v27  ;;  %v19630_v56 = vld [vmem:[#allocation55_spill] sm:$0xff]  ;;  %v19631_v27 = vld [vmem:[#allocation70_spill] sm:$0xff] }
 0x3af   :  { %v7670_v30 = vsel %vm6029_vm0, %v7580_v25, 0.0  ;;  %v10513_v20 = vcombine.low %v10505_v59, %v10512_v17  ;;  %v9659_v7 = vmul.f32 %v11742_v21, %v19534_v47  ;;  %v10535_v31 = vrot.slane %v9751_v13, %v11922_v12  ;;  %v17475_v59 = vpop.xlane.xlu0 %9214 }
 0x3b0   :  { %7671 = vadd.xlane.f32.xlu1 %v7670_v30  ;;  %v10675_v29 = vmul.f32 %v16983_v51, %v10634_v6  ;;  %v10635_v8 = vsub.f32 %v9643_v37, %v10175_v41  ;;  %v10528_v44 = vrot.slane %v10521_v53, %v11922_v12  ;;  %v9743_v15 = vmul.f32 %v19526_v38, %v19628_v33  ;;  %v19632_v53 = vld [vmem:[#allocation68_spill] sm:$0xff] }
 0x3b1   :  { %v10520_v35 = vrot.slane %v10513_v20, %v11922_v12  ;;  %v7686_v5 = vsel %vm6029_vm0, %v17139_v48, -inf  ;;  %v9744_v21 = vmul.f32 %v19526_v38, %v19629_v54  ;;  %v9745_v55 = vmul.f32 %v19526_v38, %v19630_v56  ;;  %v17494_v54 = vpop.xlane.xlu1 %7611  ;;  %v11745_v56 = vld [vmem:[%s18714_s1 + $0xfc] sm:$0x7] }
 0x3b2   :  { %v10731_v0 = vsel %vm6029_vm0, %v10675_v29, 0.0  ;;  %v10676_v37 = vmul.f32 %v16983_v51, %v10635_v8  ;;  %v10536_v17 = vcombine.low %v10528_v44, %v10535_v31  ;;  %v9755_v25 = vmul.f32 %v19526_v38, %v19631_v27  ;;  %v19633_v31 = vld [vmem:[#allocation69_spill] sm:$0xff]  ;;  %v11744_v44 = vld [vmem:[%s18714_s1 + $0xdc] sm:$0x7] }
 0x3b3   :  { %10732 = vadd.xlane.f32.xlu0 %v10731_v0  ;;  %v10650_v13 = vsub.f32 %v9658_v26, %v10520_v35  ;;  %v10475_v6 = vcombine.low %v9743_v15, %v9744_v21  ;;  %v10489_v41 = vrot.slane %v9745_v55, %v11922_v12  ;;  %v9756_v30 = vmul.f32 %v19526_v38, %v19632_v53  ;;  %v17516_v53 = vpop.xlane.xlu0 %10720 }
 0x3b4   :  { %v10734_v20 = vsel %vm6029_vm0, %v10676_v37, 0.0  ;;  %v10543_v29 = vrot.slane %v10536_v17, %v11922_v12  ;;  %v17484_v51 = vsel %vm6029_vm0, %v17182_v45, -inf  ;;  %v9757_v8 = vmul.f32 %v19526_v38, %v19633_v31 }
 0x3b5   :  { %10735 = vadd.xlane.f32.xlu1 %v10734_v20  ;;  %v10691_v26 = vmul.f32 %v17052_v42, %v10650_v13  ;;  %v9657_v33 = vmul.f32 %v11744_v44, %v19534_v47  ;;  %v10482_v15 = vrot.slane %v10475_v6, %v11922_v12  ;;  %v10567_v35 = vcombine.low %v9755_v25, %v9756_v30 }
 0x3b6   :  { %v10651_v21 = vsub.f32 %v9659_v7, %v10543_v29  ;;  %v9661_v38 = vmul.f32 %v11745_v56, %v19534_v47  ;;  %v10581_v55 = vrot.slane %v9757_v8, %v11922_v12  ;;  %v7714_v0 = vsel %vm6029_vm0, %v17171_v2, -inf  ;;  %v17533_v56 = vpop.xlane.xlu1 %7659 }
 0x3b7   :  { %v10779_v37 = vsel %vm6029_vm0, %v10691_v26, 0.0  ;;  %v10490_v17 = vcombine.low %v10482_v15, %v10489_v41  ;;  %v10574_v27 = vrot.slane %v10567_v35, %v11922_v12  ;;  %v17507_v25 = vsel %vm6029_vm0, %v17224_v58, -inf }
 0x3b8   :  { %10780 = vadd.xlane.f32.xlu0 %v10779_v37  ;;  %v10692_v7 = vmul.f32 %v17052_v42, %v10651_v21  ;;  %v10798_v47 = vsel %vm6029_vm0, %v17196_v1, inf  ;;  %v7687_v13 = vsel %vm6029_vm0, %v17282_v61, -inf  ;;  %v7715_v6 = vsel %vm6029_vm0, %v17308_v60, -inf }
 0x3b9   :  { %v10497_v41 = vrot.slane %v10490_v17, %v11922_v12  ;;  %v10582_v30 = vcombine.low %v10574_v27, %v10581_v55  ;;  %v7688_v20 = vmax.f32 %v7686_v5, %v7687_v13  ;;  %v7716_v29 = vmax.f32 %v7714_v0, %v7715_v6  ;;  %v19635_v27 = vld [vmem:[#allocation49_spill] sm:$0xff] }
 0x3ba   :  { %v10782_v31 = vsel %vm6029_vm0, %v10692_v7, 0.0  ;;  %v17522_v8 = vsel %vm6029_vm0, %v17255_v28, inf  ;;  %v17526_v26 = vsel %vm6029_vm0, %v17240_v14, inf  ;;  %v10799_v44 = vsel %vm6029_vm0, %v17344_v4, inf }
 0x3bb   :  { %10783 = vadd.xlane.f32.xlu1 %v10782_v31  ;;  %v10649_v15 = vsub.f32 %v9657_v33, %v10497_v41  ;;  %v10589_v35 = vrot.slane %v10582_v30, %v11922_v12  ;;  %v7690_v5 = vmax.f32 %v7688_v20, %v17390_v22  ;;  %v7718_v21 = vmax.f32 %v7716_v29, %v17433_v19  ;;  %v19634_v12 = vld [vmem:[#allocation195_spill] sm:$0xff]  ;;  %v17563_v30 = vpop.xlane.xlu0 %10768 }
 0x3bc   :  { %v17537_v55 = vsel %vm6029_vm0, %v17272_v16, inf  ;;  %v17541_v0 = vsel %vm6029_vm0, %v17292_v11, -inf  ;;  %v10800_v37 = vmin.f32 %v10798_v47, %v10799_v44  ;;  %v17545_v33 = vsel %vm6029_vm0, %v17327_v49, -inf  ;;  %19636 = vst [vmem:[#allocation64_spill] sm:$0xff] %v17563_v30 }
 0x3bd   :  { %v10690_v17 = vmul.f32 %v19634_v12, %v10649_v15  ;;  %v10653_v22 = vsub.f32 %v9661_v38, %v10589_v35  ;;  %v7692_v19 = vmax.f32 %v7690_v5, %v19635_v27  ;;  %v17551_v7 = vsel %vm6029_vm0, %v17385_v32, inf }
 0x3be   :  { %v7720_v13 = vmax.f32 %v7718_v21, %v17259_v3  ;;  %v10802_v6 = vmin.f32 %v10800_v37, %v17352_v10  ;;  %v17557_v47 = vsel %vm6029_vm0, %v17369_v36, -inf  ;;  %v17561_v41 = vsel %vm6029_vm0, %v17428_v18, -inf  ;;  %v19637_v3 = vld [vmem:[#allocation48_spill] sm:$0xff] }
 0x3bf   :  { %v10776_v38 = vsel %vm6029_vm0, %v10690_v17, 0.0  ;;  %v10694_v20 = vmul.f32 %v17052_v42, %v10653_v22  ;;  %vm7739_vm13 = vcmp.ge.f32.partialorder %v17139_v48, %v7692_v19  ;;  %vm7740_vm14 = vcmp.ge.f32.partialorder %v17282_v61, %v7692_v19  ;;  %v17578_v48 = vpop.xlane.xlu1 %9169  ;;  %v17590_v12 = vpop.xlane.xlu0 %6067 }
 0x3c0   :  { %10777 = vadd.xlane.f32.xlu0 %v10776_v38  ;;  %vm7741_vm15 = vcmp.ge.f32.partialorder %v17071_v24, %v7692_v19  ;;  %vm7742_vm1 = vcmp.ge.f32.partialorder %v19637_v3, %v7692_v19  ;;  %v7771_v10 = vsel %vm7739_vm13, 0, %v19478_v39  ;;  %v7772_v29 = vsel %vm7740_vm14, 1, %v19478_v39 }
 0x3c1   :  { %v10788_v31 = vsel %vm6029_vm0, %v10694_v20, 0.0  ;;  %v7773_v44 = vsel %vm7741_vm15, 2, %v19478_v39  ;;  %v7809_v15 = vsel %vm6029_vm0, %v7771_v10, 2147483647  ;;  %v10828_v42 = vmin.f32 %v17526_v26, %v17551_v7 }
 0x3c2   :  { %10789 = vadd.xlane.f32.xlu1 %v10788_v31  ;;  %v7774_v24 = vsel %vm7742_vm1, 3, %v19478_v39  ;;  %v7810_v61 = vsel %vm6029_vm0, %v7772_v29, 2147483647  ;;  %v7813_v35 = vsel %vm6029_vm0, %v7773_v44, 2147483647  ;;  %vm7755_vm2 = vcmp.ge.f32.partialorder %v17171_v2, %v7720_v13 }
 0x3c3   :  { %vm7811_vm3 = vcmp.lt.s32.totalorder %v7809_v15, %v7810_v61  ;;  %vm7756_vm4 = vcmp.ge.f32.partialorder %v17308_v60, %v7720_v13  ;;  %vm7757_vm5 = vcmp.ge.f32.partialorder %v17104_v43, %v7720_v13  ;;  %vm7758_vm6 = vcmp.ge.f32.partialorder %v16931_v40, %v7720_v13  ;;  %v17603_v13 = vpop.xlane.xlu1 %9217 }
 0x3c4   :  { %v7812_v5 = vsel %vm7811_vm3, %v7809_v15, %v7810_v61  ;;  %v7787_v26 = vsel %vm7755_vm2, 0, %v19478_v39  ;;  %v7788_v21 = vsel %vm7756_vm4, 1, %v19478_v39  ;;  %v7789_v37 = vsel %vm7757_vm5, 2, %v19478_v39  ;;  %v17616_v61 = vld [vmem:[%s18714_s1 + $0x30] sm:$0x7] }
 0x3c5   :  { %vm7814_vm7 = vcmp.lt.s32.totalorder %v7812_v5, %v7813_v35  ;;  %v7790_v17 = vsel %vm7758_vm6, 3, %v19478_v39  ;;  %v7849_v2 = vsel %vm6029_vm0, %v7787_v26, 2147483647  ;;  %v7850_v60 = vsel %vm6029_vm0, %v7788_v21, 2147483647 }
 0x3c6   :  { %v7815_v22 = vsel %vm7814_vm7, %v7812_v5, %v7813_v35  ;;  %v7816_v43 = vsel %vm6029_vm0, %v7774_v24, 2147483647  ;;  %vm7851_vm8 = vcmp.lt.s32.totalorder %v7849_v2, %v7850_v60  ;;  %v7853_v19 = vsel %vm6029_vm0, %v7789_v37, 2147483647  ;;  %v17611_v24 = vpop.xlane.xlu0 %6115  ;;  %v17628_v5 = vld [vmem:[%s18714_s1 + $0x38] sm:$0x7] }
 0x3c7   :  { %vm7817_vm9 = vcmp.lt.s32.totalorder %v7815_v22, %v7816_v43  ;;  %v7852_v27 = vsel %vm7851_vm8, %v7849_v2, %v7850_v60  ;;  %v17601_v7 = vsel %vm6029_vm0, %v17405_v57, -inf  ;;  %v7856_v20 = vsel %vm6029_vm0, %v7790_v17, 2147483647  ;;  %v17634_v21 = vld [vmem:[%s18714_s1 + $0x3c] sm:$0x7] }
 0x3c8   :  { %v7818_v38 = vsel %vm7817_vm9, %v7815_v22, %v7816_v43  ;;  %vm7854_vm10 = vcmp.lt.s32.totalorder %v7852_v27, %v7853_v19  ;;  %v10804_v3 = vmin.f32 %v10802_v6, %v17412_v46  ;;  %v19638_v10 = vmov 0.0   ;;  %v17622_v6 = vld [vmem:[%s18714_s1 + $0x34] sm:$0x7] }
 0x3c9   :  { %vm7883_vm11 = vcmp.eq.s32.totalorder %v7818_v38, 0  ;;  %vm7884_vm12 = vcmp.eq.s32.totalorder %v7818_v38, 1  ;;  %vm7885_vm13 = vcmp.eq.s32.totalorder %v7818_v38, 2  ;;  %vm7886_vm14 = vcmp.eq.s32.totalorder %v7818_v38, 3  ;;  %v17645_v38 = vpop.xlane.xlu1 %10723 }
 0x3ca   :  { %v11259_v29 = vsel %vm7883_vm11, 1.0, %v19638_v10  ;;  %v11260_v31 = vsel %vm7884_vm12, 1.0, %v19638_v10  ;;  %v11261_v44 = vsel %vm7885_vm13, 1.0, %v19638_v10  ;;  %v11262_v15 = vsel %vm7886_vm14, 1.0, %v19638_v10  ;;  %19639 = vst [vmem:[#allocation65_spill] sm:$0xff] %v17645_v38 }
 0x3cb   :  { %v7979_v46 = vmul.f32 %v17616_v61, %v11259_v29  ;;  %v7980_v35 = vmul.f32 %v17622_v6, %v11260_v31  ;;  %v7981_v26 = vmul.f32 %v17628_v5, %v11261_v44  ;;  %v7982_v37 = vmul.f32 %v17634_v21, %v11262_v15 }
 0x3cc   :  { %v7855_v17 = vsel %vm7854_vm10, %v7852_v27, %v7853_v19  ;;  %vm10851_vm15 = vcmp.le.f32.partialorder %v17196_v1, %v10804_v3  ;;  %vm10852_vm1 = vcmp.le.f32.partialorder %v17344_v4, %v10804_v3  ;;  %vm10853_vm2 = vcmp.le.f32.partialorder %v19625_v9, %v10804_v3 }
 0x3cd   :  { %v8014_v2 = vsel %vm6029_vm0, %v7979_v46, 0.0  ;;  %v8015_v60 = vsel %vm6029_vm0, %v7980_v35, 0.0  ;;  %v8017_v22 = vsel %vm6029_vm0, %v7981_v26, 0.0  ;;  %v10830_v43 = vmin.f32 %v10828_v42, %v17358_v34  ;;  %v17652_v34 = vpop.xlane.xlu0 %9178  ;;  %v17661_v35 = vld [vmem:[%s18714_s1 + $0xb0] sm:$0x7] }
 0x3ce   :  { %v8016_v29 = vadd.f32 %v8015_v60, %v8014_v2  ;;  %v8019_v31 = vsel %vm6029_vm0, %v7982_v37, 0.0  ;;  %vm7857_vm3 = vcmp.lt.s32.totalorder %v7855_v17, %v7856_v20  ;;  %vm10854_vm4 = vcmp.le.f32.partialorder %v17118_v50, %v10804_v3  ;;  %v17667_v37 = vld [vmem:[%s18714_s1 + $0xb4] sm:$0x7]  ;;  %v17673_v2 = vld [vmem:[%s18714_s1 + $0xb8] sm:$0x7] }
 0x3cf   :  { %v7858_v1 = vsel %vm7857_vm3, %v7855_v17, %v7856_v20  ;;  %v10883_v4 = vsel %vm10851_vm15, 0, %v19478_v39  ;;  %v10884_v9 = vsel %vm10852_vm1, 1, %v19478_v39  ;;  %v10885_v27 = vsel %vm10853_vm2, 2, %v19478_v39 }
 0x3d0   :  { %v8018_v19 = vadd.f32 %v8017_v22, %v8016_v29  ;;  %vm7899_vm5 = vcmp.eq.s32.totalorder %v7858_v1, 0  ;;  %vm7900_vm6 = vcmp.eq.s32.totalorder %v7858_v1, 1  ;;  %vm7901_vm7 = vcmp.eq.s32.totalorder %v7858_v1, 2  ;;  %v17679_v22 = vld [vmem:[%s18714_s1 + $0xbc] sm:$0x7] }
 0x3d1   :  { %vm7902_vm8 = vcmp.eq.s32.totalorder %v7858_v1, 3  ;;  %v11275_v42 = vsel %vm7899_vm5, 1.0, %v19638_v10  ;;  %v11276_v44 = vsel %vm7900_vm6, 1.0, %v19638_v10  ;;  %v11277_v15 = vsel %vm7901_vm7, 1.0, %v19638_v10  ;;  %v17705_v50 = vpop.xlane.xlu0 %9226 }
 0x3d2   :  { %v8020_v20 = vadd.f32 %v8019_v31, %v8018_v19  ;;  %v11278_v46 = vsel %vm7902_vm8, 1.0, %v19638_v10  ;;  %v7995_v26 = vmul.f32 %v17661_v35, %v11275_v42  ;;  %v7996_v17 = vmul.f32 %v17667_v37, %v11276_v44  ;;  %v17684_v19 = vpop.xlane.xlu1 %10771  ;;  %19641 = vst [vmem:[#allocation51_spill] sm:$0xff] %v17705_v50 }
 0x3d3   :  { %v7997_v60 = vmul.f32 %v17673_v2, %v11277_v15  ;;  %v7998_v29 = vmul.f32 %v17679_v22, %v11278_v46  ;;  %v10921_v31 = vsel %vm6029_vm0, %v10883_v4, 2147483647  ;;  %v10922_v1 = vsel %vm6029_vm0, %v10884_v9, 2147483647  ;;  %19640 = vst [vmem:[#allocation102_spill] sm:$0xff] %v17684_v19 }
 0x3d4   :  { %11288 = vst [vmem:[%s18718_s5 + $0x24] sm:$0x7] %v8020_v20  ;;  %v8042_v42 = vsel %vm6029_vm0, %v7995_v26, 0.0  ;;  %v8043_v44 = vsel %vm6029_vm0, %v7996_v17, 0.0  ;;  %v10886_v15 = vsel %vm10854_vm4, 3, %v19478_v39  ;;  %vm10923_vm9 = vcmp.lt.s32.totalorder %v10921_v31, %v10922_v1 }
 0x3d5   :  { %v8044_v46 = vadd.f32 %v8043_v44, %v8042_v42  ;;  %v10924_v40 = vsel %vm10923_vm9, %v10921_v31, %v10922_v1  ;;  %v10925_v4 = vsel %vm6029_vm0, %v10885_v27, 2147483647  ;;  %v17697_v9 = vsel %vm6029_vm0, %v17458_v63, -inf }
 0x3d6   :  { %v8045_v57 = vsel %vm6029_vm0, %v7997_v60, 0.0  ;;  %vm10926_vm10 = vcmp.lt.s32.totalorder %v10924_v40, %v10925_v4  ;;  %v10832_v20 = vmin.f32 %v10830_v43, %v17447_v62  ;;  %v17703_v26 = vsel %vm6029_vm0, %v17443_v52, inf  ;;  %v19642_v60 = vld [vmem:[#allocation99_spill] sm:$0xff]  ;;  %v17714_v42 = vpop.xlane.xlu1 %6070 }
 0x3d7   :  { %v8046_v3 = vadd.f32 %v8045_v57, %v8044_v46  ;;  %v8047_v17 = vsel %vm6029_vm0, %v7998_v29, 0.0  ;;  %v10927_v31 = vsel %vm10926_vm10, %v10924_v40, %v10925_v4  ;;  %v10928_v27 = vsel %vm6029_vm0, %v10886_v15, 2147483647 }
 0x3d8   :  { %vm10929_vm11 = vcmp.lt.s32.totalorder %v10927_v31, %v10928_v27  ;;  %vm10867_vm12 = vcmp.le.f32.partialorder %v17240_v14, %v10832_v20  ;;  %vm10868_vm13 = vcmp.le.f32.partialorder %v17385_v32, %v10832_v20  ;;  %vm10869_vm14 = vcmp.le.f32.partialorder %v19642_v60, %v10832_v20 }
 0x3d9   :  { %v8048_v62 = vadd.f32 %v8047_v17, %v8046_v3  ;;  %v10930_v43 = vsel %vm10929_vm11, %v10927_v31, %v10928_v27  ;;  %vm10870_vm15 = vcmp.le.f32.partialorder %v17150_v23, %v10832_v20  ;;  %v10899_v1 = vsel %vm10867_vm12, 0, %v19478_v39  ;;  %v17727_v3 = vpop.xlane.xlu0 %6061 }
 0x3da   :  { %vm10995_vm1 = vcmp.eq.s32.totalorder %v10930_v43, 0  ;;  %vm10996_vm2 = vcmp.eq.s32.totalorder %v10930_v43, 1  ;;  %vm10997_vm3 = vcmp.eq.s32.totalorder %v10930_v43, 2  ;;  %vm10998_vm4 = vcmp.eq.s32.totalorder %v10930_v43, 3 }
 0x3db   :  { %11292 = vst [vmem:[%s18718_s5 + $0x34] sm:$0x7] %v8048_v62  ;;  %v11357_v14 = vsel %vm10995_vm1, 1.0, %v19638_v10  ;;  %v11358_v57 = vsel %vm10996_vm2, 1.0, %v19638_v10  ;;  %v11359_v40 = vsel %vm10997_vm3, 1.0, %v19638_v10  ;;  %v11360_v29 = vsel %vm10998_vm4, 1.0, %v19638_v10 }
 0x3dc   :  { %v11091_v44 = vmul.f32 %v17616_v61, %v11357_v14  ;;  %v11092_v15 = vmul.f32 %v17622_v6, %v11358_v57  ;;  %v11093_v46 = vmul.f32 %v17628_v5, %v11359_v40  ;;  %v11094_v4 = vmul.f32 %v17634_v21, %v11360_v29  ;;  %v17753_v14 = vpop.xlane.xlu1 %6118 }
 0x3dd   :  { %v10900_v17 = vsel %vm10868_vm13, 1, %v19478_v39  ;;  %v10901_v31 = vsel %vm10869_vm14, 2, %v19478_v39  ;;  %v10961_v27 = vsel %vm6029_vm0, %v10899_v1, 2147483647  ;;  %v10902_v21 = vsel %vm10870_vm15, 3, %v19478_v39 }
 0x3de   :  { %v11126_v6 = vsel %vm6029_vm0, %v11091_v44, 0.0  ;;  %v11127_v5 = vsel %vm6029_vm0, %v11092_v15, 0.0  ;;  %v17745_v32 = vsel %vm6029_vm0, %v17494_v54, -inf  ;;  %v11129_v60 = vsel %vm6029_vm0, %v11093_v46, 0.0 }
 0x3df   :  { %v11128_v62 = vadd.f32 %v11127_v5, %v11126_v6  ;;  %v10962_v43 = vsel %vm6029_vm0, %v10900_v17, 2147483647  ;;  %v17751_v1 = vsel %vm6029_vm0, %v17475_v59, inf  ;;  %v11131_v57 = vsel %vm6029_vm0, %v11094_v4, 0.0 }
 0x3e0   :  { %vm10963_vm5 = vcmp.lt.s32.totalorder %v10961_v27, %v10962_v43  ;;  %v10965_v23 = vsel %vm6029_vm0, %v10901_v31, 2147483647  ;;  %v17759_v20 = vsel %vm6029_vm0, %v17533_v56, -inf  ;;  %v10968_v44 = vsel %vm6029_vm0, %v10902_v21, 2147483647  ;;  %v17774_v31 = vpop.xlane.xlu0 %6109 }
 0x3e1   :  { %v11130_v40 = vadd.f32 %v11129_v60, %v11128_v62  ;;  %v10964_v29 = vsel %vm10963_vm5, %v10961_v27, %v10962_v43  ;;  %v9252_v15 = vsel %vm6029_vm0, %v17578_v48, inf  ;;  %v17768_v4 = vsel %vm6029_vm0, %v17516_v53, inf }
 0x3e2   :  { %vm10966_vm6 = vcmp.lt.s32.totalorder %v10964_v29, %v10965_v23  ;;  %v17772_v17 = vsel %vm6029_vm0, %v17603_v13, inf  ;;  %v9253_v21 = vmin.f32 %v17703_v26, %v9252_v15  ;;  %v17781_v62 = vsel %vm6029_vm0, %v17563_v30, inf }
 0x3e3   :  { %v11132_v27 = vadd.f32 %v11131_v57, %v11130_v40  ;;  %v10967_v6 = vsel %vm10966_vm6, %v10964_v29, %v10965_v23  ;;  %19643 = vst [vmem:[#allocation45_spill] sm:$0xff] %v17781_v62  ;;  %v17787_v43 = vsel %vm6029_vm0, %v17590_v12, -inf  ;;  %v17794_v26 = vsel %vm6029_vm0, %v17645_v38, inf  ;;  %v17804_v29 = vpop.xlane.xlu1 %9181 }
 0x3e4   :  { %vm10969_vm7 = vcmp.lt.s32.totalorder %v10967_v6, %v10968_v44  ;;  %v17798_v23 = vsel %vm6029_vm0, %v17611_v24, -inf  ;;  %v17802_v40 = vsel %vm6029_vm0, %v17684_v19, inf  ;;  %v17814_v19 = vpop.xlane.xlu0 %9172  ;;  %v17822_v38 = vsel %vm6029_vm0, %v17652_v34, inf }
 0x3e5   :  { %11386 = vst [vmem:[%s18718_s5 + $0x64] sm:$0x7] %v11132_v27  ;;  %v10970_v57 = vsel %vm10969_vm7, %v10967_v6, %v10968_v44  ;;  %19644 = vst [vmem:[#allocation50_spill] sm:$0xff] %v17802_v40  ;;  %v17849_v40 = vsel %vm6029_vm0, %v17804_v29, inf }
 0x3e6   :  { %vm11011_vm8 = vcmp.eq.s32.totalorder %v10970_v57, 0  ;;  %vm11012_vm9 = vcmp.eq.s32.totalorder %v10970_v57, 1  ;;  %vm11013_vm10 = vcmp.eq.s32.totalorder %v10970_v57, 2  ;;  %vm11014_vm11 = vcmp.eq.s32.totalorder %v10970_v57, 3 }
 0x3e7   :  { %v11373_v44 = vsel %vm11011_vm8, 1.0, %v19638_v10  ;;  %v11374_v15 = vsel %vm11012_vm9, 1.0, %v19638_v10  ;;  %v11375_v27 = vsel %vm11013_vm10, 1.0, %v19638_v10  ;;  %v11376_v6 = vsel %vm11014_vm11, 1.0, %v19638_v10 }
 0x3e8   :  { %v11107_v5 = vmul.f32 %v17661_v35, %v11373_v44  ;;  %v11108_v46 = vmul.f32 %v17667_v37, %v11374_v15  ;;  %v11109_v60 = vmul.f32 %v17673_v2, %v11375_v27  ;;  %v11110_v61 = vmul.f32 %v17679_v22, %v11376_v6 }
 0x3e9   :  { %v6143_v35 = vsel %vm6029_vm0, %v17727_v3, -inf  ;;  %v17830_v22 = vsel %vm6029_vm0, %v17714_v42, -inf  ;;  %v17834_v44 = vsel %vm6029_vm0, %v17705_v50, inf  ;;  %v17839_v6 = vsel %vm6029_vm0, %v17753_v14, -inf }
 0x3ea   :  { %v11154_v37 = vsel %vm6029_vm0, %v11107_v5, 0.0  ;;  %v11155_v2 = vsel %vm6029_vm0, %v11108_v46, 0.0  ;;  %v11157_v27 = vsel %vm6029_vm0, %v11109_v60, 0.0  ;;  %v19645_v5 = vmax.f32 %v17541_v0, %v17561_v41  ;;  %v17844_v46 = vpop.xlane.xlu1 %9229 }
 0x3eb   :  { %v11156_v15 = vadd.f32 %v11155_v2, %v11154_v37  ;;  %v11159_v57 = vsel %vm6029_vm0, %v11110_v61, 0.0  ;;  %v6171_v37 = vsel %vm6029_vm0, %v17774_v31, -inf  ;;  %v9254_v60 = vsel %vm6029_vm0, %v17814_v19, inf }
 0x3ec   :  { %v6144_v30 = vmax.f32 %v19645_v5, %v6143_v35  ;;  %v19646_v41 = vmax.f32 %v17545_v33, %v17697_v9  ;;  %v6177_v35 = vmax.f32 %v17798_v23, %v17839_v6  ;;  %v9260_v5 = vmin.f32 %v17822_v38, %v17849_v40 }
 0x3ed   :  { %v11158_v2 = vadd.f32 %v11157_v27, %v11156_v15  ;;  %v17867_v62 = vsel %vm6029_vm0, %v17844_v46, inf  ;;  %v9255_v15 = vmin.f32 %v9253_v21, %v9254_v60  ;;  %v17869_v27 = vpop.xlane.xlu0 %9220 }
 0x3ee   :  { %v6146_v0 = vmax.f32 %v6144_v30, %v17484_v51  ;;  %v6172_v61 = vmax.f32 %v19646_v41, %v6171_v37 }
 0x3ef   :  { %v11160_v50 = vadd.f32 %v11159_v57, %v11158_v2  ;;  %v9257_v57 = vmin.f32 %v9255_v15, %v17522_v8 }
 0x3f0   :  { %vm6190_vm12 = vcmp.ge.f32.partialorder %v17292_v11, %v6146_v0  ;;  %vm6191_vm13 = vcmp.ge.f32.partialorder %v17428_v18, %v6146_v0  ;;  %vm6192_vm14 = vcmp.ge.f32.partialorder %v17727_v3, %v6146_v0  ;;  %vm6193_vm15 = vcmp.ge.f32.partialorder %v17182_v45, %v6146_v0 }
 0x3f1   :  { %v6222_v51 = vsel %vm6190_vm12, 0, %v19478_v39  ;;  %v6223_v33 = vsel %vm6191_vm13, 1, %v19478_v39  ;;  %v6224_v30 = vsel %vm6192_vm14, 2, %v19478_v39  ;;  %11390 = vst [vmem:[%s18718_s5 + $0x74] sm:$0x7] %v11160_v50  ;;  %v6174_v18 = vmax.f32 %v6172_v61, %v17507_v25 }
 0x3f2   :  { %v6266_v9 = vsel %vm6029_vm0, %v6222_v51, 2147483647  ;;  %v6267_v11 = vsel %vm6029_vm0, %v6223_v33, 2147483647  ;;  %v17886_v3 = vsel %vm6029_vm0, %v17869_v27, inf  ;;  %v6225_v45 = vsel %vm6193_vm15, 3, %v19478_v39 }
 0x3f3   :  { %vm6268_vm1 = vcmp.lt.s32.totalorder %v6266_v9, %v6267_v11  ;;  %v6270_v21 = vsel %vm6029_vm0, %v6224_v30, 2147483647  ;;  %vm6206_vm2 = vcmp.ge.f32.partialorder %v17327_v49, %v6174_v18  ;;  %vm6207_vm3 = vcmp.ge.f32.partialorder %v17458_v63, %v6174_v18  ;;  %v17914_v30 = vld [vmem:[%s18714_s1 + $0x40] sm:$0x7] }
 0x3f4   :  { %v6269_v37 = vsel %vm6268_vm1, %v6266_v9, %v6267_v11  ;;  %vm6208_vm4 = vcmp.ge.f32.partialorder %v17774_v31, %v6174_v18  ;;  %vm6209_vm6 = vcmp.ge.f32.partialorder %v17224_v58, %v6174_v18  ;;  %v6238_v25 = vsel %vm6206_vm2, 0, %v19478_v39  ;;  %v17905_v58 = vpop.xlane.xlu1 %7617  ;;  %v17920_v11 = vld [vmem:[%s18714_s1 + $0x44] sm:$0x7] }
 0x3f5   :  { %vm6271_vm5 = vcmp.lt.s32.totalorder %v6269_v37, %v6270_v21  ;;  %v6239_v50 = vsel %vm6207_vm3, 1, %v19478_v39  ;;  %v6273_v2 = vsel %vm6029_vm0, %v6225_v45, 2147483647  ;;  %v6240_v0 = vsel %vm6208_vm4, 2, %v19478_v39  ;;  %v17926_v45 = vld [vmem:[%s18714_s1 + $0x48] sm:$0x7] }
 0x3f6   :  { %v6272_v60 = vsel %vm6271_vm5, %v6269_v37, %v6270_v21  ;;  %v6306_v8 = vsel %vm6029_vm0, %v6238_v25, 2147483647  ;;  %v6241_v49 = vsel %vm6209_vm6, 3, %v19478_v39  ;;  %v6307_v63 = vsel %vm6029_vm0, %v6239_v50, 2147483647 }
 0x3f7   :  { %vm6274_vm7 = vcmp.lt.s32.totalorder %v6272_v60, %v6273_v2  ;;  %v6310_v31 = vsel %vm6029_vm0, %v6240_v0, 2147483647  ;;  %vm6308_vm8 = vcmp.lt.s32.totalorder %v6306_v8, %v6307_v63  ;;  %vm9301_vm9 = vcmp.le.f32.partialorder %v17443_v52, %v9257_v57  ;;  %v17932_v37 = vld [vmem:[%s18714_s1 + $0x4c] sm:$0x7] }
 0x3f8   :  { %v6275_v41 = vsel %vm6274_vm7, %v6272_v60, %v6273_v2  ;;  %vm9302_vm10 = vcmp.le.f32.partialorder %v17578_v48, %v9257_v57  ;;  %v6309_v50 = vsel %vm6308_vm8, %v6306_v8, %v6307_v63  ;;  %v6313_v60 = vsel %vm6029_vm0, %v6241_v49, 2147483647 }
 0x3f9   :  { %vm6334_vm11 = vcmp.eq.s32.totalorder %v6275_v41, 0  ;;  %vm6335_vm12 = vcmp.eq.s32.totalorder %v6275_v41, 1  ;;  %vm6336_vm13 = vcmp.eq.s32.totalorder %v6275_v41, 2  ;;  %vm6337_vm14 = vcmp.eq.s32.totalorder %v6275_v41, 3 }
 0x3fa   :  { %v11223_v61 = vsel %vm6334_vm11, 1.0, %v19638_v10  ;;  %v11224_v15 = vsel %vm6335_vm12, 1.0, %v19638_v10  ;;  %v11225_v51 = vsel %vm6336_vm13, 1.0, %v19638_v10  ;;  %v11226_v33 = vsel %vm6337_vm14, 1.0, %v19638_v10 }
 0x3fb   :  { %v6430_v9 = vmul.f32 %v17914_v30, %v11223_v61  ;;  %v6431_v18 = vmul.f32 %v17920_v11, %v11224_v15  ;;  %v6432_v21 = vmul.f32 %v17926_v45, %v11225_v51  ;;  %v6433_v25 = vmul.f32 %v17932_v37, %v11226_v33  ;;  %v17952_v33 = vpop.xlane.xlu1 %7665 }
 0x3fc   :  { %vm9303_vm15 = vcmp.le.f32.partialorder %v17814_v19, %v9257_v57  ;;  %v9333_v2 = vsel %vm9301_vm9, 0, %v19478_v39  ;;  %vm9304_vm1 = vcmp.le.f32.partialorder %v17255_v28, %v9257_v57  ;;  %vm6311_vm2 = vcmp.lt.s32.totalorder %v6309_v50, %v6310_v31 }
 0x3fd   :  { %v6468_v0 = vsel %vm6029_vm0, %v6430_v9, 0.0  ;;  %v6469_v41 = vsel %vm6029_vm0, %v6431_v18, 0.0  ;;  %v6471_v61 = vsel %vm6029_vm0, %v6432_v21, 0.0  ;;  %v9334_v8 = vsel %vm9302_vm10, 1, %v19478_v39 }
 0x3fe   :  { %v6470_v15 = vadd.f32 %v6469_v41, %v6468_v0  ;;  %v9335_v19 = vsel %vm9303_vm15, 2, %v19478_v39  ;;  %v6473_v49 = vsel %vm6029_vm0, %v6433_v25, 0.0  ;;  %v6312_v52 = vsel %vm6311_vm2, %v6309_v50, %v6310_v31 }
 0x3ff   :  { %v9377_v63 = vsel %vm6029_vm0, %v9333_v2, 2147483647  ;;  %v9378_v51 = vsel %vm6029_vm0, %v9334_v8, 2147483647  ;;  %vm6314_vm3 = vcmp.lt.s32.totalorder %v6312_v52, %v6313_v60  ;;  %v9336_v28 = vsel %vm9304_vm1, 3, %v19478_v39  ;;  %v17985_v8 = vpop.xlane.xlu0 %6073 }
 0x400   :  { %v6472_v9 = vadd.f32 %v6471_v61, %v6470_v15  ;;  %vm9379_vm4 = vcmp.lt.s32.totalorder %v9377_v63, %v9378_v51  ;;  %v6315_v18 = vsel %vm6314_vm3, %v6312_v52, %v6313_v60  ;;  %v9381_v48 = vsel %vm6029_vm0, %v9335_v19, 2147483647  ;;  %v17982_v61 = vld [vmem:[%s18714_s1 + $0xc8] sm:$0x7]  ;;  %v17990_v19 = vld [vmem:[%s18714_s1 + $0xcc] sm:$0x7] }
 0x401   :  { %v9380_v21 = vsel %vm9379_vm4, %v9377_v63, %v9378_v51  ;;  %v19647_v57 = vmin.f32 %v17751_v1, %v17772_v17  ;;  %vm6350_vm5 = vcmp.eq.s32.totalorder %v6315_v18, 0  ;;  %vm6351_vm6 = vcmp.eq.s32.totalorder %v6315_v18, 1  ;;  %v17970_v1 = vld [vmem:[%s18714_s1 + $0xc0] sm:$0x7]  ;;  %v17995_v51 = vpop.xlane.xlu1 %9232 }
 0x402   :  { %v6474_v25 = vadd.f32 %v6473_v49, %v6472_v9  ;;  %vm6352_vm7 = vcmp.eq.s32.totalorder %v6315_v18, 2  ;;  %vm6353_vm8 = vcmp.eq.s32.totalorder %v6315_v18, 3  ;;  %v11239_v50 = vsel %vm6350_vm5, 1.0, %v19638_v10 }
 0x403   :  { %v9283_v31 = vmin.f32 %v19647_v57, %v17886_v3  ;;  %v11240_v2 = vsel %vm6351_vm6, 1.0, %v19638_v10  ;;  %v11241_v0 = vsel %vm6352_vm7, 1.0, %v19638_v10  ;;  %v11242_v60 = vsel %vm6353_vm8, 1.0, %v19638_v10  ;;  %v17976_v3 = vld [vmem:[%s18714_s1 + $0xc4] sm:$0x7] }
 0x404   :  { %6512 = vst [vmem:[%s18718_s5 + $0x8] sm:$0x7] %v6474_v25  ;;  %v6446_v17 = vmul.f32 %v17970_v1, %v11239_v50  ;;  %v6447_v41 = vmul.f32 %v17976_v3, %v11240_v2  ;;  %v6448_v15 = vmul.f32 %v17982_v61, %v11241_v0  ;;  %v6449_v49 = vmul.f32 %v17990_v19, %v11242_v60 }
 0x405   :  { %vm9382_vm9 = vcmp.lt.s32.totalorder %v9380_v21, %v9381_v48  ;;  %v9384_v52 = vsel %vm6029_vm0, %v9336_v28, 2147483647  ;;  %v9285_v63 = vmin.f32 %v9283_v31, %v17537_v55  ;;  %v18008_v31 = vpop.xlane.xlu0 %6121 }
 0x406   :  { %v6496_v9 = vsel %vm6029_vm0, %v6446_v17, 0.0  ;;  %v6497_v18 = vsel %vm6029_vm0, %v6447_v41, 0.0  ;;  %v6499_v57 = vsel %vm6029_vm0, %v6448_v15, 0.0  ;;  %v9383_v25 = vsel %vm9382_vm9, %v9380_v21, %v9381_v48 }
 0x407   :  { %v6498_v50 = vadd.f32 %v6497_v18, %v6496_v9  ;;  %v6501_v2 = vsel %vm6029_vm0, %v6449_v49, 0.0  ;;  %vm9385_vm10 = vcmp.lt.s32.totalorder %v9383_v25, %v9384_v52  ;;  %vm9317_vm11 = vcmp.le.f32.partialorder %v17475_v59, %v9285_v63  ;;  %v18013_v49 = vpop.xlane.xlu1 %6076 }
 0x408   :  { %v9386_v0 = vsel %vm9385_vm10, %v9383_v25, %v9384_v52  ;;  %vm9318_vm12 = vcmp.le.f32.partialorder %v17603_v13, %v9285_v63  ;;  %vm9319_vm13 = vcmp.le.f32.partialorder %v17869_v27, %v9285_v63  ;;  %vm9320_vm14 = vcmp.le.f32.partialorder %v17272_v16, %v9285_v63 }
 0x409   :  { %v6500_v55 = vadd.f32 %v6499_v57, %v6498_v50  ;;  %vm9445_vm15 = vcmp.eq.s32.totalorder %v9386_v0, 0  ;;  %vm9446_vm1 = vcmp.eq.s32.totalorder %v9386_v0, 1  ;;  %vm9447_vm2 = vcmp.eq.s32.totalorder %v9386_v0, 2 }
 0x40a   :  { %vm9448_vm3 = vcmp.eq.s32.totalorder %v9386_v0, 3  ;;  %v11313_v28 = vsel %vm9445_vm15, 1.0, %v19638_v10  ;;  %v11314_v21 = vsel %vm9446_vm1, 1.0, %v19638_v10  ;;  %v11315_v48 = vsel %vm9447_vm2, 1.0, %v19638_v10 }
 0x40b   :  { %v6502_v60 = vadd.f32 %v6501_v2, %v6500_v55  ;;  %v11316_v17 = vsel %vm9448_vm3, 1.0, %v19638_v10  ;;  %v9541_v41 = vmul.f32 %v17914_v30, %v11313_v28  ;;  %v9542_v15 = vmul.f32 %v17920_v11, %v11314_v21  ;;  %v18052_v21 = vpop.xlane.xlu0 %7614 }
 0x40c   :  { %v9543_v52 = vmul.f32 %v17926_v45, %v11315_v48  ;;  %v9544_v9 = vmul.f32 %v17932_v37, %v11316_v17  ;;  %v9349_v18 = vsel %vm9317_vm11, 0, %v19478_v39  ;;  %v9350_v57 = vsel %vm9318_vm12, 1, %v19478_v39 }
 0x40d   :  { %6516 = vst [vmem:[%s18718_s5 + $0x18] sm:$0x7] %v6502_v60  ;;  %v9288_v30 = vmin.f32 %v17834_v44, %v17867_v62  ;;  %v9579_v11 = vsel %vm6029_vm0, %v9541_v41, 0.0  ;;  %v9580_v45 = vsel %vm6029_vm0, %v9542_v15, 0.0  ;;  %v18032_v37 = vsel %vm6029_vm0, %v17905_v58, -inf  ;;  %v18060_v41 = vpop.xlane.xlu1 %6124 }
 0x40e   :  { %v9581_v59 = vadd.f32 %v9580_v45, %v9579_v11  ;;  %v9351_v13 = vsel %vm9319_vm13, 2, %v19478_v39  ;;  %v9417_v25 = vsel %vm6029_vm0, %v9349_v18, 2147483647  ;;  %v18040_v50 = vsel %vm6029_vm0, %v17952_v33, -inf }
 0x40f   :  { %v9582_v62 = vsel %vm6029_vm0, %v9543_v52, 0.0  ;;  %v9584_v44 = vsel %vm6029_vm0, %v9544_v9, 0.0  ;;  %v9352_v2 = vsel %vm9320_vm14, 3, %v19478_v39  ;;  %v9418_v0 = vsel %vm6029_vm0, %v9350_v57, 2147483647 }
 0x410   :  { %v9583_v55 = vadd.f32 %v9582_v62, %v9581_v59  ;;  %vm9419_vm4 = vcmp.lt.s32.totalorder %v9417_v25, %v9418_v0  ;;  %v6150_v27 = vsel %vm6029_vm0, %v17985_v8, -inf  ;;  %v9289_v28 = vsel %vm6029_vm0, %v17995_v51, inf }
 0x411   :  { %v9420_v48 = vsel %vm9419_vm4, %v9417_v25, %v9418_v0  ;;  %v9421_v60 = vsel %vm6029_vm0, %v9351_v13, 2147483647  ;;  %v19648_v17 = vmax.f32 %v17787_v43, %v17830_v22  ;;  %v6178_v63 = vsel %vm6029_vm0, %v18008_v31, -inf }
 0x412   :  { %v9585_v15 = vadd.f32 %v9584_v44, %v9583_v55  ;;  %vm9422_vm5 = vcmp.lt.s32.totalorder %v9420_v48, %v9421_v60  ;;  %v9424_v52 = vsel %vm6029_vm0, %v9352_v2, 2147483647  ;;  %v6152_v9 = vsel %vm6029_vm0, %v18013_v49, -inf }
 0x413   :  { %v6151_v16 = vmax.f32 %v19648_v17, %v6150_v27  ;;  %v9423_v18 = vsel %vm9422_vm5, %v9420_v48, %v9421_v60  ;;  %v18065_v57 = vmin.f32 %v9288_v30, %v9289_v28  ;;  %v7696_v43 = vsel %vm6029_vm0, %v18052_v21, -inf }
 0x414   :  { %11339 = vst [vmem:[%s18718_s5 + $0x48] sm:$0x7] %v9585_v15  ;;  %vm9425_vm6 = vcmp.lt.s32.totalorder %v9423_v18, %v9424_v52  ;;  %v6179_v22 = vmax.f32 %v6177_v35, %v6178_v63  ;;  %v19649_v45 = vmax.f32 %v17557_v47, %v17745_v32  ;;  %v6180_v30 = vsel %vm6029_vm0, %v18060_v41, -inf  ;;  %v18087_v35 = vpop.xlane.xlu0 %7662 }
 0x415   :  { %v6153_v11 = vmax.f32 %v6151_v16, %v6152_v9  ;;  %v9426_v13 = vsel %vm9425_vm6, %v9423_v18, %v9424_v52 }
 0x416   :  { %v7697_v59 = vmax.f32 %v19649_v45, %v7696_v43  ;;  %vm9461_vm10 = vcmp.eq.s32.totalorder %v9426_v13, 0  ;;  %vm9462_vm11 = vcmp.eq.s32.totalorder %v9426_v13, 1  ;;  %vm9463_vm12 = vcmp.eq.s32.totalorder %v9426_v13, 2 }
 0x417   :  { %vm6194_vm7 = vcmp.ge.f32.partialorder %v17590_v12, %v6153_v11  ;;  %vm6195_vm8 = vcmp.ge.f32.partialorder %v17714_v42, %v6153_v11  ;;  %vm6196_vm9 = vcmp.ge.f32.partialorder %v17985_v8, %v6153_v11  ;;  %vm9464_vm13 = vcmp.eq.s32.totalorder %v9426_v13, 3 }
 0x418   :  { %v11329_v23 = vsel %vm9461_vm10, 1.0, %v19638_v10  ;;  %v11330_v6 = vsel %vm9462_vm11, 1.0, %v19638_v10  ;;  %v11331_v47 = vsel %vm9463_vm12, 1.0, %v19638_v10  ;;  %v11332_v32 = vsel %vm9464_vm13, 1.0, %v19638_v10 }
 0x419   :  { %v9557_v25 = vmul.f32 %v17970_v1, %v11329_v23  ;;  %v9558_v62 = vmul.f32 %v17976_v3, %v11330_v6  ;;  %v9559_v44 = vmul.f32 %v17982_v61, %v11331_v47  ;;  %v9560_v2 = vmul.f32 %v17990_v19, %v11332_v32  ;;  %v18145_v23 = vld [vmem:[%s18714_s1 + $0x60] sm:$0x7]  ;;  %v18151_v47 = vld [vmem:[%s18714_s1 + $0x64] sm:$0x7] }
 0x41a   :  { %vm6197_vm14 = vcmp.ge.f32.partialorder %v18013_v49, %v6153_v11  ;;  %v6226_v0 = vsel %vm6194_vm7, 0, %v19478_v39  ;;  %v6227_v55 = vsel %vm6195_vm8, 1, %v19478_v39  ;;  %v18100_v27 = vmax.f32 %v6179_v22, %v6180_v30 }
 0x41b   :  { %v9607_v1 = vsel %vm6029_vm0, %v9557_v25, 0.0  ;;  %v9608_v3 = vsel %vm6029_vm0, %v9558_v62, 0.0  ;;  %v6228_v61 = vsel %vm6196_vm9, 2, %v19478_v39  ;;  %v18109_v19 = vsel %vm6029_vm0, %v18087_v35, -inf  ;;  %v18157_v25 = vld [vmem:[%s18714_s1 + $0x68] sm:$0x7] }
 0x41c   :  { %v9609_v12 = vadd.f32 %v9608_v3, %v9607_v1  ;;  %v6229_v49 = vsel %vm6197_vm14, 3, %v19478_v39  ;;  %v6276_v42 = vsel %vm6029_vm0, %v6226_v0, 2147483647  ;;  %v6277_v28 = vsel %vm6029_vm0, %v6227_v55, 2147483647 }
 0x41d   :  { %v9610_v48 = vsel %vm6029_vm0, %v9559_v44, 0.0  ;;  %v9612_v60 = vsel %vm6029_vm0, %v9560_v2, 0.0  ;;  %vm6278_vm15 = vcmp.lt.s32.totalorder %v6276_v42, %v6277_v28  ;;  %v7699_v17 = vmax.f32 %v7697_v59, %v18032_v37  ;;  %v18124_v37 = vpop.xlane.xlu1 %7629  ;;  %v18165_v44 = vld [vmem:[%s18714_s1 + $0x6c] sm:$0x7] }
 0x41e   :  { %v9611_v8 = vadd.f32 %v9610_v48, %v9609_v12  ;;  %v6279_v16 = vsel %vm6278_vm15, %v6276_v42, %v6277_v28  ;;  %v6280_v63 = vsel %vm6029_vm0, %v6228_v61, 2147483647  ;;  %v6283_v15 = vsel %vm6029_vm0, %v6229_v49, 2147483647 }
 0x41f   :  { %vm6281_vm1 = vcmp.lt.s32.totalorder %v6279_v16, %v6280_v63  ;;  %vm7743_vm2 = vcmp.ge.f32.partialorder %v17369_v36, %v7699_v17  ;;  %vm7744_vm3 = vcmp.ge.f32.partialorder %v17494_v54, %v7699_v17  ;;  %vm7745_vm4 = vcmp.ge.f32.partialorder %v18052_v21, %v7699_v17  ;;  %v18130_v36 = vpop.xlane.xlu0 %9184 }
 0x420   :  { %v9613_v52 = vadd.f32 %v9612_v60, %v9611_v8  ;;  %v6282_v9 = vsel %vm6281_vm1, %v6279_v16, %v6280_v63  ;;  %vm7746_vm5 = vcmp.ge.f32.partialorder %v17905_v58, %v7699_v17  ;;  %v7775_v18 = vsel %vm7743_vm2, 0, %v19478_v39 }
 0x421   :  { %vm6284_vm6 = vcmp.lt.s32.totalorder %v6282_v9, %v6283_v15  ;;  %v7776_v11 = vsel %vm7744_vm3, 1, %v19478_v39  ;;  %v7777_v43 = vsel %vm7745_vm4, 2, %v19478_v39  ;;  %vm6210_vm7 = vcmp.ge.f32.partialorder %v17611_v24, %v18100_v27  ;;  %v18171_v55 = vpop.xlane.xlu1 %7677 }
 0x422   :  { %11343 = vst [vmem:[%s18718_s5 + $0x58] sm:$0x7] %v9613_v52  ;;  %v6285_v54 = vsel %vm6284_vm6, %v6282_v9, %v6283_v15  ;;  %v7778_v58 = vsel %vm7746_vm5, 3, %v19478_v39  ;;  %v7819_v21 = vsel %vm6029_vm0, %v7775_v18, 2147483647  ;;  %vm6211_vm12 = vcmp.ge.f32.partialorder %v17753_v14, %v18100_v27 }
 0x423   :  { %v7820_v22 = vsel %vm6029_vm0, %v7776_v11, 2147483647  ;;  %vm6338_vm8 = vcmp.eq.s32.totalorder %v6285_v54, 0  ;;  %vm6339_vm9 = vcmp.eq.s32.totalorder %v6285_v54, 1  ;;  %vm6340_vm10 = vcmp.eq.s32.totalorder %v6285_v54, 2  ;;  %v18178_v61 = vpop.xlane.xlu0 %10726 }
 0x424   :  { %vm6341_vm11 = vcmp.eq.s32.totalorder %v6285_v54, 3  ;;  %v11227_v45 = vsel %vm6338_vm8, 1.0, %v19638_v10  ;;  %v11228_v59 = vsel %vm6339_vm9, 1.0, %v19638_v10  ;;  %v11229_v30 = vsel %vm6340_vm10, 1.0, %v19638_v10 }
 0x425   :  { %v11230_v13 = vsel %vm6341_vm11, 1.0, %v19638_v10  ;;  %v6434_v6 = vmul.f32 %v18145_v23, %v11227_v45  ;;  %v6435_v32 = vmul.f32 %v18151_v47, %v11228_v59  ;;  %v6436_v62 = vmul.f32 %v18157_v25, %v11229_v30  ;;  %v18196_v11 = vpop.xlane.xlu1 %9187  ;;  %v18222_v59 = vld [vmem:[%s18714_s1 + $0x58] sm:$0x7] }
 0x426   :  { %v6437_v2 = vmul.f32 %v18165_v44, %v11230_v13  ;;  %vm7821_vm13 = vcmp.lt.s32.totalorder %v7819_v21, %v7820_v22  ;;  %v7823_v0 = vsel %vm6029_vm0, %v7777_v43, 2147483647  ;;  %vm6212_vm14 = vcmp.ge.f32.partialorder %v18008_v31, %v18100_v27  ;;  %v18228_v13 = vld [vmem:[%s18714_s1 + $0x5c] sm:$0x7] }
 0x427   :  { %v6475_v1 = vsel %vm6029_vm0, %v6434_v6, 0.0  ;;  %v6476_v3 = vsel %vm6029_vm0, %v6435_v32, 0.0  ;;  %v7826_v14 = vsel %vm6029_vm0, %v7778_v58, 2147483647  ;;  %vm6213_vm15 = vcmp.ge.f32.partialorder %v18060_v41, %v18100_v27  ;;  %v18198_v43 = vpop.xlane.xlu0 %10774 }
 0x428   :  { %v6477_v12 = vadd.f32 %v6476_v3, %v6475_v1  ;;  %v7822_v49 = vsel %vm7821_vm13, %v7819_v21, %v7820_v22  ;;  %v6242_v31 = vsel %vm6210_vm7, 0, %v19478_v39  ;;  %v6243_v42 = vsel %vm6211_vm12, 1, %v19478_v39  ;;  %v18216_v22 = vld [vmem:[%s18714_s1 + $0x54] sm:$0x7] }
 0x429   :  { %v6478_v28 = vsel %vm6029_vm0, %v6436_v62, 0.0  ;;  %vm7824_vm1 = vcmp.lt.s32.totalorder %v7822_v49, %v7823_v0  ;;  %v6244_v48 = vsel %vm6212_vm14, 2, %v19478_v39  ;;  %v6316_v60 = vsel %vm6029_vm0, %v6242_v31, 2147483647  ;;  %v19651_v31 = vld [vmem:[#allocation100_spill] sm:$0xff] }
 0x42a   :  { %v6479_v17 = vadd.f32 %v6478_v28, %v6477_v12  ;;  %v6480_v41 = vsel %vm6029_vm0, %v6437_v2, 0.0  ;;  %v7825_v8 = vsel %vm7824_vm1, %v7822_v49, %v7823_v0  ;;  %v6317_v16 = vsel %vm6029_vm0, %v6243_v42, 2147483647  ;;  %v18243_v42 = vpop.xlane.xlu1 %10738 }
 0x42b   :  { %vm7827_vm2 = vcmp.lt.s32.totalorder %v7825_v8, %v7826_v14  ;;  %v6245_v63 = vsel %vm6213_vm15, 3, %v19478_v39  ;;  %vm6318_vm3 = vcmp.lt.s32.totalorder %v6316_v60, %v6317_v16  ;;  %v6320_v24 = vsel %vm6029_vm0, %v6244_v48, 2147483647  ;;  %v18248_v28 = vpop.xlane.xlu0 %10729 }
 0x42c   :  { %v6481_v27 = vadd.f32 %v6480_v41, %v6479_v17  ;;  %v7828_v15 = vsel %vm7827_vm2, %v7825_v8, %v7826_v14  ;;  %v6319_v52 = vsel %vm6318_vm3, %v6316_v60, %v6317_v16  ;;  %v19650_v9 = vmax.f32 %v17601_v7, %v17759_v20  ;;  %v18210_v20 = vld [vmem:[%s18714_s1 + $0x50] sm:$0x7] }
 0x42d   :  { %vm7887_vm4 = vcmp.eq.s32.totalorder %v7828_v15, 0  ;;  %vm7888_vm5 = vcmp.eq.s32.totalorder %v7828_v15, 1  ;;  %vm7889_vm6 = vcmp.eq.s32.totalorder %v7828_v15, 2  ;;  %vm7890_vm7 = vcmp.eq.s32.totalorder %v7828_v15, 3  ;;  %v18265_v15 = vld [vmem:[%s18714_s1 + $0xe4] sm:$0x7] }
 0x42e   :  { %v7725_v18 = vmax.f32 %v19650_v9, %v18109_v19  ;;  %6513 = vst [vmem:[%s18718_s5 + $0xc] sm:$0x7] %v6481_v27  ;;  %v11263_v54 = vsel %vm7887_vm4, 1.0, %v19638_v10  ;;  %v11264_v58 = vsel %vm7888_vm5, 1.0, %v19638_v10  ;;  %v11265_v21 = vsel %vm7889_vm6, 1.0, %v19638_v10 }
 0x42f   :  { %v11266_v7 = vsel %vm7890_vm7, 1.0, %v19638_v10  ;;  %v7983_v19 = vmul.f32 %v18210_v20, %v11263_v54  ;;  %v7984_v45 = vmul.f32 %v18216_v22, %v11264_v58  ;;  %v7985_v30 = vmul.f32 %v18222_v59, %v11265_v21  ;;  %v18271_v9 = vld [vmem:[%s18714_s1 + $0xe8] sm:$0x7]  ;;  %v18280_v54 = vld [vmem:[%s18714_s1 + $0xec] sm:$0x7] }
 0x430   :  { %v7986_v6 = vmul.f32 %v18228_v13, %v11266_v7  ;;  %vm6321_vm8 = vcmp.lt.s32.totalorder %v6319_v52, %v6320_v24  ;;  %v6323_v32 = vsel %vm6029_vm0, %v6245_v63, 2147483647  ;;  %v7727_v62 = vmax.f32 %v7725_v18, %v18040_v50 }
 0x431   :  { %v18235_v2 = vsel %vm6029_vm0, %v18124_v37, -inf  ;;  %v8021_v0 = vsel %vm6029_vm0, %v7983_v19, 0.0  ;;  %v8022_v1 = vsel %vm6029_vm0, %v7984_v45, 0.0  ;;  %v8024_v3 = vsel %vm6029_vm0, %v7985_v30, 0.0  ;;  %v18287_v45 = vpop.xlane.xlu1 %10786 }
 0x432   :  { %v8026_v14 = vsel %vm6029_vm0, %v7986_v6, 0.0  ;;  %v8023_v12 = vadd.f32 %v8022_v1, %v8021_v0  ;;  %v6322_v49 = vsel %vm6321_vm8, %v6319_v52, %v6320_v24  ;;  %vm7759_vm9 = vcmp.ge.f32.partialorder %v19651_v31, %v7727_v62  ;;  %v18259_v24 = vld [vmem:[%s18714_s1 + $0xe0] sm:$0x7]  ;;  %v18294_v0 = vpop.xlane.xlu0 %7626 }
 0x433   :  { %vm7760_vm10 = vcmp.ge.f32.partialorder %v17533_v56, %v7727_v62  ;;  %vm6324_vm11 = vcmp.lt.s32.totalorder %v6322_v49, %v6323_v32  ;;  %vm7761_vm12 = vcmp.ge.f32.partialorder %v18087_v35, %v7727_v62  ;;  %vm7762_vm13 = vcmp.ge.f32.partialorder %v17952_v33, %v7727_v62 }
 0x434   :  { %v7791_v50 = vsel %vm7759_vm9, 0, %v19478_v39  ;;  %v8025_v48 = vadd.f32 %v8024_v3, %v8023_v12  ;;  %v6325_v60 = vsel %vm6324_vm11, %v6322_v49, %v6323_v32  ;;  %v7792_v17 = vsel %vm7760_vm10, 1, %v19478_v39 }
 0x435   :  { %v7793_v41 = vsel %vm7761_vm12, 2, %v19478_v39  ;;  %vm6354_vm14 = vcmp.eq.s32.totalorder %v6325_v60, 0  ;;  %vm6355_vm15 = vcmp.eq.s32.totalorder %v6325_v60, 1  ;;  %vm6356_vm1 = vcmp.eq.s32.totalorder %v6325_v60, 2 }
 0x436   :  { %vm6357_vm2 = vcmp.eq.s32.totalorder %v6325_v60, 3  ;;  %v8027_v56 = vadd.f32 %v8026_v14, %v8025_v48  ;;  %v11243_v8 = vsel %vm6354_vm14, 1.0, %v19638_v10  ;;  %v11244_v35 = vsel %vm6355_vm15, 1.0, %v19638_v10 }
 0x437   :  { %v11245_v16 = vsel %vm6356_vm1, 1.0, %v19638_v10  ;;  %v11246_v63 = vsel %vm6357_vm2, 1.0, %v19638_v10  ;;  %v6450_v27 = vmul.f32 %v18259_v24, %v11243_v8  ;;  %v6451_v52 = vmul.f32 %v18265_v15, %v11244_v35 }
 0x438   :  { %v6452_v18 = vmul.f32 %v18271_v9, %v11245_v16  ;;  %11289 = vst [vmem:[%s18718_s5 + $0x28] sm:$0x7] %v8027_v56  ;;  %v6453_v58 = vmul.f32 %v18280_v54, %v11246_v63  ;;  %v7859_v21 = vsel %vm6029_vm0, %v7791_v50, 2147483647  ;;  %v7860_v7 = vsel %vm6029_vm0, %v7792_v17, 2147483647  ;;  %v18320_v16 = vpop.xlane.xlu1 %9235  ;;  %v18322_v63 = vpop.xlane.xlu0 %7674 }
 0x439   :  { %v9261_v19 = vsel %vm6029_vm0, %v18130_v36, inf  ;;  %v6503_v30 = vsel %vm6029_vm0, %v6450_v27, 0.0  ;;  %v6504_v6 = vsel %vm6029_vm0, %v6451_v52, 0.0  ;;  %v7794_v32 = vsel %vm7762_vm13, 3, %v19478_v39 }
 0x43a   :  { %vm7861_vm3 = vcmp.lt.s32.totalorder %v7859_v21, %v7860_v7  ;;  %v6505_v1 = vadd.f32 %v6504_v6, %v6503_v30  ;;  %v7863_v14 = vsel %vm6029_vm0, %v7793_v41, 2147483647  ;;  %v18299_v12 = vsel %vm6029_vm0, %v18171_v55, -inf  ;;  %v18352_v6 = vld [vmem:[%s18714_s1 + $0xdc] sm:$0x7] }
 0x43b   :  { %v7862_v3 = vsel %vm7861_vm3, %v7859_v21, %v7860_v7  ;;  %v6506_v49 = vsel %vm6029_vm0, %v6452_v18, 0.0  ;;  %v9262_v31 = vmin.f32 %v9260_v5, %v9261_v19  ;;  %v10808_v33 = vsel %vm6029_vm0, %v18178_v61, inf  ;;  %v18334_v18 = vld [vmem:[%s18714_s1 + $0xd0] sm:$0x7]  ;;  %v18340_v21 = vld [vmem:[%s18714_s1 + $0xd4] sm:$0x7] }
 0x43c   :  { %vm7864_vm4 = vcmp.lt.s32.totalorder %v7862_v3, %v7863_v14  ;;  %v6507_v62 = vadd.f32 %v6506_v49, %v6505_v1  ;;  %v7866_v48 = vsel %vm6029_vm0, %v7794_v32, 2147483647  ;;  %v9263_v60 = vsel %vm6029_vm0, %v18196_v11, inf  ;;  %v18346_v19 = vld [vmem:[%s18714_s1 + $0xd8] sm:$0x7] }
 0x43d   :  { %v7865_v50 = vsel %vm7864_vm4, %v7862_v3, %v7863_v14  ;;  %v6508_v17 = vsel %vm6029_vm0, %v6453_v58, 0.0  ;;  %v19652_v41 = vmin.f32 %v17768_v4, %v17794_v26  ;;  %v9264_v8 = vmin.f32 %v9262_v31, %v9263_v60 }
 0x43e   :  { %vm7867_vm5 = vcmp.lt.s32.totalorder %v7865_v50, %v7866_v48  ;;  %v6509_v38 = vadd.f32 %v6508_v17, %v6507_v62  ;;  %v10836_v5 = vsel %vm6029_vm0, %v18198_v43, inf  ;;  %v18318_v35 = vsel %vm6029_vm0, %v18243_v42, inf  ;;  %v18367_v62 = vpop.xlane.xlu1 %10741  ;;  %v18372_v17 = vpop.xlane.xlu0 %7620 }
 0x43f   :  { %v10809_v56 = vmin.f32 %v19652_v41, %v10808_v33  ;;  %v7868_v40 = vsel %vm7867_vm5, %v7865_v50, %v7866_v48  ;;  %vm9305_vm10 = vcmp.le.f32.partialorder %v17652_v34, %v9264_v8  ;;  %vm9306_vm11 = vcmp.le.f32.partialorder %v17804_v29, %v9264_v8 }
 0x440   :  { %vm7903_vm6 = vcmp.eq.s32.totalorder %v7868_v40, 0  ;;  %vm7904_vm7 = vcmp.eq.s32.totalorder %v7868_v40, 1  ;;  %vm7905_vm8 = vcmp.eq.s32.totalorder %v7868_v40, 2  ;;  %vm7906_vm9 = vcmp.eq.s32.totalorder %v7868_v40, 3  ;;  %6517 = vst [vmem:[%s18718_s5 + $0x1c] sm:$0x7] %v6509_v38 }
 0x441   :  { %v11279_v4 = vsel %vm7903_vm6, 1.0, %v19638_v10  ;;  %v11280_v26 = vsel %vm7904_vm7, 1.0, %v19638_v10  ;;  %v11281_v27 = vsel %vm7905_vm8, 1.0, %v19638_v10  ;;  %v11282_v52 = vsel %vm7906_vm9, 1.0, %v19638_v10  ;;  %v19653_v40 = vld [vmem:[#allocation65_spill] sm:$0xff] }
 0x442   :  { %v7999_v58 = vmul.f32 %v18334_v18, %v11279_v4  ;;  %v8000_v7 = vmul.f32 %v18340_v21, %v11280_v26  ;;  %v8001_v30 = vmul.f32 %v18346_v19, %v11281_v27  ;;  %v8002_v32 = vmul.f32 %v18352_v6, %v11282_v52 }
 0x443   :  { %vm9307_vm12 = vcmp.le.f32.partialorder %v18130_v36, %v9264_v8  ;;  %v10810_v1 = vsel %vm6029_vm0, %v18248_v28, inf  ;;  %vm9308_vm13 = vcmp.le.f32.partialorder %v18196_v11, %v9264_v8  ;;  %v9337_v33 = vsel %vm9305_vm10, 0, %v19478_v39 }
 0x444   :  { %v8049_v3 = vsel %vm6029_vm0, %v7999_v58, 0.0  ;;  %v8050_v14 = vsel %vm6029_vm0, %v8000_v7, 0.0  ;;  %v8052_v49 = vsel %vm6029_vm0, %v8001_v30, 0.0  ;;  %v9338_v34 = vsel %vm9306_vm11, 1, %v19478_v39 }
 0x445   :  { %v8051_v31 = vadd.f32 %v8050_v14, %v8049_v3  ;;  %v9339_v29 = vsel %vm9307_vm12, 2, %v19478_v39  ;;  %v8054_v36 = vsel %vm6029_vm0, %v8002_v32, 0.0  ;;  %v9387_v50 = vsel %vm6029_vm0, %v9337_v33, 2147483647 }
 0x446   :  { %v9388_v48 = vsel %vm6029_vm0, %v9338_v34, 2147483647  ;;  %v10811_v60 = vmin.f32 %v10809_v56, %v10810_v1  ;;  %v9340_v11 = vsel %vm9308_vm13, 3, %v19478_v39  ;;  %v9391_v8 = vsel %vm6029_vm0, %v9339_v29, 2147483647  ;;  %v18394_v1 = vpop.xlane.xlu1 %7623 }
 0x447   :  { %v8053_v41 = vadd.f32 %v8052_v49, %v8051_v31  ;;  %vm9389_vm14 = vcmp.lt.s32.totalorder %v9387_v50, %v9388_v48  ;;  %v9394_v27 = vsel %vm6029_vm0, %v9340_v11, 2147483647  ;;  %v18398_v31 = vpop.xlane.xlu0 %7668 }
 0x448   :  { %v9390_v38 = vsel %vm9389_vm14, %v9387_v50, %v9388_v48  ;;  %vm10855_vm15 = vcmp.le.f32.partialorder %v17516_v53, %v10811_v60  ;;  %vm10856_vm1 = vcmp.le.f32.partialorder %v19653_v40, %v10811_v60  ;;  %vm10857_vm2 = vcmp.le.f32.partialorder %v18178_v61, %v10811_v60  ;;  %v19654_v53 = vld [vmem:[#allocation45_spill] sm:$0xff]  ;;  %v19655_v61 = vld [vmem:[#allocation50_spill] sm:$0xff] }
 0x449   :  { %v8055_v4 = vadd.f32 %v8054_v36, %v8053_v41  ;;  %vm9392_vm3 = vcmp.lt.s32.totalorder %v9390_v38, %v9391_v8  ;;  %vm10858_vm4 = vcmp.le.f32.partialorder %v18248_v28, %v10811_v60  ;;  %v10887_v56 = vsel %vm10855_vm15, 0, %v19478_v39 }
 0x44a   :  { %v9393_v26 = vsel %vm9392_vm3, %v9390_v38, %v9391_v8  ;;  %v10888_v52 = vsel %vm10856_vm1, 1, %v19478_v39  ;;  %v10889_v58 = vsel %vm10857_vm2, 2, %v19478_v39  ;;  %v19656_v7 = vmin.f32 %v19654_v53, %v19655_v61 }
 0x44b   :  { %11293 = vst [vmem:[%s18718_s5 + $0x38] sm:$0x7] %v8055_v4  ;;  %vm9395_vm5 = vcmp.lt.s32.totalorder %v9393_v26, %v9394_v27  ;;  %v10931_v28 = vsel %vm6029_vm0, %v10887_v56, 2147483647  ;;  %v10932_v32 = vsel %vm6029_vm0, %v10888_v52, 2147483647 }
 0x44c   :  { %v18390_v30 = vmin.f32 %v19656_v7, %v10836_v5  ;;  %v9396_v3 = vsel %vm9395_vm5, %v9393_v26, %v9394_v27  ;;  %v10890_v14 = vsel %vm10858_vm4, 3, %v19478_v39  ;;  %vm10933_vm6 = vcmp.lt.s32.totalorder %v10931_v28, %v10932_v32  ;;  %v18424_v27 = vpop.xlane.xlu0 %10732 }
 0x44d   :  { %v10935_v49 = vsel %vm6029_vm0, %v10889_v58, 2147483647  ;;  %vm9449_vm7 = vcmp.eq.s32.totalorder %v9396_v3, 0  ;;  %vm9450_vm8 = vcmp.eq.s32.totalorder %v9396_v3, 1  ;;  %vm9451_vm9 = vcmp.eq.s32.totalorder %v9396_v3, 2 }
 0x44e   :  { %vm9452_vm10 = vcmp.eq.s32.totalorder %v9396_v3, 3  ;;  %v11317_v5 = vsel %vm9449_vm7, 1.0, %v19638_v10  ;;  %v11318_v33 = vsel %vm9450_vm8, 1.0, %v19638_v10  ;;  %v11319_v34 = vsel %vm9451_vm9, 1.0, %v19638_v10 }
 0x44f   :  { %v11320_v29 = vsel %vm9452_vm10, 1.0, %v19638_v10  ;;  %v9545_v36 = vmul.f32 %v18145_v23, %v11317_v5  ;;  %v9546_v50 = vmul.f32 %v18151_v47, %v11318_v33  ;;  %v9547_v48 = vmul.f32 %v18157_v25, %v11319_v34  ;;  %v18420_v25 = vpop.xlane.xlu1 %7671 }
 0x450   :  { %v9548_v60 = vmul.f32 %v18165_v44, %v11320_v29  ;;  %v10934_v41 = vsel %vm10933_vm6, %v10931_v28, %v10932_v32  ;;  %v10938_v11 = vsel %vm6029_vm0, %v10890_v14, 2147483647  ;;  %v7703_v8 = vsel %vm6029_vm0, %v18294_v0, -inf  ;;  %v19657_v28 = vld [vmem:[#allocation51_spill] sm:$0xff] }
 0x451   :  { %v9291_v38 = vsel %vm6029_vm0, %v18320_v16, inf  ;;  %v9586_v40 = vsel %vm6029_vm0, %v9545_v36, 0.0  ;;  %v9587_v4 = vsel %vm6029_vm0, %v9546_v50, 0.0  ;;  %v9589_v23 = vsel %vm6029_vm0, %v9547_v48, 0.0  ;;  %v18451_v48 = vpop.xlane.xlu0 %10780 }
 0x452   :  { %v18418_v47 = vsel %vm6029_vm0, %v18322_v63, -inf  ;;  %v9588_v44 = vadd.f32 %v9587_v4, %v9586_v40  ;;  %v9591_v56 = vsel %vm6029_vm0, %v9548_v60, 0.0  ;;  %vm10936_vm11 = vcmp.lt.s32.totalorder %v10934_v41, %v10935_v49 }
 0x453   :  { %v9292_v26 = vmin.f32 %v18065_v57, %v9291_v38  ;;  %v10937_v52 = vsel %vm10936_vm11, %v10934_v41, %v10935_v49  ;;  %v18428_v58 = vsel %vm6029_vm0, %v18367_v62, inf  ;;  %v7700_v53 = vsel %vm6029_vm0, %v18372_v17, -inf  ;;  %v18442_v33 = vpop.xlane.xlu1 %10735 }
 0x454   :  { %v7701_v61 = vsel %vm6029_vm0, %v18394_v1, -inf  ;;  %v9590_v7 = vadd.f32 %v9589_v23, %v9588_v44  ;;  %vm10939_vm12 = vcmp.lt.s32.totalorder %v10937_v52, %v10938_v11  ;;  %v7728_v38 = vsel %vm6029_vm0, %v18398_v31, -inf }
 0x455   :  { %vm9321_vm13 = vcmp.le.f32.partialorder %v19657_v28, %v9292_v26  ;;  %vm9322_vm14 = vcmp.le.f32.partialorder %v17844_v46, %v9292_v26  ;;  %v10940_v57 = vsel %vm10939_vm12, %v10937_v52, %v10938_v11  ;;  %vm9323_vm15 = vcmp.le.f32.partialorder %v17995_v51, %v9292_v26 }
 0x456   :  { %vm9324_vm1 = vcmp.le.f32.partialorder %v18320_v16, %v9292_v26  ;;  %v9353_v32 = vsel %vm9321_vm13, 0, %v19478_v39  ;;  %v9592_v3 = vadd.f32 %v9591_v56, %v9590_v7  ;;  %vm10999_vm2 = vcmp.eq.s32.totalorder %v10940_v57, 0 }
 0x457   :  { %vm11000_vm3 = vcmp.eq.s32.totalorder %v10940_v57, 1  ;;  %vm11001_vm4 = vcmp.eq.s32.totalorder %v10940_v57, 2  ;;  %vm11002_vm5 = vcmp.eq.s32.totalorder %v10940_v57, 3  ;;  %v11361_v14 = vsel %vm10999_vm2, 1.0, %v19638_v10  ;;  %v18476_v28 = vpop.xlane.xlu1 %10783 }
 0x458   :  { %v11362_v49 = vsel %vm11000_vm3, 1.0, %v19638_v10  ;;  %v11363_v5 = vsel %vm11001_vm4, 1.0, %v19638_v10  ;;  %11340 = vst [vmem:[%s18718_s5 + $0x4c] sm:$0x7] %v9592_v3  ;;  %v11364_v34 = vsel %vm11002_vm5, 1.0, %v19638_v10  ;;  %v11095_v29 = vmul.f32 %v18210_v20, %v11361_v14  ;;  %v18481_v14 = vpop.xlane.xlu0 %10777 }
 0x459   :  { %v11096_v36 = vmul.f32 %v18216_v22, %v11362_v49  ;;  %v11097_v50 = vmul.f32 %v18222_v59, %v11363_v5  ;;  %v11098_v60 = vmul.f32 %v18228_v13, %v11364_v34  ;;  %v9354_v41 = vsel %vm9322_vm14, 1, %v19478_v39 }
 0x45a   :  { %v9355_v11 = vsel %vm9323_vm15, 2, %v19478_v39  ;;  %v11133_v20 = vsel %vm6029_vm0, %v11095_v29, 0.0  ;;  %v9356_v59 = vsel %vm9324_vm1, 3, %v19478_v39  ;;  %v9427_v13 = vsel %vm6029_vm0, %v9353_v32, 2147483647 }
 0x45b   :  { %v11134_v22 = vsel %vm6029_vm0, %v11096_v36, 0.0  ;;  %v11136_v46 = vsel %vm6029_vm0, %v11097_v50, 0.0  ;;  %v11138_v4 = vsel %vm6029_vm0, %v11098_v60, 0.0  ;;  %v9428_v51 = vsel %vm6029_vm0, %v9354_v41, 2147483647 }
 0x45c   :  { %v11135_v40 = vadd.f32 %v11134_v22, %v11133_v20  ;;  %vm9429_vm6 = vcmp.lt.s32.totalorder %v9427_v13, %v9428_v51  ;;  %v9431_v23 = vsel %vm6029_vm0, %v9355_v11, 2147483647  ;;  %v7702_v44 = vmax.f32 %v7700_v53, %v7701_v61 }
 0x45d   :  { %v7729_v56 = vsel %vm6029_vm0, %v18420_v25, -inf  ;;  %v9430_v7 = vsel %vm9429_vm6, %v9427_v13, %v9428_v51  ;;  %v10812_v26 = vsel %vm6029_vm0, %v18424_v27, inf  ;;  %v9434_v57 = vsel %vm6029_vm0, %v9356_v59, 2147483647 }
 0x45e   :  { %v11137_v52 = vadd.f32 %v11136_v46, %v11135_v40  ;;  %v7730_v16 = vmax.f32 %v7728_v38, %v7729_v56  ;;  %vm9432_vm7 = vcmp.lt.s32.totalorder %v9430_v7, %v9431_v23  ;;  %v7704_v32 = vmax.f32 %v7702_v44, %v7703_v8 }
 0x45f   :  { %v10813_v3 = vsel %vm6029_vm0, %v18442_v33, inf  ;;  %v9433_v61 = vsel %vm9432_vm7, %v9430_v7, %v9431_v23  ;;  %v18487_v29 = vsel %vm6029_vm0, %v18451_v48, inf  ;;  %v18491_v8 = vsel %vm6029_vm0, %v18476_v28, inf }
 0x460   :  { %v11139_v53 = vadd.f32 %v11138_v4, %v11137_v52  ;;  %v7732_v49 = vmax.f32 %v7730_v16, %v18418_v47  ;;  %v10814_v5 = vmin.f32 %v10812_v26, %v10813_v3  ;;  %vm9435_vm8 = vcmp.lt.s32.totalorder %v9433_v61, %v9434_v57 }
 0x461   :  { %v7706_v34 = vmax.f32 %v7704_v32, %v18235_v2  ;;  %v9436_v36 = vsel %vm9435_vm8, %v9433_v61, %v9434_v57  ;;  %v18500_v2 = vsel %vm6029_vm0, %v18481_v14, inf }
 0x462   :  { %11387 = vst [vmem:[%s18718_s5 + $0x68] sm:$0x7] %v11139_v53  ;;  %v7734_v50 = vmax.f32 %v7732_v49, %v18299_v12  ;;  %v10816_v47 = vmin.f32 %v10814_v5, %v18318_v35  ;;  %vm9465_vm9 = vcmp.eq.s32.totalorder %v9436_v36, 0  ;;  %vm9466_vm10 = vcmp.eq.s32.totalorder %v9436_v36, 1 }
 0x463   :  { %vm9467_vm11 = vcmp.eq.s32.totalorder %v9436_v36, 2  ;;  %vm9468_vm12 = vcmp.eq.s32.totalorder %v9436_v36, 3  ;;  %v11333_v60 = vsel %vm9465_vm9, 1.0, %v19638_v10  ;;  %v11334_v41 = vsel %vm9466_vm10, 1.0, %v19638_v10 }
 0x464   :  { %v11335_v11 = vsel %vm9467_vm11, 1.0, %v19638_v10  ;;  %v11336_v38 = vsel %vm9468_vm12, 1.0, %v19638_v10  ;;  %v9561_v12 = vmul.f32 %v18259_v24, %v11333_v60  ;;  %v9562_v35 = vmul.f32 %v18265_v15, %v11334_v41  ;;  %v18569_v41 = vld [vmem:[%s18714_s1 + $0x7c] sm:$0x7] }
 0x465   :  { %v9563_v20 = vmul.f32 %v18271_v9, %v11335_v11  ;;  %v9564_v22 = vmul.f32 %v18280_v54, %v11336_v38  ;;  %vm7747_vm13 = vcmp.ge.f32.partialorder %v18372_v17, %v7706_v34  ;;  %vm7748_vm14 = vcmp.ge.f32.partialorder %v18394_v1, %v7706_v34 }
 0x466   :  { %vm7749_vm15 = vcmp.ge.f32.partialorder %v18294_v0, %v7706_v34  ;;  %vm7750_vm1 = vcmp.ge.f32.partialorder %v18124_v37, %v7706_v34  ;;  %v9614_v59 = vsel %vm6029_vm0, %v9561_v12, 0.0  ;;  %v9615_v13 = vsel %vm6029_vm0, %v9562_v35, 0.0  ;;  %v18551_v34 = vld [vmem:[%s18714_s1 + $0x70] sm:$0x7] }
 0x467   :  { %v9617_v24 = vsel %vm6029_vm0, %v9563_v20, 0.0  ;;  %v9619_v15 = vsel %vm6029_vm0, %v9564_v22, 0.0  ;;  %v9616_v40 = vadd.f32 %v9615_v13, %v9614_v59  ;;  %v7779_v9 = vsel %vm7747_vm13, 0, %v19478_v39 }
 0x468   :  { %v7780_v54 = vsel %vm7748_vm14, 1, %v19478_v39  ;;  %v7781_v17 = vsel %vm7749_vm15, 2, %v19478_v39  ;;  %v7782_v1 = vsel %vm7750_vm1, 3, %v19478_v39  ;;  %v7829_v0 = vsel %vm6029_vm0, %v7779_v9, 2147483647 }
 0x469   :  { %v7830_v37 = vsel %vm6029_vm0, %v7780_v54, 2147483647  ;;  %vm7763_vm2 = vcmp.ge.f32.partialorder %v18398_v31, %v7734_v50  ;;  %v9618_v46 = vadd.f32 %v9617_v24, %v9616_v40  ;;  %v7833_v4 = vsel %vm6029_vm0, %v7781_v17, 2147483647 }
 0x46a   :  { %vm7831_vm3 = vcmp.lt.s32.totalorder %v7829_v0, %v7830_v37  ;;  %v7836_v51 = vsel %vm6029_vm0, %v7782_v1, 2147483647  ;;  %vm7764_vm4 = vcmp.ge.f32.partialorder %v18420_v25, %v7734_v50  ;;  %vm7765_vm5 = vcmp.ge.f32.partialorder %v18322_v63, %v7734_v50 }
 0x46b   :  { %v7832_v23 = vsel %vm7831_vm3, %v7829_v0, %v7830_v37  ;;  %vm7766_vm6 = vcmp.ge.f32.partialorder %v18171_v55, %v7734_v50  ;;  %v9620_v44 = vadd.f32 %v9619_v15, %v9618_v46  ;;  %v7795_v56 = vsel %vm7763_vm2, 0, %v19478_v39  ;;  %v18602_v46 = vld [vmem:[%s18714_s1 + $0xf0] sm:$0x7] }
 0x46c   :  { %vm7834_vm7 = vcmp.lt.s32.totalorder %v7832_v23, %v7833_v4  ;;  %v7796_v52 = vsel %vm7764_vm4, 1, %v19478_v39  ;;  %v7797_v7 = vsel %vm7765_vm5, 2, %v19478_v39  ;;  %v7798_v16 = vsel %vm7766_vm6, 3, %v19478_v39 }
 0x46d   :  { %v7835_v31 = vsel %vm7834_vm7, %v7832_v23, %v7833_v4  ;;  %v7869_v26 = vsel %vm6029_vm0, %v7795_v56, 2147483647  ;;  %11344 = vst [vmem:[%s18718_s5 + $0x5c] sm:$0x7] %v9620_v44  ;;  %v7870_v55 = vsel %vm6029_vm0, %v7796_v52, 2147483647  ;;  %v10842_v25 = vmin.f32 %v18487_v29, %v18491_v8 }
 0x46e   :  { %vm7837_vm8 = vcmp.lt.s32.totalorder %v7835_v31, %v7836_v51  ;;  %v7873_v63 = vsel %vm6029_vm0, %v7797_v7, 2147483647  ;;  %vm7871_vm9 = vcmp.lt.s32.totalorder %v7869_v26, %v7870_v55  ;;  %v7876_v32 = vsel %vm6029_vm0, %v7798_v16, 2147483647  ;;  %v18614_v44 = vld [vmem:[%s18714_s1 + $0xf8] sm:$0x7] }
 0x46f   :  { %v7838_v57 = vsel %vm7837_vm8, %v7835_v31, %v7836_v51  ;;  %v10818_v3 = vmin.f32 %v10816_v47, %v18428_v58  ;;  %v18557_v58 = vld [vmem:[%s18714_s1 + $0x74] sm:$0x7]  ;;  %v18563_v47 = vld [vmem:[%s18714_s1 + $0x78] sm:$0x7]  ;;  %v7872_v38 = vsel %vm7871_vm9, %v7869_v26, %v7870_v55  ;;  %v18581_v22 = vmin.f32 %v18390_v30, %v18500_v2  ;;  %v18620_v52 = vld [vmem:[%s18714_s1 + $0xfc] sm:$0x7] }
 0x470   :  { %vm7891_vm10 = vcmp.eq.s32.totalorder %v7838_v57, 0  ;;  %vm7892_vm11 = vcmp.eq.s32.totalorder %v7838_v57, 1  ;;  %vm7893_vm12 = vcmp.eq.s32.totalorder %v7838_v57, 2  ;;  %vm7894_vm13 = vcmp.eq.s32.totalorder %v7838_v57, 3  ;;  %v18608_v51 = vld [vmem:[%s18714_s1 + $0xf4] sm:$0x7] }
 0x471   :  { %v11267_v53 = vsel %vm7891_vm10, 1.0, %v19638_v10  ;;  %v11268_v61 = vsel %vm7892_vm11, 1.0, %v19638_v10  ;;  %v11269_v49 = vsel %vm7893_vm12, 1.0, %v19638_v10  ;;  %v11270_v5 = vsel %vm7894_vm13, 1.0, %v19638_v10  ;;  %v19658_v26 = vld [vmem:[#allocation64_spill] sm:$0xff]  ;;  %v19659_v57 = vld [vmem:[#allocation102_spill] sm:$0xff] }
 0x472   :  { %v7987_v36 = vmul.f32 %v18551_v34, %v11267_v53  ;;  %v7988_v50 = vmul.f32 %v18557_v58, %v11268_v61  ;;  %v7989_v60 = vmul.f32 %v18563_v47, %v11269_v49  ;;  %v7990_v11 = vmul.f32 %v18569_v41, %v11270_v5 }
 0x473   :  { %vm10859_vm14 = vcmp.le.f32.partialorder %v18424_v27, %v10818_v3  ;;  %vm10860_vm15 = vcmp.le.f32.partialorder %v18442_v33, %v10818_v3  ;;  %vm10861_vm1 = vcmp.le.f32.partialorder %v18243_v42, %v10818_v3  ;;  %vm7874_vm2 = vcmp.lt.s32.totalorder %v7872_v38, %v7873_v63 }
 0x474   :  { %v8028_v12 = vsel %vm6029_vm0, %v7987_v36, 0.0  ;;  %v8029_v35 = vsel %vm6029_vm0, %v7988_v50, 0.0  ;;  %v8031_v20 = vsel %vm6029_vm0, %v7989_v60, 0.0  ;;  %vm10862_vm3 = vcmp.le.f32.partialorder %v18367_v62, %v10818_v3 }
 0x475   :  { %v8030_v59 = vadd.f32 %v8029_v35, %v8028_v12  ;;  %v10891_v27 = vsel %vm10859_vm14, 0, %v19478_v39  ;;  %v8033_v33 = vsel %vm6029_vm0, %v7990_v11, 0.0  ;;  %v7875_v13 = vsel %vm7874_vm2, %v7872_v38, %v7873_v63 }
 0x476   :  { %v10892_v42 = vsel %vm10860_vm15, 1, %v19478_v39  ;;  %v10893_v24 = vsel %vm10861_vm1, 2, %v19478_v39  ;;  %vm7877_vm4 = vcmp.lt.s32.totalorder %v7875_v13, %v7876_v32  ;;  %v10941_v40 = vsel %vm6029_vm0, %v10891_v27, 2147483647 }
 0x477   :  { %v8032_v15 = vadd.f32 %v8031_v20, %v8030_v59  ;;  %v10942_v30 = vsel %vm6029_vm0, %v10892_v42, 2147483647  ;;  %v7878_v2 = vsel %vm7877_vm4, %v7875_v13, %v7876_v32  ;;  %v10894_v9 = vsel %vm10862_vm3, 3, %v19478_v39 }
 0x478   :  { %vm10943_vm5 = vcmp.lt.s32.totalorder %v10941_v40, %v10942_v30  ;;  %v10945_v62 = vsel %vm6029_vm0, %v10893_v24, 2147483647  ;;  %vm7907_vm6 = vcmp.eq.s32.totalorder %v7878_v2, 0  ;;  %vm7908_vm7 = vcmp.eq.s32.totalorder %v7878_v2, 1  ;;  %v10790_v24 = vpop.xlane.xlu1 %10789 }
 0x479   :  { %v8034_v54 = vadd.f32 %v8033_v33, %v8032_v15  ;;  %vm7909_vm8 = vcmp.eq.s32.totalorder %v7878_v2, 2  ;;  %vm7910_vm9 = vcmp.eq.s32.totalorder %v7878_v2, 3  ;;  %v11283_v17 = vsel %vm7907_vm6, 1.0, %v19638_v10 }
 0x47a   :  { %v11284_v1 = vsel %vm7908_vm7, 1.0, %v19638_v10  ;;  %v11285_v0 = vsel %vm7909_vm8, 1.0, %v19638_v10  ;;  %v11286_v37 = vsel %vm7910_vm9, 1.0, %v19638_v10  ;;  %v8003_v4 = vmul.f32 %v18602_v46, %v11283_v17 }
 0x47b   :  { %11290 = vst [vmem:[%s18718_s5 + $0x2c] sm:$0x7] %v8034_v54  ;;  %v8004_v23 = vmul.f32 %v18608_v51, %v11284_v1  ;;  %v8005_v56 = vmul.f32 %v18614_v44, %v11285_v0  ;;  %v8006_v31 = vmul.f32 %v18620_v52, %v11286_v37  ;;  %v10944_v7 = vsel %vm10943_vm5, %v10941_v40, %v10942_v30 }
 0x47c   :  { %v10948_v16 = vsel %vm6029_vm0, %v10894_v9, 2147483647  ;;  %vm10871_vm10 = vcmp.le.f32.partialorder %v19658_v26, %v18581_v22  ;;  %v8056_v55 = vsel %vm6029_vm0, %v8003_v4, 0.0  ;;  %vm10946_vm11 = vcmp.lt.s32.totalorder %v10944_v7, %v10945_v62 }
 0x47d   :  { %v8057_v63 = vsel %vm6029_vm0, %v8004_v23, 0.0  ;;  %vm10872_vm12 = vcmp.le.f32.partialorder %v19659_v57, %v18581_v22  ;;  %v8059_v3 = vsel %vm6029_vm0, %v8005_v56, 0.0  ;;  %v10947_v53 = vsel %vm10946_vm11, %v10944_v7, %v10945_v62 }
 0x47e   :  { %v8058_v32 = vadd.f32 %v8057_v63, %v8056_v55  ;;  %vm10873_vm13 = vcmp.le.f32.partialorder %v18198_v43, %v18581_v22  ;;  %v8061_v61 = vsel %vm6029_vm0, %v8006_v31, 0.0  ;;  %vm10949_vm14 = vcmp.lt.s32.totalorder %v10947_v53, %v10948_v16 }
 0x47f   :  { %vm10874_vm15 = vcmp.le.f32.partialorder %v18481_v14, %v18581_v22  ;;  %v10903_v49 = vsel %vm10871_vm10, 0, %v19478_v39  ;;  %v10950_v36 = vsel %vm10949_vm14, %v10947_v53, %v10948_v16  ;;  %v10904_v50 = vsel %vm10872_vm12, 1, %v19478_v39 }
 0x480   :  { %v8060_v5 = vadd.f32 %v8059_v3, %v8058_v32  ;;  %v10905_v60 = vsel %vm10873_vm13, 2, %v19478_v39  ;;  %vm11003_vm1 = vcmp.eq.s32.totalorder %v10950_v36, 0  ;;  %vm11004_vm2 = vcmp.eq.s32.totalorder %v10950_v36, 1 }
 0x481   :  { %vm11005_vm3 = vcmp.eq.s32.totalorder %v10950_v36, 2  ;;  %vm11006_vm4 = vcmp.eq.s32.totalorder %v10950_v36, 3  ;;  %v11365_v43 = vsel %vm11003_vm1, 1.0, %v19638_v10  ;;  %v11366_v38 = vsel %vm11004_vm2, 1.0, %v19638_v10 }
 0x482   :  { %v8062_v11 = vadd.f32 %v8061_v61, %v8060_v5  ;;  %v11367_v12 = vsel %vm11005_vm3, 1.0, %v19638_v10  ;;  %v11368_v35 = vsel %vm11006_vm4, 1.0, %v19638_v10  ;;  %v11099_v20 = vmul.f32 %v18551_v34, %v11365_v43 }
 0x483   :  { %v11100_v59 = vmul.f32 %v18557_v58, %v11366_v38  ;;  %v11101_v27 = vmul.f32 %v18563_v47, %v11367_v12  ;;  %v10906_v33 = vsel %vm10874_vm15, 3, %v19478_v39  ;;  %v10971_v13 = vsel %vm6029_vm0, %v10903_v49, 2147483647 }
 0x484   :  { %11294 = vst [vmem:[%s18718_s5 + $0x3c] sm:$0x7] %v8062_v11  ;;  %v10972_v42 = vsel %vm6029_vm0, %v10904_v50, 2147483647  ;;  %v11102_v34 = vmul.f32 %v18569_v41, %v11368_v35  ;;  %v11140_v58 = vsel %vm6029_vm0, %v11099_v20, 0.0  ;;  %v10843_v15 = vsel %vm6029_vm0, %v18287_v45, inf }
 0x485   :  { %v11141_v47 = vsel %vm6029_vm0, %v11100_v59, 0.0  ;;  %vm10973_vm5 = vcmp.lt.s32.totalorder %v10971_v13, %v10972_v42  ;;  %v10975_v14 = vsel %vm6029_vm0, %v10905_v60, 2147483647  ;;  %v11143_v22 = vsel %vm6029_vm0, %v11101_v27, 0.0 }
 0x486   :  { %v11142_v40 = vadd.f32 %v11141_v47, %v11140_v58  ;;  %v10974_v30 = vsel %vm10973_vm5, %v10971_v13, %v10972_v42  ;;  %v10844_v2 = vmin.f32 %v10842_v25, %v10843_v15  ;;  %v10845_v41 = vsel %vm6029_vm0, %v10790_v24, inf }
 0x487   :  { %vm10976_vm6 = vcmp.lt.s32.totalorder %v10974_v30, %v10975_v14  ;;  %v10978_v54 = vsel %vm6029_vm0, %v10906_v33, 2147483647  ;;  %v11145_v17 = vsel %vm6029_vm0, %v11102_v34, 0.0 }
 0x488   :  { %v11144_v9 = vadd.f32 %v11143_v22, %v11142_v40  ;;  %v10977_v62 = vsel %vm10976_vm6, %v10974_v30, %v10975_v14  ;;  %v10846_v37 = vmin.f32 %v10844_v2, %v10845_v41 }
 0x489   :  { %vm10979_vm7 = vcmp.lt.s32.totalorder %v10977_v62, %v10978_v54 }
 0x48a   :  { %v11146_v1 = vadd.f32 %v11145_v17, %v11144_v9  ;;  %v10980_v0 = vsel %vm10979_vm7, %v10977_v62, %v10978_v54  ;;  %vm10875_vm12 = vcmp.le.f32.partialorder %v18451_v48, %v10846_v37  ;;  %vm10876_vm13 = vcmp.le.f32.partialorder %v18476_v28, %v10846_v37 }
 0x48b   :  { %vm11015_vm8 = vcmp.eq.s32.totalorder %v10980_v0, 0  ;;  %vm11016_vm9 = vcmp.eq.s32.totalorder %v10980_v0, 1  ;;  %vm11017_vm10 = vcmp.eq.s32.totalorder %v10980_v0, 2  ;;  %vm11018_vm11 = vcmp.eq.s32.totalorder %v10980_v0, 3 }
 0x48c   :  { %11388 = vst [vmem:[%s18718_s5 + $0x6c] sm:$0x7] %v11146_v1  ;;  %v11377_v29 = vsel %vm11015_vm8, 1.0, %v19638_v10  ;;  %v11378_v8 = vsel %vm11016_vm9, 1.0, %v19638_v10  ;;  %v11379_v25 = vsel %vm11017_vm10, 1.0, %v19638_v10  ;;  %v11380_v4 = vsel %vm11018_vm11, 1.0, %v19638_v10 }
 0x48d   :  { %v11111_v23 = vmul.f32 %v18334_v18, %v11377_v29  ;;  %v11112_v56 = vmul.f32 %v18340_v21, %v11378_v8  ;;  %v11113_v31 = vmul.f32 %v18346_v19, %v11379_v25  ;;  %vm10877_vm14 = vcmp.le.f32.partialorder %v18287_v45, %v10846_v37 }
 0x48e   :  { %v11114_v7 = vmul.f32 %v18352_v6, %v11380_v4  ;;  %vm10878_vm15 = vcmp.le.f32.partialorder %v10790_v24, %v10846_v37  ;;  %v10907_v18 = vsel %vm10875_vm12, 0, %v19478_v39  ;;  %v10908_v21 = vsel %vm10876_vm13, 1, %v19478_v39 }
 0x48f   :  { %v11161_v16 = vsel %vm6029_vm0, %v11111_v23, 0.0  ;;  %v11162_v26 = vsel %vm6029_vm0, %v11112_v56, 0.0  ;;  %v10909_v19 = vsel %vm10877_vm14, 2, %v19478_v39  ;;  %v11164_v48 = vsel %vm6029_vm0, %v11113_v31, 0.0 }
 0x490   :  { %v11163_v55 = vadd.f32 %v11162_v26, %v11161_v16  ;;  %v10981_v28 = vsel %vm6029_vm0, %v10907_v18, 2147483647  ;;  %v10982_v45 = vsel %vm6029_vm0, %v10908_v21, 2147483647  ;;  %v10910_v6 = vsel %vm10878_vm15, 3, %v19478_v39 }
 0x491   :  { %vm10983_vm1 = vcmp.lt.s32.totalorder %v10981_v28, %v10982_v45  ;;  %v11166_v57 = vsel %vm6029_vm0, %v11114_v7, 0.0  ;;  %v10985_v3 = vsel %vm6029_vm0, %v10909_v19, 2147483647  ;;  %v10988_v49 = vsel %vm6029_vm0, %v10910_v6, 2147483647 }
 0x492   :  { %v11165_v63 = vadd.f32 %v11164_v48, %v11163_v55  ;;  %v10984_v32 = vsel %vm10983_vm1, %v10981_v28, %v10982_v45 }
 0x493   :  { %vm10986_vm2 = vcmp.lt.s32.totalorder %v10984_v32, %v10985_v3 }
 0x494   :  { %v11167_v53 = vadd.f32 %v11166_v57, %v11165_v63  ;;  %v10987_v61 = vsel %vm10986_vm2, %v10984_v32, %v10985_v3 }
 0x495   :  { %vm10989_vm3 = vcmp.lt.s32.totalorder %v10987_v61, %v10988_v49 }
 0x496   :  { %11391 = vst [vmem:[%s18718_s5 + $0x78] sm:$0x7] %v11167_v53  ;;  %v10990_v5 = vsel %vm10989_vm3, %v10987_v61, %v10988_v49 }
 0x497   :  { %vm11019_vm4 = vcmp.eq.s32.totalorder %v10990_v5, 0  ;;  %vm11020_vm5 = vcmp.eq.s32.totalorder %v10990_v5, 1  ;;  %vm11021_vm6 = vcmp.eq.s32.totalorder %v10990_v5, 2  ;;  %vm11022_vm7 = vcmp.eq.s32.totalorder %v10990_v5, 3 }
 0x498   :  { %v11381_v39 = vsel %vm11019_vm4, 1.0, %v19638_v10  ;;  %v11382_v36 = vsel %vm11020_vm5, 1.0, %v19638_v10  ;;  %v11383_v50 = vsel %vm11021_vm6, 1.0, %v19638_v10  ;;  %v11384_v60 = vsel %vm11022_vm7, 1.0, %v19638_v10 }
 0x499   :  { %v11115_v11 = vmul.f32 %v18602_v46, %v11381_v39  ;;  %v11116_v43 = vmul.f32 %v18608_v51, %v11382_v36  ;;  %v11117_v38 = vmul.f32 %v18614_v44, %v11383_v50  ;;  %v11118_v12 = vmul.f32 %v18620_v52, %v11384_v60 }
 0x49b   :  { %v11168_v35 = vsel %vm6029_vm0, %v11115_v11, 0.0  ;;  %v11169_v20 = vsel %vm6029_vm0, %v11116_v43, 0.0  ;;  %v11171_v27 = vsel %vm6029_vm0, %v11117_v38, 0.0  ;;  %v11173_v13 = vsel %vm6029_vm0, %v11118_v12, 0.0 }
 0x49c   :  { %v11170_v59 = vadd.f32 %v11169_v20, %v11168_v35 }
 0x49e   :  { %v11172_v33 = vadd.f32 %v11171_v27, %v11170_v59 }
 0x4a0   :  { %v11174_v42 = vadd.f32 %v11173_v13, %v11172_v33 }
 0x4a2   :  { %11392 = vst [vmem:[%s18718_s5 + $0x7c] sm:$0x7] %v11174_v42 }
 0x4a3   :  { %11188 = vsyncpa [#allocation3], 1 }

</bundles_post_ra>
